<compile_context>
chip_gen: v6e
topology: v6e:2x2x1
jax: 0.10.0
libtpu: 0.0.40
codegen_flags: <defaults>
</compile_context>

<pallas_src>
import functools

import jax
import jax.numpy as jnp
import numpy as np
from jax.experimental import pallas as pl
from jax.experimental.pallas import tpu as pltpu

BN_EPS = 1e-5


def _round_up(x, m):
    return ((x + m - 1) // m) * m


# ----------------------------------------------------------------------------
# Pallas kernels
# ----------------------------------------------------------------------------
def _gemm_epilogue_kernel(*refs, relu, has_residual, shared_lhs):
    """Grouped, tiled GEMM with fused shift (+residual) + ReLU epilogue.

    Grid = (G, M/tm, N/tn, K/tk); K is the innermost ("arbitrary") axis and the
    f32 accumulator scratch persists across it.
    """
    if has_residual:
        a_ref, b_ref, shift_ref, res_ref, o_ref, acc_ref = refs
    else:
        a_ref, b_ref, shift_ref, o_ref, acc_ref = refs
        res_ref = None

    k = pl.program_id(3)

    @pl.when(k == 0)
    def _():
        acc_ref[...] = jnp.zeros_like(acc_ref)

    a = a_ref[...] if shared_lhs else a_ref[0]
    acc_ref[...] += jnp.dot(a, b_ref[0], preferred_element_type=jnp.float32)

    @pl.when(k == pl.num_programs(3) - 1)
    def _():
        out = acc_ref[...] + shift_ref[0]          # f32 epilogue (v5e-friendly)
        if has_residual:
            out = out + res_ref[0].astype(jnp.float32)
        if relu:
            out = jnp.maximum(out, 0.0)
        o_ref[0] = out.astype(o_ref.dtype)


def grouped_gemm(A, B, shift, residual=None, relu=True, out_dtype=jnp.bfloat16):
    """out[g] = maybe_relu(A[g] @ B[g] + shift[g] (+ residual[g])).

    A: (G, M, K) bf16 im2col patches, or (M, K) if the LHS is shared by all
       groups (the group index is then ignored by the LHS index_map).
    B: (G, K, N) bf16 (BN scale pre-folded), shift: (G, N) f32,
    residual: (G, M, N) bf16 or None.
    """
    shared_lhs = (A.ndim == 2)
    if shared_lhs:
        M, K = A.shape
    else:
        _, M, K = A.shape
    G, _, N = B.shape

    Mr = _round_up(M, 8)
    tm = min(Mr, 128)
    Mp = _round_up(M, tm)
    Nr = _round_up(N, 128)
    tn = min(Nr, 256)
    Np = _round_up(N, tn)
    Kr = _round_up(K, 128)
    tk = Kr if Kr <= 1024 else 512
    Kp = _round_up(K, tk)

    if shared_lhs:
        Ap = jnp.pad(A.astype(jnp.bfloat16), ((0, Mp - M), (0, Kp - K)))
        a_spec = pl.BlockSpec((tm, tk), lambda g, i, j, k: (i, k))
    else:
        Ap = jnp.pad(A.astype(jnp.bfloat16),
                     ((0, 0), (0, Mp - M), (0, Kp - K)))
        a_spec = pl.BlockSpec((1, tm, tk), lambda g, i, j, k: (g, i, k))
    Bp = jnp.pad(B.astype(jnp.bfloat16), ((0, 0), (0, Kp - K), (0, Np - N)))
    shiftp = jnp.pad(shift.astype(jnp.float32),
                     ((0, 0), (0, Np - N))).reshape(G, 1, Np)

    in_specs = [
        a_spec,
        pl.BlockSpec((1, tk, tn), lambda g, i, j, k: (g, k, j)),
        pl.BlockSpec((1, 1, tn), lambda g, i, j, k: (g, 0, j)),
    ]
    args = [Ap, Bp, shiftp]
    has_residual = residual is not None
    if has_residual:
        resp = jnp.pad(residual.astype(jnp.bfloat16),
                       ((0, 0), (0, Mp - M), (0, Np - N)))
        in_specs.append(pl.BlockSpec((1, tm, tn), lambda g, i, j, k: (g, i, j)))
        args.append(resp)

    kernel = functools.partial(_gemm_epilogue_kernel, relu=relu,
                               has_residual=has_residual, shared_lhs=shared_lhs)
    out = pl.pallas_call(
        kernel,
        out_shape=jax.ShapeDtypeStruct((G, Mp, Np), out_dtype),
        grid=(G, Mp // tm, Np // tn, Kp // tk),
        in_specs=in_specs,
        out_specs=pl.BlockSpec((1, tm, tn), lambda g, i, j, k: (g, i, j)),
        scratch_shapes=[pltpu.VMEM((tm, tn), jnp.float32)],
        compiler_params=pltpu.CompilerParams(
            dimension_semantics=("parallel", "parallel", "parallel",
                                 "arbitrary")),
    )(*args)
    return out[:, :M, :N]


def _max_pool_kernel(x_ref, o_ref):
    # x: (M, 9, C) with C on the lane axis; reduce over the window axis.
    o_ref[...] = jnp.max(x_ref[...], axis=1)


def _gap_mlp_head_kernel(x_ref, w1_ref, b1_ref, w2_ref, b2_ref, w3_ref, b3_ref,
                         o_ref):
    """Fused GAP + fc1/relu + fc2/relu + fc3 head.

    x: (2, NB, HW, C) final feature maps of both stems. Mean-pool over HW,
    combine the two stems' 512-d features by splitting the fc1 weight in two
    (avoids an in-kernel concatenate), keep all intermediates in VMEM/vregs.
    """
    C = x_ref.shape[-1]
    x = x_ref[...].astype(jnp.float32)
    pooled = jnp.mean(x, axis=2)                                  # (2, NB, C)
    h0 = pooled[0].astype(jnp.bfloat16)
    h1 = pooled[1].astype(jnp.bfloat16)
    z = (jnp.dot(h0, w1_ref[:C, :], preferred_element_type=jnp.float32)
         + jnp.dot(h1, w1_ref[C:, :], preferred_element_type=jnp.float32)
         + b1_ref[...])
    z = jnp.maximum(z, 0.0).astype(jnp.bfloat16)
    z = jnp.dot(z, w2_ref[...], preferred_element_type=jnp.float32) + b2_ref[...]
    z = jnp.maximum(z, 0.0).astype(jnp.bfloat16)
    z = jnp.dot(z, w3_ref[...], preferred_element_type=jnp.float32) + b3_ref[...]
    o_ref[...] = z


def gap_mlp_head(x, w1, b1, w2, b2, w3, b3):
    # x: (2, NB, HW, C) bf16 -> (NB, 2) f32 in a single pallas_call.
    _, NB, _, _ = x.shape
    full = lambda s: pl.BlockSpec(s, lambda i: (0,) * len(s))
    return pl.pallas_call(
        _gap_mlp_head_kernel,
        out_shape=jax.ShapeDtypeStruct((NB, w3.shape[1]), jnp.float32),
        grid=(1,),
        in_specs=[full(x.shape), full(w1.shape), full(b1.shape),
                  full(w2.shape), full(b2.shape), full(w3.shape),
                  full(b3.shape)],
        out_specs=full((NB, w3.shape[1])),
    )(x, w1, b1, w2, b2, w3, b3)


# ----------------------------------------------------------------------------
# Glue: im2col, grouped conv+bn+relu, pooling wrappers
# ----------------------------------------------------------------------------
# TODO(synk): im2col still materializes kh*kw shifted copies of the activation
# in HBM; a fully fused version would stream patches into the GEMM's K loop
# with manual DMA instead.
def _extract_patches(x, kh, kw, stride, pad, pad_value=0.0):
    # x: (N, H, W, C) -> (N, Ho, Wo, kh*kw, C)
    N, H, W, C = x.shape
    xp = jnp.pad(x, ((0, 0), (pad, pad), (pad, pad), (0, 0)),
                 constant_values=pad_value)
    Ho = (H + 2 * pad - kh) // stride + 1
    Wo = (W + 2 * pad - kw) // stride + 1
    views = []
    for i in range(kh):
        for j in range(kw):
            views.append(xp[:, i:i + stride * (Ho - 1) + 1:stride,
                             j:j + stride * (Wo - 1) + 1:stride, :])
    patches = jnp.stack(views, axis=3)
    return patches, Ho, Wo


def grouped_conv_bn_act(x, B, shift, kh, kw, stride, pad, relu, residual=None,
                        shared_input=False):
    # x: (G, NB, H, W, Cin) bf16, or (NB, H, W, Cin) if shared across groups.
    # B: (G, kh*kw*Cin, Cout) bf16; shift: (G, Cout) f32.
    if shared_input:
        NB, H, W, Cin = x.shape
        flat = x
    else:
        G, NB, H, W, Cin = x.shape
        flat = x.reshape(G * NB, H, W, Cin)
    Gw = B.shape[0]
    Cout = B.shape[-1]
    patches, Ho, Wo = _extract_patches(flat, kh, kw, stride, pad)
    if shared_input:
        A = patches.reshape(NB * Ho * Wo, kh * kw * Cin)
    else:
        A = patches.reshape(Gw, NB * Ho * Wo, kh * kw * Cin)
    res_flat = None
    if residual is not None:
        res_flat = residual.reshape(Gw, NB * Ho * Wo, Cout)
    out = grouped_gemm(A, B, shift, residual=res_flat, relu=relu)
    return out.reshape(Gw, NB, Ho, Wo, Cout)


def grouped_max_pool_3x3_s2(x):
    # x: (G, NB, H, W, C) -> (G, NB, Ho, Wo, C), single pallas_call.
    G, NB, H, W, C = x.shape
    patches, Ho, Wo = _extract_patches(x.reshape(G * NB, H, W, C), 3, 3, 2, 1,
                                       pad_value=-jnp.inf)
    stacked = patches.reshape(G * NB * Ho * Wo, 9, C)
    M = stacked.shape[0]
    out = pl.pallas_call(
        _max_pool_kernel,
        out_shape=jax.ShapeDtypeStruct((M, C), x.dtype),
        grid=(1,),
        in_specs=[pl.BlockSpec((M, 9, C), lambda i: (0, 0, 0))],
        out_specs=pl.BlockSpec((M, C), lambda i: (0, 0)),
    )(stacked)
    return out.reshape(G, NB, Ho, Wo, C)


# ----------------------------------------------------------------------------
# Deterministic parameter initialization (synthetic weights, no checkpoint)
# ----------------------------------------------------------------------------
def _conv_params(key, cout, cin, kh, kw):
    return 0.05 * jax.random.normal(key, (cout, cin, kh, kw), jnp.float32)


def _bn_params(key, c):
    k1, k2, k3, k4 = jax.random.split(key, 4)
    gamma = 1.0 + 0.1 * jax.random.normal(k1, (c,), jnp.float32)
    beta = 0.1 * jax.random.normal(k2, (c,), jnp.float32)
    mean = 0.1 * jax.random.normal(k3, (c,), jnp.float32)
    var = 1.0 + 0.1 * jnp.abs(jax.random.normal(k4, (c,), jnp.float32))
    scale = gamma / jnp.sqrt(var + BN_EPS)          # eval-mode BN folded into
    shift = beta - mean * scale                     # a per-channel scale/shift
    return scale, shift


def _linear_params(key, out_f, in_f):
    k1, k2 = jax.random.split(key)
    bound = 1.0 / np.sqrt(in_f)
    w = jax.random.uniform(k1, (out_f, in_f), jnp.float32, -bound, bound)
    b = jax.random.uniform(k2, (out_f,), jnp.float32, -bound, bound)
    return w, b


def init_resnet18(key, in_channels):
    keys = iter(jax.random.split(key, 64))
    params = {
        'conv1': _conv_params(next(keys), 64, in_channels, 7, 7),
        'bn1': _bn_params(next(keys), 64),
    }
    layers = []
    in_c = 64
    for s, c in enumerate([64, 128, 256, 512]):
        blocks = []
        for b in range(2):
            stride = 2 if (s > 0 and b == 0) else 1
            blk = {
                'conv1': _conv_params(next(keys), c, in_c, 3, 3),
                'bn1': _bn_params(next(keys), c),
                'conv2': _conv_params(next(keys), c, c, 3, 3),
                'bn2': _bn_params(next(keys), c),
            }
            if stride != 1 or in_c != c:
                blk['ds_conv'] = _conv_params(next(keys), c, in_c, 1, 1)
                blk['ds_bn'] = _bn_params(next(keys), c)
            blocks.append(blk)
            in_c = c
        layers.append(blocks)
    params['layers'] = layers
    return params


def _prep_conv(w, bn):
    # Fold BN scale into the GEMM B matrix; keep the shift for the epilogue.
    scale, shift = bn
    Cout, Cin, kh, kw = w.shape
    B = jnp.transpose(w, (2, 3, 1, 0)).reshape(kh * kw * Cin, Cout)
    B = (B * scale[None, :]).astype(jnp.bfloat16)
    return B, shift.astype(jnp.float32)


def prep_resnet18(params):
    prep = {'conv1': _prep_conv(params['conv1'], params['bn1'])}
    layers = []
    for blocks in params['layers']:
        pblocks = []
        for blk in blocks:
            p = {'c1': _prep_conv(blk['conv1'], blk['bn1']),
                 'c2': _prep_conv(blk['conv2'], blk['bn2'])}
            if 'ds_conv' in blk:
                p['ds'] = _prep_conv(blk['ds_conv'], blk['ds_bn'])
            pblocks.append(p)
        layers.append(pblocks)
    prep['layers'] = layers
    return prep


def stack_stems(prep1, prep2):
    # Stack the two (identically-shaped) stems on a leading group axis G=2.
    return jax.tree_util.tree_map(lambda a, b: jnp.stack([a, b], axis=0),
                                  prep1, prep2)


def grouped_resnet18_trunk(prep, x_shared):
    # x_shared: (NB, H, W, Cin) bf16 (same input feeds both stems)
    # -> (2, NB, Hf, Wf, 512) bf16 final feature map.
    B, sh = prep['conv1']
    x = grouped_conv_bn_act(x_shared, B, sh, 7, 7, stride=2, pad=3, relu=True,
                            shared_input=True)
    x = grouped_max_pool_3x3_s2(x)
    for s, blocks in enumerate(prep['layers']):
        for b, blk in enumerate(blocks):
            stride = 2 if (s > 0 and b == 0) else 1
            identity = x
            B1, sh1 = blk['c1']
            out = grouped_conv_bn_act(x, B1, sh1, 3, 3, stride, 1, relu=True)
            if 'ds' in blk:
                Bd, shd = blk['ds']
                identity = grouped_conv_bn_act(x, Bd, shd, 1, 1, stride, 0,
                                               relu=False)
            B2, sh2 = blk['c2']
            x = grouped_conv_bn_act(out, B2, sh2, 3, 3, 1, 1, relu=True,
                                    residual=identity)
    return x


@jax.jit
def _pe_h_network(prep_stacked, fc_params, obs_nchw):
    # obs_nchw: (NB, 4F, H, W) -> (NB, 2); both stems + all seekers batched.
    x = jnp.transpose(obs_nchw, (0, 2, 3, 1)).astype(jnp.bfloat16)     # NHWC
    feats = grouped_resnet18_trunk(prep_stacked, x)      # (2, NB, Hf, Wf, 512)
    G, NB, Hf, Wf, C = feats.shape
    feats = feats.reshape(G, NB, Hf * Wf, C)
    (w1, b1), (w2, b2), (w3, b3) = fc_params
    return gap_mlp_head(feats, w1, b1, w2, b2, w3, b3)


# ----------------------------------------------------------------------------
# PE_H equivalent (replay-buffer state is host-side Python glue, like PyTorch)
# ----------------------------------------------------------------------------
class PE_H:
    def __init__(self, num_of_frames, decision_frequency, num_of_seekers, key):
        k1, k2, k3, k4, k5 = jax.random.split(key, 5)
        in_ch = 4 * num_of_frames
        raw1 = init_resnet18(k1, in_ch)
        raw2 = init_resnet18(k2, in_ch)
        self.stems = stack_stems(prep_resnet18(raw1), prep_resnet18(raw2))

        def prep_fc(p):
            w, b = p
            return (jnp.transpose(w).astype(jnp.bfloat16),
                    b.reshape(1, -1).astype(jnp.float32))

        self.fc_params = (prep_fc(_linear_params(k3, 256, 512 * 2)),
                          prep_fc(_linear_params(k4, 128, 256)),
                          prep_fc(_linear_params(k5, 2, 128)))
        self.num_of_frames = num_of_frames
        self.num_of_frames_per_second = int(1 / decision_frequency)
        self.num_of_seekers = num_of_seekers
        self.replay_buffer = [[] for _ in range(num_of_seekers)]
        self.last_id = [0 for _ in range(num_of_seekers)]

    def forward(self, *input_tensor):
        x, idt = input_tensor
        if idt.shape[0] != 1:
            idt_col = jnp.squeeze(idt[:, 2])
        else:
            idt_col = idt[:, 2]
        # Single host sync for the replay-buffer bookkeeping (instead of one
        # per seeker inside the loop).
        idt_host = np.asarray(jax.device_get(idt_col)).reshape(-1)

        x = jnp.concatenate([obs for obs in x], axis=0)             # (4*S, H, W)
        output = jnp.zeros((self.num_of_seekers, 2), jnp.float32)
        if x.shape[0] == 4 * self.num_of_seekers:
            obs_batch, valid = [], []
            for i in range(self.num_of_seekers):
                obs1 = x[4 * i:4 * (i + 1), :, :][None]             # (1,4,H,W)
                if obs1.shape[1] == 4:
                    if float(idt_host[i]) > self.last_id[i]:
                        self.replay_buffer[i] = []
                    self.last_id[i] = float(idt_host[i])
                    cap = (self.num_of_frames - 1) * self.num_of_frames_per_second + 1
                    if len(self.replay_buffer[i]) < cap:
                        self.replay_buffer[i].append(obs1)
                    else:
                        self.replay_buffer[i].pop(0)
                        self.replay_buffer[i].append(obs1)
                    obs_list = []
                    L = len(self.replay_buffer[i])
                    nfps = self.num_of_frames_per_second
                    for m in range(self.num_of_frames):
                        if L > nfps * m and L <= nfps * (m + 1):
                            for f in range(m):
                                obs_list.append(self.replay_buffer[i][-1 - f * nfps])
                            for _ in range(self.num_of_frames - m):
                                obs_list.append(self.replay_buffer[i][-1 - m * nfps])
                            break
                    obs_list.reverse()
                    # (original code prints the frame indices; omitted here)
                    obs1 = jnp.concatenate(obs_list, axis=1)        # (1, 4*F, H, W)
                if obs1.shape[1] == 4 * self.num_of_frames:
                    obs_batch.append(obs1)
                    valid.append(i)
            if obs_batch:
                batch = jnp.concatenate(obs_batch, axis=0)          # (NB, 4F, H, W)
                rows = _pe_h_network(self.stems, self.fc_params, batch)
                output = output.at[jnp.array(valid, dtype=jnp.int32), :].set(rows)
        return output


# ----------------------------------------------------------------------------
if __name__ == "__main__":
    key = jax.random.PRNGKey(0)
    k_params, k_x = jax.random.split(key)

    num_of_frames = 1
    decision_frequency = 0.5        # -> num_of_frames_per_second = 2
    num_of_seekers = 2
    H = W = 16

    model = PE_H(num_of_frames, decision_frequency, num_of_seekers, k_params)

    x = jax.random.normal(k_x, (num_of_seekers, 4, H, W), jnp.float32)
    id_arr = jnp.array([[0.0, 0.0, 1.0],
                        [0.0, 0.0, 1.0]], jnp.float32)

    out = model.forward(x, id_arr)
    out = jax.block_until_ready(out)
    assert out.shape == (num_of_seekers, 2)
    assert bool(jnp.all(jnp.isfinite(out)))
    print("KERNEL_OK")
</pallas_src>

<mosaic_0001>
module attributes {stable_mosaic.version = 11 : i64} {
  func.func @_gemm_epilogue_kernel(%arg0: i32, %arg1: i32, %arg2: i32, %arg3: i32, %arg4: memref<128x256xbf16, #tpu.memory_space<vmem>>, %arg5: memref<1x256x128xbf16, #tpu.memory_space<vmem>>, %arg6: memref<1x1x128xf32, #tpu.memory_space<vmem>>, %arg7: memref<1x128x128xbf16, #tpu.memory_space<vmem>>, %arg8: memref<128x128xf32, #tpu.memory_space<vmem>>) attributes {dimension_semantics = [#tpu.dimension_semantics<parallel>, #tpu.dimension_semantics<parallel>, #tpu.dimension_semantics<parallel>, #tpu.dimension_semantics<arbitrary>], iteration_bounds = array<i64: 2, 1, 1, 1>, scalar_prefetch = 0 : i64, scratch_operands = 1 : i64, tpu.core_type = #tpu.core_type<tc>, window_params = [{transform_indices = @transform_0, window_bounds = array<i64: 128, 256>}, {transform_indices = @transform_1, window_bounds = array<i64: 1, 256, 128>}, {transform_indices = @transform_2, window_bounds = array<i64: 1, 1, 128>}, {transform_indices = @transform_3, window_bounds = array<i64: 1, 128, 128>}]} {
    %c0_i32 = arith.constant 0 : i32
    %0 = arith.cmpi eq, %arg3, %c0_i32 : i32
    %1 = arith.extui %0 : i1 to i32
    %c0_i32_0 = arith.constant 0 : i32
    %2 = arith.cmpi ne, %1, %c0_i32_0 : i32
    scf.if %2 {
      %cst_11 = arith.constant 0.000000e+00 : f32
      %13 = vector.broadcast %cst_11 : f32 to vector<128x128xf32>
      %c0_12 = arith.constant 0 : index
      %c0_13 = arith.constant 0 : index
      %14 = vector.load %arg8[%c0_12, %c0_13] : memref<128x128xf32, #tpu.memory_space<vmem>>, vector<128x128xf32>
      tpu.vector_store %arg8[%c0_12, %c0_13], %13 {strides = array<i32>} : memref<128x128xf32, #tpu.memory_space<vmem>>, vector<128x128xf32>,
    } else {
    }
    %c0 = arith.constant 0 : index
    %c0_1 = arith.constant 0 : index
    %3 = vector.load %arg4[%c0, %c0_1] : memref<128x256xbf16, #tpu.memory_space<vmem>>, vector<128x256xbf16>
    %c0_2 = arith.constant 0 : index
    %c0_3 = arith.constant 0 : index
    %4 = vector.load %arg8[%c0_2, %c0_3] : memref<128x128xf32, #tpu.memory_space<vmem>>, vector<128x128xf32>
    %c0_4 = arith.constant 0 : index
    %c0_5 = arith.constant 0 : index
    %c0_6 = arith.constant 0 : index
    %5 = vector.load %arg5[%c0_4, %c0_5, %c0_6] : memref<1x256x128xbf16, #tpu.memory_space<vmem>>, vector<1x256x128xbf16>
    %6 = vector.shape_cast %5 : vector<1x256x128xbf16> to vector<256x128xbf16>
    %cst = arith.constant dense<0.000000e+00> : vector<128x128xf32>
    %7 = tpu.matmul %3, %6, %cst {dimension_numbers = #tpu.dot_dimension_numbers<[1], [0], [0], [1], [0, 0, 1, 1], [], []>} : vector<128x256xbf16>, vector<256x128xbf16>, vector<128x128xf32> -> vector<128x128xf32>
    %8 = arith.addf %4, %7 : vector<128x128xf32>
    %c0_7 = arith.constant 0 : index
    %c0_8 = arith.constant 0 : index
    %9 = vector.load %arg8[%c0_7, %c0_8] : memref<128x128xf32, #tpu.memory_space<vmem>>, vector<128x128xf32>
    tpu.vector_store %arg8[%c0_7, %c0_8], %8 {strides = array<i32>} : memref<128x128xf32, #tpu.memory_space<vmem>>, vector<128x128xf32>,
    %c0_i32_9 = arith.constant 0 : i32
    %10 = arith.cmpi eq, %arg3, %c0_i32_9 : i32
    %11 = arith.extui %10 : i1 to i32
    %c0_i32_10 = arith.constant 0 : i32
    %12 = arith.cmpi ne, %11, %c0_i32_10 : i32
    scf.if %12 {
      %c0_11 = arith.constant 0 : index
      %c0_12 = arith.constant 0 : index
      %13 = vector.load %arg8[%c0_11, %c0_12] : memref<128x128xf32, #tpu.memory_space<vmem>>, vector<128x128xf32>
      %c0_13 = arith.constant 0 : index
      %c0_14 = arith.constant 0 : index
      %c0_15 = arith.constant 0 : index
      %14 = vector.load %arg6[%c0_13, %c0_14, %c0_15] : memref<1x1x128xf32, #tpu.memory_space<vmem>>, vector<1x1x128xf32>
      %15 = vector.shape_cast %14 : vector<1x1x128xf32> to vector<1x128xf32>
      %16 = vector.broadcast %15 : vector<1x128xf32> to vector<128x128xf32>
      %17 = arith.addf %13, %16 : vector<128x128xf32>
      %cst_16 = arith.constant 0.000000e+00 : f32
      %18 = vector.broadcast %cst_16 : f32 to vector<128x128xf32>
      %19 = arith.maximumf %17, %18 : vector<128x128xf32>
      %20 = arith.truncf %19 : vector<128x128xf32> to vector<128x128xbf16>
      %c0_17 = arith.constant 0 : index
      %c0_18 = arith.constant 0 : index
      %c0_19 = arith.constant 0 : index
      %21 = vector.load %arg7[%c0_17, %c0_18, %c0_19] : memref<1x128x128xbf16, #tpu.memory_space<vmem>>, vector<1x128x128xbf16>
      %22 = vector.shape_cast %21 : vector<1x128x128xbf16> to vector<128x128xbf16>
      %23 = vector.shape_cast %20 : vector<128x128xbf16> to vector<1x128x128xbf16>
      tpu.vector_store %arg7[%c0_17, %c0_18, %c0_19], %23 {strides = array<i32>} : memref<1x128x128xbf16, #tpu.memory_space<vmem>>, vector<1x128x128xbf16>,
    } else {
    }
    return
  }
  func.func @transform_0(%arg0: i32, %arg1: i32, %arg2: i32, %arg3: i32) -> (i32, i32) {
    %c0_i32 = arith.constant 0 : i32
    return %arg1, %arg3 : i32, i32
  }
  func.func @transform_1(%arg0: i32, %arg1: i32, %arg2: i32, %arg3: i32) -> (i32, i32, i32) {
    %c0_i32 = arith.constant 0 : i32
    return %arg0, %arg3, %arg2 : i32, i32, i32
  }
  func.func @transform_2(%arg0: i32, %arg1: i32, %arg2: i32, %arg3: i32) -> (i32, i32, i32) {
    %c0_i32 = arith.constant 0 : i32
    %c0_i32_0 = arith.constant 0 : i32
    return %arg0, %c0_i32, %arg2 : i32, i32, i32
  }
  func.func @transform_3(%arg0: i32, %arg1: i32, %arg2: i32, %arg3: i32) -> (i32, i32, i32) {
    %c0_i32 = arith.constant 0 : i32
    return %arg0, %arg1, %arg2 : i32, i32, i32
  }
}

module attributes {stable_mosaic.version = 11 : i64} {
  func.func @_max_pool_kernel(%arg0: i32, %arg1: memref<64x9x64xbf16, #tpu.memory_space<vmem>>, %arg2: memref<64x64xbf16, #tpu.memory_space<vmem>>) attributes {dimension_semantics = [#tpu.dimension_semantics<arbitrary>], iteration_bounds = array<i64: 1>, scalar_prefetch = 0 : i64, scratch_operands = 0 : i64, tpu.core_type = #tpu.core_type<tc>, window_params = [{pipeline_mode = #tpu.pipeline_mode<synchronous>, transform_indices = @transform_0, window_bounds = array<i64: 64, 9, 64>}, {pipeline_mode = #tpu.pipeline_mode<synchronous>, transform_indices = @transform_1, window_bounds = array<i64: 64, 64>}]} {
    %c0 = arith.constant 0 : index
    %c0_0 = arith.constant 0 : index
    %c0_1 = arith.constant 0 : index
    %0 = vector.load %arg1[%c0, %c0_0, %c0_1] : memref<64x9x64xbf16, #tpu.memory_space<vmem>>, vector<64x9x64xbf16>
    %cst = arith.constant dense<0xFF80> : vector<64x64xbf16>
    %1 = vector.multi_reduction <maximumf>, %0, %cst [1] : vector<64x9x64xbf16> to vector<64x64xbf16>
    %c0_2 = arith.constant 0 : index
    %c0_3 = arith.constant 0 : index
    %2 = vector.load %arg2[%c0_2, %c0_3] : memref<64x64xbf16, #tpu.memory_space<vmem>>, vector<64x64xbf16>
    tpu.vector_store %arg2[%c0_2, %c0_3], %1 {strides = array<i32>} : memref<64x64xbf16, #tpu.memory_space<vmem>>, vector<64x64xbf16>,
    return
  }
  func.func @transform_0(%arg0: i32) -> (i32, i32, i32) {
    %c0_i32 = arith.constant 0 : i32
    %c0_i32_0 = arith.constant 0 : i32
    %c0_i32_1 = arith.constant 0 : i32
    %c0_i32_2 = arith.constant 0 : i32
    return %c0_i32, %c0_i32_0, %c0_i32_1 : i32, i32, i32
  }
  func.func @transform_1(%arg0: i32) -> (i32, i32) {
    %c0_i32 = arith.constant 0 : i32
    %c0_i32_0 = arith.constant 0 : i32
    %c0_i32_1 = arith.constant 0 : i32
    return %c0_i32, %c0_i32_0 : i32, i32
  }
}

module attributes {stable_mosaic.version = 11 : i64} {
  func.func @_gemm_epilogue_kernel(%arg0: i32, %arg1: i32, %arg2: i32, %arg3: i32, %arg4: memref<1x32x640xbf16, #tpu.memory_space<vmem>>, %arg5: memref<1x640x128xbf16, #tpu.memory_space<vmem>>, %arg6: memref<1x1x128xf32, #tpu.memory_space<vmem>>, %arg7: memref<1x32x128xbf16, #tpu.memory_space<vmem>>, %arg8: memref<32x128xf32, #tpu.memory_space<vmem>>) attributes {dimension_semantics = [#tpu.dimension_semantics<parallel>, #tpu.dimension_semantics<parallel>, #tpu.dimension_semantics<parallel>, #tpu.dimension_semantics<arbitrary>], iteration_bounds = array<i64: 2, 1, 1, 1>, scalar_prefetch = 0 : i64, scratch_operands = 1 : i64, tpu.core_type = #tpu.core_type<tc>, window_params = [{transform_indices = @transform_0, window_bounds = array<i64: 1, 32, 640>}, {transform_indices = @transform_1, window_bounds = array<i64: 1, 640, 128>}, {transform_indices = @transform_2, window_bounds = array<i64: 1, 1, 128>}, {transform_indices = @transform_3, window_bounds = array<i64: 1, 32, 128>}]} {
    %c0_i32 = arith.constant 0 : i32
    %0 = arith.cmpi eq, %arg3, %c0_i32 : i32
    %1 = arith.extui %0 : i1 to i32
    %c0_i32_0 = arith.constant 0 : i32
    %2 = arith.cmpi ne, %1, %c0_i32_0 : i32
    scf.if %2 {
      %cst_12 = arith.constant 0.000000e+00 : f32
      %14 = vector.broadcast %cst_12 : f32 to vector<32x128xf32>
      %c0_13 = arith.constant 0 : index
      %c0_14 = arith.constant 0 : index
      %15 = vector.load %arg8[%c0_13, %c0_14] : memref<32x128xf32, #tpu.memory_space<vmem>>, vector<32x128xf32>
      tpu.vector_store %arg8[%c0_13, %c0_14], %14 {strides = array<i32>} : memref<32x128xf32, #tpu.memory_space<vmem>>, vector<32x128xf32>,
    } else {
    }
    %c0 = arith.constant 0 : index
    %c0_1 = arith.constant 0 : index
    %c0_2 = arith.constant 0 : index
    %3 = vector.load %arg4[%c0, %c0_1, %c0_2] : memref<1x32x640xbf16, #tpu.memory_space<vmem>>, vector<1x32x640xbf16>
    %4 = vector.shape_cast %3 : vector<1x32x640xbf16> to vector<32x640xbf16>
    %c0_3 = arith.constant 0 : index
    %c0_4 = arith.constant 0 : index
    %5 = vector.load %arg8[%c0_3, %c0_4] : memref<32x128xf32, #tpu.memory_space<vmem>>, vector<32x128xf32>
    %c0_5 = arith.constant 0 : index
    %c0_6 = arith.constant 0 : index
    %c0_7 = arith.constant 0 : index
    %6 = vector.load %arg5[%c0_5, %c0_6, %c0_7] : memref<1x640x128xbf16, #tpu.memory_space<vmem>>, vector<1x640x128xbf16>
    %7 = vector.shape_cast %6 : vector<1x640x128xbf16> to vector<640x128xbf16>
    %cst = arith.constant dense<0.000000e+00> : vector<32x128xf32>
    %8 = tpu.matmul %4, %7, %cst {dimension_numbers = #tpu.dot_dimension_numbers<[1], [0], [0], [1], [0, 0, 1, 1], [], []>} : vector<32x640xbf16>, vector<640x128xbf16>, vector<32x128xf32> -> vector<32x128xf32>
    %9 = arith.addf %5, %8 : vector<32x128xf32>
    %c0_8 = arith.constant 0 : index
    %c0_9 = arith.constant 0 : index
    %10 = vector.load %arg8[%c0_8, %c0_9] : memref<32x128xf32, #tpu.memory_space<vmem>>, vector<32x128xf32>
    tpu.vector_store %arg8[%c0_8, %c0_9], %9 {strides = array<i32>} : memref<32x128xf32, #tpu.memory_space<vmem>>, vector<32x128xf32>,
    %c0_i32_10 = arith.constant 0 : i32
    %11 = arith.cmpi eq, %arg3, %c0_i32_10 : i32
    %12 = arith.extui %11 : i1 to i32
    %c0_i32_11 = arith.constant 0 : i32
    %13 = arith.cmpi ne, %12, %c0_i32_11 : i32
    scf.if %13 {
      %c0_12 = arith.constant 0 : index
      %c0_13 = arith.constant 0 : index
      %14 = vector.load %arg8[%c0_12, %c0_13] : memref<32x128xf32, #tpu.memory_space<vmem>>, vector<32x128xf32>
      %c0_14 = arith.constant 0 : index
      %c0_15 = arith.constant 0 : index
      %c0_16 = arith.constant 0 : index
      %15 = vector.load %arg6[%c0_14, %c0_15, %c0_16] : memref<1x1x128xf32, #tpu.memory_space<vmem>>, vector<1x1x128xf32>
      %16 = vector.shape_cast %15 : vector<1x1x128xf32> to vector<1x128xf32>
      %17 = vector.broadcast %16 : vector<1x128xf32> to vector<32x128xf32>
      %18 = arith.addf %14, %17 : vector<32x128xf32>
      %cst_17 = arith.constant 0.000000e+00 : f32
      %19 = vector.broadcast %cst_17 : f32 to vector<32x128xf32>
      %20 = arith.maximumf %18, %19 : vector<32x128xf32>
      %21 = arith.truncf %20 : vector<32x128xf32> to vector<32x128xbf16>
      %c0_18 = arith.constant 0 : index
      %c0_19 = arith.constant 0 : index
      %c0_20 = arith.constant 0 : index
      %22 = vector.load %arg7[%c0_18, %c0_19, %c0_20] : memref<1x32x128xbf16, #tpu.memory_space<vmem>>, vector<1x32x128xbf16>
      %23 = vector.shape_cast %22 : vector<1x32x128xbf16> to vector<32x128xbf16>
      %24 = vector.shape_cast %21 : vector<32x128xbf16> to vector<1x32x128xbf16>
      tpu.vector_store %arg7[%c0_18, %c0_19, %c0_20], %24 {strides = array<i32>} : memref<1x32x128xbf16, #tpu.memory_space<vmem>>, vector<1x32x128xbf16>,
    } else {
    }
    return
  }
  func.func @transform_0(%arg0: i32, %arg1: i32, %arg2: i32, %arg3: i32) -> (i32, i32, i32) {
    %c0_i32 = arith.constant 0 : i32
    return %arg0, %arg1, %arg3 : i32, i32, i32
  }
  func.func @transform_1(%arg0: i32, %arg1: i32, %arg2: i32, %arg3: i32) -> (i32, i32, i32) {
    %c0_i32 = arith.constant 0 : i32
    return %arg0, %arg3, %arg2 : i32, i32, i32
  }
  func.func @transform_2(%arg0: i32, %arg1: i32, %arg2: i32, %arg3: i32) -> (i32, i32, i32) {
    %c0_i32 = arith.constant 0 : i32
    %c0_i32_0 = arith.constant 0 : i32
    return %arg0, %c0_i32, %arg2 : i32, i32, i32
  }
  func.func @transform_3(%arg0: i32, %arg1: i32, %arg2: i32, %arg3: i32) -> (i32, i32, i32) {
    %c0_i32 = arith.constant 0 : i32
    return %arg0, %arg1, %arg2 : i32, i32, i32
  }
}

module attributes {stable_mosaic.version = 11 : i64} {
  func.func @_gemm_epilogue_kernel(%arg0: i32, %arg1: i32, %arg2: i32, %arg3: i32, %arg4: memref<1x32x640xbf16, #tpu.memory_space<vmem>>, %arg5: memref<1x640x128xbf16, #tpu.memory_space<vmem>>, %arg6: memref<1x1x128xf32, #tpu.memory_space<vmem>>, %arg7: memref<1x32x128xbf16, #tpu.memory_space<vmem>>, %arg8: memref<1x32x128xbf16, #tpu.memory_space<vmem>>, %arg9: memref<32x128xf32, #tpu.memory_space<vmem>>) attributes {dimension_semantics = [#tpu.dimension_semantics<parallel>, #tpu.dimension_semantics<parallel>, #tpu.dimension_semantics<parallel>, #tpu.dimension_semantics<arbitrary>], iteration_bounds = array<i64: 2, 1, 1, 1>, scalar_prefetch = 0 : i64, scratch_operands = 1 : i64, tpu.core_type = #tpu.core_type<tc>, window_params = [{transform_indices = @transform_0, window_bounds = array<i64: 1, 32, 640>}, {transform_indices = @transform_1, window_bounds = array<i64: 1, 640, 128>}, {transform_indices = @transform_2, window_bounds = array<i64: 1, 1, 128>}, {transform_indices = @transform_3, window_bounds = array<i64: 1, 32, 128>}, {transform_indices = @transform_4, window_bounds = array<i64: 1, 32, 128>}]} {
    %c0_i32 = arith.constant 0 : i32
    %0 = arith.cmpi eq, %arg3, %c0_i32 : i32
    %1 = arith.extui %0 : i1 to i32
    %c0_i32_0 = arith.constant 0 : i32
    %2 = arith.cmpi ne, %1, %c0_i32_0 : i32
    scf.if %2 {
      %cst_12 = arith.constant 0.000000e+00 : f32
      %14 = vector.broadcast %cst_12 : f32 to vector<32x128xf32>
      %c0_13 = arith.constant 0 : index
      %c0_14 = arith.constant 0 : index
      %15 = vector.load %arg9[%c0_13, %c0_14] : memref<32x128xf32, #tpu.memory_space<vmem>>, vector<32x128xf32>
      tpu.vector_store %arg9[%c0_13, %c0_14], %14 {strides = array<i32>} : memref<32x128xf32, #tpu.memory_space<vmem>>, vector<32x128xf32>,
    } else {
    }
    %c0 = arith.constant 0 : index
    %c0_1 = arith.constant 0 : index
    %c0_2 = arith.constant 0 : index
    %3 = vector.load %arg4[%c0, %c0_1, %c0_2] : memref<1x32x640xbf16, #tpu.memory_space<vmem>>, vector<1x32x640xbf16>
    %4 = vector.shape_cast %3 : vector<1x32x640xbf16> to vector<32x640xbf16>
    %c0_3 = arith.constant 0 : index
    %c0_4 = arith.constant 0 : index
    %5 = vector.load %arg9[%c0_3, %c0_4] : memref<32x128xf32, #tpu.memory_space<vmem>>, vector<32x128xf32>
    %c0_5 = arith.constant 0 : index
    %c0_6 = arith.constant 0 : index
    %c0_7 = arith.constant 0 : index
    %6 = vector.load %arg5[%c0_5, %c0_6, %c0_7] : memref<1x640x128xbf16, #tpu.memory_space<vmem>>, vector<1x640x128xbf16>
    %7 = vector.shape_cast %6 : vector<1x640x128xbf16> to vector<640x128xbf16>
    %cst = arith.constant dense<0.000000e+00> : vector<32x128xf32>
    %8 = tpu.matmul %4, %7, %cst {dimension_numbers = #tpu.dot_dimension_numbers<[1], [0], [0], [1], [0, 0, 1, 1], [], []>} : vector<32x640xbf16>, vector<640x128xbf16>, vector<32x128xf32> -> vector<32x128xf32>
    %9 = arith.addf %5, %8 : vector<32x128xf32>
    %c0_8 = arith.constant 0 : index
    %c0_9 = arith.constant 0 : index
    %10 = vector.load %arg9[%c0_8, %c0_9] : memref<32x128xf32, #tpu.memory_space<vmem>>, vector<32x128xf32>
    tpu.vector_store %arg9[%c0_8, %c0_9], %9 {strides = array<i32>} : memref<32x128xf32, #tpu.memory_space<vmem>>, vector<32x128xf32>,
    %c0_i32_10 = arith.constant 0 : i32
    %11 = arith.cmpi eq, %arg3, %c0_i32_10 : i32
    %12 = arith.extui %11 : i1 to i32
    %c0_i32_11 = arith.constant 0 : i32
    %13 = arith.cmpi ne, %12, %c0_i32_11 : i32
    scf.if %13 {
      %c0_12 = arith.constant 0 : index
      %c0_13 = arith.constant 0 : index
      %14 = vector.load %arg9[%c0_12, %c0_13] : memref<32x128xf32, #tpu.memory_space<vmem>>, vector<32x128xf32>
      %c0_14 = arith.constant 0 : index
      %c0_15 = arith.constant 0 : index
      %c0_16 = arith.constant 0 : index
      %15 = vector.load %arg6[%c0_14, %c0_15, %c0_16] : memref<1x1x128xf32, #tpu.memory_space<vmem>>, vector<1x1x128xf32>
      %16 = vector.shape_cast %15 : vector<1x1x128xf32> to vector<1x128xf32>
      %17 = vector.broadcast %16 : vector<1x128xf32> to vector<32x128xf32>
      %18 = arith.addf %14, %17 : vector<32x128xf32>
      %c0_17 = arith.constant 0 : index
      %c0_18 = arith.constant 0 : index
      %c0_19 = arith.constant 0 : index
      %19 = vector.load %arg7[%c0_17, %c0_18, %c0_19] : memref<1x32x128xbf16, #tpu.memory_space<vmem>>, vector<1x32x128xbf16>
      %20 = vector.shape_cast %19 : vector<1x32x128xbf16> to vector<32x128xbf16>
      %21 = arith.extf %20 : vector<32x128xbf16> to vector<32x128xf32>
      %22 = arith.addf %18, %21 : vector<32x128xf32>
      %cst_20 = arith.constant 0.000000e+00 : f32
      %23 = vector.broadcast %cst_20 : f32 to vector<32x128xf32>
      %24 = arith.maximumf %22, %23 : vector<32x128xf32>
      %25 = arith.truncf %24 : vector<32x128xf32> to vector<32x128xbf16>
      %c0_21 = arith.constant 0 : index
      %c0_22 = arith.constant 0 : index
      %c0_23 = arith.constant 0 : index
      %26 = vector.load %arg8[%c0_21, %c0_22, %c0_23] : memref<1x32x128xbf16, #tpu.memory_space<vmem>>, vector<1x32x128xbf16>
      %27 = vector.shape_cast %26 : vector<1x32x128xbf16> to vector<32x128xbf16>
      %28 = vector.shape_cast %25 : vector<32x128xbf16> to vector<1x32x128xbf16>
      tpu.vector_store %arg8[%c0_21, %c0_22, %c0_23], %28 {strides = array<i32>} : memref<1x32x128xbf16, #tpu.memory_space<vmem>>, vector<1x32x128xbf16>,
    } else {
    }
    return
  }
  func.func @transform_0(%arg0: i32, %arg1: i32, %arg2: i32, %arg3: i32) -> (i32, i32, i32) {
    %c0_i32 = arith.constant 0 : i32
    return %arg0, %arg1, %arg3 : i32, i32, i32
  }
  func.func @transform_1(%arg0: i32, %arg1: i32, %arg2: i32, %arg3: i32) -> (i32, i32, i32) {
    %c0_i32 = arith.constant 0 : i32
    return %arg0, %arg3, %arg2 : i32, i32, i32
  }
  func.func @transform_2(%arg0: i32, %arg1: i32, %arg2: i32, %arg3: i32) -> (i32, i32, i32) {
    %c0_i32 = arith.constant 0 : i32
    %c0_i32_0 = arith.constant 0 : i32
    return %arg0, %c0_i32, %arg2 : i32, i32, i32
  }
  func.func @transform_3(%arg0: i32, %arg1: i32, %arg2: i32, %arg3: i32) -> (i32, i32, i32) {
    %c0_i32 = arith.constant 0 : i32
    return %arg0, %arg1, %arg2 : i32, i32, i32
  }
  func.func @transform_4(%arg0: i32, %arg1: i32, %arg2: i32, %arg3: i32) -> (i32, i32, i32) {
    %c0_i32 = arith.constant 0 : i32
    return %arg0, %arg1, %arg2 : i32, i32, i32
  }
}

module attributes {stable_mosaic.version = 11 : i64} {
  func.func @_gemm_epilogue_kernel(%arg0: i32, %arg1: i32, %arg2: i32, %arg3: i32, %arg4: memref<1x8x640xbf16, #tpu.memory_space<vmem>>, %arg5: memref<1x640x128xbf16, #tpu.memory_space<vmem>>, %arg6: memref<1x1x128xf32, #tpu.memory_space<vmem>>, %arg7: memref<1x8x128xbf16, #tpu.memory_space<vmem>>, %arg8: memref<8x128xf32, #tpu.memory_space<vmem>>) attributes {dimension_semantics = [#tpu.dimension_semantics<parallel>, #tpu.dimension_semantics<parallel>, #tpu.dimension_semantics<parallel>, #tpu.dimension_semantics<arbitrary>], iteration_bounds = array<i64: 2, 1, 1, 1>, scalar_prefetch = 0 : i64, scratch_operands = 1 : i64, tpu.core_type = #tpu.core_type<tc>, window_params = [{transform_indices = @transform_0, window_bounds = array<i64: 1, 8, 640>}, {transform_indices = @transform_1, window_bounds = array<i64: 1, 640, 128>}, {transform_indices = @transform_2, window_bounds = array<i64: 1, 1, 128>}, {transform_indices = @transform_3, window_bounds = array<i64: 1, 8, 128>}]} {
    %c0_i32 = arith.constant 0 : i32
    %0 = arith.cmpi eq, %arg3, %c0_i32 : i32
    %1 = arith.extui %0 : i1 to i32
    %c0_i32_0 = arith.constant 0 : i32
    %2 = arith.cmpi ne, %1, %c0_i32_0 : i32
    scf.if %2 {
      %cst_12 = arith.constant 0.000000e+00 : f32
      %14 = vector.broadcast %cst_12 : f32 to vector<8x128xf32>
      %c0_13 = arith.constant 0 : index
      %c0_14 = arith.constant 0 : index
      %15 = vector.load %arg8[%c0_13, %c0_14] : memref<8x128xf32, #tpu.memory_space<vmem>>, vector<8x128xf32>
      tpu.vector_store %arg8[%c0_13, %c0_14], %14 {strides = array<i32>} : memref<8x128xf32, #tpu.memory_space<vmem>>, vector<8x128xf32>,
    } else {
    }
    %c0 = arith.constant 0 : index
    %c0_1 = arith.constant 0 : index
    %c0_2 = arith.constant 0 : index
    %3 = vector.load %arg4[%c0, %c0_1, %c0_2] : memref<1x8x640xbf16, #tpu.memory_space<vmem>>, vector<1x8x640xbf16>
    %4 = vector.shape_cast %3 : vector<1x8x640xbf16> to vector<8x640xbf16>
    %c0_3 = arith.constant 0 : index
    %c0_4 = arith.constant 0 : index
    %5 = vector.load %arg8[%c0_3, %c0_4] : memref<8x128xf32, #tpu.memory_space<vmem>>, vector<8x128xf32>
    %c0_5 = arith.constant 0 : index
    %c0_6 = arith.constant 0 : index
    %c0_7 = arith.constant 0 : index
    %6 = vector.load %arg5[%c0_5, %c0_6, %c0_7] : memref<1x640x128xbf16, #tpu.memory_space<vmem>>, vector<1x640x128xbf16>
    %7 = vector.shape_cast %6 : vector<1x640x128xbf16> to vector<640x128xbf16>
    %cst = arith.constant dense<0.000000e+00> : vector<8x128xf32>
    %8 = tpu.matmul %4, %7, %cst {dimension_numbers = #tpu.dot_dimension_numbers<[1], [0], [0], [1], [0, 0, 1, 1], [], []>} : vector<8x640xbf16>, vector<640x128xbf16>, vector<8x128xf32> -> vector<8x128xf32>
    %9 = arith.addf %5, %8 : vector<8x128xf32>
    %c0_8 = arith.constant 0 : index
    %c0_9 = arith.constant 0 : index
    %10 = vector.load %arg8[%c0_8, %c0_9] : memref<8x128xf32, #tpu.memory_space<vmem>>, vector<8x128xf32>
    tpu.vector_store %arg8[%c0_8, %c0_9], %9 {strides = array<i32>} : memref<8x128xf32, #tpu.memory_space<vmem>>, vector<8x128xf32>,
    %c0_i32_10 = arith.constant 0 : i32
    %11 = arith.cmpi eq, %arg3, %c0_i32_10 : i32
    %12 = arith.extui %11 : i1 to i32
    %c0_i32_11 = arith.constant 0 : i32
    %13 = arith.cmpi ne, %12, %c0_i32_11 : i32
    scf.if %13 {
      %c0_12 = arith.constant 0 : index
      %c0_13 = arith.constant 0 : index
      %14 = vector.load %arg8[%c0_12, %c0_13] : memref<8x128xf32, #tpu.memory_space<vmem>>, vector<8x128xf32>
      %c0_14 = arith.constant 0 : index
      %c0_15 = arith.constant 0 : index
      %c0_16 = arith.constant 0 : index
      %15 = vector.load %arg6[%c0_14, %c0_15, %c0_16] : memref<1x1x128xf32, #tpu.memory_space<vmem>>, vector<1x1x128xf32>
      %16 = vector.shape_cast %15 : vector<1x1x128xf32> to vector<1x128xf32>
      %17 = vector.broadcast %16 : vector<1x128xf32> to vector<8x128xf32>
      %18 = arith.addf %14, %17 : vector<8x128xf32>
      %cst_17 = arith.constant 0.000000e+00 : f32
      %19 = vector.broadcast %cst_17 : f32 to vector<8x128xf32>
      %20 = arith.maximumf %18, %19 : vector<8x128xf32>
      %21 = arith.truncf %20 : vector<8x128xf32> to vector<8x128xbf16>
      %c0_18 = arith.constant 0 : index
      %c0_19 = arith.constant 0 : index
      %c0_20 = arith.constant 0 : index
      %22 = vector.load %arg7[%c0_18, %c0_19, %c0_20] : memref<1x8x128xbf16, #tpu.memory_space<vmem>>, vector<1x8x128xbf16>
      %23 = vector.shape_cast %22 : vector<1x8x128xbf16> to vector<8x128xbf16>
      %24 = vector.shape_cast %21 : vector<8x128xbf16> to vector<1x8x128xbf16>
      tpu.vector_store %arg7[%c0_18, %c0_19, %c0_20], %24 {strides = array<i32>} : memref<1x8x128xbf16, #tpu.memory_space<vmem>>, vector<1x8x128xbf16>,
    } else {
    }
    return
  }
  func.func @transform_0(%arg0: i32, %arg1: i32, %arg2: i32, %arg3: i32) -> (i32, i32, i32) {
    %c0_i32 = arith.constant 0 : i32
    return %arg0, %arg1, %arg3 : i32, i32, i32
  }
  func.func @transform_1(%arg0: i32, %arg1: i32, %arg2: i32, %arg3: i32) -> (i32, i32, i32) {
    %c0_i32 = arith.constant 0 : i32
    return %arg0, %arg3, %arg2 : i32, i32, i32
  }
  func.func @transform_2(%arg0: i32, %arg1: i32, %arg2: i32, %arg3: i32) -> (i32, i32, i32) {
    %c0_i32 = arith.constant 0 : i32
    %c0_i32_0 = arith.constant 0 : i32
    return %arg0, %c0_i32, %arg2 : i32, i32, i32
  }
  func.func @transform_3(%arg0: i32, %arg1: i32, %arg2: i32, %arg3: i32) -> (i32, i32, i32) {
    %c0_i32 = arith.constant 0 : i32
    return %arg0, %arg1, %arg2 : i32, i32, i32
  }
}

module attributes {stable_mosaic.version = 11 : i64} {
  func.func @_gemm_epilogue_kernel(%arg0: i32, %arg1: i32, %arg2: i32, %arg3: i32, %arg4: memref<1x8x128xbf16, #tpu.memory_space<vmem>>, %arg5: memref<1x128x128xbf16, #tpu.memory_space<vmem>>, %arg6: memref<1x1x128xf32, #tpu.memory_space<vmem>>, %arg7: memref<1x8x128xbf16, #tpu.memory_space<vmem>>, %arg8: memref<8x128xf32, #tpu.memory_space<vmem>>) attributes {dimension_semantics = [#tpu.dimension_semantics<parallel>, #tpu.dimension_semantics<parallel>, #tpu.dimension_semantics<parallel>, #tpu.dimension_semantics<arbitrary>], iteration_bounds = array<i64: 2, 1, 1, 1>, scalar_prefetch = 0 : i64, scratch_operands = 1 : i64, tpu.core_type = #tpu.core_type<tc>, window_params = [{transform_indices = @transform_0, window_bounds = array<i64: 1, 8, 128>}, {transform_indices = @transform_1, window_bounds = array<i64: 1, 128, 128>}, {transform_indices = @transform_2, window_bounds = array<i64: 1, 1, 128>}, {transform_indices = @transform_3, window_bounds = array<i64: 1, 8, 128>}]} {
    %c0_i32 = arith.constant 0 : i32
    %0 = arith.cmpi eq, %arg3, %c0_i32 : i32
    %1 = arith.extui %0 : i1 to i32
    %c0_i32_0 = arith.constant 0 : i32
    %2 = arith.cmpi ne, %1, %c0_i32_0 : i32
    scf.if %2 {
      %cst_12 = arith.constant 0.000000e+00 : f32
      %14 = vector.broadcast %cst_12 : f32 to vector<8x128xf32>
      %c0_13 = arith.constant 0 : index
      %c0_14 = arith.constant 0 : index
      %15 = vector.load %arg8[%c0_13, %c0_14] : memref<8x128xf32, #tpu.memory_space<vmem>>, vector<8x128xf32>
      tpu.vector_store %arg8[%c0_13, %c0_14], %14 {strides = array<i32>} : memref<8x128xf32, #tpu.memory_space<vmem>>, vector<8x128xf32>,
    } else {
    }
    %c0 = arith.constant 0 : index
    %c0_1 = arith.constant 0 : index
    %c0_2 = arith.constant 0 : index
    %3 = vector.load %arg4[%c0, %c0_1, %c0_2] : memref<1x8x128xbf16, #tpu.memory_space<vmem>>, vector<1x8x128xbf16>
    %4 = vector.shape_cast %3 : vector<1x8x128xbf16> to vector<8x128xbf16>
    %c0_3 = arith.constant 0 : index
    %c0_4 = arith.constant 0 : index
    %5 = vector.load %arg8[%c0_3, %c0_4] : memref<8x128xf32, #tpu.memory_space<vmem>>, vector<8x128xf32>
    %c0_5 = arith.constant 0 : index
    %c0_6 = arith.constant 0 : index
    %c0_7 = arith.constant 0 : index
    %6 = vector.load %arg5[%c0_5, %c0_6, %c0_7] : memref<1x128x128xbf16, #tpu.memory_space<vmem>>, vector<1x128x128xbf16>
    %7 = vector.shape_cast %6 : vector<1x128x128xbf16> to vector<128x128xbf16>
    %cst = arith.constant dense<0.000000e+00> : vector<8x128xf32>
    %8 = tpu.matmul %4, %7, %cst {dimension_numbers = #tpu.dot_dimension_numbers<[1], [0], [0], [1], [0, 0, 1, 1], [], []>} : vector<8x128xbf16>, vector<128x128xbf16>, vector<8x128xf32> -> vector<8x128xf32>
    %9 = arith.addf %5, %8 : vector<8x128xf32>
    %c0_8 = arith.constant 0 : index
    %c0_9 = arith.constant 0 : index
    %10 = vector.load %arg8[%c0_8, %c0_9] : memref<8x128xf32, #tpu.memory_space<vmem>>, vector<8x128xf32>
    tpu.vector_store %arg8[%c0_8, %c0_9], %9 {strides = array<i32>} : memref<8x128xf32, #tpu.memory_space<vmem>>, vector<8x128xf32>,
    %c0_i32_10 = arith.constant 0 : i32
    %11 = arith.cmpi eq, %arg3, %c0_i32_10 : i32
    %12 = arith.extui %11 : i1 to i32
    %c0_i32_11 = arith.constant 0 : i32
    %13 = arith.cmpi ne, %12, %c0_i32_11 : i32
    scf.if %13 {
      %c0_12 = arith.constant 0 : index
      %c0_13 = arith.constant 0 : index
      %14 = vector.load %arg8[%c0_12, %c0_13] : memref<8x128xf32, #tpu.memory_space<vmem>>, vector<8x128xf32>
      %c0_14 = arith.constant 0 : index
      %c0_15 = arith.constant 0 : index
      %c0_16 = arith.constant 0 : index
      %15 = vector.load %arg6[%c0_14, %c0_15, %c0_16] : memref<1x1x128xf32, #tpu.memory_space<vmem>>, vector<1x1x128xf32>
      %16 = vector.shape_cast %15 : vector<1x1x128xf32> to vector<1x128xf32>
      %17 = vector.broadcast %16 : vector<1x128xf32> to vector<8x128xf32>
      %18 = arith.addf %14, %17 : vector<8x128xf32>
      %19 = arith.truncf %18 : vector<8x128xf32> to vector<8x128xbf16>
      %c0_17 = arith.constant 0 : index
      %c0_18 = arith.constant 0 : index
      %c0_19 = arith.constant 0 : index
      %20 = vector.load %arg7[%c0_17, %c0_18, %c0_19] : memref<1x8x128xbf16, #tpu.memory_space<vmem>>, vector<1x8x128xbf16>
      %21 = vector.shape_cast %20 : vector<1x8x128xbf16> to vector<8x128xbf16>
      %22 = vector.shape_cast %19 : vector<8x128xbf16> to vector<1x8x128xbf16>
      tpu.vector_store %arg7[%c0_17, %c0_18, %c0_19], %22 {strides = array<i32>} : memref<1x8x128xbf16, #tpu.memory_space<vmem>>, vector<1x8x128xbf16>,
    } else {
    }
    return
  }
  func.func @transform_0(%arg0: i32, %arg1: i32, %arg2: i32, %arg3: i32) -> (i32, i32, i32) {
    %c0_i32 = arith.constant 0 : i32
    return %arg0, %arg1, %arg3 : i32, i32, i32
  }
  func.func @transform_1(%arg0: i32, %arg1: i32, %arg2: i32, %arg3: i32) -> (i32, i32, i32) {
    %c0_i32 = arith.constant 0 : i32
    return %arg0, %arg3, %arg2 : i32, i32, i32
  }
  func.func @transform_2(%arg0: i32, %arg1: i32, %arg2: i32, %arg3: i32) -> (i32, i32, i32) {
    %c0_i32 = arith.constant 0 : i32
    %c0_i32_0 = arith.constant 0 : i32
    return %arg0, %c0_i32, %arg2 : i32, i32, i32
  }
  func.func @transform_3(%arg0: i32, %arg1: i32, %arg2: i32, %arg3: i32) -> (i32, i32, i32) {
    %c0_i32 = arith.constant 0 : i32
    return %arg0, %arg1, %arg2 : i32, i32, i32
  }
}

module attributes {stable_mosaic.version = 11 : i64} {
  func.func @_gemm_epilogue_kernel(%arg0: i32, %arg1: i32, %arg2: i32, %arg3: i32, %arg4: memref<1x8x512xbf16, #tpu.memory_space<vmem>>, %arg5: memref<1x512x128xbf16, #tpu.memory_space<vmem>>, %arg6: memref<1x1x128xf32, #tpu.memory_space<vmem>>, %arg7: memref<1x8x128xbf16, #tpu.memory_space<vmem>>, %arg8: memref<1x8x128xbf16, #tpu.memory_space<vmem>>, %arg9: memref<8x128xf32, #tpu.memory_space<vmem>>) attributes {dimension_semantics = [#tpu.dimension_semantics<parallel>, #tpu.dimension_semantics<parallel>, #tpu.dimension_semantics<parallel>, #tpu.dimension_semantics<arbitrary>], iteration_bounds = array<i64: 2, 1, 1, 3>, scalar_prefetch = 0 : i64, scratch_operands = 1 : i64, tpu.core_type = #tpu.core_type<tc>, window_params = [{transform_indices = @transform_0, window_bounds = array<i64: 1, 8, 512>}, {transform_indices = @transform_1, window_bounds = array<i64: 1, 512, 128>}, {transform_indices = @transform_2, window_bounds = array<i64: 1, 1, 128>}, {transform_indices = @transform_3, window_bounds = array<i64: 1, 8, 128>}, {transform_indices = @transform_4, window_bounds = array<i64: 1, 8, 128>}]} {
    %c0_i32 = arith.constant 0 : i32
    %0 = arith.cmpi eq, %arg3, %c0_i32 : i32
    %1 = arith.extui %0 : i1 to i32
    %c0_i32_0 = arith.constant 0 : i32
    %2 = arith.cmpi ne, %1, %c0_i32_0 : i32
    scf.if %2 {
      %cst_11 = arith.constant 0.000000e+00 : f32
      %14 = vector.broadcast %cst_11 : f32 to vector<8x128xf32>
      %c0_12 = arith.constant 0 : index
      %c0_13 = arith.constant 0 : index
      %15 = vector.load %arg9[%c0_12, %c0_13] : memref<8x128xf32, #tpu.memory_space<vmem>>, vector<8x128xf32>
      tpu.vector_store %arg9[%c0_12, %c0_13], %14 {strides = array<i32>} : memref<8x128xf32, #tpu.memory_space<vmem>>, vector<8x128xf32>,
    } else {
    }
    %c0 = arith.constant 0 : index
    %c0_1 = arith.constant 0 : index
    %c0_2 = arith.constant 0 : index
    %3 = vector.load %arg4[%c0, %c0_1, %c0_2] : memref<1x8x512xbf16, #tpu.memory_space<vmem>>, vector<1x8x512xbf16>
    %4 = vector.shape_cast %3 : vector<1x8x512xbf16> to vector<8x512xbf16>
    %c0_3 = arith.constant 0 : index
    %c0_4 = arith.constant 0 : index
    %5 = vector.load %arg9[%c0_3, %c0_4] : memref<8x128xf32, #tpu.memory_space<vmem>>, vector<8x128xf32>
    %c0_5 = arith.constant 0 : index
    %c0_6 = arith.constant 0 : index
    %c0_7 = arith.constant 0 : index
    %6 = vector.load %arg5[%c0_5, %c0_6, %c0_7] : memref<1x512x128xbf16, #tpu.memory_space<vmem>>, vector<1x512x128xbf16>
    %7 = vector.shape_cast %6 : vector<1x512x128xbf16> to vector<512x128xbf16>
    %cst = arith.constant dense<0.000000e+00> : vector<8x128xf32>
    %8 = tpu.matmul %4, %7, %cst {dimension_numbers = #tpu.dot_dimension_numbers<[1], [0], [0], [1], [0, 0, 1, 1], [], []>} : vector<8x512xbf16>, vector<512x128xbf16>, vector<8x128xf32> -> vector<8x128xf32>
    %9 = arith.addf %5, %8 : vector<8x128xf32>
    %c0_8 = arith.constant 0 : index
    %c0_9 = arith.constant 0 : index
    %10 = vector.load %arg9[%c0_8, %c0_9] : memref<8x128xf32, #tpu.memory_space<vmem>>, vector<8x128xf32>
    tpu.vector_store %arg9[%c0_8, %c0_9], %9 {strides = array<i32>} : memref<8x128xf32, #tpu.memory_space<vmem>>, vector<8x128xf32>,
    %c2_i32 = arith.constant 2 : i32
    %11 = arith.cmpi eq, %arg3, %c2_i32 : i32
    %12 = arith.extui %11 : i1 to i32
    %c0_i32_10 = arith.constant 0 : i32
    %13 = arith.cmpi ne, %12, %c0_i32_10 : i32
    scf.if %13 {
      %c0_11 = arith.constant 0 : index
      %c0_12 = arith.constant 0 : index
      %14 = vector.load %arg9[%c0_11, %c0_12] : memref<8x128xf32, #tpu.memory_space<vmem>>, vector<8x128xf32>
      %c0_13 = arith.constant 0 : index
      %c0_14 = arith.constant 0 : index
      %c0_15 = arith.constant 0 : index
      %15 = vector.load %arg6[%c0_13, %c0_14, %c0_15] : memref<1x1x128xf32, #tpu.memory_space<vmem>>, vector<1x1x128xf32>
      %16 = vector.shape_cast %15 : vector<1x1x128xf32> to vector<1x128xf32>
      %17 = vector.broadcast %16 : vector<1x128xf32> to vector<8x128xf32>
      %18 = arith.addf %14, %17 : vector<8x128xf32>
      %c0_16 = arith.constant 0 : index
      %c0_17 = arith.constant 0 : index
      %c0_18 = arith.constant 0 : index
      %19 = vector.load %arg7[%c0_16, %c0_17, %c0_18] : memref<1x8x128xbf16, #tpu.memory_space<vmem>>, vector<1x8x128xbf16>
      %20 = vector.shape_cast %19 : vector<1x8x128xbf16> to vector<8x128xbf16>
      %21 = arith.extf %20 : vector<8x128xbf16> to vector<8x128xf32>
      %22 = arith.addf %18, %21 : vector<8x128xf32>
      %cst_19 = arith.constant 0.000000e+00 : f32
      %23 = vector.broadcast %cst_19 : f32 to vector<8x128xf32>
      %24 = arith.maximumf %22, %23 : vector<8x128xf32>
      %25 = arith.truncf %24 : vector<8x128xf32> to vector<8x128xbf16>
      %c0_20 = arith.constant 0 : index
      %c0_21 = arith.constant 0 : index
      %c0_22 = arith.constant 0 : index
      %26 = vector.load %arg8[%c0_20, %c0_21, %c0_22] : memref<1x8x128xbf16, #tpu.memory_space<vmem>>, vector<1x8x128xbf16>
      %27 = vector.shape_cast %26 : vector<1x8x128xbf16> to vector<8x128xbf16>
      %28 = vector.shape_cast %25 : vector<8x128xbf16> to vector<1x8x128xbf16>
      tpu.vector_store %arg8[%c0_20, %c0_21, %c0_22], %28 {strides = array<i32>} : memref<1x8x128xbf16, #tpu.memory_space<vmem>>, vector<1x8x128xbf16>,
    } else {
    }
    return
  }
  func.func @transform_0(%arg0: i32, %arg1: i32, %arg2: i32, %arg3: i32) -> (i32, i32, i32) {
    %c0_i32 = arith.constant 0 : i32
    return %arg0, %arg1, %arg3 : i32, i32, i32
  }
  func.func @transform_1(%arg0: i32, %arg1: i32, %arg2: i32, %arg3: i32) -> (i32, i32, i32) {
    %c0_i32 = arith.constant 0 : i32
    return %arg0, %arg3, %arg2 : i32, i32, i32
  }
  func.func @transform_2(%arg0: i32, %arg1: i32, %arg2: i32, %arg3: i32) -> (i32, i32, i32) {
    %c0_i32 = arith.constant 0 : i32
    %c0_i32_0 = arith.constant 0 : i32
    return %arg0, %c0_i32, %arg2 : i32, i32, i32
  }
  func.func @transform_3(%arg0: i32, %arg1: i32, %arg2: i32, %arg3: i32) -> (i32, i32, i32) {
    %c0_i32 = arith.constant 0 : i32
    return %arg0, %arg1, %arg2 : i32, i32, i32
  }
  func.func @transform_4(%arg0: i32, %arg1: i32, %arg2: i32, %arg3: i32) -> (i32, i32, i32) {
    %c0_i32 = arith.constant 0 : i32
    return %arg0, %arg1, %arg2 : i32, i32, i32
  }
}

module attributes {stable_mosaic.version = 11 : i64} {
  func.func @_gemm_epilogue_kernel(%arg0: i32, %arg1: i32, %arg2: i32, %arg3: i32, %arg4: memref<1x8x512xbf16, #tpu.memory_space<vmem>>, %arg5: memref<1x512x128xbf16, #tpu.memory_space<vmem>>, %arg6: memref<1x1x128xf32, #tpu.memory_space<vmem>>, %arg7: memref<1x8x128xbf16, #tpu.memory_space<vmem>>, %arg8: memref<8x128xf32, #tpu.memory_space<vmem>>) attributes {dimension_semantics = [#tpu.dimension_semantics<parallel>, #tpu.dimension_semantics<parallel>, #tpu.dimension_semantics<parallel>, #tpu.dimension_semantics<arbitrary>], iteration_bounds = array<i64: 2, 1, 1, 3>, scalar_prefetch = 0 : i64, scratch_operands = 1 : i64, tpu.core_type = #tpu.core_type<tc>, window_params = [{transform_indices = @transform_0, window_bounds = array<i64: 1, 8, 512>}, {transform_indices = @transform_1, window_bounds = array<i64: 1, 512, 128>}, {transform_indices = @transform_2, window_bounds = array<i64: 1, 1, 128>}, {transform_indices = @transform_3, window_bounds = array<i64: 1, 8, 128>}]} {
    %c0_i32 = arith.constant 0 : i32
    %0 = arith.cmpi eq, %arg3, %c0_i32 : i32
    %1 = arith.extui %0 : i1 to i32
    %c0_i32_0 = arith.constant 0 : i32
    %2 = arith.cmpi ne, %1, %c0_i32_0 : i32
    scf.if %2 {
      %cst_11 = arith.constant 0.000000e+00 : f32
      %14 = vector.broadcast %cst_11 : f32 to vector<8x128xf32>
      %c0_12 = arith.constant 0 : index
      %c0_13 = arith.constant 0 : index
      %15 = vector.load %arg8[%c0_12, %c0_13] : memref<8x128xf32, #tpu.memory_space<vmem>>, vector<8x128xf32>
      tpu.vector_store %arg8[%c0_12, %c0_13], %14 {strides = array<i32>} : memref<8x128xf32, #tpu.memory_space<vmem>>, vector<8x128xf32>,
    } else {
    }
    %c0 = arith.constant 0 : index
    %c0_1 = arith.constant 0 : index
    %c0_2 = arith.constant 0 : index
    %3 = vector.load %arg4[%c0, %c0_1, %c0_2] : memref<1x8x512xbf16, #tpu.memory_space<vmem>>, vector<1x8x512xbf16>
    %4 = vector.shape_cast %3 : vector<1x8x512xbf16> to vector<8x512xbf16>
    %c0_3 = arith.constant 0 : index
    %c0_4 = arith.constant 0 : index
    %5 = vector.load %arg8[%c0_3, %c0_4] : memref<8x128xf32, #tpu.memory_space<vmem>>, vector<8x128xf32>
    %c0_5 = arith.constant 0 : index
    %c0_6 = arith.constant 0 : index
    %c0_7 = arith.constant 0 : index
    %6 = vector.load %arg5[%c0_5, %c0_6, %c0_7] : memref<1x512x128xbf16, #tpu.memory_space<vmem>>, vector<1x512x128xbf16>
    %7 = vector.shape_cast %6 : vector<1x512x128xbf16> to vector<512x128xbf16>
    %cst = arith.constant dense<0.000000e+00> : vector<8x128xf32>
    %8 = tpu.matmul %4, %7, %cst {dimension_numbers = #tpu.dot_dimension_numbers<[1], [0], [0], [1], [0, 0, 1, 1], [], []>} : vector<8x512xbf16>, vector<512x128xbf16>, vector<8x128xf32> -> vector<8x128xf32>
    %9 = arith.addf %5, %8 : vector<8x128xf32>
    %c0_8 = arith.constant 0 : index
    %c0_9 = arith.constant 0 : index
    %10 = vector.load %arg8[%c0_8, %c0_9] : memref<8x128xf32, #tpu.memory_space<vmem>>, vector<8x128xf32>
    tpu.vector_store %arg8[%c0_8, %c0_9], %9 {strides = array<i32>} : memref<8x128xf32, #tpu.memory_space<vmem>>, vector<8x128xf32>,
    %c2_i32 = arith.constant 2 : i32
    %11 = arith.cmpi eq, %arg3, %c2_i32 : i32
    %12 = arith.extui %11 : i1 to i32
    %c0_i32_10 = arith.constant 0 : i32
    %13 = arith.cmpi ne, %12, %c0_i32_10 : i32
    scf.if %13 {
      %c0_11 = arith.constant 0 : index
      %c0_12 = arith.constant 0 : index
      %14 = vector.load %arg8[%c0_11, %c0_12] : memref<8x128xf32, #tpu.memory_space<vmem>>, vector<8x128xf32>
      %c0_13 = arith.constant 0 : index
      %c0_14 = arith.constant 0 : index
      %c0_15 = arith.constant 0 : index
      %15 = vector.load %arg6[%c0_13, %c0_14, %c0_15] : memref<1x1x128xf32, #tpu.memory_space<vmem>>, vector<1x1x128xf32>
      %16 = vector.shape_cast %15 : vector<1x1x128xf32> to vector<1x128xf32>
      %17 = vector.broadcast %16 : vector<1x128xf32> to vector<8x128xf32>
      %18 = arith.addf %14, %17 : vector<8x128xf32>
      %cst_16 = arith.constant 0.000000e+00 : f32
      %19 = vector.broadcast %cst_16 : f32 to vector<8x128xf32>
      %20 = arith.maximumf %18, %19 : vector<8x128xf32>
      %21 = arith.truncf %20 : vector<8x128xf32> to vector<8x128xbf16>
      %c0_17 = arith.constant 0 : index
      %c0_18 = arith.constant 0 : index
      %c0_19 = arith.constant 0 : index
      %22 = vector.load %arg7[%c0_17, %c0_18, %c0_19] : memref<1x8x128xbf16, #tpu.memory_space<vmem>>, vector<1x8x128xbf16>
      %23 = vector.shape_cast %22 : vector<1x8x128xbf16> to vector<8x128xbf16>
      %24 = vector.shape_cast %21 : vector<8x128xbf16> to vector<1x8x128xbf16>
      tpu.vector_store %arg7[%c0_17, %c0_18, %c0_19], %24 {strides = array<i32>} : memref<1x8x128xbf16, #tpu.memory_space<vmem>>, vector<1x8x128xbf16>,
    } else {
    }
    return
  }
  func.func @transform_0(%arg0: i32, %arg1: i32, %arg2: i32, %arg3: i32) -> (i32, i32, i32) {
    %c0_i32 = arith.constant 0 : i32
    return %arg0, %arg1, %arg3 : i32, i32, i32
  }
  func.func @transform_1(%arg0: i32, %arg1: i32, %arg2: i32, %arg3: i32) -> (i32, i32, i32) {
    %c0_i32 = arith.constant 0 : i32
    return %arg0, %arg3, %arg2 : i32, i32, i32
  }
  func.func @transform_2(%arg0: i32, %arg1: i32, %arg2: i32, %arg3: i32) -> (i32, i32, i32) {
    %c0_i32 = arith.constant 0 : i32
    %c0_i32_0 = arith.constant 0 : i32
    return %arg0, %c0_i32, %arg2 : i32, i32, i32
  }
  func.func @transform_3(%arg0: i32, %arg1: i32, %arg2: i32, %arg3: i32) -> (i32, i32, i32) {
    %c0_i32 = arith.constant 0 : i32
    return %arg0, %arg1, %arg2 : i32, i32, i32
  }
}

module attributes {stable_mosaic.version = 11 : i64} {
  func.func @_gemm_epilogue_kernel(%arg0: i32, %arg1: i32, %arg2: i32, %arg3: i32, %arg4: memref<1x8x512xbf16, #tpu.memory_space<vmem>>, %arg5: memref<1x512x256xbf16, #tpu.memory_space<vmem>>, %arg6: memref<1x1x256xf32, #tpu.memory_space<vmem>>, %arg7: memref<1x8x256xbf16, #tpu.memory_space<vmem>>, %arg8: memref<8x256xf32, #tpu.memory_space<vmem>>) attributes {dimension_semantics = [#tpu.dimension_semantics<parallel>, #tpu.dimension_semantics<parallel>, #tpu.dimension_semantics<parallel>, #tpu.dimension_semantics<arbitrary>], iteration_bounds = array<i64: 2, 1, 1, 3>, scalar_prefetch = 0 : i64, scratch_operands = 1 : i64, tpu.core_type = #tpu.core_type<tc>, window_params = [{transform_indices = @transform_0, window_bounds = array<i64: 1, 8, 512>}, {transform_indices = @transform_1, window_bounds = array<i64: 1, 512, 256>}, {transform_indices = @transform_2, window_bounds = array<i64: 1, 1, 256>}, {transform_indices = @transform_3, window_bounds = array<i64: 1, 8, 256>}]} {
    %c0_i32 = arith.constant 0 : i32
    %0 = arith.cmpi eq, %arg3, %c0_i32 : i32
    %1 = arith.extui %0 : i1 to i32
    %c0_i32_0 = arith.constant 0 : i32
    %2 = arith.cmpi ne, %1, %c0_i32_0 : i32
    scf.if %2 {
      %cst_11 = arith.constant 0.000000e+00 : f32
      %14 = vector.broadcast %cst_11 : f32 to vector<8x256xf32>
      %c0_12 = arith.constant 0 : index
      %c0_13 = arith.constant 0 : index
      %15 = vector.load %arg8[%c0_12, %c0_13] : memref<8x256xf32, #tpu.memory_space<vmem>>, vector<8x256xf32>
      tpu.vector_store %arg8[%c0_12, %c0_13], %14 {strides = array<i32>} : memref<8x256xf32, #tpu.memory_space<vmem>>, vector<8x256xf32>,
    } else {
    }
    %c0 = arith.constant 0 : index
    %c0_1 = arith.constant 0 : index
    %c0_2 = arith.constant 0 : index
    %3 = vector.load %arg4[%c0, %c0_1, %c0_2] : memref<1x8x512xbf16, #tpu.memory_space<vmem>>, vector<1x8x512xbf16>
    %4 = vector.shape_cast %3 : vector<1x8x512xbf16> to vector<8x512xbf16>
    %c0_3 = arith.constant 0 : index
    %c0_4 = arith.constant 0 : index
    %5 = vector.load %arg8[%c0_3, %c0_4] : memref<8x256xf32, #tpu.memory_space<vmem>>, vector<8x256xf32>
    %c0_5 = arith.constant 0 : index
    %c0_6 = arith.constant 0 : index
    %c0_7 = arith.constant 0 : index
    %6 = vector.load %arg5[%c0_5, %c0_6, %c0_7] : memref<1x512x256xbf16, #tpu.memory_space<vmem>>, vector<1x512x256xbf16>
    %7 = vector.shape_cast %6 : vector<1x512x256xbf16> to vector<512x256xbf16>
    %cst = arith.constant dense<0.000000e+00> : vector<8x256xf32>
    %8 = tpu.matmul %4, %7, %cst {dimension_numbers = #tpu.dot_dimension_numbers<[1], [0], [0], [1], [0, 0, 1, 1], [], []>} : vector<8x512xbf16>, vector<512x256xbf16>, vector<8x256xf32> -> vector<8x256xf32>
    %9 = arith.addf %5, %8 : vector<8x256xf32>
    %c0_8 = arith.constant 0 : index
    %c0_9 = arith.constant 0 : index
    %10 = vector.load %arg8[%c0_8, %c0_9] : memref<8x256xf32, #tpu.memory_space<vmem>>, vector<8x256xf32>
    tpu.vector_store %arg8[%c0_8, %c0_9], %9 {strides = array<i32>} : memref<8x256xf32, #tpu.memory_space<vmem>>, vector<8x256xf32>,
    %c2_i32 = arith.constant 2 : i32
    %11 = arith.cmpi eq, %arg3, %c2_i32 : i32
    %12 = arith.extui %11 : i1 to i32
    %c0_i32_10 = arith.constant 0 : i32
    %13 = arith.cmpi ne, %12, %c0_i32_10 : i32
    scf.if %13 {
      %c0_11 = arith.constant 0 : index
      %c0_12 = arith.constant 0 : index
      %14 = vector.load %arg8[%c0_11, %c0_12] : memref<8x256xf32, #tpu.memory_space<vmem>>, vector<8x256xf32>
      %c0_13 = arith.constant 0 : index
      %c0_14 = arith.constant 0 : index
      %c0_15 = arith.constant 0 : index
      %15 = vector.load %arg6[%c0_13, %c0_14, %c0_15] : memref<1x1x256xf32, #tpu.memory_space<vmem>>, vector<1x1x256xf32>
      %16 = vector.shape_cast %15 : vector<1x1x256xf32> to vector<1x256xf32>
      %17 = vector.broadcast %16 : vector<1x256xf32> to vector<8x256xf32>
      %18 = arith.addf %14, %17 : vector<8x256xf32>
      %cst_16 = arith.constant 0.000000e+00 : f32
      %19 = vector.broadcast %cst_16 : f32 to vector<8x256xf32>
      %20 = arith.maximumf %18, %19 : vector<8x256xf32>
      %21 = arith.truncf %20 : vector<8x256xf32> to vector<8x256xbf16>
      %c0_17 = arith.constant 0 : index
      %c0_18 = arith.constant 0 : index
      %c0_19 = arith.constant 0 : index
      %22 = vector.load %arg7[%c0_17, %c0_18, %c0_19] : memref<1x8x256xbf16, #tpu.memory_space<vmem>>, vector<1x8x256xbf16>
      %23 = vector.shape_cast %22 : vector<1x8x256xbf16> to vector<8x256xbf16>
      %24 = vector.shape_cast %21 : vector<8x256xbf16> to vector<1x8x256xbf16>
      tpu.vector_store %arg7[%c0_17, %c0_18, %c0_19], %24 {strides = array<i32>} : memref<1x8x256xbf16, #tpu.memory_space<vmem>>, vector<1x8x256xbf16>,
    } else {
    }
    return
  }
  func.func @transform_0(%arg0: i32, %arg1: i32, %arg2: i32, %arg3: i32) -> (i32, i32, i32) {
    %c0_i32 = arith.constant 0 : i32
    return %arg0, %arg1, %arg3 : i32, i32, i32
  }
  func.func @transform_1(%arg0: i32, %arg1: i32, %arg2: i32, %arg3: i32) -> (i32, i32, i32) {
    %c0_i32 = arith.constant 0 : i32
    return %arg0, %arg3, %arg2 : i32, i32, i32
  }
  func.func @transform_2(%arg0: i32, %arg1: i32, %arg2: i32, %arg3: i32) -> (i32, i32, i32) {
    %c0_i32 = arith.constant 0 : i32
    %c0_i32_0 = arith.constant 0 : i32
    return %arg0, %c0_i32, %arg2 : i32, i32, i32
  }
  func.func @transform_3(%arg0: i32, %arg1: i32, %arg2: i32, %arg3: i32) -> (i32, i32, i32) {
    %c0_i32 = arith.constant 0 : i32
    return %arg0, %arg1, %arg2 : i32, i32, i32
  }
}

module attributes {stable_mosaic.version = 11 : i64} {
  func.func @_gemm_epilogue_kernel(%arg0: i32, %arg1: i32, %arg2: i32, %arg3: i32, %arg4: memref<1x8x512xbf16, #tpu.memory_space<vmem>>, %arg5: memref<1x512x256xbf16, #tpu.memory_space<vmem>>, %arg6: memref<1x1x256xf32, #tpu.memory_space<vmem>>, %arg7: memref<1x8x256xbf16, #tpu.memory_space<vmem>>, %arg8: memref<1x8x256xbf16, #tpu.memory_space<vmem>>, %arg9: memref<8x256xf32, #tpu.memory_space<vmem>>) attributes {dimension_semantics = [#tpu.dimension_semantics<parallel>, #tpu.dimension_semantics<parallel>, #tpu.dimension_semantics<parallel>, #tpu.dimension_semantics<arbitrary>], iteration_bounds = array<i64: 2, 1, 1, 5>, scalar_prefetch = 0 : i64, scratch_operands = 1 : i64, tpu.core_type = #tpu.core_type<tc>, window_params = [{transform_indices = @transform_0, window_bounds = array<i64: 1, 8, 512>}, {transform_indices = @transform_1, window_bounds = array<i64: 1, 512, 256>}, {transform_indices = @transform_2, window_bounds = array<i64: 1, 1, 256>}, {transform_indices = @transform_3, window_bounds = array<i64: 1, 8, 256>}, {transform_indices = @transform_4, window_bounds = array<i64: 1, 8, 256>}]} {
    %c0_i32 = arith.constant 0 : i32
    %0 = arith.cmpi eq, %arg3, %c0_i32 : i32
    %1 = arith.extui %0 : i1 to i32
    %c0_i32_0 = arith.constant 0 : i32
    %2 = arith.cmpi ne, %1, %c0_i32_0 : i32
    scf.if %2 {
      %cst_11 = arith.constant 0.000000e+00 : f32
      %14 = vector.broadcast %cst_11 : f32 to vector<8x256xf32>
      %c0_12 = arith.constant 0 : index
      %c0_13 = arith.constant 0 : index
      %15 = vector.load %arg9[%c0_12, %c0_13] : memref<8x256xf32, #tpu.memory_space<vmem>>, vector<8x256xf32>
      tpu.vector_store %arg9[%c0_12, %c0_13], %14 {strides = array<i32>} : memref<8x256xf32, #tpu.memory_space<vmem>>, vector<8x256xf32>,
    } else {
    }
    %c0 = arith.constant 0 : index
    %c0_1 = arith.constant 0 : index
    %c0_2 = arith.constant 0 : index
    %3 = vector.load %arg4[%c0, %c0_1, %c0_2] : memref<1x8x512xbf16, #tpu.memory_space<vmem>>, vector<1x8x512xbf16>
    %4 = vector.shape_cast %3 : vector<1x8x512xbf16> to vector<8x512xbf16>
    %c0_3 = arith.constant 0 : index
    %c0_4 = arith.constant 0 : index
    %5 = vector.load %arg9[%c0_3, %c0_4] : memref<8x256xf32, #tpu.memory_space<vmem>>, vector<8x256xf32>
    %c0_5 = arith.constant 0 : index
    %c0_6 = arith.constant 0 : index
    %c0_7 = arith.constant 0 : index
    %6 = vector.load %arg5[%c0_5, %c0_6, %c0_7] : memref<1x512x256xbf16, #tpu.memory_space<vmem>>, vector<1x512x256xbf16>
    %7 = vector.shape_cast %6 : vector<1x512x256xbf16> to vector<512x256xbf16>
    %cst = arith.constant dense<0.000000e+00> : vector<8x256xf32>
    %8 = tpu.matmul %4, %7, %cst {dimension_numbers = #tpu.dot_dimension_numbers<[1], [0], [0], [1], [0, 0, 1, 1], [], []>} : vector<8x512xbf16>, vector<512x256xbf16>, vector<8x256xf32> -> vector<8x256xf32>
    %9 = arith.addf %5, %8 : vector<8x256xf32>
    %c0_8 = arith.constant 0 : index
    %c0_9 = arith.constant 0 : index
    %10 = vector.load %arg9[%c0_8, %c0_9] : memref<8x256xf32, #tpu.memory_space<vmem>>, vector<8x256xf32>
    tpu.vector_store %arg9[%c0_8, %c0_9], %9 {strides = array<i32>} : memref<8x256xf32, #tpu.memory_space<vmem>>, vector<8x256xf32>,
    %c4_i32 = arith.constant 4 : i32
    %11 = arith.cmpi eq, %arg3, %c4_i32 : i32
    %12 = arith.extui %11 : i1 to i32
    %c0_i32_10 = arith.constant 0 : i32
    %13 = arith.cmpi ne, %12, %c0_i32_10 : i32
    scf.if %13 {
      %c0_11 = arith.constant 0 : index
      %c0_12 = arith.constant 0 : index
      %14 = vector.load %arg9[%c0_11, %c0_12] : memref<8x256xf32, #tpu.memory_space<vmem>>, vector<8x256xf32>
      %c0_13 = arith.constant 0 : index
      %c0_14 = arith.constant 0 : index
      %c0_15 = arith.constant 0 : index
      %15 = vector.load %arg6[%c0_13, %c0_14, %c0_15] : memref<1x1x256xf32, #tpu.memory_space<vmem>>, vector<1x1x256xf32>
      %16 = vector.shape_cast %15 : vector<1x1x256xf32> to vector<1x256xf32>
      %17 = vector.broadcast %16 : vector<1x256xf32> to vector<8x256xf32>
      %18 = arith.addf %14, %17 : vector<8x256xf32>
      %c0_16 = arith.constant 0 : index
      %c0_17 = arith.constant 0 : index
      %c0_18 = arith.constant 0 : index
      %19 = vector.load %arg7[%c0_16, %c0_17, %c0_18] : memref<1x8x256xbf16, #tpu.memory_space<vmem>>, vector<1x8x256xbf16>
      %20 = vector.shape_cast %19 : vector<1x8x256xbf16> to vector<8x256xbf16>
      %21 = arith.extf %20 : vector<8x256xbf16> to vector<8x256xf32>
      %22 = arith.addf %18, %21 : vector<8x256xf32>
      %cst_19 = arith.constant 0.000000e+00 : f32
      %23 = vector.broadcast %cst_19 : f32 to vector<8x256xf32>
      %24 = arith.maximumf %22, %23 : vector<8x256xf32>
      %25 = arith.truncf %24 : vector<8x256xf32> to vector<8x256xbf16>
      %c0_20 = arith.constant 0 : index
      %c0_21 = arith.constant 0 : index
      %c0_22 = arith.constant 0 : index
      %26 = vector.load %arg8[%c0_20, %c0_21, %c0_22] : memref<1x8x256xbf16, #tpu.memory_space<vmem>>, vector<1x8x256xbf16>
      %27 = vector.shape_cast %26 : vector<1x8x256xbf16> to vector<8x256xbf16>
      %28 = vector.shape_cast %25 : vector<8x256xbf16> to vector<1x8x256xbf16>
      tpu.vector_store %arg8[%c0_20, %c0_21, %c0_22], %28 {strides = array<i32>} : memref<1x8x256xbf16, #tpu.memory_space<vmem>>, vector<1x8x256xbf16>,
    } else {
    }
    return
  }
  func.func @transform_0(%arg0: i32, %arg1: i32, %arg2: i32, %arg3: i32) -> (i32, i32, i32) {
    %c0_i32 = arith.constant 0 : i32
    return %arg0, %arg1, %arg3 : i32, i32, i32
  }
  func.func @transform_1(%arg0: i32, %arg1: i32, %arg2: i32, %arg3: i32) -> (i32, i32, i32) {
    %c0_i32 = arith.constant 0 : i32
    return %arg0, %arg3, %arg2 : i32, i32, i32
  }
  func.func @transform_2(%arg0: i32, %arg1: i32, %arg2: i32, %arg3: i32) -> (i32, i32, i32) {
    %c0_i32 = arith.constant 0 : i32
    %c0_i32_0 = arith.constant 0 : i32
    return %arg0, %c0_i32, %arg2 : i32, i32, i32
  }
  func.func @transform_3(%arg0: i32, %arg1: i32, %arg2: i32, %arg3: i32) -> (i32, i32, i32) {
    %c0_i32 = arith.constant 0 : i32
    return %arg0, %arg1, %arg2 : i32, i32, i32
  }
  func.func @transform_4(%arg0: i32, %arg1: i32, %arg2: i32, %arg3: i32) -> (i32, i32, i32) {
    %c0_i32 = arith.constant 0 : i32
    return %arg0, %arg1, %arg2 : i32, i32, i32
  }
}

module attributes {stable_mosaic.version = 11 : i64} {
  func.func @_gemm_epilogue_kernel(%arg0: i32, %arg1: i32, %arg2: i32, %arg3: i32, %arg4: memref<1x8x128xbf16, #tpu.memory_space<vmem>>, %arg5: memref<1x128x256xbf16, #tpu.memory_space<vmem>>, %arg6: memref<1x1x256xf32, #tpu.memory_space<vmem>>, %arg7: memref<1x8x256xbf16, #tpu.memory_space<vmem>>, %arg8: memref<8x256xf32, #tpu.memory_space<vmem>>) attributes {dimension_semantics = [#tpu.dimension_semantics<parallel>, #tpu.dimension_semantics<parallel>, #tpu.dimension_semantics<parallel>, #tpu.dimension_semantics<arbitrary>], iteration_bounds = array<i64: 2, 1, 1, 1>, scalar_prefetch = 0 : i64, scratch_operands = 1 : i64, tpu.core_type = #tpu.core_type<tc>, window_params = [{transform_indices = @transform_0, window_bounds = array<i64: 1, 8, 128>}, {transform_indices = @transform_1, window_bounds = array<i64: 1, 128, 256>}, {transform_indices = @transform_2, window_bounds = array<i64: 1, 1, 256>}, {transform_indices = @transform_3, window_bounds = array<i64: 1, 8, 256>}]} {
    %c0_i32 = arith.constant 0 : i32
    %0 = arith.cmpi eq, %arg3, %c0_i32 : i32
    %1 = arith.extui %0 : i1 to i32
    %c0_i32_0 = arith.constant 0 : i32
    %2 = arith.cmpi ne, %1, %c0_i32_0 : i32
    scf.if %2 {
      %cst_12 = arith.constant 0.000000e+00 : f32
      %14 = vector.broadcast %cst_12 : f32 to vector<8x256xf32>
      %c0_13 = arith.constant 0 : index
      %c0_14 = arith.constant 0 : index
      %15 = vector.load %arg8[%c0_13, %c0_14] : memref<8x256xf32, #tpu.memory_space<vmem>>, vector<8x256xf32>
      tpu.vector_store %arg8[%c0_13, %c0_14], %14 {strides = array<i32>} : memref<8x256xf32, #tpu.memory_space<vmem>>, vector<8x256xf32>,
    } else {
    }
    %c0 = arith.constant 0 : index
    %c0_1 = arith.constant 0 : index
    %c0_2 = arith.constant 0 : index
    %3 = vector.load %arg4[%c0, %c0_1, %c0_2] : memref<1x8x128xbf16, #tpu.memory_space<vmem>>, vector<1x8x128xbf16>
    %4 = vector.shape_cast %3 : vector<1x8x128xbf16> to vector<8x128xbf16>
    %c0_3 = arith.constant 0 : index
    %c0_4 = arith.constant 0 : index
    %5 = vector.load %arg8[%c0_3, %c0_4] : memref<8x256xf32, #tpu.memory_space<vmem>>, vector<8x256xf32>
    %c0_5 = arith.constant 0 : index
    %c0_6 = arith.constant 0 : index
    %c0_7 = arith.constant 0 : index
    %6 = vector.load %arg5[%c0_5, %c0_6, %c0_7] : memref<1x128x256xbf16, #tpu.memory_space<vmem>>, vector<1x128x256xbf16>
    %7 = vector.shape_cast %6 : vector<1x128x256xbf16> to vector<128x256xbf16>
    %cst = arith.constant dense<0.000000e+00> : vector<8x256xf32>
    %8 = tpu.matmul %4, %7, %cst {dimension_numbers = #tpu.dot_dimension_numbers<[1], [0], [0], [1], [0, 0, 1, 1], [], []>} : vector<8x128xbf16>, vector<128x256xbf16>, vector<8x256xf32> -> vector<8x256xf32>
    %9 = arith.addf %5, %8 : vector<8x256xf32>
    %c0_8 = arith.constant 0 : index
    %c0_9 = arith.constant 0 : index
    %10 = vector.load %arg8[%c0_8, %c0_9] : memref<8x256xf32, #tpu.memory_space<vmem>>, vector<8x256xf32>
    tpu.vector_store %arg8[%c0_8, %c0_9], %9 {strides = array<i32>} : memref<8x256xf32, #tpu.memory_space<vmem>>, vector<8x256xf32>,
    %c0_i32_10 = arith.constant 0 : i32
    %11 = arith.cmpi eq, %arg3, %c0_i32_10 : i32
    %12 = arith.extui %11 : i1 to i32
    %c0_i32_11 = arith.constant 0 : i32
    %13 = arith.cmpi ne, %12, %c0_i32_11 : i32
    scf.if %13 {
      %c0_12 = arith.constant 0 : index
      %c0_13 = arith.constant 0 : index
      %14 = vector.load %arg8[%c0_12, %c0_13] : memref<8x256xf32, #tpu.memory_space<vmem>>, vector<8x256xf32>
      %c0_14 = arith.constant 0 : index
      %c0_15 = arith.constant 0 : index
      %c0_16 = arith.constant 0 : index
      %15 = vector.load %arg6[%c0_14, %c0_15, %c0_16] : memref<1x1x256xf32, #tpu.memory_space<vmem>>, vector<1x1x256xf32>
      %16 = vector.shape_cast %15 : vector<1x1x256xf32> to vector<1x256xf32>
      %17 = vector.broadcast %16 : vector<1x256xf32> to vector<8x256xf32>
      %18 = arith.addf %14, %17 : vector<8x256xf32>
      %19 = arith.truncf %18 : vector<8x256xf32> to vector<8x256xbf16>
      %c0_17 = arith.constant 0 : index
      %c0_18 = arith.constant 0 : index
      %c0_19 = arith.constant 0 : index
      %20 = vector.load %arg7[%c0_17, %c0_18, %c0_19] : memref<1x8x256xbf16, #tpu.memory_space<vmem>>, vector<1x8x256xbf16>
      %21 = vector.shape_cast %20 : vector<1x8x256xbf16> to vector<8x256xbf16>
      %22 = vector.shape_cast %19 : vector<8x256xbf16> to vector<1x8x256xbf16>
      tpu.vector_store %arg7[%c0_17, %c0_18, %c0_19], %22 {strides = array<i32>} : memref<1x8x256xbf16, #tpu.memory_space<vmem>>, vector<1x8x256xbf16>,
    } else {
    }
    return
  }
  func.func @transform_0(%arg0: i32, %arg1: i32, %arg2: i32, %arg3: i32) -> (i32, i32, i32) {
    %c0_i32 = arith.constant 0 : i32
    return %arg0, %arg1, %arg3 : i32, i32, i32
  }
  func.func @transform_1(%arg0: i32, %arg1: i32, %arg2: i32, %arg3: i32) -> (i32, i32, i32) {
    %c0_i32 = arith.constant 0 : i32
    return %arg0, %arg3, %arg2 : i32, i32, i32
  }
  func.func @transform_2(%arg0: i32, %arg1: i32, %arg2: i32, %arg3: i32) -> (i32, i32, i32) {
    %c0_i32 = arith.constant 0 : i32
    %c0_i32_0 = arith.constant 0 : i32
    return %arg0, %c0_i32, %arg2 : i32, i32, i32
  }
  func.func @transform_3(%arg0: i32, %arg1: i32, %arg2: i32, %arg3: i32) -> (i32, i32, i32) {
    %c0_i32 = arith.constant 0 : i32
    return %arg0, %arg1, %arg2 : i32, i32, i32
  }
}

module attributes {stable_mosaic.version = 11 : i64} {
  func.func @_gemm_epilogue_kernel(%arg0: i32, %arg1: i32, %arg2: i32, %arg3: i32, %arg4: memref<1x8x512xbf16, #tpu.memory_space<vmem>>, %arg5: memref<1x512x256xbf16, #tpu.memory_space<vmem>>, %arg6: memref<1x1x256xf32, #tpu.memory_space<vmem>>, %arg7: memref<1x8x256xbf16, #tpu.memory_space<vmem>>, %arg8: memref<8x256xf32, #tpu.memory_space<vmem>>) attributes {dimension_semantics = [#tpu.dimension_semantics<parallel>, #tpu.dimension_semantics<parallel>, #tpu.dimension_semantics<parallel>, #tpu.dimension_semantics<arbitrary>], iteration_bounds = array<i64: 2, 1, 2, 5>, scalar_prefetch = 0 : i64, scratch_operands = 1 : i64, tpu.core_type = #tpu.core_type<tc>, window_params = [{transform_indices = @transform_0, window_bounds = array<i64: 1, 8, 512>}, {transform_indices = @transform_1, window_bounds = array<i64: 1, 512, 256>}, {transform_indices = @transform_2, window_bounds = array<i64: 1, 1, 256>}, {transform_indices = @transform_3, window_bounds = array<i64: 1, 8, 256>}]} {
    %c0_i32 = arith.constant 0 : i32
    %0 = arith.cmpi eq, %arg3, %c0_i32 : i32
    %1 = arith.extui %0 : i1 to i32
    %c0_i32_0 = arith.constant 0 : i32
    %2 = arith.cmpi ne, %1, %c0_i32_0 : i32
    scf.if %2 {
      %cst_11 = arith.constant 0.000000e+00 : f32
      %14 = vector.broadcast %cst_11 : f32 to vector<8x256xf32>
      %c0_12 = arith.constant 0 : index
      %c0_13 = arith.constant 0 : index
      %15 = vector.load %arg8[%c0_12, %c0_13] : memref<8x256xf32, #tpu.memory_space<vmem>>, vector<8x256xf32>
      tpu.vector_store %arg8[%c0_12, %c0_13], %14 {strides = array<i32>} : memref<8x256xf32, #tpu.memory_space<vmem>>, vector<8x256xf32>,
    } else {
    }
    %c0 = arith.constant 0 : index
    %c0_1 = arith.constant 0 : index
    %c0_2 = arith.constant 0 : index
    %3 = vector.load %arg4[%c0, %c0_1, %c0_2] : memref<1x8x512xbf16, #tpu.memory_space<vmem>>, vector<1x8x512xbf16>
    %4 = vector.shape_cast %3 : vector<1x8x512xbf16> to vector<8x512xbf16>
    %c0_3 = arith.constant 0 : index
    %c0_4 = arith.constant 0 : index
    %5 = vector.load %arg8[%c0_3, %c0_4] : memref<8x256xf32, #tpu.memory_space<vmem>>, vector<8x256xf32>
    %c0_5 = arith.constant 0 : index
    %c0_6 = arith.constant 0 : index
    %c0_7 = arith.constant 0 : index
    %6 = vector.load %arg5[%c0_5, %c0_6, %c0_7] : memref<1x512x256xbf16, #tpu.memory_space<vmem>>, vector<1x512x256xbf16>
    %7 = vector.shape_cast %6 : vector<1x512x256xbf16> to vector<512x256xbf16>
    %cst = arith.constant dense<0.000000e+00> : vector<8x256xf32>
    %8 = tpu.matmul %4, %7, %cst {dimension_numbers = #tpu.dot_dimension_numbers<[1], [0], [0], [1], [0, 0, 1, 1], [], []>} : vector<8x512xbf16>, vector<512x256xbf16>, vector<8x256xf32> -> vector<8x256xf32>
    %9 = arith.addf %5, %8 : vector<8x256xf32>
    %c0_8 = arith.constant 0 : index
    %c0_9 = arith.constant 0 : index
    %10 = vector.load %arg8[%c0_8, %c0_9] : memref<8x256xf32, #tpu.memory_space<vmem>>, vector<8x256xf32>
    tpu.vector_store %arg8[%c0_8, %c0_9], %9 {strides = array<i32>} : memref<8x256xf32, #tpu.memory_space<vmem>>, vector<8x256xf32>,
    %c4_i32 = arith.constant 4 : i32
    %11 = arith.cmpi eq, %arg3, %c4_i32 : i32
    %12 = arith.extui %11 : i1 to i32
    %c0_i32_10 = arith.constant 0 : i32
    %13 = arith.cmpi ne, %12, %c0_i32_10 : i32
    scf.if %13 {
      %c0_11 = arith.constant 0 : index
      %c0_12 = arith.constant 0 : index
      %14 = vector.load %arg8[%c0_11, %c0_12] : memref<8x256xf32, #tpu.memory_space<vmem>>, vector<8x256xf32>
      %c0_13 = arith.constant 0 : index
      %c0_14 = arith.constant 0 : index
      %c0_15 = arith.constant 0 : index
      %15 = vector.load %arg6[%c0_13, %c0_14, %c0_15] : memref<1x1x256xf32, #tpu.memory_space<vmem>>, vector<1x1x256xf32>
      %16 = vector.shape_cast %15 : vector<1x1x256xf32> to vector<1x256xf32>
      %17 = vector.broadcast %16 : vector<1x256xf32> to vector<8x256xf32>
      %18 = arith.addf %14, %17 : vector<8x256xf32>
      %cst_16 = arith.constant 0.000000e+00 : f32
      %19 = vector.broadcast %cst_16 : f32 to vector<8x256xf32>
      %20 = arith.maximumf %18, %19 : vector<8x256xf32>
      %21 = arith.truncf %20 : vector<8x256xf32> to vector<8x256xbf16>
      %c0_17 = arith.constant 0 : index
      %c0_18 = arith.constant 0 : index
      %c0_19 = arith.constant 0 : index
      %22 = vector.load %arg7[%c0_17, %c0_18, %c0_19] : memref<1x8x256xbf16, #tpu.memory_space<vmem>>, vector<1x8x256xbf16>
      %23 = vector.shape_cast %22 : vector<1x8x256xbf16> to vector<8x256xbf16>
      %24 = vector.shape_cast %21 : vector<8x256xbf16> to vector<1x8x256xbf16>
      tpu.vector_store %arg7[%c0_17, %c0_18, %c0_19], %24 {strides = array<i32>} : memref<1x8x256xbf16, #tpu.memory_space<vmem>>, vector<1x8x256xbf16>,
    } else {
    }
    return
  }
  func.func @transform_0(%arg0: i32, %arg1: i32, %arg2: i32, %arg3: i32) -> (i32, i32, i32) {
    %c0_i32 = arith.constant 0 : i32
    return %arg0, %arg1, %arg3 : i32, i32, i32
  }
  func.func @transform_1(%arg0: i32, %arg1: i32, %arg2: i32, %arg3: i32) -> (i32, i32, i32) {
    %c0_i32 = arith.constant 0 : i32
    return %arg0, %arg3, %arg2 : i32, i32, i32
  }
  func.func @transform_2(%arg0: i32, %arg1: i32, %arg2: i32, %arg3: i32) -> (i32, i32, i32) {
    %c0_i32 = arith.constant 0 : i32
    %c0_i32_0 = arith.constant 0 : i32
    return %arg0, %c0_i32, %arg2 : i32, i32, i32
  }
  func.func @transform_3(%arg0: i32, %arg1: i32, %arg2: i32, %arg3: i32) -> (i32, i32, i32) {
    %c0_i32 = arith.constant 0 : i32
    return %arg0, %arg1, %arg2 : i32, i32, i32
  }
}

module attributes {stable_mosaic.version = 11 : i64} {
  func.func @_gemm_epilogue_kernel(%arg0: i32, %arg1: i32, %arg2: i32, %arg3: i32, %arg4: memref<1x8x512xbf16, #tpu.memory_space<vmem>>, %arg5: memref<1x512x256xbf16, #tpu.memory_space<vmem>>, %arg6: memref<1x1x256xf32, #tpu.memory_space<vmem>>, %arg7: memref<1x8x256xbf16, #tpu.memory_space<vmem>>, %arg8: memref<8x256xf32, #tpu.memory_space<vmem>>) attributes {dimension_semantics = [#tpu.dimension_semantics<parallel>, #tpu.dimension_semantics<parallel>, #tpu.dimension_semantics<parallel>, #tpu.dimension_semantics<arbitrary>], iteration_bounds = array<i64: 2, 1, 1, 5>, scalar_prefetch = 0 : i64, scratch_operands = 1 : i64, tpu.core_type = #tpu.core_type<tc>, window_params = [{transform_indices = @transform_0, window_bounds = array<i64: 1, 8, 512>}, {transform_indices = @transform_1, window_bounds = array<i64: 1, 512, 256>}, {transform_indices = @transform_2, window_bounds = array<i64: 1, 1, 256>}, {transform_indices = @transform_3, window_bounds = array<i64: 1, 8, 256>}]} {
    %c0_i32 = arith.constant 0 : i32
    %0 = arith.cmpi eq, %arg3, %c0_i32 : i32
    %1 = arith.extui %0 : i1 to i32
    %c0_i32_0 = arith.constant 0 : i32
    %2 = arith.cmpi ne, %1, %c0_i32_0 : i32
    scf.if %2 {
      %cst_11 = arith.constant 0.000000e+00 : f32
      %14 = vector.broadcast %cst_11 : f32 to vector<8x256xf32>
      %c0_12 = arith.constant 0 : index
      %c0_13 = arith.constant 0 : index
      %15 = vector.load %arg8[%c0_12, %c0_13] : memref<8x256xf32, #tpu.memory_space<vmem>>, vector<8x256xf32>
      tpu.vector_store %arg8[%c0_12, %c0_13], %14 {strides = array<i32>} : memref<8x256xf32, #tpu.memory_space<vmem>>, vector<8x256xf32>,
    } else {
    }
    %c0 = arith.constant 0 : index
    %c0_1 = arith.constant 0 : index
    %c0_2 = arith.constant 0 : index
    %3 = vector.load %arg4[%c0, %c0_1, %c0_2] : memref<1x8x512xbf16, #tpu.memory_space<vmem>>, vector<1x8x512xbf16>
    %4 = vector.shape_cast %3 : vector<1x8x512xbf16> to vector<8x512xbf16>
    %c0_3 = arith.constant 0 : index
    %c0_4 = arith.constant 0 : index
    %5 = vector.load %arg8[%c0_3, %c0_4] : memref<8x256xf32, #tpu.memory_space<vmem>>, vector<8x256xf32>
    %c0_5 = arith.constant 0 : index
    %c0_6 = arith.constant 0 : index
    %c0_7 = arith.constant 0 : index
    %6 = vector.load %arg5[%c0_5, %c0_6, %c0_7] : memref<1x512x256xbf16, #tpu.memory_space<vmem>>, vector<1x512x256xbf16>
    %7 = vector.shape_cast %6 : vector<1x512x256xbf16> to vector<512x256xbf16>
    %cst = arith.constant dense<0.000000e+00> : vector<8x256xf32>
    %8 = tpu.matmul %4, %7, %cst {dimension_numbers = #tpu.dot_dimension_numbers<[1], [0], [0], [1], [0, 0, 1, 1], [], []>} : vector<8x512xbf16>, vector<512x256xbf16>, vector<8x256xf32> -> vector<8x256xf32>
    %9 = arith.addf %5, %8 : vector<8x256xf32>
    %c0_8 = arith.constant 0 : index
    %c0_9 = arith.constant 0 : index
    %10 = vector.load %arg8[%c0_8, %c0_9] : memref<8x256xf32, #tpu.memory_space<vmem>>, vector<8x256xf32>
    tpu.vector_store %arg8[%c0_8, %c0_9], %9 {strides = array<i32>} : memref<8x256xf32, #tpu.memory_space<vmem>>, vector<8x256xf32>,
    %c4_i32 = arith.constant 4 : i32
    %11 = arith.cmpi eq, %arg3, %c4_i32 : i32
    %12 = arith.extui %11 : i1 to i32
    %c0_i32_10 = arith.constant 0 : i32
    %13 = arith.cmpi ne, %12, %c0_i32_10 : i32
    scf.if %13 {
      %c0_11 = arith.constant 0 : index
      %c0_12 = arith.constant 0 : index
      %14 = vector.load %arg8[%c0_11, %c0_12] : memref<8x256xf32, #tpu.memory_space<vmem>>, vector<8x256xf32>
      %c0_13 = arith.constant 0 : index
      %c0_14 = arith.constant 0 : index
      %c0_15 = arith.constant 0 : index
      %15 = vector.load %arg6[%c0_13, %c0_14, %c0_15] : memref<1x1x256xf32, #tpu.memory_space<vmem>>, vector<1x1x256xf32>
      %16 = vector.shape_cast %15 : vector<1x1x256xf32> to vector<1x256xf32>
      %17 = vector.broadcast %16 : vector<1x256xf32> to vector<8x256xf32>
      %18 = arith.addf %14, %17 : vector<8x256xf32>
      %cst_16 = arith.constant 0.000000e+00 : f32
      %19 = vector.broadcast %cst_16 : f32 to vector<8x256xf32>
      %20 = arith.maximumf %18, %19 : vector<8x256xf32>
      %21 = arith.truncf %20 : vector<8x256xf32> to vector<8x256xbf16>
      %c0_17 = arith.constant 0 : index
      %c0_18 = arith.constant 0 : index
      %c0_19 = arith.constant 0 : index
      %22 = vector.load %arg7[%c0_17, %c0_18, %c0_19] : memref<1x8x256xbf16, #tpu.memory_space<vmem>>, vector<1x8x256xbf16>
      %23 = vector.shape_cast %22 : vector<1x8x256xbf16> to vector<8x256xbf16>
      %24 = vector.shape_cast %21 : vector<8x256xbf16> to vector<1x8x256xbf16>
      tpu.vector_store %arg7[%c0_17, %c0_18, %c0_19], %24 {strides = array<i32>} : memref<1x8x256xbf16, #tpu.memory_space<vmem>>, vector<1x8x256xbf16>,
    } else {
    }
    return
  }
  func.func @transform_0(%arg0: i32, %arg1: i32, %arg2: i32, %arg3: i32) -> (i32, i32, i32) {
    %c0_i32 = arith.constant 0 : i32
    return %arg0, %arg1, %arg3 : i32, i32, i32
  }
  func.func @transform_1(%arg0: i32, %arg1: i32, %arg2: i32, %arg3: i32) -> (i32, i32, i32) {
    %c0_i32 = arith.constant 0 : i32
    return %arg0, %arg3, %arg2 : i32, i32, i32
  }
  func.func @transform_2(%arg0: i32, %arg1: i32, %arg2: i32, %arg3: i32) -> (i32, i32, i32) {
    %c0_i32 = arith.constant 0 : i32
    %c0_i32_0 = arith.constant 0 : i32
    return %arg0, %c0_i32, %arg2 : i32, i32, i32
  }
  func.func @transform_3(%arg0: i32, %arg1: i32, %arg2: i32, %arg3: i32) -> (i32, i32, i32) {
    %c0_i32 = arith.constant 0 : i32
    return %arg0, %arg1, %arg2 : i32, i32, i32
  }
}

module attributes {stable_mosaic.version = 11 : i64} {
  func.func @_gemm_epilogue_kernel(%arg0: i32, %arg1: i32, %arg2: i32, %arg3: i32, %arg4: memref<1x8x256xbf16, #tpu.memory_space<vmem>>, %arg5: memref<1x256x256xbf16, #tpu.memory_space<vmem>>, %arg6: memref<1x1x256xf32, #tpu.memory_space<vmem>>, %arg7: memref<1x8x256xbf16, #tpu.memory_space<vmem>>, %arg8: memref<8x256xf32, #tpu.memory_space<vmem>>) attributes {dimension_semantics = [#tpu.dimension_semantics<parallel>, #tpu.dimension_semantics<parallel>, #tpu.dimension_semantics<parallel>, #tpu.dimension_semantics<arbitrary>], iteration_bounds = array<i64: 2, 1, 2, 1>, scalar_prefetch = 0 : i64, scratch_operands = 1 : i64, tpu.core_type = #tpu.core_type<tc>, window_params = [{transform_indices = @transform_0, window_bounds = array<i64: 1, 8, 256>}, {transform_indices = @transform_1, window_bounds = array<i64: 1, 256, 256>}, {transform_indices = @transform_2, window_bounds = array<i64: 1, 1, 256>}, {transform_indices = @transform_3, window_bounds = array<i64: 1, 8, 256>}]} {
    %c0_i32 = arith.constant 0 : i32
    %0 = arith.cmpi eq, %arg3, %c0_i32 : i32
    %1 = arith.extui %0 : i1 to i32
    %c0_i32_0 = arith.constant 0 : i32
    %2 = arith.cmpi ne, %1, %c0_i32_0 : i32
    scf.if %2 {
      %cst_12 = arith.constant 0.000000e+00 : f32
      %14 = vector.broadcast %cst_12 : f32 to vector<8x256xf32>
      %c0_13 = arith.constant 0 : index
      %c0_14 = arith.constant 0 : index
      %15 = vector.load %arg8[%c0_13, %c0_14] : memref<8x256xf32, #tpu.memory_space<vmem>>, vector<8x256xf32>
      tpu.vector_store %arg8[%c0_13, %c0_14], %14 {strides = array<i32>} : memref<8x256xf32, #tpu.memory_space<vmem>>, vector<8x256xf32>,
    } else {
    }
    %c0 = arith.constant 0 : index
    %c0_1 = arith.constant 0 : index
    %c0_2 = arith.constant 0 : index
    %3 = vector.load %arg4[%c0, %c0_1, %c0_2] : memref<1x8x256xbf16, #tpu.memory_space<vmem>>, vector<1x8x256xbf16>
    %4 = vector.shape_cast %3 : vector<1x8x256xbf16> to vector<8x256xbf16>
    %c0_3 = arith.constant 0 : index
    %c0_4 = arith.constant 0 : index
    %5 = vector.load %arg8[%c0_3, %c0_4] : memref<8x256xf32, #tpu.memory_space<vmem>>, vector<8x256xf32>
    %c0_5 = arith.constant 0 : index
    %c0_6 = arith.constant 0 : index
    %c0_7 = arith.constant 0 : index
    %6 = vector.load %arg5[%c0_5, %c0_6, %c0_7] : memref<1x256x256xbf16, #tpu.memory_space<vmem>>, vector<1x256x256xbf16>
    %7 = vector.shape_cast %6 : vector<1x256x256xbf16> to vector<256x256xbf16>
    %cst = arith.constant dense<0.000000e+00> : vector<8x256xf32>
    %8 = tpu.matmul %4, %7, %cst {dimension_numbers = #tpu.dot_dimension_numbers<[1], [0], [0], [1], [0, 0, 1, 1], [], []>} : vector<8x256xbf16>, vector<256x256xbf16>, vector<8x256xf32> -> vector<8x256xf32>
    %9 = arith.addf %5, %8 : vector<8x256xf32>
    %c0_8 = arith.constant 0 : index
    %c0_9 = arith.constant 0 : index
    %10 = vector.load %arg8[%c0_8, %c0_9] : memref<8x256xf32, #tpu.memory_space<vmem>>, vector<8x256xf32>
    tpu.vector_store %arg8[%c0_8, %c0_9], %9 {strides = array<i32>} : memref<8x256xf32, #tpu.memory_space<vmem>>, vector<8x256xf32>,
    %c0_i32_10 = arith.constant 0 : i32
    %11 = arith.cmpi eq, %arg3, %c0_i32_10 : i32
    %12 = arith.extui %11 : i1 to i32
    %c0_i32_11 = arith.constant 0 : i32
    %13 = arith.cmpi ne, %12, %c0_i32_11 : i32
    scf.if %13 {
      %c0_12 = arith.constant 0 : index
      %c0_13 = arith.constant 0 : index
      %14 = vector.load %arg8[%c0_12, %c0_13] : memref<8x256xf32, #tpu.memory_space<vmem>>, vector<8x256xf32>
      %c0_14 = arith.constant 0 : index
      %c0_15 = arith.constant 0 : index
      %c0_16 = arith.constant 0 : index
      %15 = vector.load %arg6[%c0_14, %c0_15, %c0_16] : memref<1x1x256xf32, #tpu.memory_space<vmem>>, vector<1x1x256xf32>
      %16 = vector.shape_cast %15 : vector<1x1x256xf32> to vector<1x256xf32>
      %17 = vector.broadcast %16 : vector<1x256xf32> to vector<8x256xf32>
      %18 = arith.addf %14, %17 : vector<8x256xf32>
      %19 = arith.truncf %18 : vector<8x256xf32> to vector<8x256xbf16>
      %c0_17 = arith.constant 0 : index
      %c0_18 = arith.constant 0 : index
      %c0_19 = arith.constant 0 : index
      %20 = vector.load %arg7[%c0_17, %c0_18, %c0_19] : memref<1x8x256xbf16, #tpu.memory_space<vmem>>, vector<1x8x256xbf16>
      %21 = vector.shape_cast %20 : vector<1x8x256xbf16> to vector<8x256xbf16>
      %22 = vector.shape_cast %19 : vector<8x256xbf16> to vector<1x8x256xbf16>
      tpu.vector_store %arg7[%c0_17, %c0_18, %c0_19], %22 {strides = array<i32>} : memref<1x8x256xbf16, #tpu.memory_space<vmem>>, vector<1x8x256xbf16>,
    } else {
    }
    return
  }
  func.func @transform_0(%arg0: i32, %arg1: i32, %arg2: i32, %arg3: i32) -> (i32, i32, i32) {
    %c0_i32 = arith.constant 0 : i32
    return %arg0, %arg1, %arg3 : i32, i32, i32
  }
  func.func @transform_1(%arg0: i32, %arg1: i32, %arg2: i32, %arg3: i32) -> (i32, i32, i32) {
    %c0_i32 = arith.constant 0 : i32
    return %arg0, %arg3, %arg2 : i32, i32, i32
  }
  func.func @transform_2(%arg0: i32, %arg1: i32, %arg2: i32, %arg3: i32) -> (i32, i32, i32) {
    %c0_i32 = arith.constant 0 : i32
    %c0_i32_0 = arith.constant 0 : i32
    return %arg0, %c0_i32, %arg2 : i32, i32, i32
  }
  func.func @transform_3(%arg0: i32, %arg1: i32, %arg2: i32, %arg3: i32) -> (i32, i32, i32) {
    %c0_i32 = arith.constant 0 : i32
    return %arg0, %arg1, %arg2 : i32, i32, i32
  }
}

module attributes {stable_mosaic.version = 11 : i64} {
  func.func @_gemm_epilogue_kernel(%arg0: i32, %arg1: i32, %arg2: i32, %arg3: i32, %arg4: memref<1x8x512xbf16, #tpu.memory_space<vmem>>, %arg5: memref<1x512x256xbf16, #tpu.memory_space<vmem>>, %arg6: memref<1x1x256xf32, #tpu.memory_space<vmem>>, %arg7: memref<1x8x256xbf16, #tpu.memory_space<vmem>>, %arg8: memref<1x8x256xbf16, #tpu.memory_space<vmem>>, %arg9: memref<8x256xf32, #tpu.memory_space<vmem>>) attributes {dimension_semantics = [#tpu.dimension_semantics<parallel>, #tpu.dimension_semantics<parallel>, #tpu.dimension_semantics<parallel>, #tpu.dimension_semantics<arbitrary>], iteration_bounds = array<i64: 2, 1, 2, 9>, scalar_prefetch = 0 : i64, scratch_operands = 1 : i64, tpu.core_type = #tpu.core_type<tc>, window_params = [{transform_indices = @transform_0, window_bounds = array<i64: 1, 8, 512>}, {transform_indices = @transform_1, window_bounds = array<i64: 1, 512, 256>}, {transform_indices = @transform_2, window_bounds = array<i64: 1, 1, 256>}, {transform_indices = @transform_3, window_bounds = array<i64: 1, 8, 256>}, {transform_indices = @transform_4, window_bounds = array<i64: 1, 8, 256>}]} {
    %c0_i32 = arith.constant 0 : i32
    %0 = arith.cmpi eq, %arg3, %c0_i32 : i32
    %1 = arith.extui %0 : i1 to i32
    %c0_i32_0 = arith.constant 0 : i32
    %2 = arith.cmpi ne, %1, %c0_i32_0 : i32
    scf.if %2 {
      %cst_11 = arith.constant 0.000000e+00 : f32
      %14 = vector.broadcast %cst_11 : f32 to vector<8x256xf32>
      %c0_12 = arith.constant 0 : index
      %c0_13 = arith.constant 0 : index
      %15 = vector.load %arg9[%c0_12, %c0_13] : memref<8x256xf32, #tpu.memory_space<vmem>>, vector<8x256xf32>
      tpu.vector_store %arg9[%c0_12, %c0_13], %14 {strides = array<i32>} : memref<8x256xf32, #tpu.memory_space<vmem>>, vector<8x256xf32>,
    } else {
    }
    %c0 = arith.constant 0 : index
    %c0_1 = arith.constant 0 : index
    %c0_2 = arith.constant 0 : index
    %3 = vector.load %arg4[%c0, %c0_1, %c0_2] : memref<1x8x512xbf16, #tpu.memory_space<vmem>>, vector<1x8x512xbf16>
    %4 = vector.shape_cast %3 : vector<1x8x512xbf16> to vector<8x512xbf16>
    %c0_3 = arith.constant 0 : index
    %c0_4 = arith.constant 0 : index
    %5 = vector.load %arg9[%c0_3, %c0_4] : memref<8x256xf32, #tpu.memory_space<vmem>>, vector<8x256xf32>
    %c0_5 = arith.constant 0 : index
    %c0_6 = arith.constant 0 : index
    %c0_7 = arith.constant 0 : index
    %6 = vector.load %arg5[%c0_5, %c0_6, %c0_7] : memref<1x512x256xbf16, #tpu.memory_space<vmem>>, vector<1x512x256xbf16>
    %7 = vector.shape_cast %6 : vector<1x512x256xbf16> to vector<512x256xbf16>
    %cst = arith.constant dense<0.000000e+00> : vector<8x256xf32>
    %8 = tpu.matmul %4, %7, %cst {dimension_numbers = #tpu.dot_dimension_numbers<[1], [0], [0], [1], [0, 0, 1, 1], [], []>} : vector<8x512xbf16>, vector<512x256xbf16>, vector<8x256xf32> -> vector<8x256xf32>
    %9 = arith.addf %5, %8 : vector<8x256xf32>
    %c0_8 = arith.constant 0 : index
    %c0_9 = arith.constant 0 : index
    %10 = vector.load %arg9[%c0_8, %c0_9] : memref<8x256xf32, #tpu.memory_space<vmem>>, vector<8x256xf32>
    tpu.vector_store %arg9[%c0_8, %c0_9], %9 {strides = array<i32>} : memref<8x256xf32, #tpu.memory_space<vmem>>, vector<8x256xf32>,
    %c8_i32 = arith.constant 8 : i32
    %11 = arith.cmpi eq, %arg3, %c8_i32 : i32
    %12 = arith.extui %11 : i1 to i32
    %c0_i32_10 = arith.constant 0 : i32
    %13 = arith.cmpi ne, %12, %c0_i32_10 : i32
    scf.if %13 {
      %c0_11 = arith.constant 0 : index
      %c0_12 = arith.constant 0 : index
      %14 = vector.load %arg9[%c0_11, %c0_12] : memref<8x256xf32, #tpu.memory_space<vmem>>, vector<8x256xf32>
      %c0_13 = arith.constant 0 : index
      %c0_14 = arith.constant 0 : index
      %c0_15 = arith.constant 0 : index
      %15 = vector.load %arg6[%c0_13, %c0_14, %c0_15] : memref<1x1x256xf32, #tpu.memory_space<vmem>>, vector<1x1x256xf32>
      %16 = vector.shape_cast %15 : vector<1x1x256xf32> to vector<1x256xf32>
      %17 = vector.broadcast %16 : vector<1x256xf32> to vector<8x256xf32>
      %18 = arith.addf %14, %17 : vector<8x256xf32>
      %c0_16 = arith.constant 0 : index
      %c0_17 = arith.constant 0 : index
      %c0_18 = arith.constant 0 : index
      %19 = vector.load %arg7[%c0_16, %c0_17, %c0_18] : memref<1x8x256xbf16, #tpu.memory_space<vmem>>, vector<1x8x256xbf16>
      %20 = vector.shape_cast %19 : vector<1x8x256xbf16> to vector<8x256xbf16>
      %21 = arith.extf %20 : vector<8x256xbf16> to vector<8x256xf32>
      %22 = arith.addf %18, %21 : vector<8x256xf32>
      %cst_19 = arith.constant 0.000000e+00 : f32
      %23 = vector.broadcast %cst_19 : f32 to vector<8x256xf32>
      %24 = arith.maximumf %22, %23 : vector<8x256xf32>
      %25 = arith.truncf %24 : vector<8x256xf32> to vector<8x256xbf16>
      %c0_20 = arith.constant 0 : index
      %c0_21 = arith.constant 0 : index
      %c0_22 = arith.constant 0 : index
      %26 = vector.load %arg8[%c0_20, %c0_21, %c0_22] : memref<1x8x256xbf16, #tpu.memory_space<vmem>>, vector<1x8x256xbf16>
      %27 = vector.shape_cast %26 : vector<1x8x256xbf16> to vector<8x256xbf16>
      %28 = vector.shape_cast %25 : vector<8x256xbf16> to vector<1x8x256xbf16>
      tpu.vector_store %arg8[%c0_20, %c0_21, %c0_22], %28 {strides = array<i32>} : memref<1x8x256xbf16, #tpu.memory_space<vmem>>, vector<1x8x256xbf16>,
    } else {
    }
    return
  }
  func.func @transform_0(%arg0: i32, %arg1: i32, %arg2: i32, %arg3: i32) -> (i32, i32, i32) {
    %c0_i32 = arith.constant 0 : i32
    return %arg0, %arg1, %arg3 : i32, i32, i32
  }
  func.func @transform_1(%arg0: i32, %arg1: i32, %arg2: i32, %arg3: i32) -> (i32, i32, i32) {
    %c0_i32 = arith.constant 0 : i32
    return %arg0, %arg3, %arg2 : i32, i32, i32
  }
  func.func @transform_2(%arg0: i32, %arg1: i32, %arg2: i32, %arg3: i32) -> (i32, i32, i32) {
    %c0_i32 = arith.constant 0 : i32
    %c0_i32_0 = arith.constant 0 : i32
    return %arg0, %c0_i32, %arg2 : i32, i32, i32
  }
  func.func @transform_3(%arg0: i32, %arg1: i32, %arg2: i32, %arg3: i32) -> (i32, i32, i32) {
    %c0_i32 = arith.constant 0 : i32
    return %arg0, %arg1, %arg2 : i32, i32, i32
  }
  func.func @transform_4(%arg0: i32, %arg1: i32, %arg2: i32, %arg3: i32) -> (i32, i32, i32) {
    %c0_i32 = arith.constant 0 : i32
    return %arg0, %arg1, %arg2 : i32, i32, i32
  }
}

module attributes {stable_mosaic.version = 11 : i64} {
  func.func @_gemm_epilogue_kernel(%arg0: i32, %arg1: i32, %arg2: i32, %arg3: i32, %arg4: memref<1x8x512xbf16, #tpu.memory_space<vmem>>, %arg5: memref<1x512x256xbf16, #tpu.memory_space<vmem>>, %arg6: memref<1x1x256xf32, #tpu.memory_space<vmem>>, %arg7: memref<1x8x256xbf16, #tpu.memory_space<vmem>>, %arg8: memref<8x256xf32, #tpu.memory_space<vmem>>) attributes {dimension_semantics = [#tpu.dimension_semantics<parallel>, #tpu.dimension_semantics<parallel>, #tpu.dimension_semantics<parallel>, #tpu.dimension_semantics<arbitrary>], iteration_bounds = array<i64: 2, 1, 2, 9>, scalar_prefetch = 0 : i64, scratch_operands = 1 : i64, tpu.core_type = #tpu.core_type<tc>, window_params = [{transform_indices = @transform_0, window_bounds = array<i64: 1, 8, 512>}, {transform_indices = @transform_1, window_bounds = array<i64: 1, 512, 256>}, {transform_indices = @transform_2, window_bounds = array<i64: 1, 1, 256>}, {transform_indices = @transform_3, window_bounds = array<i64: 1, 8, 256>}]} {
    %c0_i32 = arith.constant 0 : i32
    %0 = arith.cmpi eq, %arg3, %c0_i32 : i32
    %1 = arith.extui %0 : i1 to i32
    %c0_i32_0 = arith.constant 0 : i32
    %2 = arith.cmpi ne, %1, %c0_i32_0 : i32
    scf.if %2 {
      %cst_11 = arith.constant 0.000000e+00 : f32
      %14 = vector.broadcast %cst_11 : f32 to vector<8x256xf32>
      %c0_12 = arith.constant 0 : index
      %c0_13 = arith.constant 0 : index
      %15 = vector.load %arg8[%c0_12, %c0_13] : memref<8x256xf32, #tpu.memory_space<vmem>>, vector<8x256xf32>
      tpu.vector_store %arg8[%c0_12, %c0_13], %14 {strides = array<i32>} : memref<8x256xf32, #tpu.memory_space<vmem>>, vector<8x256xf32>,
    } else {
    }
    %c0 = arith.constant 0 : index
    %c0_1 = arith.constant 0 : index
    %c0_2 = arith.constant 0 : index
    %3 = vector.load %arg4[%c0, %c0_1, %c0_2] : memref<1x8x512xbf16, #tpu.memory_space<vmem>>, vector<1x8x512xbf16>
    %4 = vector.shape_cast %3 : vector<1x8x512xbf16> to vector<8x512xbf16>
    %c0_3 = arith.constant 0 : index
    %c0_4 = arith.constant 0 : index
    %5 = vector.load %arg8[%c0_3, %c0_4] : memref<8x256xf32, #tpu.memory_space<vmem>>, vector<8x256xf32>
    %c0_5 = arith.constant 0 : index
    %c0_6 = arith.constant 0 : index
    %c0_7 = arith.constant 0 : index
    %6 = vector.load %arg5[%c0_5, %c0_6, %c0_7] : memref<1x512x256xbf16, #tpu.memory_space<vmem>>, vector<1x512x256xbf16>
    %7 = vector.shape_cast %6 : vector<1x512x256xbf16> to vector<512x256xbf16>
    %cst = arith.constant dense<0.000000e+00> : vector<8x256xf32>
    %8 = tpu.matmul %4, %7, %cst {dimension_numbers = #tpu.dot_dimension_numbers<[1], [0], [0], [1], [0, 0, 1, 1], [], []>} : vector<8x512xbf16>, vector<512x256xbf16>, vector<8x256xf32> -> vector<8x256xf32>
    %9 = arith.addf %5, %8 : vector<8x256xf32>
    %c0_8 = arith.constant 0 : index
    %c0_9 = arith.constant 0 : index
    %10 = vector.load %arg8[%c0_8, %c0_9] : memref<8x256xf32, #tpu.memory_space<vmem>>, vector<8x256xf32>
    tpu.vector_store %arg8[%c0_8, %c0_9], %9 {strides = array<i32>} : memref<8x256xf32, #tpu.memory_space<vmem>>, vector<8x256xf32>,
    %c8_i32 = arith.constant 8 : i32
    %11 = arith.cmpi eq, %arg3, %c8_i32 : i32
    %12 = arith.extui %11 : i1 to i32
    %c0_i32_10 = arith.constant 0 : i32
    %13 = arith.cmpi ne, %12, %c0_i32_10 : i32
    scf.if %13 {
      %c0_11 = arith.constant 0 : index
      %c0_12 = arith.constant 0 : index
      %14 = vector.load %arg8[%c0_11, %c0_12] : memref<8x256xf32, #tpu.memory_space<vmem>>, vector<8x256xf32>
      %c0_13 = arith.constant 0 : index
      %c0_14 = arith.constant 0 : index
      %c0_15 = arith.constant 0 : index
      %15 = vector.load %arg6[%c0_13, %c0_14, %c0_15] : memref<1x1x256xf32, #tpu.memory_space<vmem>>, vector<1x1x256xf32>
      %16 = vector.shape_cast %15 : vector<1x1x256xf32> to vector<1x256xf32>
      %17 = vector.broadcast %16 : vector<1x256xf32> to vector<8x256xf32>
      %18 = arith.addf %14, %17 : vector<8x256xf32>
      %cst_16 = arith.constant 0.000000e+00 : f32
      %19 = vector.broadcast %cst_16 : f32 to vector<8x256xf32>
      %20 = arith.maximumf %18, %19 : vector<8x256xf32>
      %21 = arith.truncf %20 : vector<8x256xf32> to vector<8x256xbf16>
      %c0_17 = arith.constant 0 : index
      %c0_18 = arith.constant 0 : index
      %c0_19 = arith.constant 0 : index
      %22 = vector.load %arg7[%c0_17, %c0_18, %c0_19] : memref<1x8x256xbf16, #tpu.memory_space<vmem>>, vector<1x8x256xbf16>
      %23 = vector.shape_cast %22 : vector<1x8x256xbf16> to vector<8x256xbf16>
      %24 = vector.shape_cast %21 : vector<8x256xbf16> to vector<1x8x256xbf16>
      tpu.vector_store %arg7[%c0_17, %c0_18, %c0_19], %24 {strides = array<i32>} : memref<1x8x256xbf16, #tpu.memory_space<vmem>>, vector<1x8x256xbf16>,
    } else {
    }
    return
  }
  func.func @transform_0(%arg0: i32, %arg1: i32, %arg2: i32, %arg3: i32) -> (i32, i32, i32) {
    %c0_i32 = arith.constant 0 : i32
    return %arg0, %arg1, %arg3 : i32, i32, i32
  }
  func.func @transform_1(%arg0: i32, %arg1: i32, %arg2: i32, %arg3: i32) -> (i32, i32, i32) {
    %c0_i32 = arith.constant 0 : i32
    return %arg0, %arg3, %arg2 : i32, i32, i32
  }
  func.func @transform_2(%arg0: i32, %arg1: i32, %arg2: i32, %arg3: i32) -> (i32, i32, i32) {
    %c0_i32 = arith.constant 0 : i32
    %c0_i32_0 = arith.constant 0 : i32
    return %arg0, %c0_i32, %arg2 : i32, i32, i32
  }
  func.func @transform_3(%arg0: i32, %arg1: i32, %arg2: i32, %arg3: i32) -> (i32, i32, i32) {
    %c0_i32 = arith.constant 0 : i32
    return %arg0, %arg1, %arg2 : i32, i32, i32
  }
}

module attributes {stable_mosaic.version = 11 : i64} {
  func.func @_gap_mlp_head_kernel(%arg0: i32, %arg1: memref<2x2x1x512xbf16, #tpu.memory_space<vmem>>, %arg2: memref<1024x256xbf16, #tpu.memory_space<vmem>>, %arg3: memref<1x256xf32, #tpu.memory_space<vmem>>, %arg4: memref<256x128xbf16, #tpu.memory_space<vmem>>, %arg5: memref<1x128xf32, #tpu.memory_space<vmem>>, %arg6: memref<128x2xbf16, #tpu.memory_space<vmem>>, %arg7: memref<1x2xf32, #tpu.memory_space<vmem>>, %arg8: memref<2x2xf32, #tpu.memory_space<vmem>>) attributes {dimension_semantics = [#tpu.dimension_semantics<arbitrary>], iteration_bounds = array<i64: 1>, scalar_prefetch = 0 : i64, scratch_operands = 0 : i64, tpu.core_type = #tpu.core_type<tc>, window_params = [{pipeline_mode = #tpu.pipeline_mode<synchronous>, transform_indices = @transform_0, window_bounds = array<i64: 2, 2, 1, 512>}, {pipeline_mode = #tpu.pipeline_mode<synchronous>, transform_indices = @transform_1, window_bounds = array<i64: 1024, 256>}, {pipeline_mode = #tpu.pipeline_mode<synchronous>, transform_indices = @transform_2, window_bounds = array<i64: 1, 256>}, {pipeline_mode = #tpu.pipeline_mode<synchronous>, transform_indices = @transform_3, window_bounds = array<i64: 256, 128>}, {pipeline_mode = #tpu.pipeline_mode<synchronous>, transform_indices = @transform_4, window_bounds = array<i64: 1, 128>}, {pipeline_mode = #tpu.pipeline_mode<synchronous>, transform_indices = @transform_5, window_bounds = array<i64: 128, 2>}, {pipeline_mode = #tpu.pipeline_mode<synchronous>, transform_indices = @transform_6, window_bounds = array<i64: 1, 2>}, {pipeline_mode = #tpu.pipeline_mode<synchronous>, transform_indices = @transform_7, window_bounds = array<i64: 2, 2>}]} {
    %c0 = arith.constant 0 : index
    %c0_0 = arith.constant 0 : index
    %c0_1 = arith.constant 0 : index
    %c0_2 = arith.constant 0 : index
    %0 = vector.load %arg1[%c0, %c0_0, %c0_1, %c0_2] : memref<2x2x1x512xbf16, #tpu.memory_space<vmem>>, vector<2x2x1x512xbf16>
    %1 = arith.extf %0 : vector<2x2x1x512xbf16> to vector<2x2x1x512xf32>
    %cst = arith.constant dense<0.000000e+00> : vector<2x2x512xf32>
    %2 = vector.multi_reduction <add>, %1, %cst [2] : vector<2x2x1x512xf32> to vector<2x2x512xf32>
    %cst_3 = arith.constant 1.000000e+00 : f32
    %3 = vector.broadcast %cst_3 : f32 to vector<2x2x512xf32>
    %4 = arith.divf %2, %3 : vector<2x2x512xf32>
    %5 = vector.extract_strided_slice %4 {offsets = [0, 0, 0], sizes = [1, 2, 512], strides = [1, 1, 1]} : vector<2x2x512xf32> to vector<1x2x512xf32>
    %6 = vector.shape_cast %5 : vector<1x2x512xf32> to vector<2x512xf32>
    %7 = arith.truncf %6 : vector<2x512xf32> to vector<2x512xbf16>
    %8 = vector.extract_strided_slice %4 {offsets = [1, 0, 0], sizes = [1, 2, 512], strides = [1, 1, 1]} : vector<2x2x512xf32> to vector<1x2x512xf32>
    %9 = vector.shape_cast %8 : vector<1x2x512xf32> to vector<2x512xf32>
    %10 = arith.truncf %9 : vector<2x512xf32> to vector<2x512xbf16>
    %c0_4 = arith.constant 0 : index
    %c0_5 = arith.constant 0 : index
    %11 = vector.load %arg2[%c0_4, %c0_5] : memref<1024x256xbf16, #tpu.memory_space<vmem>>, vector<512x256xbf16>
    %cst_6 = arith.constant dense<0.000000e+00> : vector<2x256xf32>
    %12 = tpu.matmul %7, %11, %cst_6 {dimension_numbers = #tpu.dot_dimension_numbers<[1], [0], [0], [1], [0, 0, 1, 1], [], []>} : vector<2x512xbf16>, vector<512x256xbf16>, vector<2x256xf32> -> vector<2x256xf32>
    %c512 = arith.constant 512 : index
    %c0_7 = arith.constant 0 : index
    %13 = vector.load %arg2[%c512, %c0_7] : memref<1024x256xbf16, #tpu.memory_space<vmem>>, vector<512x256xbf16>
    %cst_8 = arith.constant dense<0.000000e+00> : vector<2x256xf32>
    %14 = tpu.matmul %10, %13, %cst_8 {dimension_numbers = #tpu.dot_dimension_numbers<[1], [0], [0], [1], [0, 0, 1, 1], [], []>} : vector<2x512xbf16>, vector<512x256xbf16>, vector<2x256xf32> -> vector<2x256xf32>
    %15 = arith.addf %12, %14 : vector<2x256xf32>
    %c0_9 = arith.constant 0 : index
    %c0_10 = arith.constant 0 : index
    %16 = vector.load %arg3[%c0_9, %c0_10] : memref<1x256xf32, #tpu.memory_space<vmem>>, vector<1x256xf32>
    %17 = vector.broadcast %16 : vector<1x256xf32> to vector<2x256xf32>
    %18 = arith.addf %15, %17 : vector<2x256xf32>
    %cst_11 = arith.constant 0.000000e+00 : f32
    %19 = vector.broadcast %cst_11 : f32 to vector<2x256xf32>
    %20 = arith.maximumf %18, %19 : vector<2x256xf32>
    %21 = arith.truncf %20 : vector<2x256xf32> to vector<2x256xbf16>
    %c0_12 = arith.constant 0 : index
    %c0_13 = arith.constant 0 : index
    %22 = vector.load %arg4[%c0_12, %c0_13] : memref<256x128xbf16, #tpu.memory_space<vmem>>, vector<256x128xbf16>
    %cst_14 = arith.constant dense<0.000000e+00> : vector<2x128xf32>
    %23 = tpu.matmul %21, %22, %cst_14 {dimension_numbers = #tpu.dot_dimension_numbers<[1], [0], [0], [1], [0, 0, 1, 1], [], []>} : vector<2x256xbf16>, vector<256x128xbf16>, vector<2x128xf32> -> vector<2x128xf32>
    %c0_15 = arith.constant 0 : index
    %c0_16 = arith.constant 0 : index
    %24 = vector.load %arg5[%c0_15, %c0_16] : memref<1x128xf32, #tpu.memory_space<vmem>>, vector<1x128xf32>
    %25 = vector.broadcast %24 : vector<1x128xf32> to vector<2x128xf32>
    %26 = arith.addf %23, %25 : vector<2x128xf32>
    %cst_17 = arith.constant 0.000000e+00 : f32
    %27 = vector.broadcast %cst_17 : f32 to vector<2x128xf32>
    %28 = arith.maximumf %26, %27 : vector<2x128xf32>
    %29 = arith.truncf %28 : vector<2x128xf32> to vector<2x128xbf16>
    %c0_18 = arith.constant 0 : index
    %c0_19 = arith.constant 0 : index
    %30 = vector.load %arg6[%c0_18, %c0_19] : memref<128x2xbf16, #tpu.memory_space<vmem>>, vector<128x2xbf16>
    %cst_20 = arith.constant dense<0.000000e+00> : vector<2x2xf32>
    %31 = tpu.matmul %29, %30, %cst_20 {dimension_numbers = #tpu.dot_dimension_numbers<[1], [0], [0], [1], [0, 0, 1, 1], [], []>} : vector<2x128xbf16>, vector<128x2xbf16>, vector<2x2xf32> -> vector<2x2xf32>
    %c0_21 = arith.constant 0 : index
    %c0_22 = arith.constant 0 : index
    %32 = vector.load %arg7[%c0_21, %c0_22] : memref<1x2xf32, #tpu.memory_space<vmem>>, vector<1x2xf32>
    %33 = vector.broadcast %32 : vector<1x2xf32> to vector<2x2xf32>
    %34 = arith.addf %31, %33 : vector<2x2xf32>
    %c0_23 = arith.constant 0 : index
    %c0_24 = arith.constant 0 : index
    %35 = vector.load %arg8[%c0_23, %c0_24] : memref<2x2xf32, #tpu.memory_space<vmem>>, vector<2x2xf32>
    tpu.vector_store %arg8[%c0_23, %c0_24], %34 {strides = array<i32>} : memref<2x2xf32, #tpu.memory_space<vmem>>, vector<2x2xf32>,
    return
  }
  func.func @transform_0(%arg0: i32) -> (i32, i32, i32, i32) {
    %c0_i32 = arith.constant 0 : i32
    %c0_i32_0 = arith.constant 0 : i32
    %c0_i32_1 = arith.constant 0 : i32
    %c0_i32_2 = arith.constant 0 : i32
    %c0_i32_3 = arith.constant 0 : i32
    return %c0_i32, %c0_i32_0, %c0_i32_1, %c0_i32_2 : i32, i32, i32, i32
  }
  func.func @transform_1(%arg0: i32) -> (i32, i32) {
    %c0_i32 = arith.constant 0 : i32
    %c0_i32_0 = arith.constant 0 : i32
    %c0_i32_1 = arith.constant 0 : i32
    return %c0_i32, %c0_i32_0 : i32, i32
  }
  func.func @transform_2(%arg0: i32) -> (i32, i32) {
    %c0_i32 = arith.constant 0 : i32
    %c0_i32_0 = arith.constant 0 : i32
    %c0_i32_1 = arith.constant 0 : i32
    return %c0_i32, %c0_i32_0 : i32, i32
  }
  func.func @transform_3(%arg0: i32) -> (i32, i32) {
    %c0_i32 = arith.constant 0 : i32
    %c0_i32_0 = arith.constant 0 : i32
    %c0_i32_1 = arith.constant 0 : i32
    return %c0_i32, %c0_i32_0 : i32, i32
  }
  func.func @transform_4(%arg0: i32) -> (i32, i32) {
    %c0_i32 = arith.constant 0 : i32
    %c0_i32_0 = arith.constant 0 : i32
    %c0_i32_1 = arith.constant 0 : i32
    return %c0_i32, %c0_i32_0 : i32, i32
  }
  func.func @transform_5(%arg0: i32) -> (i32, i32) {
    %c0_i32 = arith.constant 0 : i32
    %c0_i32_0 = arith.constant 0 : i32
    %c0_i32_1 = arith.constant 0 : i32
    return %c0_i32, %c0_i32_0 : i32, i32
  }
  func.func @transform_6(%arg0: i32) -> (i32, i32) {
    %c0_i32 = arith.constant 0 : i32
    %c0_i32_0 = arith.constant 0 : i32
    %c0_i32_1 = arith.constant 0 : i32
    return %c0_i32, %c0_i32_0 : i32, i32
  }
  func.func @transform_7(%arg0: i32) -> (i32, i32) {
    %c0_i32 = arith.constant 0 : i32
    %c0_i32_0 = arith.constant 0 : i32
    %c0_i32_1 = arith.constant 0 : i32
    return %c0_i32, %c0_i32_0 : i32, i32
  }
}

</mosaic_0001>

<bundles_post_ra>
// kernel: _pe_h_network.22
= control target key start
LH: loop header
LB: loop body
LE: loop exit
PB: predicated region body
PF: predicated region fallthrough
CT: control target
= control target key end

     0   :  { %s1290_s12 = smov 0   ;;  %s1292_s13 = smov 0   ;;  %s1425_s0 = inlined_call_operand.vmem [shape: bf16[128,256], index: 0, kind: input, shape index: {}]   ;;  %s1426_s1 = inlined_call_operand.vmem [shape: bf16[2,256,128], index: 1, kind: input, shape index: {}]   ;;  %s1427_s2 = inlined_call_operand.vmem [shape: f32[2,1,128], index: 2, kind: input, shape index: {}]   ;;  %s1428_s3 = inlined_call_operand.vmem [shape: bf16[2,128,128], index: 3, kind: output, shape index: {}]  }
   0x1   :  { %s1294_s14 = smov 0  }
   0x2 LB: > { %s39_s15 = sadd.s32 1, %s1264_s13  ;;  %p981_p0 = scmp.ge.s32.totalorder %s1268_s14, 1  ;;  %s1268_s14 = sphi %s1294_s14, %s13_s14   ;;  %s1264_s13 = sphi %s1292_s13, %s1430_s13   ;;  %s1260_s12 = sphi %s1290_s12, %s1429_s12  }
   0x3   : > { %p41_p1 = scmp.ge.s32.totalorder %s39_s15, 2  ;;  %p211_p2 = scmp.lt.s32.totalorder %s1268_s14, 3 }
   0x5   : > { %s1432_s15 = smov (%p41_p1, %s39_s15), 0  ;;  %p212_p3 = pnand %p981_p0, %p211_p2 }
   0x6   : > { %p278_p4 = scmp.lt.s32.totalorder (!%p212_p3), %s1260_s12, 1 }
   0x7   : > { %215 = sbr.rel (%p212_p3) target bundleno = 280 (0x118), region = 32 }
   0xc   : > { %v1224_v0 = vld [vmem:[%s1425_s0 + $0x4] ss:$8 sps:$4 sm:$0xff]   ;;  %s1434_s12 = smov (!%p278_p4, %s1260_s12), 1  ;;  %v1222_v18 = vld [vmem:[%s1425_s0] ss:$8 sps:$4 sm:$0xff]  }
   0xd   : > { %v1227_v1 = vld [vmem:[%s1425_s0 + $0x44] ss:$8 sps:$4 sm:$0xff]   ;;  %602 = vmatprep.mubr.bf16.mxu0 %v1224_v0  ;;  %s1037_s20 = sshll.u32 %s1434_s12, 7  ;;  %v1225_v19 = vld [vmem:[%s1425_s0 + $0x40] ss:$8 sps:$4 sm:$0xff]   ;;  %s295_s4 = scalar_lea.vmem %s1427_s2, %s1434_s12 }
   0xe   : > { %634 = vmatprep.mubr.bf16.mxu1 %v1227_v1  ;;  %s1320_s23 = scalar_lea.vmem %s1426_s1, %s1037_s20  ;;  %v1228_v20 = vld [vmem:[%s1425_s0 + $0x14] ss:$8 sps:$4 sm:$0xff]   ;;  %v1232_v22 = vld [vmem:[%s1425_s0 + $0x10] ss:$8 sps:$4 sm:$0xff]   ;;  %v1234_v24 = vld [vmem:[%s1425_s0 + $0x24] ss:$8 sps:$4 sm:$0xff]  }
   0xf   : > { %v1206_v2 = vld [vmem:[%s1320_s23 + $0x78] sm:$0xff]   ;;  %v1208_v4 = vld [vmem:[%s1320_s23 + $0x70] sm:$0xff]   ;;  %v1210_v6 = vld [vmem:[%s1320_s23 + $0x68] sm:$0xff]   ;;  %s1038_s5 = sshll.u32 %s1434_s12, 6 }
  0x10   : > { %v1207_v3 = vld [vmem:[%s1320_s23 + $0x38] sm:$0xff]   ;;  %1102 = vmatprep.subr.bf16.mxu0 %v1206_v2  ;;  %1166 = vmatprep.subr.bf16.mxu1 %v1206_v2  ;;  %v1209_v5 = vld [vmem:[%s1320_s23 + $0x30] sm:$0xff]   ;;  %v1211_v7 = vld [vmem:[%s1320_s23 + $0x28] sm:$0xff]   ;;  %s1394_s8 = scalar_lea.vmem %s1428_s3, %s1038_s5 }
  0x11   : > { %1103 = vmatpush3.bf16.msra.mxu0 %v1207_v3  ;;  %1174 = vmatpush3.bf16.msra.mxu1 %v1207_v3  ;;  %v1212_v8 = vld [vmem:[%s1320_s23 + $0x60] sm:$0xff]   ;;  %v1214_v10 = vld [vmem:[%s1320_s23 + $0x58] sm:$0xff]   ;;  %v1216_v12 = vld [vmem:[%s1320_s23 + $0x50] sm:$0xff]  }
  0x12   : > { %1104 = vmatprep.subr.bf16.mxu0 %v1208_v4  ;;  %1167 = vmatprep.subr.bf16.mxu1 %v1208_v4  ;;  %v1213_v9 = vld [vmem:[%s1320_s23 + $0x20] sm:$0xff]   ;;  %v1215_v11 = vld [vmem:[%s1320_s23 + $0x18] sm:$0xff]   ;;  %v1217_v13 = vld [vmem:[%s1320_s23 + $0x10] sm:$0xff]  }
  0x13   : > { %v1218_v14 = vld [vmem:[%s1320_s23 + $0x48] sm:$0xff]   ;;  %v1220_v16 = vld [vmem:[%s1320_s23 + $0x40] sm:$0xff]   ;;  %v1230_v21 = vld [vmem:[%s1425_s0 + $0x54] ss:$8 sps:$4 sm:$0xff]  }
  0x14   : > { %v1219_v15 = vld [vmem:[%s1320_s23 + $0x8] sm:$0xff]   ;;  %v1221_v17 = vld [vmem:[%s1320_s23] sm:$0xff]   ;;  %v1233_v23 = vld [vmem:[%s1425_s0 + $0x50] ss:$8 sps:$4 sm:$0xff]  }
  0x15   : > { %1105 = vmatpush3.bf16.msra.mxu0 %v1209_v5  ;;  %1175 = vmatpush3.bf16.msra.mxu1 %v1209_v5  ;;  %v1236_v25 = vld [vmem:[%s1425_s0 + $0x64] ss:$8 sps:$4 sm:$0xff]   ;;  %v1238_v26 = vld [vmem:[%s1425_s0 + $0x20] ss:$8 sps:$4 sm:$0xff]   ;;  %v1240_v28 = vld [vmem:[%s1425_s0 + $0x34] ss:$8 sps:$4 sm:$0xff]  }
  0x16   : > { %1106 = vmatprep.subr.bf16.mxu0 %v1210_v6  ;;  %1168 = vmatprep.subr.bf16.mxu1 %v1210_v6  ;;  %v1239_v27 = vld [vmem:[%s1425_s0 + $0x60] ss:$8 sps:$4 sm:$0xff]   ;;  %v1242_v29 = vld [vmem:[%s1425_s0 + $0x74] ss:$8 sps:$4 sm:$0xff]   ;;  %v1244_v30 = vld [vmem:[%s1425_s0 + $0x30] ss:$8 sps:$4 sm:$0xff]  }
  0x17   : > { %v1245_v31 = vld [vmem:[%s1425_s0 + $0x70] ss:$8 sps:$4 sm:$0xff]   ;;  %v1384_v37 = vld [vmem:[%s295_s4] ss:$0 sm:$0xff] }
  0x19   : > { %1107 = vmatpush3.bf16.msra.mxu0 %v1211_v7  ;;  %1176 = vmatpush3.bf16.msra.mxu1 %v1211_v7 }
  0x1a   : > { %1108 = vmatprep.subr.bf16.mxu0 %v1212_v8  ;;  %1169 = vmatprep.subr.bf16.mxu1 %v1212_v8 }
  0x1d   : > { %1109 = vmatpush3.bf16.msra.mxu0 %v1213_v9  ;;  %1177 = vmatpush3.bf16.msra.mxu1 %v1213_v9 }
  0x1e   : > { %1110 = vmatprep.subr.bf16.mxu0 %v1214_v10  ;;  %1170 = vmatprep.subr.bf16.mxu1 %v1214_v10 }
  0x21   : > { %1111 = vmatpush3.bf16.msra.mxu0 %v1215_v11  ;;  %1178 = vmatpush3.bf16.msra.mxu1 %v1215_v11 }
  0x22   : > { %1112 = vmatprep.subr.bf16.mxu0 %v1216_v12  ;;  %1171 = vmatprep.subr.bf16.mxu1 %v1216_v12 }
  0x25   : > { %1113 = vmatpush3.bf16.msra.mxu0 %v1217_v13  ;;  %1179 = vmatpush3.bf16.msra.mxu1 %v1217_v13 }
  0x26   : > { %1114 = vmatprep.subr.bf16.mxu0 %v1218_v14  ;;  %1172 = vmatprep.subr.bf16.mxu1 %v1218_v14 }
  0x29   : > { %1115 = vmatpush3.bf16.msra.mxu0 %v1219_v15  ;;  %1180 = vmatpush3.bf16.msra.mxu1 %v1219_v15 }
  0x2a   : > { %1116 = vmatprep.subr.bf16.mxu0 %v1220_v16  ;;  %1173 = vmatprep.subr.bf16.mxu1 %v1220_v16 }
  0x2d   : > { %1117 = vmatpush3.bf16.msra.mxu0 %v1221_v17  ;;  %1181 = vmatpush3.bf16.msra.mxu1 %v1221_v17 }
  0x30   : > { %603 = vmatmul.mubr.bf16.vlgmr.msra.gmra.mxu0 %v1222_v18  ;;  %635 = vmatmul.mubr.bf16.vlgmr.msra.gmra.mxu1 %v1225_v19 }
  0x31   : > { %610 = vmatprep.mubr.bf16.mxu0 %v1228_v20  ;;  %642 = vmatprep.mubr.bf16.mxu1 %v1230_v21 }
  0x38   : > { %611 = vmatmul.mubr.bf16.gmra.mxu0 %v1232_v22  ;;  %643 = vmatmul.mubr.bf16.gmra.mxu1 %v1233_v23 }
  0x39   : > { %618 = vmatprep.mubr.bf16.mxu0 %v1234_v24  ;;  %650 = vmatprep.mubr.bf16.mxu1 %v1236_v25 }
  0x40   : > { %619 = vmatmul.mubr.bf16.gmra.mxu0 %v1238_v26  ;;  %651 = vmatmul.mubr.bf16.gmra.mxu1 %v1239_v27 }
  0x41   : > { %626 = vmatprep.mubr.bf16.mxu0 %v1240_v28  ;;  %658 = vmatprep.mubr.bf16.mxu1 %v1242_v29 }
  0x48   : > { %627 = vmatmul.mubr.bf16.gmra.mxu0 %v1244_v30  ;;  %659 = vmatmul.mubr.bf16.gmra.mxu1 %v1245_v31 }
  0xf0   : > { %v1118_v32 = vpop.f32.mrf.mxu0  ;;  %v1142_v33 = vpop.f32.mrf.mxu1 }
  0xf2   : > { %v1119_v34 = vpop.f32.mrf.mxu0  ;;  %v1143_v35 = vpop.f32.mrf.mxu1 }
  0xf3   : > { %v1120_v36 = vadd.f32 %v1119_v34, %v1118_v32  ;;  %v1144_v38 = vadd.f32 %v1143_v35, %v1142_v33 }
  0xf4   : > { %v1121_v39 = vpop.f32.mrf.mxu0  ;;  %v1145_v40 = vpop.f32.mrf.mxu1 }
  0xf5   : > { %v725_v41 = vadd.f32 %v1120_v36, %v1384_v37  ;;  %v733_v42 = vadd.f32 %v1144_v38, %v1384_v37 }
  0xf6   : > { %v1122_v43 = vpop.f32.mrf.mxu0  ;;  %v1146_v44 = vpop.f32.mrf.mxu1 }
  0xf7   : > { %v1123_v45 = vadd.f32 %v1122_v43, %v1121_v39  ;;  %v1147_v46 = vadd.f32 %v1146_v44, %v1145_v40  ;;  %v741_v51 = vmax.f32 %v725_v41, 0.0  ;;  %v749_v52 = vmax.f32 %v733_v42, 0.0 }
  0xf8   : > { %v1124_v47 = vpop.f32.mrf.mxu0  ;;  %v1148_v48 = vpop.f32.mrf.mxu1 }
  0xf9   : > { %v726_v49 = vadd.f32 %v1123_v45, %v1384_v37  ;;  %v734_v50 = vadd.f32 %v1147_v46, %v1384_v37 }
  0xfa   : > { %v1125_v53 = vpop.f32.mrf.mxu0  ;;  %v1149_v54 = vpop.f32.mrf.mxu1 }
  0xfb   : > { %v742_v55 = vmax.f32 %v726_v49, 0.0  ;;  %v750_v56 = vmax.f32 %v734_v50, 0.0  ;;  %v1126_v57 = vadd.f32 %v1125_v53, %v1124_v47  ;;  %v1150_v58 = vadd.f32 %v1149_v54, %v1148_v48 }
  0xfc   : > { %v1127_v59 = vpop.f32.mrf.mxu0  ;;  %v1151_v60 = vpop.f32.mrf.mxu1 }
  0xfd   : > { %v1058_v61 = vpack.c.bf16 %v742_v55, %v741_v51  ;;  %v1078_v62 = vpack.c.bf16 %v750_v56, %v749_v52  ;;  %v727_v63 = vadd.f32 %v1126_v57, %v1384_v37  ;;  %v735_v0 = vadd.f32 %v1150_v58, %v1384_v37 }
  0xfe   : > { %v1128_v1 = vpop.f32.mrf.mxu0  ;;  %v1152_v2 = vpop.f32.mrf.mxu1 }
  0xff   : > { %1059 = vst [vmem:[%s1394_s8] sm:$0xff] %v1058_v61   ;;  %1098 = vst [vmem:[%s1394_s8 + $0x20] sm:$0xff] %v1078_v62   ;;  %v1129_v3 = vadd.f32 %v1128_v1, %v1127_v59  ;;  %v1153_v4 = vadd.f32 %v1152_v2, %v1151_v60  ;;  %v743_v9 = vmax.f32 %v727_v63, 0.0  ;;  %v751_v10 = vmax.f32 %v735_v0, 0.0 }
 0x100   : > { %v1130_v5 = vpop.f32.mrf.mxu0  ;;  %v1154_v6 = vpop.f32.mrf.mxu1 }
 0x101   : > { %v728_v7 = vadd.f32 %v1129_v3, %v1384_v37  ;;  %v736_v8 = vadd.f32 %v1153_v4, %v1384_v37 }
 0x102   : > { %v1131_v11 = vpop.f32.mrf.mxu0  ;;  %v1155_v12 = vpop.f32.mrf.mxu1 }
 0x103   : > { %v744_v13 = vmax.f32 %v728_v7, 0.0  ;;  %v752_v14 = vmax.f32 %v736_v8, 0.0  ;;  %v1132_v15 = vadd.f32 %v1131_v11, %v1130_v5  ;;  %v1156_v16 = vadd.f32 %v1155_v12, %v1154_v6 }
 0x104   : > { %v1133_v17 = vpop.f32.mrf.mxu0  ;;  %v1157_v18 = vpop.f32.mrf.mxu1 }
 0x105   : > { %v1063_v19 = vpack.c.bf16 %v744_v13, %v743_v9  ;;  %v1083_v20 = vpack.c.bf16 %v752_v14, %v751_v10  ;;  %v729_v21 = vadd.f32 %v1132_v15, %v1384_v37  ;;  %v737_v22 = vadd.f32 %v1156_v16, %v1384_v37 }
 0x106   : > { %v1134_v23 = vpop.f32.mrf.mxu0  ;;  %v1158_v24 = vpop.f32.mrf.mxu1 }
 0x107   : > { %1095 = vst [vmem:[%s1394_s8 + $0x8] sm:$0xff] %v1063_v19   ;;  %1099 = vst [vmem:[%s1394_s8 + $0x28] sm:$0xff] %v1083_v20   ;;  %v1135_v25 = vadd.f32 %v1134_v23, %v1133_v17  ;;  %v1159_v26 = vadd.f32 %v1158_v24, %v1157_v18  ;;  %v745_v31 = vmax.f32 %v729_v21, 0.0  ;;  %v753_v32 = vmax.f32 %v737_v22, 0.0 }
 0x108   : > { %v1136_v27 = vpop.f32.mrf.mxu0  ;;  %v1160_v28 = vpop.f32.mrf.mxu1 }
 0x109   : > { %v730_v29 = vadd.f32 %v1135_v25, %v1384_v37  ;;  %v738_v30 = vadd.f32 %v1159_v26, %v1384_v37 }
 0x10a   : > { %v1137_v33 = vpop.f32.mrf.mxu0  ;;  %v1161_v34 = vpop.f32.mrf.mxu1 }
 0x10b   : > { %v746_v35 = vmax.f32 %v730_v29, 0.0  ;;  %v754_v36 = vmax.f32 %v738_v30, 0.0  ;;  %v1138_v38 = vadd.f32 %v1137_v33, %v1136_v27  ;;  %v1162_v39 = vadd.f32 %v1161_v34, %v1160_v28 }
 0x10c   : > { %v1139_v40 = vpop.f32.mrf.mxu0  ;;  %v1163_v41 = vpop.f32.mrf.mxu1 }
 0x10d   : > { %v1068_v42 = vpack.c.bf16 %v746_v35, %v745_v31  ;;  %v1088_v43 = vpack.c.bf16 %v754_v36, %v753_v32  ;;  %v731_v46 = vadd.f32 %v1138_v38, %v1384_v37  ;;  %v739_v47 = vadd.f32 %v1162_v39, %v1384_v37 }
 0x10e   : > { %v1140_v44 = vpop.f32.mrf.mxu0  ;;  %v1164_v45 = vpop.f32.mrf.mxu1 }
 0x10f   : > { %1096 = vst [vmem:[%s1394_s8 + $0x10] sm:$0xff] %v1068_v42   ;;  %1100 = vst [vmem:[%s1394_s8 + $0x30] sm:$0xff] %v1088_v43   ;;  %v1141_v48 = vadd.f32 %v1140_v44, %v1139_v40  ;;  %v1165_v49 = vadd.f32 %v1164_v45, %v1163_v41  ;;  %v747_v52 = vmax.f32 %v731_v46, 0.0  ;;  %v755_v53 = vmax.f32 %v739_v47, 0.0 }
 0x111   : > { %v732_v50 = vadd.f32 %v1141_v48, %v1384_v37  ;;  %v740_v51 = vadd.f32 %v1165_v49, %v1384_v37 }
 0x113   : > { %v748_v54 = vmax.f32 %v732_v50, 0.0  ;;  %v756_v55 = vmax.f32 %v740_v51, 0.0 }
 0x115   : > { %v1073_v56 = vpack.c.bf16 %v748_v54, %v747_v52  ;;  %v1093_v57 = vpack.c.bf16 %v756_v55, %v755_v53 }
 0x117   : > { %1097 = vst [vmem:[%s1394_s8 + $0x18] sm:$0xff] %v1073_v56   ;;  %1101 = vst [vmem:[%s1394_s8 + $0x38] sm:$0xff] %v1093_v57  }
 0x118 PF: > { %s13_s14 = sadd.s32 1, %s1268_s14   ;;  %s1429_s12 = smov %s1264_s13 }
 0x119   : > { %p10_p5 = scmp.ge.s32.totalorder %s13_s14, 4   ;;  %s1430_s13 = smov %s1432_s15 }
 0x11b   :  { %12 = sbr.rel (!%p10_p5) target bundleno = 2 (0x2), region = 76 }

// kernel: _pe_h_network.23
= control target key start
LH: loop header
LB: loop body
LE: loop exit
PB: predicated region body
PF: predicated region fallthrough
CT: control target
= control target key end

     0   :  { %vm521_vm0 = vcmask 520192   ;;  %vm522_vm1 = vsmask.f32 4352  ;;  %vm1484_vm3 = vcmask 1041409   ;;  %vm1486_vm4 = vcmask 1042434   ;;  %s2762_s0 = inlined_call_operand.vmem [shape: bf16[64,9,64], index: 0, kind: input, shape index: {}]   ;;  %s2763_s1 = inlined_call_operand.vmem [shape: bf16[64,64], index: 1, kind: output, shape index: {}]  }
   0x1   :  { %v1704_v0 = vld [vmem:[%s2762_s0] sm:$0x1f]   ;;  %v1705_v1 = vld [vmem:[%s2762_s0 + $0x8] sm:$0x1f]   ;;  %v1706_v2 = vld [vmem:[%s2762_s0 + $0x10] sm:$0x1f]  }
   0x2   :  { %v1707_v3 = vld [vmem:[%s2762_s0 + $0x18] sm:$0x1f]   ;;  %v1708_v4 = vld [vmem:[%s2762_s0 + $0x20] sm:$0x1f]   ;;  %v1709_v5 = vld [vmem:[%s2762_s0 + $0x28] sm:$0x1f]  }
   0x3   :  { %vm1796_vm2 = vmand %vm521_vm0, %vm522_vm1  ;;  %v1710_v14 = vld [vmem:[%s2762_s0 + $0x30] sm:$0x1f]   ;;  %v1711_v27 = vld [vmem:[%s2762_s0 + $0x38] sm:$0x1f]   ;;  %vm1488_vm5 = vcmask 1043459   ;;  %vm1490_vm6 = vcmask 1044484  }
   0x4   :  { %v524_v7 = vsel %vm1796_vm2, %v1704_v0, 4286644096  ;;  %v535_v8 = vsel %vm1796_vm2, %v1705_v1, 4286644096  ;;  %v546_v9 = vsel %vm1796_vm2, %v1706_v2, 4286644096 }
   0x5   :  { %v525_v10 = vunpack.i.l.bf16 %v524_v7  ;;  %v526_v11 = vunpack.i.h.bf16 %v524_v7  ;;  %v536_v12 = vunpack.i.l.bf16 %v535_v8  ;;  %v537_v13 = vunpack.i.h.bf16 %v535_v8 }
   0x6   :  { %v547_v15 = vunpack.i.l.bf16 %v546_v9  ;;  %v548_v16 = vunpack.i.h.bf16 %v546_v9  ;;  %v557_v17 = vsel %vm1796_vm2, %v1707_v3, 4286644096  ;;  %v568_v18 = vsel %vm1796_vm2, %v1708_v4, 4286644096  ;;  %v1712_v4 = vld [vmem:[%s2762_s0 + $0x40] sm:$0x1f]  }
   0x7   :  { %v527_v19 = vmax.f32 %v525_v10, %v526_v11  ;;  %v538_v20 = vmax.f32 %v536_v12, %v537_v13  ;;  %v558_v21 = vunpack.i.l.bf16 %v557_v17  ;;  %v559_v22 = vunpack.i.h.bf16 %v557_v17 }
   0x8   :  { %v549_v23 = vmax.f32 %v547_v15, %v548_v16  ;;  %v569_v24 = vunpack.i.l.bf16 %v568_v18  ;;  %v570_v25 = vunpack.i.h.bf16 %v568_v18  ;;  %v579_v26 = vsel %vm1796_vm2, %v1709_v5, 4286644096  ;;  %v1713_v5 = vld [vmem:[%s2762_s0 + $0x48] sm:$0x1f]  }
   0x9   :  { %v528_v28 = vrot.slane %v527_v19, 4  ;;  %v539_v29 = vrot.slane %v538_v20, 4  ;;  %v560_v30 = vmax.f32 %v558_v21, %v559_v22  ;;  %v580_v31 = vunpack.i.l.bf16 %v579_v26 }
   0xa   :  { %v550_v32 = vrot.slane %v549_v23, 4  ;;  %v571_v33 = vmax.f32 %v569_v24, %v570_v25  ;;  %v581_v34 = vunpack.i.h.bf16 %v579_v26  ;;  %v590_v35 = vsel %vm1796_vm2, %v1710_v14, 4286644096 }
   0xb   :  { %v529_v36 = vmax.f32 %v527_v19, %v528_v28  ;;  %v540_v37 = vmax.f32 %v538_v20, %v539_v29  ;;  %v561_v38 = vrot.slane %v560_v30, 4  ;;  %v591_v39 = vunpack.i.l.bf16 %v590_v35  ;;  %v1714_v19 = vld [vmem:[%s2762_s0 + $0x50] sm:$0x1f]   ;;  %v1715_v20 = vld [vmem:[%s2762_s0 + $0x58] sm:$0x1f]  }
   0xc   :  { %v551_v40 = vmax.f32 %v549_v23, %v550_v32  ;;  %v572_v41 = vrot.slane %v571_v33, 4  ;;  %v582_v42 = vmax.f32 %v580_v31, %v581_v34  ;;  %v592_v43 = vunpack.i.h.bf16 %v590_v35 }
   0xd   :  { %v530_v44 = vrot.slane %v529_v36, 2  ;;  %v541_v45 = vrot.slane %v540_v37, 2  ;;  %v562_v46 = vmax.f32 %v560_v30, %v561_v38  ;;  %v601_v47 = vsel %vm1796_vm2, %v1711_v27, 4286644096 }
   0xe   :  { %v552_v48 = vrot.slane %v551_v40, 2  ;;  %v573_v49 = vmax.f32 %v571_v33, %v572_v41  ;;  %v583_v50 = vrot.slane %v582_v42, 4  ;;  %v593_v51 = vmax.f32 %v591_v39, %v592_v43  ;;  %v1716_v33 = vld [vmem:[%s2762_s0 + $0x60] sm:$0x1f]  }
   0xf   :  { %v531_v52 = vmax.f32 %v529_v36, %v530_v44  ;;  %v542_v53 = vmax.f32 %v540_v37, %v541_v45  ;;  %v563_v54 = vrot.slane %v562_v46, 2  ;;  %v602_v55 = vunpack.i.l.bf16 %v601_v47 }
  0x10   :  { %v553_v56 = vmax.f32 %v551_v40, %v552_v48  ;;  %v574_v57 = vrot.slane %v573_v49, 2  ;;  %v584_v58 = vmax.f32 %v582_v42, %v583_v50  ;;  %v594_v59 = vrot.slane %v593_v51, 4  ;;  %v1717_v42 = vld [vmem:[%s2762_s0 + $0x68] sm:$0x1f]  }
  0x11   :  { %v532_v60 = vrot.slane %v531_v52, 1  ;;  %v543_v61 = vrot.slane %v542_v53, 1  ;;  %v564_v62 = vmax.f32 %v562_v46, %v563_v54  ;;  %v603_v63 = vunpack.i.h.bf16 %v601_v47 }
  0x12   :  { %v554_v0 = vrot.slane %v553_v56, 1  ;;  %v575_v1 = vmax.f32 %v573_v49, %v574_v57  ;;  %v585_v2 = vrot.slane %v584_v58, 2  ;;  %v595_v3 = vmax.f32 %v593_v51, %v594_v59 }
  0x13   :  { %v533_v7 = vmax.f32 %v531_v52, %v532_v60  ;;  %v544_v8 = vmax.f32 %v542_v53, %v543_v61  ;;  %v565_v9 = vrot.slane %v564_v62, 1  ;;  %v604_v10 = vmax.f32 %v602_v55, %v603_v63  ;;  %v1718_v55 = vld [vmem:[%s2762_s0 + $0x70] sm:$0x1f]  }
  0x14   :  { %v555_v11 = vmax.f32 %v553_v56, %v554_v0  ;;  %v576_v12 = vrot.slane %v575_v1, 1  ;;  %v586_v13 = vmax.f32 %v584_v58, %v585_v2  ;;  %v596_v14 = vrot.slane %v595_v3, 2 }
  0x15   :  { %v1828_v15 = vpack.i.bf16 %v533_v7, %v533_v7  ;;  %v1830_v16 = vpack.i.bf16 %v544_v8, %v544_v8  ;;  %v566_v17 = vmax.f32 %v564_v62, %v565_v9  ;;  %v605_v18 = vrot.slane %v604_v10, 4 }
  0x16   :  { %v1838_v21 = vpack.i.bf16 %v555_v11, %v555_v11  ;;  %v577_v22 = vmax.f32 %v575_v1, %v576_v12  ;;  %v587_v23 = vrot.slane %v586_v13, 1  ;;  %v597_v24 = vmax.f32 %v595_v3, %v596_v14 }
  0x17   :  { %v1840_v25 = vpack.i.bf16 %v566_v17, %v566_v17  ;;  %v606_v26 = vmax.f32 %v604_v10, %v605_v18  ;;  %v612_v27 = vsel %vm1796_vm2, %v1712_v4, 4286644096  ;;  %v623_v28 = vsel %vm1796_vm2, %v1713_v5, 4286644096  ;;  %v1719_v4 = vld [vmem:[%s2762_s0 + $0x78] sm:$0x1f]  }
  0x18   :  { %v1846_v29 = vpack.i.bf16 %v577_v22, %v577_v22  ;;  %v588_v30 = vmax.f32 %v586_v13, %v587_v23  ;;  %v598_v31 = vrot.slane %v597_v24, 1  ;;  %v613_v32 = vunpack.i.l.bf16 %v612_v27 }
  0x19   :  { %v607_v34 = vrot.slane %v606_v26, 2  ;;  %v614_v35 = vunpack.i.h.bf16 %v612_v27  ;;  %v624_v36 = vunpack.i.l.bf16 %v623_v28  ;;  %v625_v37 = vunpack.i.h.bf16 %v623_v28 }
  0x1a   :  { %v1851_v38 = vpack.i.bf16 %v588_v30, %v588_v30  ;;  %v599_v39 = vmax.f32 %v597_v24, %v598_v31  ;;  %v634_v40 = vsel %vm1796_vm2, %v1714_v19, 4286644096  ;;  %v645_v41 = vsel %vm1796_vm2, %v1715_v20, 4286644096 }
  0x1b   :  { %v608_v43 = vmax.f32 %v606_v26, %v607_v34  ;;  %v615_v44 = vmax.f32 %v613_v32, %v614_v35  ;;  %v626_v45 = vmax.f32 %v624_v36, %v625_v37  ;;  %v635_v46 = vunpack.i.l.bf16 %v634_v40  ;;  %v1720_v35 = vld [vmem:[%s2762_s0 + $0x80] sm:$0x1f]   ;;  %v1721_v36 = vld [vmem:[%s2762_s0 + $0x88] sm:$0x1f]  }
  0x1c   :  { %v1860_v47 = vpack.i.bf16 %v599_v39, %v599_v39  ;;  %v636_v48 = vunpack.i.h.bf16 %v634_v40  ;;  %v646_v49 = vunpack.i.l.bf16 %v645_v41  ;;  %v647_v50 = vunpack.i.h.bf16 %v645_v41 }
  0x1d   :  { %v609_v51 = vrot.slane %v608_v43, 1  ;;  %v616_v52 = vrot.slane %v615_v44, 4  ;;  %v627_v53 = vrot.slane %v626_v45, 4  ;;  %v656_v54 = vsel %vm1796_vm2, %v1716_v33, 4286644096 }
  0x1e   :  { %v637_v56 = vmax.f32 %v635_v46, %v636_v48  ;;  %v648_v57 = vmax.f32 %v646_v49, %v647_v50  ;;  %v657_v58 = vunpack.i.l.bf16 %v656_v54  ;;  %v658_v59 = vunpack.i.h.bf16 %v656_v54 }
  0x1f   :  { %v610_v60 = vmax.f32 %v608_v43, %v609_v51  ;;  %v617_v61 = vmax.f32 %v615_v44, %v616_v52  ;;  %v628_v62 = vmax.f32 %v626_v45, %v627_v53  ;;  %v667_v63 = vsel %vm1796_vm2, %v1717_v42, 4286644096 }
  0x20   :  { %v638_v0 = vrot.slane %v637_v56, 4  ;;  %v649_v1 = vrot.slane %v648_v57, 4  ;;  %v659_v2 = vmax.f32 %v657_v58, %v658_v59  ;;  %v668_v3 = vunpack.i.l.bf16 %v667_v63 }
  0x21   :  { %v1872_v5 = vpack.i.bf16 %v610_v60, %v610_v60  ;;  %v618_v7 = vrot.slane %v617_v61, 2  ;;  %v629_v8 = vrot.slane %v628_v62, 2  ;;  %v669_v9 = vunpack.i.h.bf16 %v667_v63 }
  0x22   :  { %v639_v10 = vmax.f32 %v637_v56, %v638_v0  ;;  %v650_v11 = vmax.f32 %v648_v57, %v649_v1  ;;  %v660_v12 = vrot.slane %v659_v2, 4  ;;  %v678_v13 = vsel %vm1796_vm2, %v1718_v55, 4286644096  ;;  %v1722_v55 = vld [vmem:[%s2762_s0 + $0x90] sm:$0x1f]  }
  0x23   :  { %v619_v14 = vmax.f32 %v617_v61, %v618_v7  ;;  %v630_v17 = vmax.f32 %v628_v62, %v629_v8  ;;  %v670_v18 = vmax.f32 %v668_v3, %v669_v9  ;;  %v679_v19 = vunpack.i.l.bf16 %v678_v13  ;;  %v1723_v0 = vld [vmem:[%s2762_s0 + $0x98] sm:$0x1f]  }
  0x24   :  { %v640_v20 = vrot.slane %v639_v10, 2  ;;  %v651_v22 = vrot.slane %v650_v11, 2  ;;  %v661_v23 = vmax.f32 %v659_v2, %v660_v12  ;;  %v680_v24 = vunpack.i.h.bf16 %v678_v13 }
  0x25   :  { %v620_v26 = vrot.slane %v619_v14, 1  ;;  %v631_v27 = vrot.slane %v630_v17, 1  ;;  %v671_v28 = vrot.slane %v670_v18, 4  ;;  %v689_v30 = vsel %vm1796_vm2, %v1719_v4, 4286644096 }
  0x26   :  { %v641_v31 = vmax.f32 %v639_v10, %v640_v20  ;;  %v652_v32 = vmax.f32 %v650_v11, %v651_v22  ;;  %v662_v33 = vrot.slane %v661_v23, 2  ;;  %v681_v34 = vmax.f32 %v679_v19, %v680_v24  ;;  %v1724_v11 = vld [vmem:[%s2762_s0 + $0xa0] sm:$0x1f]  }
  0x27   :  { %v621_v37 = vmax.f32 %v619_v14, %v620_v26  ;;  %v632_v39 = vmax.f32 %v630_v17, %v631_v27  ;;  %v672_v40 = vmax.f32 %v670_v18, %v671_v28  ;;  %v690_v41 = vunpack.i.l.bf16 %v689_v30  ;;  %v1725_v28 = vld [vmem:[%s2762_s0 + $0xa8] sm:$0x1f]  }
  0x28   :  { %v642_v42 = vrot.slane %v641_v31, 1  ;;  %v653_v43 = vrot.slane %v652_v32, 1  ;;  %v663_v44 = vmax.f32 %v661_v23, %v662_v33  ;;  %v682_v45 = vrot.slane %v681_v34, 4 }
  0x29   :  { %v1884_v46 = vpack.i.bf16 %v621_v37, %v621_v37  ;;  %v1886_v48 = vpack.i.bf16 %v632_v39, %v632_v39  ;;  %v673_v49 = vrot.slane %v672_v40, 2  ;;  %v691_v50 = vunpack.i.h.bf16 %v689_v30  ;;  %v1726_v30 = vld [vmem:[%s2762_s0 + $0xb0] sm:$0x1f]  }
  0x2a   :  { %v643_v51 = vmax.f32 %v641_v31, %v642_v42  ;;  %v654_v52 = vmax.f32 %v652_v32, %v653_v43  ;;  %v664_v53 = vrot.slane %v663_v44, 1  ;;  %v683_v54 = vmax.f32 %v681_v34, %v682_v45 }
  0x2b   :  { %v674_v56 = vmax.f32 %v672_v40, %v673_v49  ;;  %v692_v57 = vmax.f32 %v690_v41, %v691_v50  ;;  %v700_v58 = vsel %vm1796_vm2, %v1720_v35, 4286644096  ;;  %v711_v59 = vsel %vm1796_vm2, %v1721_v36, 4286644096 }
  0x2c   :  { %v1895_v60 = vpack.i.bf16 %v643_v51, %v643_v51  ;;  %v1897_v61 = vpack.i.bf16 %v654_v52, %v654_v52  ;;  %v665_v62 = vmax.f32 %v663_v44, %v664_v53  ;;  %v684_v63 = vrot.slane %v683_v54, 2 }
  0x2d   :  { %v675_v1 = vrot.slane %v674_v56, 1  ;;  %v693_v2 = vrot.slane %v692_v57, 4  ;;  %v701_v3 = vunpack.i.l.bf16 %v700_v58  ;;  %v702_v4 = vunpack.i.h.bf16 %v700_v58 }
  0x2e   :  { %v1902_v7 = vpack.i.bf16 %v665_v62, %v665_v62  ;;  %v685_v8 = vmax.f32 %v683_v54, %v684_v63  ;;  %v712_v9 = vunpack.i.l.bf16 %v711_v59  ;;  %v713_v10 = vunpack.i.h.bf16 %v711_v59  ;;  %v1727_v59 = vld [vmem:[%s2762_s0 + $0xb8] sm:$0x1f]  }
  0x2f   :  { %v676_v12 = vmax.f32 %v674_v56, %v675_v1  ;;  %v694_v13 = vmax.f32 %v692_v57, %v693_v2  ;;  %v703_v14 = vmax.f32 %v701_v3, %v702_v4  ;;  %v722_v17 = vsel %vm1796_vm2, %v1722_v55, 4286644096 }
  0x30   :  { %v686_v18 = vrot.slane %v685_v8, 1  ;;  %v714_v19 = vmax.f32 %v712_v9, %v713_v10  ;;  %v723_v20 = vunpack.i.l.bf16 %v722_v17  ;;  %v724_v22 = vunpack.i.h.bf16 %v722_v17 }
  0x31   :  { %v1909_v23 = vpack.i.bf16 %v676_v12, %v676_v12  ;;  %v695_v24 = vrot.slane %v694_v13, 2  ;;  %v704_v26 = vrot.slane %v703_v14, 4  ;;  %v733_v27 = vsel %vm1796_vm2, %v1723_v0, 4286644096 }
  0x32   :  { %v687_v31 = vmax.f32 %v685_v8, %v686_v18  ;;  %v715_v32 = vrot.slane %v714_v19, 4  ;;  %v725_v33 = vmax.f32 %v723_v20, %v724_v22  ;;  %v734_v34 = vunpack.i.l.bf16 %v733_v27  ;;  %v1729_v20 = vld [vmem:[%s2762_s0 + $0xc8] sm:$0x1f]  }
  0x33   :  { %v696_v35 = vmax.f32 %v694_v13, %v695_v24  ;;  %v705_v36 = vmax.f32 %v703_v14, %v704_v26  ;;  %v735_v37 = vunpack.i.h.bf16 %v733_v27  ;;  %v744_v39 = vsel %vm1796_vm2, %v1724_v11, 4286644096  ;;  %v1728_v13 = vld [vmem:[%s2762_s0 + $0xc0] sm:$0x1f]  }
  0x34   :  { %v1921_v40 = vpack.i.bf16 %v687_v31, %v687_v31  ;;  %v716_v41 = vmax.f32 %v714_v19, %v715_v32  ;;  %v726_v42 = vrot.slane %v725_v33, 4  ;;  %v745_v43 = vunpack.i.l.bf16 %v744_v39 }
  0x35   :  { %v697_v44 = vrot.slane %v696_v35, 1  ;;  %v706_v45 = vrot.slane %v705_v36, 2  ;;  %v736_v49 = vmax.f32 %v734_v34, %v735_v37  ;;  %v746_v50 = vunpack.i.h.bf16 %v744_v39  ;;  %v1730_v37 = vld [vmem:[%s2762_s0 + $0xd0] sm:$0x1f]  }
  0x36   :  { %v717_v51 = vrot.slane %v716_v41, 2  ;;  %v727_v52 = vmax.f32 %v725_v33, %v726_v42  ;;  %v755_v53 = vsel %vm1796_vm2, %v1725_v28, 4286644096  ;;  %v766_v54 = vsel %vm1796_vm2, %v1726_v30, 4286644096 }
  0x37   :  { %v698_v55 = vmax.f32 %v696_v35, %v697_v44  ;;  %v707_v56 = vmax.f32 %v705_v36, %v706_v45  ;;  %v737_v57 = vrot.slane %v736_v49, 4  ;;  %v747_v58 = vmax.f32 %v745_v43, %v746_v50 }
  0x38   :  { %v718_v62 = vmax.f32 %v716_v41, %v717_v51  ;;  %v728_v63 = vrot.slane %v727_v52, 2  ;;  %v756_v0 = vunpack.i.l.bf16 %v755_v53  ;;  %v757_v1 = vunpack.i.h.bf16 %v755_v53 }
  0x39   :  { %v1930_v2 = vpack.i.bf16 %v698_v55, %v698_v55  ;;  %v708_v3 = vrot.slane %v707_v56, 1  ;;  %v738_v4 = vmax.f32 %v736_v49, %v737_v57  ;;  %v748_v8 = vrot.slane %v747_v58, 4 }
  0x3a   :  { %v719_v9 = vrot.slane %v718_v62, 1  ;;  %v729_v10 = vmax.f32 %v727_v52, %v728_v63  ;;  %v758_v11 = vmax.f32 %v756_v0, %v757_v1  ;;  %v767_v12 = vunpack.i.l.bf16 %v766_v54 }
  0x3b   :  { %v709_v14 = vmax.f32 %v707_v56, %v708_v3  ;;  %v739_v17 = vrot.slane %v738_v4, 2  ;;  %v749_v18 = vmax.f32 %v747_v58, %v748_v8  ;;  %v768_v19 = vunpack.i.h.bf16 %v766_v54 }
  0x3c   :  { %v720_v22 = vmax.f32 %v718_v62, %v719_v9  ;;  %v730_v24 = vrot.slane %v729_v10, 1  ;;  %v759_v26 = vrot.slane %v758_v11, 4  ;;  %v777_v27 = vsel %vm1796_vm2, %v1727_v59, 4286644096  ;;  %v1731_v59 = vld [vmem:[%s2762_s0 + $0xd8] sm:$0x1f]  }
  0x3d   :  { %v1940_v28 = vpack.i.bf16 %v709_v14, %v709_v14  ;;  %v740_v30 = vmax.f32 %v738_v4, %v739_v17  ;;  %v750_v31 = vrot.slane %v749_v18, 2  ;;  %v769_v32 = vmax.f32 %v767_v12, %v768_v19  ;;  %v1732_v62 = vld [vmem:[%s2762_s0 + $0xe0] sm:$0x1f]  }
  0x3e   :  { %v1942_v33 = vpack.i.bf16 %v720_v22, %v720_v22  ;;  %v731_v34 = vmax.f32 %v729_v10, %v730_v24  ;;  %v760_v35 = vmax.f32 %v758_v11, %v759_v26  ;;  %v778_v36 = vunpack.i.l.bf16 %v777_v27 }
  0x3f   :  { %v741_v39 = vrot.slane %v740_v30, 1  ;;  %v751_v41 = vmax.f32 %v749_v18, %v750_v31  ;;  %v770_v42 = vrot.slane %v769_v32, 4  ;;  %v779_v43 = vunpack.i.h.bf16 %v777_v27 }
  0x40   :  { %v1947_v44 = vpack.i.bf16 %v731_v34, %v731_v34  ;;  %v761_v45 = vrot.slane %v760_v35, 2  ;;  %v788_v49 = vsel %vm1796_vm2, %v1728_v13, 4286644096  ;;  %v799_v50 = vsel %vm1796_vm2, %v1729_v20, 4286644096 }
  0x41   :  { %v742_v51 = vmax.f32 %v740_v30, %v741_v39  ;;  %v752_v52 = vrot.slane %v751_v41, 1  ;;  %v771_v53 = vmax.f32 %v769_v32, %v770_v42  ;;  %v780_v54 = vmax.f32 %v778_v36, %v779_v43  ;;  %v1733_v30 = vld [vmem:[%s2762_s0 + $0xe8] sm:$0x1f]  }
  0x42   :  { %v762_v55 = vmax.f32 %v760_v35, %v761_v45  ;;  %v789_v56 = vunpack.i.l.bf16 %v788_v49  ;;  %v790_v57 = vunpack.i.h.bf16 %v788_v49  ;;  %v800_v58 = vunpack.i.l.bf16 %v799_v50 }
  0x43   :  { %v1959_v63 = vpack.i.bf16 %v742_v51, %v742_v51  ;;  %v753_v0 = vmax.f32 %v751_v41, %v752_v52  ;;  %v772_v1 = vrot.slane %v771_v53, 2  ;;  %v781_v3 = vrot.slane %v780_v54, 4 }
  0x44   :  { %v763_v4 = vrot.slane %v762_v55, 1  ;;  %v791_v8 = vmax.f32 %v789_v56, %v790_v57  ;;  %v801_v9 = vunpack.i.h.bf16 %v799_v50  ;;  %v810_v10 = vsel %vm1796_vm2, %v1730_v37, 4286644096  ;;  %v1734_v50 = vld [vmem:[%s2762_s0 + $0xf0] sm:$0x1f]  }
  0x45   :  { %v1963_v11 = vpack.i.bf16 %v753_v0, %v753_v0  ;;  %v773_v12 = vmax.f32 %v771_v53, %v772_v1  ;;  %v782_v13 = vmax.f32 %v780_v54, %v781_v3  ;;  %v811_v14 = vunpack.i.l.bf16 %v810_v10 }
  0x46   :  { %v764_v17 = vmax.f32 %v762_v55, %v763_v4  ;;  %v792_v18 = vrot.slane %v791_v8, 4  ;;  %v802_v19 = vmax.f32 %v800_v58, %v801_v9  ;;  %v812_v20 = vunpack.i.h.bf16 %v810_v10  ;;  %v1735_v10 = vld [vmem:[%s2762_s0 + $0xf8] sm:$0x1f]  }
  0x47   :  { %v774_v22 = vrot.slane %v773_v12, 1  ;;  %v783_v24 = vrot.slane %v782_v13, 2  ;;  %v821_v26 = vsel %vm1796_vm2, %v1731_v59, 4286644096  ;;  %v832_v27 = vsel %vm1796_vm2, %v1732_v62, 4286644096 }
  0x48   :  { %v1972_v31 = vpack.i.bf16 %v764_v17, %v764_v17  ;;  %v793_v32 = vmax.f32 %v791_v8, %v792_v18  ;;  %v803_v34 = vrot.slane %v802_v19, 4  ;;  %v813_v35 = vmax.f32 %v811_v14, %v812_v20 }
  0x49   :  { %v775_v36 = vmax.f32 %v773_v12, %v774_v22  ;;  %v784_v37 = vmax.f32 %v782_v13, %v783_v24  ;;  %v822_v39 = vunpack.i.l.bf16 %v821_v26  ;;  %v823_v41 = vunpack.i.h.bf16 %v821_v26 }
  0x4a   :  { %v794_v42 = vrot.slane %v793_v32, 2  ;;  %v804_v43 = vmax.f32 %v802_v19, %v803_v34  ;;  %v814_v45 = vrot.slane %v813_v35, 4  ;;  %v833_v49 = vunpack.i.l.bf16 %v832_v27  ;;  %v1737_v34 = vld [vmem:[%s2762_s0 + $0x108] sm:$0x1f]  }
  0x4b   :  { %v1977_v51 = vpack.i.bf16 %v775_v36, %v775_v36  ;;  %v785_v52 = vrot.slane %v784_v37, 1  ;;  %v824_v53 = vmax.f32 %v822_v39, %v823_v41  ;;  %v834_v54 = vunpack.i.h.bf16 %v832_v27 }
  0x4c   :  { %v795_v55 = vmax.f32 %v793_v32, %v794_v42  ;;  %v805_v56 = vrot.slane %v804_v43, 2  ;;  %v815_v57 = vmax.f32 %v813_v35, %v814_v45  ;;  %v843_v58 = vsel %vm1796_vm2, %v1733_v30, 4286644096  ;;  %v1736_v32 = vld [vmem:[%s2762_s0 + $0x100] sm:$0x1f]  }
  0x4d   :  { %v786_v59 = vmax.f32 %v784_v37, %v785_v52  ;;  %v825_v62 = vrot.slane %v824_v53, 4  ;;  %v835_v0 = vmax.f32 %v833_v49, %v834_v54  ;;  %v844_v1 = vunpack.i.l.bf16 %v843_v58  ;;  %v1738_v54 = vld [vmem:[%s2762_s0 + $0x110] sm:$0x1f]  }
  0x4e   :  { %v796_v3 = vrot.slane %v795_v55, 1  ;;  %v806_v4 = vmax.f32 %v804_v43, %v805_v56  ;;  %v816_v8 = vrot.slane %v815_v57, 2  ;;  %v845_v9 = vunpack.i.h.bf16 %v843_v58 }
  0x4f   :  { %v1984_v12 = vpack.i.bf16 %v786_v59, %v786_v59  ;;  %v826_v13 = vmax.f32 %v824_v53, %v825_v62  ;;  %v836_v14 = vrot.slane %v835_v0, 4  ;;  %v854_v17 = vsel %vm1796_vm2, %v1734_v50, 4286644096 }
  0x50   :  { %v797_v18 = vmax.f32 %v795_v55, %v796_v3  ;;  %v807_v19 = vrot.slane %v806_v4, 1  ;;  %v817_v20 = vmax.f32 %v815_v57, %v816_v8  ;;  %v846_v22 = vmax.f32 %v844_v1, %v845_v9 }
  0x51   :  { %v827_v24 = vrot.slane %v826_v13, 2  ;;  %v837_v26 = vmax.f32 %v835_v0, %v836_v14  ;;  %v855_v27 = vunpack.i.l.bf16 %v854_v17  ;;  %v856_v30 = vunpack.i.h.bf16 %v854_v17 }
  0x52   :  { %v1994_v35 = vpack.i.bf16 %v797_v18, %v797_v18  ;;  %v808_v36 = vmax.f32 %v806_v4, %v807_v19  ;;  %v818_v37 = vrot.slane %v817_v20, 1  ;;  %v847_v39 = vrot.slane %v846_v22, 4  ;;  %v1739_v18 = vld [vmem:[%s2762_s0 + $0x118] sm:$0x1f]   ;;  %v1740_v19 = vld [vmem:[%s2762_s0 + $0x120] sm:$0x1f]  }
  0x53   :  { %v828_v41 = vmax.f32 %v826_v13, %v827_v24  ;;  %v838_v42 = vrot.slane %v837_v26, 2  ;;  %v857_v43 = vmax.f32 %v855_v27, %v856_v30  ;;  %v865_v45 = vsel %vm1796_vm2, %v1735_v10, 4286644096 }
  0x54   :  { %v1998_v49 = vpack.i.bf16 %v808_v36, %v808_v36  ;;  %v819_v50 = vmax.f32 %v817_v20, %v818_v37  ;;  %v848_v52 = vmax.f32 %v846_v22, %v847_v39  ;;  %v866_v53 = vunpack.i.l.bf16 %v865_v45 }
  0x55   :  { %v829_v55 = vrot.slane %v828_v41, 1  ;;  %v839_v56 = vmax.f32 %v837_v26, %v838_v42  ;;  %v858_v57 = vrot.slane %v857_v43, 4  ;;  %v867_v58 = vunpack.i.h.bf16 %v865_v45 }
  0x56   :  { %v2003_v59 = vpack.i.bf16 %v819_v50, %v819_v50  ;;  %v849_v62 = vrot.slane %v848_v52, 2  ;;  %v876_v0 = vsel %vm1796_vm2, %v1736_v32, 4286644096  ;;  %v887_v1 = vsel %vm1796_vm2, %v1737_v34, 4286644096 }
  0x57   :  { %v830_v3 = vmax.f32 %v828_v41, %v829_v55  ;;  %v840_v4 = vrot.slane %v839_v56, 1  ;;  %v859_v8 = vmax.f32 %v857_v43, %v858_v57  ;;  %v868_v9 = vmax.f32 %v866_v53, %v867_v58 }
  0x58   :  { %v850_v10 = vmax.f32 %v848_v52, %v849_v62  ;;  %v877_v13 = vunpack.i.l.bf16 %v876_v0  ;;  %v878_v14 = vunpack.i.h.bf16 %v876_v0  ;;  %v888_v17 = vunpack.i.l.bf16 %v887_v1 }
  0x59   :  { %v2015_v20 = vpack.i.bf16 %v830_v3, %v830_v3  ;;  %v841_v22 = vmax.f32 %v839_v56, %v840_v4  ;;  %v860_v24 = vrot.slane %v859_v8, 2  ;;  %v869_v26 = vrot.slane %v868_v9, 4 }
  0x5a   :  { %v851_v27 = vrot.slane %v850_v10, 1  ;;  %v879_v30 = vmax.f32 %v877_v13, %v878_v14  ;;  %v889_v32 = vunpack.i.h.bf16 %v887_v1  ;;  %v898_v34 = vsel %vm1796_vm2, %v1738_v54, 4286644096  ;;  %v1741_v54 = vld [vmem:[%s2762_s0 + $0x128] sm:$0x1f]  }
  0x5b   :  { %v2019_v36 = vpack.i.bf16 %v841_v22, %v841_v22  ;;  %v861_v37 = vmax.f32 %v859_v8, %v860_v24  ;;  %v870_v39 = vmax.f32 %v868_v9, %v869_v26  ;;  %v899_v41 = vunpack.i.l.bf16 %v898_v34 }
  0x5c   :  { %v852_v42 = vmax.f32 %v850_v10, %v851_v27  ;;  %v880_v43 = vrot.slane %v879_v30, 4  ;;  %v890_v45 = vmax.f32 %v888_v17, %v889_v32  ;;  %v900_v50 = vunpack.i.h.bf16 %v898_v34  ;;  %v1742_v17 = vld [vmem:[%s2762_s0 + $0x130] sm:$0x1f]  }
  0x5d   :  { %v862_v52 = vrot.slane %v861_v37, 1  ;;  %v871_v53 = vrot.slane %v870_v39, 2  ;;  %v909_v55 = vsel %vm1796_vm2, %v1739_v18, 4286644096  ;;  %v920_v56 = vsel %vm1796_vm2, %v1740_v19, 4286644096 }
  0x5e   :  { %v2028_v57 = vpack.i.bf16 %v852_v42, %v852_v42  ;;  %v881_v58 = vmax.f32 %v879_v30, %v880_v43  ;;  %v891_v62 = vrot.slane %v890_v45, 4  ;;  %v901_v0 = vmax.f32 %v899_v41, %v900_v50 }
  0x5f   :  { %v863_v1 = vmax.f32 %v861_v37, %v862_v52  ;;  %v872_v3 = vmax.f32 %v870_v39, %v871_v53  ;;  %v910_v4 = vunpack.i.l.bf16 %v909_v55  ;;  %v911_v8 = vunpack.i.h.bf16 %v909_v55  ;;  %v1743_v52 = vld [vmem:[%s2762_s0 + $0x138] sm:$0x1f]  }
  0x60   :  { %v882_v9 = vrot.slane %v881_v58, 2  ;;  %v892_v10 = vmax.f32 %v890_v45, %v891_v62  ;;  %v902_v13 = vrot.slane %v901_v0, 4  ;;  %v921_v14 = vunpack.i.l.bf16 %v920_v56 }
  0x61   :  { %v2033_v18 = vpack.i.bf16 %v863_v1, %v863_v1  ;;  %v873_v19 = vrot.slane %v872_v3, 1  ;;  %v912_v22 = vmax.f32 %v910_v4, %v911_v8  ;;  %v922_v24 = vunpack.i.h.bf16 %v920_v56 }
  0x62   :  { %v883_v26 = vmax.f32 %v881_v58, %v882_v9  ;;  %v893_v27 = vrot.slane %v892_v10, 2  ;;  %v903_v30 = vmax.f32 %v901_v0, %v902_v13  ;;  %v931_v32 = vsel %vm1796_vm2, %v1741_v54, 4286644096  ;;  %v1745_v13 = vld [vmem:[%s2762_s0 + $0x148] sm:$0x1f]  }
  0x63   :  { %v874_v34 = vmax.f32 %v872_v3, %v873_v19  ;;  %v913_v37 = vrot.slane %v912_v22, 4  ;;  %v923_v39 = vmax.f32 %v921_v14, %v922_v24  ;;  %v932_v41 = vunpack.i.l.bf16 %v931_v32 }
  0x64   :  { %v884_v42 = vrot.slane %v883_v26, 1  ;;  %v894_v43 = vmax.f32 %v892_v10, %v893_v27  ;;  %v904_v45 = vrot.slane %v903_v30, 2  ;;  %v933_v50 = vunpack.i.h.bf16 %v931_v32  ;;  %v1744_v10 = vld [vmem:[%s2762_s0 + $0x140] sm:$0x1f]  }
  0x65   :  { %v2040_v53 = vpack.i.bf16 %v874_v34, %v874_v34  ;;  %v914_v55 = vmax.f32 %v912_v22, %v913_v37  ;;  %v924_v56 = vrot.slane %v923_v39, 4  ;;  %v942_v58 = vsel %vm1796_vm2, %v1742_v17, 4286644096 }
  0x66   :  { %v885_v54 = vmax.f32 %v883_v26, %v884_v42  ;;  %v895_v62 = vrot.slane %v894_v43, 1  ;;  %v905_v0 = vmax.f32 %v903_v30, %v904_v45  ;;  %v934_v1 = vmax.f32 %v932_v41, %v933_v50  ;;  %v1746_v41 = vld [vmem:[%s2762_s0 + $0x150] sm:$0x1f]  }
  0x67   :  { %v915_v3 = vrot.slane %v914_v55, 2  ;;  %v925_v4 = vmax.f32 %v923_v39, %v924_v56  ;;  %v943_v8 = vunpack.i.l.bf16 %v942_v58  ;;  %v944_v9 = vunpack.i.h.bf16 %v942_v58 }
  0x68   :  { %v2050_v14 = vpack.i.bf16 %v885_v54, %v885_v54  ;;  %v896_v19 = vmax.f32 %v894_v43, %v895_v62  ;;  %v906_v17 = vrot.slane %v905_v0, 1  ;;  %v935_v22 = vrot.slane %v934_v1, 4 }
  0x69   :  { %v916_v24 = vmax.f32 %v914_v55, %v915_v3  ;;  %v926_v26 = vrot.slane %v925_v4, 2  ;;  %v945_v27 = vmax.f32 %v943_v8, %v944_v9  ;;  %v953_v30 = vsel %vm1796_vm2, %v1743_v52, 4286644096 }
  0x6a   :  { %v2054_v32 = vpack.i.bf16 %v896_v19, %v896_v19  ;;  %v907_v34 = vmax.f32 %v905_v0, %v906_v17  ;;  %v936_v37 = vmax.f32 %v934_v1, %v935_v22  ;;  %v954_v39 = vunpack.i.l.bf16 %v953_v30  ;;  %v1748_v17 = vld [vmem:[%s2762_s0 + $0x160] sm:$0x1f]  }
  0x6b   :  { %v917_v42 = vrot.slane %v916_v24, 1  ;;  %v927_v45 = vmax.f32 %v925_v4, %v926_v26  ;;  %v946_v43 = vrot.slane %v945_v27, 4  ;;  %v955_v50 = vunpack.i.h.bf16 %v953_v30  ;;  %v1747_v4 = vld [vmem:[%s2762_s0 + $0x158] sm:$0x1f]  }
  0x6c   :  { %v2059_v56 = vpack.i.bf16 %v907_v34, %v907_v34  ;;  %v937_v55 = vrot.slane %v936_v37, 2  ;;  %v964_v58 = vsel %vm1796_vm2, %v1744_v10, 4286644096  ;;  %v975_v52 = vsel %vm1796_vm2, %v1745_v13, 4286644096 }
  0x6d   :  { %v918_v54 = vmax.f32 %v916_v24, %v917_v42  ;;  %v928_v62 = vrot.slane %v927_v45, 1  ;;  %v947_v0 = vmax.f32 %v945_v27, %v946_v43  ;;  %v956_v1 = vmax.f32 %v954_v39, %v955_v50 }
  0x6e   :  { %2792 = vst [vmem:[#allocation2_spill] sm:$0xff] %v2059_v56  ;;  %v938_v3 = vmax.f32 %v936_v37, %v937_v55  ;;  %v965_v8 = vunpack.i.l.bf16 %v964_v58  ;;  %v966_v9 = vunpack.i.h.bf16 %v964_v58  ;;  %v976_v19 = vunpack.i.l.bf16 %v975_v52 }
  0x6f   :  { %v2071_v10 = vpack.i.bf16 %v918_v54, %v918_v54  ;;  %v929_v22 = vmax.f32 %v927_v45, %v928_v62  ;;  %v948_v13 = vrot.slane %v947_v0, 2  ;;  %v957_v24 = vrot.slane %v956_v1, 4 }
  0x70   :  { %v939_v26 = vrot.slane %v938_v3, 1  ;;  %v967_v27 = vmax.f32 %v965_v8, %v966_v9  ;;  %v977_v30 = vunpack.i.h.bf16 %v975_v52  ;;  %v986_v34 = vsel %vm1796_vm2, %v1746_v41, 4286644096  ;;  %v1749_v41 = vld [vmem:[%s2762_s0 + $0x168] sm:$0x1f]  }
  0x71   :  { %2793 = vst [vmem:[#allocation3_spill] sm:$0xff] %v2071_v10  ;;  %v2075_v37 = vpack.i.bf16 %v929_v22, %v929_v22  ;;  %v949_v39 = vmax.f32 %v947_v0, %v948_v13  ;;  %v958_v42 = vmax.f32 %v956_v1, %v957_v24  ;;  %v987_v43 = vunpack.i.l.bf16 %v986_v34 }
  0x72   :  { %v940_v50 = vmax.f32 %v938_v3, %v939_v26  ;;  %v968_v55 = vrot.slane %v967_v27, 4  ;;  %v978_v58 = vmax.f32 %v976_v19, %v977_v30  ;;  %v988_v56 = vunpack.i.h.bf16 %v986_v34 }
  0x73   :  { %2794 = vst [vmem:[#allocation4_spill] sm:$0xff] %v2075_v37  ;;  %v950_v54 = vrot.slane %v949_v39, 1  ;;  %v959_v10 = vrot.slane %v958_v42, 2  ;;  %v997_v45 = vsel %vm1796_vm2, %v1747_v4, 4286644096  ;;  %vm1492_vm7 = vcmask 1045509  }
  0x74   :  { %v1008_v52 = vsel %vm1796_vm2, %v1748_v17, 4286644096  ;;  %v2084_v62 = vpack.i.bf16 %v940_v50, %v940_v50  ;;  %v969_v0 = vmax.f32 %v967_v27, %v968_v55  ;;  %v979_v1 = vrot.slane %v978_v58, 4  ;;  %v1750_v17 = vld [vmem:[%s2762_s0 + $0x170] sm:$0x1f]  }
  0x75   :  { %v989_v3 = vmax.f32 %v987_v43, %v988_v56  ;;  %v951_v8 = vmax.f32 %v949_v39, %v950_v54  ;;  %v960_v9 = vmax.f32 %v958_v42, %v959_v10  ;;  %v998_v19 = vunpack.i.l.bf16 %v997_v45 }
  0x76   :  { %2795 = vst [vmem:[#allocation5_spill] sm:$0xff] %v2084_v62  ;;  %v999_v22 = vunpack.i.h.bf16 %v997_v45  ;;  %v970_v13 = vrot.slane %v969_v0, 2  ;;  %v980_v24 = vmax.f32 %v978_v58, %v979_v1  ;;  %v1009_v4 = vunpack.i.l.bf16 %v1008_v52 }
  0x77   :  { %v990_v26 = vrot.slane %v989_v3, 4  ;;  %v2089_v30 = vpack.i.bf16 %v951_v8, %v951_v8  ;;  %v961_v34 = vrot.slane %v960_v9, 1  ;;  %v1010_v62 = vunpack.i.h.bf16 %v1008_v52  ;;  %v1751_v8 = vld [vmem:[%s2762_s0 + $0x178] sm:$0x1f]  }
  0x78   :  { %v1000_v50 = vmax.f32 %v998_v19, %v999_v22  ;;  %v971_v27 = vmax.f32 %v969_v0, %v970_v13  ;;  %v981_v55 = vrot.slane %v980_v24, 2  ;;  %v1019_v10 = vsel %vm1796_vm2, %v1749_v41, 4286644096 }
  0x79   :  { %2796 = vst [vmem:[#allocation6_spill] sm:$0xff] %v2089_v30  ;;  %v991_v56 = vmax.f32 %v989_v3, %v990_v26  ;;  %v962_v39 = vmax.f32 %v960_v9, %v961_v34  ;;  %v1011_v43 = vmax.f32 %v1009_v4, %v1010_v62  ;;  %v1020_v58 = vunpack.i.l.bf16 %v1019_v10  ;;  %v1752_v34 = vld [vmem:[%s2762_s0 + $0x180] sm:$0x1f]  }
  0x7a   :  { %v1001_v42 = vrot.slane %v1000_v50, 4  ;;  %v972_v54 = vrot.slane %v971_v27, 1  ;;  %v982_v45 = vmax.f32 %v980_v24, %v981_v55  ;;  %v1021_v37 = vunpack.i.h.bf16 %v1019_v10 }
  0x7b   :  { %v992_v1 = vrot.slane %v991_v56, 2  ;;  %v2096_v19 = vpack.i.bf16 %v962_v39, %v962_v39  ;;  %v1012_v0 = vrot.slane %v1011_v43, 4  ;;  %v1030_v3 = vsel %vm1796_vm2, %v1750_v17, 4286644096 }
  0x7c   :  { %v1002_v52 = vmax.f32 %v1000_v50, %v1001_v42  ;;  %v973_v41 = vmax.f32 %v971_v27, %v972_v54  ;;  %v983_v9 = vrot.slane %v982_v45, 1  ;;  %v1022_v62 = vmax.f32 %v1020_v58, %v1021_v37  ;;  %v1753_v50 = vld [vmem:[%s2762_s0 + $0x188] sm:$0x1f]  }
  0x7d   :  { %2797 = vst [vmem:[#allocation7_spill] sm:$0xff] %v2096_v19  ;;  %v993_v22 = vmax.f32 %v991_v56, %v992_v1  ;;  %v1013_v26 = vmax.f32 %v1011_v43, %v1012_v0  ;;  %v1031_v24 = vunpack.i.l.bf16 %v1030_v3  ;;  %v1032_v4 = vunpack.i.h.bf16 %v1030_v3  ;;  %v1754_v0 = vld [vmem:[%s2762_s0 + $0x190] sm:$0x1f]  }
  0x7e   :  { %v1003_v13 = vrot.slane %v1002_v52, 2  ;;  %v2106_v55 = vpack.i.bf16 %v973_v41, %v973_v41  ;;  %v984_v10 = vmax.f32 %v982_v45, %v983_v9  ;;  %v1023_v27 = vrot.slane %v1022_v62, 4 }
  0x7f   :  { %v994_v17 = vrot.slane %v993_v22, 1  ;;  %v1014_v56 = vrot.slane %v1013_v26, 2  ;;  %v1033_v37 = vmax.f32 %v1031_v24, %v1032_v4  ;;  %v1041_v42 = vsel %vm1796_vm2, %v1751_v8, 4286644096 }
  0x80   :  { %2798 = vst [vmem:[#allocation8_spill] sm:$0xff] %v2106_v55  ;;  %v1004_v39 = vmax.f32 %v1002_v52, %v1003_v13  ;;  %v2110_v43 = vpack.i.bf16 %v984_v10, %v984_v10  ;;  %v1024_v54 = vmax.f32 %v1022_v62, %v1023_v27  ;;  %v1042_v1 = vunpack.i.l.bf16 %v1041_v42 }
  0x81   :  { %v995_v58 = vmax.f32 %v993_v22, %v994_v17  ;;  %v1015_v41 = vmax.f32 %v1013_v26, %v1014_v56  ;;  %v1034_v45 = vrot.slane %v1033_v37, 4  ;;  %v1043_v9 = vunpack.i.h.bf16 %v1041_v42  ;;  %v1755_v26 = vld [vmem:[%s2762_s0 + $0x198] sm:$0x1f]   ;;  %v1756_v56 = vld [vmem:[%s2762_s0 + $0x1a0] sm:$0x1f]  }
  0x82   :  { %2799 = vst [vmem:[#allocation9_spill] sm:$0xff] %v2110_v43  ;;  %v1005_v3 = vrot.slane %v1004_v39, 1  ;;  %v1025_v52 = vrot.slane %v1024_v54, 2  ;;  %v1052_v13 = vsel %vm1796_vm2, %v1752_v34, 4286644096  ;;  %vm1494_vm8 = vcmask 1046534  }
  0x83   :  { %v2115_v55 = vpack.i.bf16 %v995_v58, %v995_v58  ;;  %v1063_v8 = vsel %vm1796_vm2, %v1753_v50, 4286644096  ;;  %v1016_v62 = vrot.slane %v1015_v41, 1  ;;  %v1035_v24 = vmax.f32 %v1033_v37, %v1034_v45 }
  0x84   :  { %v1006_v22 = vmax.f32 %v1004_v39, %v1005_v3  ;;  %v1044_v4 = vmax.f32 %v1042_v1, %v1043_v9  ;;  %v1026_v10 = vmax.f32 %v1024_v54, %v1025_v52  ;;  %v1053_v17 = vunpack.i.l.bf16 %v1052_v13 }
  0x85   :  { %2800 = vst [vmem:[#allocation10_spill] sm:$0xff] %v2115_v55  ;;  %v1054_v27 = vunpack.i.h.bf16 %v1052_v13  ;;  %v1064_v43 = vunpack.i.l.bf16 %v1063_v8  ;;  %v1017_v42 = vmax.f32 %v1015_v41, %v1016_v62  ;;  %v1036_v50 = vrot.slane %v1035_v24, 2 }
  0x86   :  { %v2127_v34 = vpack.i.bf16 %v1006_v22, %v1006_v22  ;;  %v1045_v39 = vrot.slane %v1044_v4, 4  ;;  %v1027_v58 = vrot.slane %v1026_v10, 1  ;;  %v1065_v1 = vunpack.i.h.bf16 %v1063_v8 }
  0x87   :  { %v1055_v37 = vmax.f32 %v1053_v17, %v1054_v27  ;;  %v1074_v54 = vsel %vm1796_vm2, %v1754_v0, 4286644096  ;;  %v2131_v3 = vpack.i.bf16 %v1017_v42, %v1017_v42  ;;  %v1037_v45 = vmax.f32 %v1035_v24, %v1036_v50  ;;  %v1757_v0 = vld [vmem:[%s2762_s0 + $0x1a8] sm:$0x1f]  }
  0x88   :  { %2801 = vst [vmem:[#allocation11_spill] sm:$0xff] %v2127_v34  ;;  %v1046_v9 = vmax.f32 %v1044_v4, %v1045_v39  ;;  %v1075_v52 = vunpack.i.l.bf16 %v1074_v54  ;;  %v1028_v13 = vmax.f32 %v1026_v10, %v1027_v58  ;;  %v1066_v19 = vmax.f32 %v1064_v43, %v1065_v1 }
  0x89   :  { %2802 = vst [vmem:[#allocation12_spill] sm:$0xff] %v2131_v3  ;;  %v1056_v55 = vrot.slane %v1055_v37, 4  ;;  %v1076_v30 = vunpack.i.h.bf16 %v1074_v54  ;;  %v1038_v22 = vrot.slane %v1037_v45, 1  ;;  %v1085_v41 = vsel %vm1796_vm2, %v1755_v26, 4286644096 }
  0x8a   :  { %v1047_v34 = vrot.slane %v1046_v9, 2  ;;  %v1096_v8 = vsel %vm1796_vm2, %v1756_v56, 4286644096  ;;  %v2140_v62 = vpack.i.bf16 %v1028_v13, %v1028_v13  ;;  %v1067_v4 = vrot.slane %v1066_v19, 4  ;;  %v1758_v56 = vld [vmem:[%s2762_s0 + $0x1b0] sm:$0x1f]  }
  0x8b   :  { %v1057_v24 = vmax.f32 %v1055_v37, %v1056_v55  ;;  %v1077_v10 = vmax.f32 %v1075_v52, %v1076_v30  ;;  %v1039_v17 = vmax.f32 %v1037_v45, %v1038_v22  ;;  %v1086_v27 = vunpack.i.l.bf16 %v1085_v41 }
  0x8c   :  { %2803 = vst [vmem:[#allocation13_spill] sm:$0xff] %v2140_v62  ;;  %v1048_v43 = vmax.f32 %v1046_v9, %v1047_v34  ;;  %v1087_v42 = vunpack.i.h.bf16 %v1085_v41  ;;  %v1068_v39 = vmax.f32 %v1066_v19, %v1067_v4  ;;  %v1097_v26 = vunpack.i.l.bf16 %v1096_v8 }
  0x8d   :  { %v1058_v50 = vrot.slane %v1057_v24, 2  ;;  %v1078_v58 = vrot.slane %v1077_v10, 4  ;;  %v2145_v1 = vpack.i.bf16 %v1039_v17, %v1039_v17  ;;  %v1098_v62 = vunpack.i.h.bf16 %v1096_v8  ;;  %v1759_v17 = vld [vmem:[%s2762_s0 + $0x1b8] sm:$0x1f]  }
  0x8e   :  { %v1049_v54 = vrot.slane %v1048_v43, 1  ;;  %v1088_v13 = vmax.f32 %v1086_v27, %v1087_v42  ;;  %v1069_v37 = vrot.slane %v1068_v39, 2  ;;  %v1107_v34 = vsel %vm1796_vm2, %v1757_v0, 4286644096 }
  0x8f   :  { %2804 = vst [vmem:[#allocation14_spill] sm:$0xff] %v2145_v1  ;;  %v1059_v55 = vmax.f32 %v1057_v24, %v1058_v50  ;;  %v1079_v30 = vmax.f32 %v1077_v10, %v1078_v58  ;;  %v1099_v19 = vmax.f32 %v1097_v26, %v1098_v62  ;;  %v1108_v52 = vunpack.i.l.bf16 %v1107_v34 }
  0x90   :  { %v1050_v45 = vmax.f32 %v1048_v43, %v1049_v54  ;;  %v1089_v9 = vrot.slane %v1088_v13, 4  ;;  %v1070_v41 = vmax.f32 %v1068_v39, %v1069_v37  ;;  %v1109_v3 = vunpack.i.h.bf16 %v1107_v34  ;;  %v1760_v54 = vld [vmem:[%s2762_s0 + $0x1c0] sm:$0x1f]  }
  0x91   :  { %v1060_v22 = vrot.slane %v1059_v55, 1  ;;  %v1080_v4 = vrot.slane %v1079_v30, 2  ;;  %v1100_v24 = vrot.slane %v1099_v19, 4  ;;  %v1118_v10 = vsel %vm1796_vm2, %v1758_v56, 4286644096 }
  0x92   :  { %v2152_v27 = vpack.i.bf16 %v1050_v45, %v1050_v45  ;;  %v1090_v8 = vmax.f32 %v1088_v13, %v1089_v9  ;;  %v1071_v43 = vrot.slane %v1070_v41, 1  ;;  %v1110_v62 = vmax.f32 %v1108_v52, %v1109_v3  ;;  %v1761_v13 = vld [vmem:[%s2762_s0 + $0x1c8] sm:$0x1f]  }
  0x93   :  { %v1061_v0 = vmax.f32 %v1059_v55, %v1060_v22  ;;  %v1081_v42 = vmax.f32 %v1079_v30, %v1080_v4  ;;  %v1101_v58 = vmax.f32 %v1099_v19, %v1100_v24  ;;  %v1119_v39 = vunpack.i.l.bf16 %v1118_v10  ;;  %v1762_v24 = vld [vmem:[%s2762_s0 + $0x1d0] sm:$0x1f]  }
  0x94   :  { %2805 = vst [vmem:[#allocation15_spill] sm:$0xff] %v2152_v27  ;;  %v1091_v50 = vrot.slane %v1090_v8, 2  ;;  %v1120_v26 = vunpack.i.h.bf16 %v1118_v10  ;;  %v1072_v34 = vmax.f32 %v1070_v41, %v1071_v43  ;;  %v1111_v55 = vrot.slane %v1110_v62, 4 }
  0x95   :  { %v2162_v37 = vpack.i.bf16 %v1061_v0, %v1061_v0  ;;  %v1082_v56 = vrot.slane %v1081_v42, 1  ;;  %v1102_v30 = vrot.slane %v1101_v58, 2  ;;  %v1129_v9 = vsel %vm1796_vm2, %v1759_v17, 4286644096 }
  0x96   :  { %v1092_v45 = vmax.f32 %v1090_v8, %v1091_v50  ;;  %v1121_v3 = vmax.f32 %v1119_v39, %v1120_v26  ;;  %v2166_v19 = vpack.i.bf16 %v1072_v34, %v1072_v34  ;;  %v1112_v22 = vmax.f32 %v1110_v62, %v1111_v55 }
  0x97   :  { %2806 = vst [vmem:[#allocation16_spill] sm:$0xff] %v2162_v37  ;;  %v1083_v52 = vmax.f32 %v1081_v42, %v1082_v56  ;;  %v1130_v4 = vunpack.i.l.bf16 %v1129_v9  ;;  %v1103_v0 = vmax.f32 %v1101_v58, %v1102_v30  ;;  %v1131_v43 = vunpack.i.h.bf16 %v1129_v9  ;;  %v1763_v58 = vld [vmem:[%s2762_s0 + $0x1d8] sm:$0x1f]   ;;  %v1764_v30 = vld [vmem:[%s2762_s0 + $0x1e0] sm:$0x1f]  }
  0x98   :  { %2807 = vst [vmem:[#allocation17_spill] sm:$0xff] %v2166_v19  ;;  %v1093_v10 = vrot.slane %v1092_v45, 1  ;;  %v1122_v41 = vrot.slane %v1121_v3, 4  ;;  %v1113_v8 = vrot.slane %v1112_v22, 2  ;;  %v1140_v50 = vsel %vm1796_vm2, %v1760_v54, 4286644096 }
  0x99   :  { %v2171_v37 = vpack.i.bf16 %v1083_v52, %v1083_v52  ;;  %v1151_v17 = vsel %vm1796_vm2, %v1761_v13, 4286644096  ;;  %v1104_v62 = vrot.slane %v1103_v0, 1  ;;  %v1132_v26 = vmax.f32 %v1130_v4, %v1131_v43 }
  0x9a   :  { %v1094_v42 = vmax.f32 %v1092_v45, %v1093_v10  ;;  %v1123_v39 = vmax.f32 %v1121_v3, %v1122_v41  ;;  %v1114_v34 = vmax.f32 %v1112_v22, %v1113_v8  ;;  %v1141_v56 = vunpack.i.l.bf16 %v1140_v50 }
  0x9b   :  { %2808 = vst [vmem:[#allocation18_spill] sm:$0xff] %v2171_v37  ;;  %v1142_v55 = vunpack.i.h.bf16 %v1140_v50  ;;  %v1152_v19 = vunpack.i.l.bf16 %v1151_v17  ;;  %v1105_v9 = vmax.f32 %v1103_v0, %v1104_v62  ;;  %v1133_v45 = vrot.slane %v1132_v26, 4 }
  0x9c   :  { %v2183_v54 = vpack.i.bf16 %v1094_v42, %v1094_v42  ;;  %v1124_v13 = vrot.slane %v1123_v39, 2  ;;  %v1115_v52 = vrot.slane %v1114_v34, 1  ;;  %v1153_v4 = vunpack.i.h.bf16 %v1151_v17 }
  0x9d   :  { %v1143_v3 = vmax.f32 %v1141_v56, %v1142_v55  ;;  %v1162_v22 = vsel %vm1796_vm2, %v1762_v24, 4286644096  ;;  %v2187_v10 = vpack.i.bf16 %v1105_v9, %v1105_v9  ;;  %v1134_v43 = vmax.f32 %v1132_v26, %v1133_v45  ;;  %v1765_v24 = vld [vmem:[%s2762_s0 + $0x1e8] sm:$0x1f]  }
  0x9e   :  { %2809 = vst [vmem:[#allocation19_spill] sm:$0xff] %v2183_v54  ;;  %v1125_v41 = vmax.f32 %v1123_v39, %v1124_v13  ;;  %v1163_v8 = vunpack.i.l.bf16 %v1162_v22  ;;  %v1116_v50 = vmax.f32 %v1114_v34, %v1115_v52  ;;  %v1154_v27 = vmax.f32 %v1152_v19, %v1153_v4 }
  0x9f   :  { %2810 = vst [vmem:[#allocation20_spill] sm:$0xff] %v2187_v10  ;;  %v1144_v37 = vrot.slane %v1143_v3, 4  ;;  %v1164_v1 = vunpack.i.h.bf16 %v1162_v22  ;;  %v1135_v54 = vrot.slane %v1134_v43, 2  ;;  %v1173_v0 = vsel %vm1796_vm2, %v1763_v58, 4286644096 }
  0xa0   :  { %v1126_v42 = vrot.slane %v1125_v41, 1  ;;  %v1184_v17 = vsel %vm1796_vm2, %v1764_v30, 4286644096  ;;  %v2196_v62 = vpack.i.bf16 %v1116_v50, %v1116_v50  ;;  %v1155_v26 = vrot.slane %v1154_v27, 4  ;;  %v1766_v30 = vld [vmem:[%s2762_s0 + $0x1f0] sm:$0x1f]  }
  0xa1   :  { %v1145_v39 = vmax.f32 %v1143_v3, %v1144_v37  ;;  %v1165_v34 = vmax.f32 %v1163_v8, %v1164_v1  ;;  %v1136_v19 = vmax.f32 %v1134_v43, %v1135_v54  ;;  %v1174_v55 = vunpack.i.l.bf16 %v1173_v0 }
  0xa2   :  { %2811 = vst [vmem:[#allocation21_spill] sm:$0xff] %v2196_v62  ;;  %v1127_v56 = vmax.f32 %v1125_v41, %v1126_v42  ;;  %v1175_v9 = vunpack.i.h.bf16 %v1173_v0  ;;  %v1156_v45 = vmax.f32 %v1154_v27, %v1155_v26  ;;  %v1185_v58 = vunpack.i.l.bf16 %v1184_v17 }
  0xa3   :  { %v1146_v13 = vrot.slane %v1145_v39, 2  ;;  %v1166_v52 = vrot.slane %v1165_v34, 4  ;;  %v1137_v22 = vrot.slane %v1136_v19, 1  ;;  %v1186_v62 = vunpack.i.h.bf16 %v1184_v17 }
  0xa4   :  { %v2201_v4 = vpack.i.bf16 %v1127_v56, %v1127_v56  ;;  %v1176_v50 = vmax.f32 %v1174_v55, %v1175_v9  ;;  %v1157_v3 = vrot.slane %v1156_v45, 2  ;;  %v1195_v54 = vsel %vm1796_vm2, %v1765_v24, 4286644096  ;;  %v1767_v56 = vld [vmem:[%s2762_s0 + $0x1f8] sm:$0x1f]  }
  0xa5   :  { %v1147_v37 = vmax.f32 %v1145_v39, %v1146_v13  ;;  %v1167_v1 = vmax.f32 %v1165_v34, %v1166_v52  ;;  %v1138_v41 = vmax.f32 %v1136_v19, %v1137_v22  ;;  %v1187_v27 = vmax.f32 %v1185_v58, %v1186_v62 }
  0xa6   :  { %2812 = vst [vmem:[#allocation22_spill] sm:$0xff] %v2201_v4  ;;  %v1177_v43 = vrot.slane %v1176_v50, 4  ;;  %v1196_v8 = vunpack.i.l.bf16 %v1195_v54  ;;  %v1158_v0 = vmax.f32 %v1156_v45, %v1157_v3  ;;  %v1197_v10 = vunpack.i.h.bf16 %v1195_v54 }
  0xa7   :  { %v1148_v42 = vrot.slane %v1147_v37, 1  ;;  %v1168_v26 = vrot.slane %v1167_v1, 2  ;;  %v2208_v55 = vpack.i.bf16 %v1138_v41, %v1138_v41  ;;  %v1188_v39 = vrot.slane %v1187_v27, 4 }
  0xa8   :  { %v1178_v17 = vmax.f32 %v1176_v50, %v1177_v43  ;;  %v1206_v34 = vsel %vm1796_vm2, %v1766_v30, 4286644096  ;;  %v1159_v19 = vrot.slane %v1158_v0, 1  ;;  %v1198_v62 = vmax.f32 %v1196_v8, %v1197_v10 }
  0xa9   :  { %2813 = vst [vmem:[#allocation23_spill] sm:$0xff] %v2208_v55  ;;  %v1149_v24 = vmax.f32 %v1147_v37, %v1148_v42  ;;  %v1169_v9 = vmax.f32 %v1167_v1, %v1168_v26  ;;  %v1189_v52 = vmax.f32 %v1187_v27, %v1188_v39  ;;  %v1207_v45 = vunpack.i.l.bf16 %v1206_v34 }
  0xaa   :  { %v1179_v13 = vrot.slane %v1178_v17, 2  ;;  %v1208_v58 = vunpack.i.h.bf16 %v1206_v34  ;;  %v1160_v3 = vmax.f32 %v1158_v0, %v1159_v19  ;;  %v1199_v4 = vrot.slane %v1198_v62, 4 }
  0xab   :  { %v2212_v22 = vpack.i.bf16 %v1149_v24, %v1149_v24  ;;  %v1170_v54 = vrot.slane %v1169_v9, 1  ;;  %v1190_v55 = vrot.slane %v1189_v52, 2  ;;  %v1217_v43 = vsel %vm1796_vm2, %v1767_v56, 4286644096 }
  0xac   :  { %v1180_v41 = vmax.f32 %v1178_v17, %v1179_v13  ;;  %v1209_v50 = vmax.f32 %v1207_v45, %v1208_v58  ;;  %v2216_v30 = vpack.i.bf16 %v1160_v3, %v1160_v3  ;;  %v1200_v1 = vmax.f32 %v1198_v62, %v1199_v4  ;;  %v2830_v17 = vld [vmem:[#allocation16_spill] sm:$0xff] }
  0xad   :  { %v1171_v37 = vmax.f32 %v1169_v9, %v1170_v54  ;;  %v1218_v10 = vunpack.i.l.bf16 %v1217_v43  ;;  %v1191_v27 = vmax.f32 %v1189_v52, %v1190_v55  ;;  %v1219_v26 = vunpack.i.h.bf16 %v1217_v43  ;;  %v2833_v54 = vld [vmem:[#allocation19_spill] sm:$0xff]  ;;  %v2834_v62 = vld [vmem:[#allocation20_spill] sm:$0xff]  ;;  %v2835_v55 = vld [vmem:[#allocation21_spill] sm:$0xff] }
  0xae   :  { %2814 = vst [vmem:[#allocation24_spill] sm:$0xff] %v2216_v30  ;;  %v1181_v8 = vrot.slane %v1180_v41, 1  ;;  %v1210_v42 = vrot.slane %v1209_v50, 4  ;;  %v1201_v0 = vrot.slane %v1200_v1, 2  ;;  %v2836_v4 = vld [vmem:[#allocation22_spill] sm:$0xff]  ;;  %vm1496_vm9 = vcmask 1047559  }
  0xaf   :  { %v2218_v39 = vpack.i.bf16 %v1171_v37, %v1171_v37  ;;  %v1192_v56 = vrot.slane %v1191_v27, 1  ;;  %v1220_v19 = vmax.f32 %v1218_v10, %v1219_v26  ;;  %v2822_v10 = vld [vmem:[#allocation8_spill] sm:$0xff]  ;;  %vm1563_vm10 = vcmask 519168  }
  0xb0   :  { %v1182_v6 = vmax.f32 %v1180_v41, %v1181_v8  ;;  %v1211_v24 = vmax.f32 %v1209_v50, %v1210_v42  ;;  %v1202_v9 = vmax.f32 %v1200_v1, %v1201_v0  ;;  %v2820_v42 = vld [vmem:[#allocation6_spill] sm:$0xff]  ;;  %v2831_v50 = vld [vmem:[#allocation17_spill] sm:$0xff]  ;;  %v2837_v34 = vld [vmem:[#allocation23_spill] sm:$0xff]  ;;  %v2856_v41 = vcombine.low %v1942_v33, %v1942_v33 }
  0xb1   :  { %v1193_v52 = vmax.f32 %v1191_v27, %v1192_v56  ;;  %v1221_v58 = vrot.slane %v1220_v19, 4  ;;  %v2818_v56 = vld [vmem:[#allocation4_spill] sm:$0xff]  ;;  %v2821_v27 = vld [vmem:[#allocation7_spill] sm:$0xff]  ;;  %v2861_v33 = vcombine.low %v1977_v51, %v1977_v51  ;;  %v2866_v51 = vcombine.low %v2015_v20, %v2015_v20 }
  0xb2   :  { %v2230_v13 = vpack.i.bf16 %v1182_v6, %v1182_v6  ;;  %v1212_v45 = vrot.slane %v1211_v24, 2  ;;  %v1203_v3 = vrot.slane %v1202_v9, 1 }
  0xb3   :  { %v2238_v43 = vpack.i.bf16 %v1193_v52, %v1193_v52  ;;  %v1222_v1 = vmax.f32 %v1220_v19, %v1221_v58  ;;  %v2816_v52 = vld [vmem:[#allocation2_spill] sm:$0xff] }
  0xb4   :  { %v1213_v37 = vmax.f32 %v1211_v24, %v1212_v45  ;;  %v1204_v8 = vmax.f32 %v1202_v9, %v1203_v3  ;;  %v2819_v24 = vld [vmem:[#allocation5_spill] sm:$0xff]  ;;  %v2840_v9 = vcombine.low %v1838_v21, %v1838_v21  ;;  %v2844_v21 = vcombine.low %v1860_v47, %v1860_v47 }
  0xb5   :  { %v1223_v6 = vrot.slane %v1222_v1, 2  ;;  %v2849_v47 = vcombine.low %v1895_v60, %v1895_v60  ;;  %v2853_v60 = vcombine.low %v1921_v40, %v1921_v40  ;;  %v2858_v40 = vcombine.low %v1959_v63, %v1959_v63 }
  0xb6   :  { %v1214_v0 = vrot.slane %v1213_v37, 1  ;;  %v2252_v19 = vpack.i.bf16 %v1204_v8, %v1204_v8  ;;  %v2839_v8 = vcombine.low %v1830_v16, %v1830_v16  ;;  %v2371_v26 = vunpack.c.l.b16 %v2840_v9 }
  0xb7   :  { %v1224_v3 = vmax.f32 %v1222_v1, %v1223_v6  ;;  %v2843_v16 = vcombine.low %v1851_v38, %v1851_v38  ;;  %v2391_v9 = vunpack.c.l.b16 %v2844_v21  ;;  %v2848_v38 = vcombine.low %v1886_v48, %v1886_v48 }
  0xb8   :  { %v1215_v58 = vmax.f32 %v1213_v37, %v1214_v0  ;;  %v2838_v0 = vcombine.low %v1828_v15, %v1828_v15  ;;  %v2366_v6 = vunpack.c.l.b16 %v2839_v8  ;;  %v2842_v15 = vcombine.low %v1846_v29, %v1846_v29 }
  0xb9   :  { %v1225_v1 = vrot.slane %v1224_v3, 1  ;;  %v2386_v8 = vunpack.c.l.b16 %v2843_v16  ;;  %v2847_v29 = vcombine.low %v1884_v46, %v1884_v46  ;;  %v2406_v16 = vunpack.c.l.b16 %v2848_v38 }
  0xba   :  { %v2272_v37 = vpack.i.bf16 %v1215_v58, %v1215_v58  ;;  %v2817_v58 = vld [vmem:[#allocation3_spill] sm:$0xff]  ;;  %v2361_v30 = vunpack.c.l.b16 %v2838_v0  ;;  %v2381_v0 = vunpack.c.l.b16 %v2842_v15  ;;  %v2411_v21 = vunpack.c.l.b16 %v2849_v47 }
  0xbb   :  { %v1226_v45 = vmax.f32 %v1224_v3, %v1225_v1  ;;  %v2841_v3 = vcombine.low %v1840_v25, %v1840_v25  ;;  %v2845_v25 = vcombine.low %v1872_v5, %v1872_v5  ;;  %v2401_v15 = vunpack.c.l.b16 %v2847_v29 }
  0xbc   :  { %2815 = vst [vmem:[#allocation25_spill] sm:$0xff] %v2272_v37  ;;  %v2850_v5 = vcombine.low %v1897_v61, %v1897_v61  ;;  %v2851_v46 = vcombine.low %v1902_v7, %v1902_v7  ;;  %v2852_v48 = vcombine.low %v1909_v23, %v1909_v23  ;;  %v2431_v47 = vunpack.c.l.b16 %v2853_v60 }
  0xbd   :  { %v2300_v1 = vpack.i.bf16 %v1226_v45, %v1226_v45  ;;  %v2832_v45 = vld [vmem:[#allocation18_spill] sm:$0xff]  ;;  %v2376_v37 = vunpack.c.l.b16 %v2841_v3  ;;  %v2396_v3 = vunpack.c.l.b16 %v2845_v25  ;;  %v2854_v61 = vcombine.low %v1930_v2, %v1930_v2 }
  0xbe   :  { %v2416_v25 = vunpack.c.l.b16 %v2850_v5  ;;  %v2421_v29 = vunpack.c.l.b16 %v2851_v46  ;;  %v2426_v38 = vunpack.c.l.b16 %v2852_v48  ;;  %v2855_v7 = vcombine.low %v1940_v28, %v1940_v28 }
  0xbf   :  { %2846 = vst [vmem:[#allocation2_spill] sm:$0xff] %v2396_v3  ;;  %v2436_v5 = vunpack.c.l.b16 %v2854_v61  ;;  %v1437_v23 = vunpack.c.l.b16 %v2856_v41  ;;  %v2857_v48 = vcombine.low %v1947_v44, %v1947_v44  ;;  %v2450_v60 = vunpack.c.l.b16 %v2858_v40 }
  0xc0   :  { %v1436_v46 = vunpack.c.l.b16 %v2855_v7  ;;  %v2859_v2 = vcombine.low %v1963_v11, %v1963_v11  ;;  %v2860_v28 = vcombine.low %v1972_v31, %v1972_v31  ;;  %v2465_v44 = vunpack.c.l.b16 %v2861_v33 }
  0xc1   :  { %v1438_v3 = vunpack.c.l.b16 %v2857_v48  ;;  %v2862_v63 = vcombine.low %v1984_v12, %v1984_v12  ;;  %v2863_v11 = vcombine.low %v1994_v35, %v1994_v35  ;;  %v2864_v40 = vcombine.low %v1998_v49, %v1998_v49 }
  0xc2   :  { %v2455_v61 = vunpack.c.l.b16 %v2859_v2  ;;  %v2460_v7 = vunpack.c.l.b16 %v2860_v28  ;;  %v2865_v2 = vcombine.low %v2003_v59, %v2003_v59  ;;  %v1447_v33 = vunpack.c.l.b16 %v2866_v51 }
  0xc3   :  { %v2470_v41 = vunpack.c.l.b16 %v2862_v63  ;;  %v1444_v48 = vunpack.c.l.b16 %v2863_v11  ;;  %v1445_v31 = vunpack.c.l.b16 %v2864_v40  ;;  %v2867_v12 = vcombine.low %v2019_v36, %v2019_v36 }
  0xc4   :  { %v1446_v28 = vunpack.c.l.b16 %v2865_v2  ;;  %v2868_v35 = vcombine.low %v2028_v57, %v2028_v57  ;;  %v2869_v49 = vcombine.low %v2033_v18, %v2033_v18  ;;  %v2870_v59 = vcombine.low %v2040_v53, %v2040_v53 }
  0xc5   :  { %v2487_v63 = vunpack.c.l.b16 %v2867_v12  ;;  %v2871_v36 = vcombine.low %v2050_v14, %v2050_v14  ;;  %v2872_v57 = vcombine.low %v2054_v32, %v2054_v32  ;;  %v2873_v18 = vcombine.low %v2816_v52, %v2816_v52 }
  0xc6   :  { %v2492_v11 = vunpack.c.l.b16 %v2868_v35  ;;  %v2497_v40 = vunpack.c.l.b16 %v2869_v49  ;;  %v2502_v20 = vunpack.c.l.b16 %v2870_v59  ;;  %v2874_v53 = vcombine.low %v2817_v58, %v2817_v58 }
  0xc7   :  { %v2507_v2 = vunpack.c.l.b16 %v2871_v36  ;;  %v2512_v51 = vunpack.c.l.b16 %v2872_v57  ;;  %v2517_v12 = vunpack.c.l.b16 %v2873_v18  ;;  %v2875_v14 = vcombine.low %v2818_v56, %v2818_v56 }
  0xc8   :  { %v2522_v35 = vunpack.c.l.b16 %v2874_v53  ;;  %v2877_v32 = vcombine.low %v2819_v24, %v2819_v24  ;;  %v2879_v52 = vcombine.low %v2820_v42, %v2820_v42  ;;  %v2881_v58 = vcombine.low %v2821_v27, %v2821_v27  ;;  %v2884_v53 = vld [vmem:[#allocation9_spill] sm:$0xff]  ;;  %v2889_v42 = vld [vmem:[#allocation11_spill] sm:$0xff]  ;;  %v2891_v27 = vld [vmem:[#allocation12_spill] sm:$0xff] }
  0xc9   :  { %v2527_v49 = vunpack.c.l.b16 %v2875_v14  ;;  %v2883_v56 = vcombine.low %v2822_v10, %v2822_v10  ;;  %v2885_v14 = vcombine.low %v2884_v53, %v2884_v53  ;;  %v2894_v10 = vld [vmem:[#allocation13_spill] sm:$0xff] }
  0xca   :  { %v2532_v59 = vunpack.c.l.b16 %v2877_v32  ;;  %v2537_v36 = vunpack.c.l.b16 %v2879_v52  ;;  %v2542_v57 = vunpack.c.l.b16 %v2881_v58  ;;  %v2886_v32 = vld [vmem:[#allocation10_spill] sm:$0xff]  ;;  %v2890_v52 = vcombine.low %v2889_v42, %v2889_v42 }
  0xcb   :  { %2876 = vst [vmem:[#allocation3_spill] sm:$0xff] %v2527_v49  ;;  %v1460_v18 = vunpack.c.l.b16 %v2883_v56  ;;  %v1461_v24 = vunpack.c.l.b16 %v2885_v14  ;;  %v2892_v58 = vcombine.low %v2891_v27, %v2891_v27  ;;  %v2895_v56 = vcombine.low %v2894_v10, %v2894_v10  ;;  %v2897_v14 = vld [vmem:[#allocation14_spill] sm:$0xff] }
  0xcc   :  { %2878 = vst [vmem:[#allocation4_spill] sm:$0xff] %v2532_v59  ;;  %2880 = vst [vmem:[#allocation5_spill] sm:$0xff] %v2537_v36  ;;  %v2887_v59 = vcombine.low %v2886_v32, %v2886_v32  ;;  %v2558_v36 = vunpack.c.l.b16 %v2890_v52  ;;  %v2898_v32 = vcombine.low %v2897_v14, %v2897_v14  ;;  %v2902_v27 = vcombine.low %v2830_v17, %v2830_v17 }
  0xcd   :  { %2882 = vst [vmem:[#allocation6_spill] sm:$0xff] %v2542_v57  ;;  %v2563_v57 = vunpack.c.l.b16 %v2892_v58  ;;  %v2568_v53 = vunpack.c.l.b16 %v2895_v56  ;;  %v2904_v56 = vcombine.low %v2832_v45, %v2832_v45  ;;  %v2905_v14 = vcombine.low %v2833_v54, %v2833_v54 }
  0xce   :  { %v2553_v49 = vunpack.c.l.b16 %v2887_v59  ;;  %v2573_v59 = vunpack.c.l.b16 %v2898_v32  ;;  %v1468_v58 = vunpack.c.l.b16 %v2902_v27  ;;  %v2907_v17 = vcombine.low %v2835_v55, %v2835_v55 }
  0xcf   :  { %2893 = vst [vmem:[#allocation8_spill] sm:$0xff] %v2563_v57  ;;  %2896 = vst [vmem:[#allocation16_spill] sm:$0xff] %v2568_v53  ;;  %v2903_v57 = vcombine.low %v2831_v50, %v2831_v50  ;;  %v1470_v53 = vunpack.c.l.b16 %v2904_v56  ;;  %v1471_v32 = vunpack.c.l.b16 %v2905_v14  ;;  %v2908_v50 = vcombine.low %v2836_v4, %v2836_v4  ;;  %v2912_v14 = vld [vmem:[#allocation24_spill] sm:$0xff] }
  0xd0   :  { %2888 = vst [vmem:[#allocation7_spill] sm:$0xff] %v2553_v49  ;;  %v2899_v49 = vld [vmem:[#allocation15_spill] sm:$0xff]  ;;  %v2598_v27 = vunpack.c.l.b16 %v2907_v17  ;;  %v2909_v45 = vcombine.low %v2837_v34, %v2837_v34  ;;  %v2911_v54 = vcombine.low %v2212_v22, %v2212_v22  ;;  %v2914_v17 = vcombine.low %v2218_v39, %v2218_v39 }
  0xd1   :  { %v2900_v42 = vcombine.low %v2899_v49, %v2899_v49  ;;  %v1469_v10 = vunpack.c.l.b16 %v2903_v57  ;;  %v2906_v49 = vcombine.low %v2834_v62, %v2834_v62  ;;  %v2603_v57 = vunpack.c.l.b16 %v2908_v50 }
  0xd2   :  { %v2608_v56 = vunpack.c.l.b16 %v2909_v45  ;;  %v1476_v62 = vunpack.c.l.b16 %v2911_v54  ;;  %v2915_v4 = vcombine.low %v2230_v13, %v2230_v13  ;;  %v2916_v34 = vcombine.low %v2238_v43, %v2238_v43 }
  0xd3   :  { %v2578_v52 = vunpack.c.l.b16 %v2900_v42  ;;  %v1472_v42 = vunpack.c.l.b16 %v2906_v49  ;;  %v2913_v49 = vcombine.low %v2912_v14, %v2912_v14  ;;  %v2917_v22 = vcombine.low %v2252_v19, %v2252_v19 }
  0xd4   :  { %2910 = vst [vmem:[#allocation18_spill] sm:$0xff] %v2608_v56  ;;  %v1479_v50 = vunpack.c.l.b16 %v2915_v4  ;;  %v1480_v45 = vunpack.c.l.b16 %v2916_v34  ;;  %v2918_v56 = vld [vmem:[#allocation25_spill] sm:$0xff]  ;;  %v2920_v39 = vcombine.low %v2300_v1, %v2300_v1  ;;  %v1485_v13 = vsel %vm1484_vm3, %v2366_v6, %v2361_v30 }
  0xd5   :  { %2901 = vst [vmem:[#allocation17_spill] sm:$0xff] %v2578_v52  ;;  %v1477_v55 = vunpack.c.l.b16 %v2913_v49  ;;  %v1478_v52 = vunpack.c.l.b16 %v2914_v17  ;;  %v1481_v54 = vunpack.c.l.b16 %v2917_v22  ;;  %v2919_v14 = vcombine.low %v2918_v56, %v2918_v56 }
  0xd6   :  { %v2636_v17 = vunpack.c.l.b16 %v2920_v39  ;;  %v1487_v43 = vsel %vm1486_vm4, %v2371_v26, %v1485_v13  ;;  %v1498_v19 = vsel %vm1484_vm3, %v2406_v16, %v2401_v15  ;;  %v1505_v1 = vsel %vm1484_vm3, %v1437_v23, %v1436_v46  ;;  %v2927_v39 = vld [vmem:[#allocation16_spill] sm:$0xff]  ;;  %v2928_v13 = vld [vmem:[#allocation6_spill] sm:$0xff] }
  0xd7   :  { %v2631_v49 = vunpack.c.l.b16 %v2919_v14  ;;  %v1489_v56 = vsel %vm1488_vm5, %v2376_v37, %v1487_v43  ;;  %v1499_v4 = vsel %vm1486_vm4, %v2411_v21, %v1498_v19  ;;  %v1506_v30 = vsel %vm1486_vm4, %v1438_v3, %v1505_v1 }
  0xd8   :  { %v1512_v6 = vsel %vm1484_vm3, %v1445_v31, %v1444_v48  ;;  %v1491_v26 = vsel %vm1490_vm6, %v2381_v0, %v1489_v56  ;;  %v1500_v34 = vsel %vm1488_vm5, %v2416_v25, %v1499_v4  ;;  %v1507_v15 = vsel %vm1488_vm5, %v2450_v60, %v1506_v30  ;;  %v2921_v60 = vld [vmem:[#allocation2_spill] sm:$0xff] }
  0xd9   :  { %v1513_v16 = vsel %vm1486_vm4, %v1446_v28, %v1512_v6  ;;  %v1493_v37 = vsel %vm1492_vm7, %v2386_v8, %v1491_v26  ;;  %v1501_v21 = vsel %vm1490_vm6, %v2421_v29, %v1500_v34  ;;  %v1508_v3 = vsel %vm1490_vm6, %v2455_v61, %v1507_v15 }
  0xda   :  { %v1514_v46 = vsel %vm1488_vm5, %v1447_v33, %v1513_v16  ;;  %v1495_v0 = vsel %vm1494_vm8, %v2391_v9, %v1493_v37  ;;  %v1502_v25 = vsel %vm1492_vm7, %v2426_v38, %v1501_v21  ;;  %v1509_v23 = vsel %vm1492_vm7, %v2460_v7, %v1508_v3 }
  0xdb   :  { %v1515_v8 = vsel %vm1490_vm6, %v2487_v63, %v1514_v46  ;;  %v1497_v29 = vsel %vm1496_vm9, %v2921_v60, %v1495_v0  ;;  %v1503_v61 = vsel %vm1494_vm8, %v2431_v47, %v1502_v25  ;;  %v1510_v48 = vsel %vm1494_vm8, %v2465_v44, %v1509_v23  ;;  %v2922_v63 = vld [vmem:[#allocation7_spill] sm:$0xff]  ;;  %v2930_v4 = vld [vmem:[#allocation18_spill] sm:$0xff] }
  0xdc   :  { %v1516_v9 = vsel %vm1492_vm7, %v2492_v11, %v1515_v8  ;;  %v1504_v38 = vsel %vm1496_vm9, %v2436_v5, %v1503_v61  ;;  %v1511_v7 = vsel %vm1496_vm9, %v2470_v41, %v1510_v48  ;;  %v1519_v28 = vsel %vm1484_vm3, %v2512_v51, %v2507_v2  ;;  %v2923_v51 = vld [vmem:[#allocation3_spill] sm:$0xff]  ;;  %v2929_v1 = vld [vmem:[#allocation17_spill] sm:$0xff] }
  0xdd   :  { %v1517_v31 = vsel %vm1494_vm8, %v2497_v40, %v1516_v9  ;;  %v1520_v44 = vsel %vm1486_vm4, %v2517_v12, %v1519_v28  ;;  %v1526_v33 = vsel %vm1484_vm3, %v1461_v24, %v1460_v18  ;;  %v1533_v5 = vsel %vm1484_vm3, %v1469_v10, %v1468_v58  ;;  %v2924_v58 = vld [vmem:[#allocation4_spill] sm:$0xff] }
  0xde   :  { %v1518_v47 = vsel %vm1496_vm9, %v2502_v20, %v1517_v31  ;;  %v1521_v41 = vsel %vm1488_vm5, %v2522_v35, %v1520_v44  ;;  %v1527_v11 = vsel %vm1486_vm4, %v2922_v63, %v1526_v33  ;;  %v1534_v40 = vsel %vm1486_vm4, %v1470_v53, %v1533_v5  ;;  %v2925_v10 = vld [vmem:[#allocation8_spill] sm:$0xff] }
  0xdf   :  { %v1540_v2 = vsel %vm1484_vm3, %v1477_v55, %v1476_v62  ;;  %v1522_v20 = vsel %vm1490_vm6, %v2923_v51, %v1521_v41  ;;  %v1528_v12 = vsel %vm1488_vm5, %v2558_v36, %v1527_v11  ;;  %v1535_v18 = vsel %vm1488_vm5, %v1471_v32, %v1534_v40  ;;  %v2926_v55 = vld [vmem:[#allocation5_spill] sm:$0xff] }
  0xe0   :  { %v1541_v24 = vsel %vm1486_vm4, %v1478_v52, %v1540_v2  ;;  %v1523_v35 = vsel %vm1492_vm7, %v2924_v58, %v1522_v20  ;;  %v1529_v22 = vsel %vm1490_vm6, %v2925_v10, %v1528_v12  ;;  %v1536_v53 = vsel %vm1490_vm6, %v1472_v42, %v1535_v18 }
  0xe1   :  { %v1542_v62 = vsel %vm1488_vm5, %v1479_v50, %v1541_v24  ;;  %v1524_v14 = vsel %vm1494_vm8, %v2926_v55, %v1523_v35  ;;  %v1530_v36 = vsel %vm1492_vm7, %v2927_v39, %v1529_v22  ;;  %v1537_v32 = vsel %vm1492_vm7, %v2598_v27, %v1536_v53 }
  0xe2   :  { %v1543_v52 = vsel %vm1490_vm6, %v1480_v45, %v1542_v62  ;;  %v1525_v43 = vsel %vm1496_vm9, %v2928_v13, %v1524_v14  ;;  %v1531_v19 = vsel %vm1494_vm8, %v2573_v59, %v1530_v36  ;;  %v1538_v42 = vsel %vm1494_vm8, %v2603_v57, %v1537_v32 }
  0xe3   :  { %v1544_v50 = vsel %vm1492_vm7, %v1481_v54, %v1543_v52  ;;  %v1532_v56 = vsel %vm1496_vm9, %v2929_v1, %v1531_v19  ;;  %v1539_v30 = vsel %vm1496_vm9, %v2930_v4, %v1538_v42  ;;  %v1547_v45 = vpack.c.b16 %v1497_v29, %v1497_v29 }
  0xe4   :  { %v1545_v27 = vsel %vm1494_vm8, %v2631_v49, %v1544_v50  ;;  %v1548_v26 = vpack.c.b16 %v1504_v38, %v1504_v38  ;;  %v1549_v59 = vpack.c.b16 %v1511_v7, %v1511_v7  ;;  %v1550_v34 = vpack.c.b16 %v1518_v47, %v1518_v47 }
  0xe5   :  { %v1546_v6 = vsel %vm1496_vm9, %v2636_v17, %v1545_v27  ;;  %v1551_v15 = vpack.c.b16 %v1525_v43, %v1525_v43  ;;  %v1552_v57 = vpack.c.b16 %v1532_v56, %v1532_v56  ;;  %v1553_v16 = vpack.c.b16 %v1539_v30, %v1539_v30  ;;  %1564 = vst.msk [vmem:[%s2763_s1] sm:$0xf] %vm1563_vm10, %v1547_v45 }
  0xe6   :  { %v1554_v54 = vpack.c.b16 %v1546_v6, %v1546_v6  ;;  %1565 = vst.msk [vmem:[%s2763_s1 + $0x4] sm:$0xf] %vm1563_vm10, %v1548_v26  ;;  %1566 = vst.msk [vmem:[%s2763_s1 + $0x8] sm:$0xf] %vm1563_vm10, %v1549_v59 }
  0xe7   :  { %1567 = vst.msk [vmem:[%s2763_s1 + $0xc] sm:$0xf] %vm1563_vm10, %v1550_v34  ;;  %1568 = vst.msk [vmem:[%s2763_s1 + $0x10] sm:$0xf] %vm1563_vm10, %v1551_v15 }
  0xe8   :  { %1569 = vst.msk [vmem:[%s2763_s1 + $0x14] sm:$0xf] %vm1563_vm10, %v1552_v57  ;;  %1570 = vst.msk [vmem:[%s2763_s1 + $0x18] sm:$0xf] %vm1563_vm10, %v1553_v16 }
  0xe9   :  { %1571 = vst.msk [vmem:[%s2763_s1 + $0x1c] sm:$0xf] %vm1563_vm10, %v1554_v54 }

// kernel: _pe_h_network.24
= control target key start
LH: loop header
LB: loop body
LE: loop exit
PB: predicated region body
PF: predicated region fallthrough
CT: control target
= control target key end

     0   :  { %s1351_s12 = smov 0   ;;  %s1353_s13 = smov 0   ;;  %s1450_s0 = inlined_call_operand.vmem [shape: bf16[2,32,640], index: 0, kind: input, shape index: {}]   ;;  %s1451_s1 = inlined_call_operand.vmem [shape: bf16[2,640,128], index: 1, kind: input, shape index: {}]   ;;  %s1452_s2 = inlined_call_operand.vmem [shape: f32[2,1,128], index: 2, kind: input, shape index: {}]   ;;  %s1453_s3 = inlined_call_operand.vmem [shape: bf16[2,32,128], index: 3, kind: output, shape index: {}]  }
   0x1   :  { %s1355_s14 = smov 0  }
   0x2 LB: > { %s39_s15 = sadd.s32 1, %s1325_s13  ;;  %p1063_p0 = scmp.ge.s32.totalorder %s1329_s14, 1  ;;  %s1329_s14 = sphi %s1355_s14, %s13_s14   ;;  %s1325_s13 = sphi %s1353_s13, %s1455_s13   ;;  %s1321_s12 = sphi %s1351_s12, %s1454_s12  }
   0x3   : > { %p41_p1 = scmp.ge.s32.totalorder %s39_s15, 2  ;;  %p217_p2 = scmp.lt.s32.totalorder %s1329_s14, 3 }
   0x5   : > { %s1457_s15 = smov (%p41_p1, %s39_s15), 0  ;;  %p218_p3 = pnand %p1063_p0, %p217_p2 }
   0x6   : > { %p277_p4 = scmp.lt.s32.totalorder (!%p218_p3), %s1321_s12, 1 }
   0x7   : > { %221 = sbr.rel (%p218_p3) target bundleno = 290 (0x122), region = 32 }
   0xc   : > { %s1459_s12 = smov (!%p277_p4, %s1321_s12), 1 }
   0xd   : > { %s1228_s16 = smul.u32 320, %s1459_s12  ;;  %s309_s26 = scalar_lea.vmem %s1452_s2, %s1459_s12 }
   0xe   : > { %s1227_s20 = smul.u32 80, %s1459_s12  ;;  %s1125_s27 = sshll.u32 %s1459_s12, 4 }
   0xf   : > { %s1375_s19 = scalar_lea.vmem %s1451_s1, %s1228_s16  ;;  %s321_s30 = scalar_lea.vmem %s1453_s3, %s1125_s27 }
  0x10   : > { %v1253_v0 = vld [vmem:[%s1375_s19 + $0x78] sm:$0xff]   ;;  %v1257_v4 = vld [vmem:[%s1375_s19 + $0x70] sm:$0xff]   ;;  %v1261_v8 = vld [vmem:[%s1375_s19 + $0x68] sm:$0xff]   ;;  %s1411_s23 = scalar_lea.vmem %s1450_s0, %s1227_s20 }
  0x11   : > { %v1254_v1 = vld [vmem:[%s1375_s19 + $0xf8] sm:$0xff]   ;;  %1141 = vmatprep.subr.bf16.mxu0 %v1253_v0  ;;  %v1258_v5 = vld [vmem:[%s1375_s19 + $0xf0] sm:$0xff]   ;;  %v1262_v9 = vld [vmem:[%s1375_s19 + $0xe8] sm:$0xff]  }
  0x12   : > { %v1255_v2 = vld [vmem:[%s1375_s19 + $0x38] sm:$0xff]   ;;  %1169 = vmatprep.subr.bf16.mxu1 %v1254_v1  ;;  %v1259_v6 = vld [vmem:[%s1375_s19 + $0x30] sm:$0xff]   ;;  %v1263_v10 = vld [vmem:[%s1375_s19 + $0x28] sm:$0xff]  }
  0x13   : > { %v1256_v3 = vld [vmem:[%s1375_s19 + $0xb8] sm:$0xff]   ;;  %1142 = vmatpush3.bf16.msra.mxu0 %v1255_v2  ;;  %v1260_v7 = vld [vmem:[%s1375_s19 + $0xb0] sm:$0xff]   ;;  %v1264_v11 = vld [vmem:[%s1375_s19 + $0xa8] sm:$0xff]  }
  0x14   : > { %1170 = vmatpush3.bf16.msra.mxu1 %v1256_v3  ;;  %1143 = vmatprep.subr.bf16.mxu0 %v1257_v4  ;;  %v1265_v12 = vld [vmem:[%s1375_s19 + $0x60] sm:$0xff]   ;;  %v1269_v16 = vld [vmem:[%s1375_s19 + $0x58] sm:$0xff]   ;;  %v1273_v20 = vld [vmem:[%s1375_s19 + $0x50] sm:$0xff]  }
  0x15   : > { %1171 = vmatprep.subr.bf16.mxu1 %v1258_v5  ;;  %v1266_v13 = vld [vmem:[%s1375_s19 + $0xe0] sm:$0xff]   ;;  %v1270_v17 = vld [vmem:[%s1375_s19 + $0xd8] sm:$0xff]   ;;  %v1274_v21 = vld [vmem:[%s1375_s19 + $0xd0] sm:$0xff]  }
  0x16   : > { %v1267_v14 = vld [vmem:[%s1375_s19 + $0x20] sm:$0xff]   ;;  %v1271_v18 = vld [vmem:[%s1375_s19 + $0x18] sm:$0xff]   ;;  %v1275_v22 = vld [vmem:[%s1375_s19 + $0x10] sm:$0xff]  }
  0x17   : > { %1144 = vmatpush3.bf16.msra.mxu0 %v1259_v6  ;;  %v1268_v15 = vld [vmem:[%s1375_s19 + $0xa0] sm:$0xff]   ;;  %v1272_v19 = vld [vmem:[%s1375_s19 + $0x98] sm:$0xff]   ;;  %v1276_v23 = vld [vmem:[%s1375_s19 + $0x90] sm:$0xff]  }
  0x18   : > { %1172 = vmatpush3.bf16.msra.mxu1 %v1260_v7  ;;  %1145 = vmatprep.subr.bf16.mxu0 %v1261_v8  ;;  %v1277_v24 = vld [vmem:[%s1375_s19 + $0x48] sm:$0xff]   ;;  %v1281_v28 = vld [vmem:[%s1375_s19 + $0x40] sm:$0xff]   ;;  %v1291_v36 = vld [vmem:[%s1375_s19 + $0x138] sm:$0xff]  }
  0x19   : > { %1173 = vmatprep.subr.bf16.mxu1 %v1262_v9  ;;  %v1278_v25 = vld [vmem:[%s1375_s19 + $0xc8] sm:$0xff]   ;;  %v1282_v29 = vld [vmem:[%s1375_s19 + $0xc0] sm:$0xff]   ;;  %v1292_v37 = vld [vmem:[%s1375_s19 + $0x130] sm:$0xff]  }
  0x1a   : > { %v1279_v26 = vld [vmem:[%s1375_s19 + $0x8] sm:$0xff]   ;;  %v1283_v30 = vld [vmem:[%s1375_s19] sm:$0xff]   ;;  %v1295_v45 = vld [vmem:[%s1375_s19 + $0x118] sm:$0xff]  }
  0x1b   : > { %1146 = vmatpush3.bf16.msra.mxu0 %v1263_v10  ;;  %v1280_v27 = vld [vmem:[%s1375_s19 + $0x88] sm:$0xff]   ;;  %v1284_v31 = vld [vmem:[%s1375_s19 + $0x80] sm:$0xff]   ;;  %v1302_v46 = vld [vmem:[%s1375_s19 + $0x110] sm:$0xff]  }
  0x1c   : > { %1174 = vmatpush3.bf16.msra.mxu1 %v1264_v11  ;;  %1147 = vmatprep.subr.bf16.mxu0 %v1265_v12  ;;  %v1285_v32 = vld [vmem:[%s1411_s23] ss:$20 sps:$4 sm:$0xff]   ;;  %v1287_v33 = vld [vmem:[%s1411_s23 + $0x4] ss:$20 sps:$4 sm:$0xff]   ;;  %v1288_v34 = vld [vmem:[%s1411_s23 + $0x8] ss:$20 sps:$4 sm:$0xff]  }
  0x1d   : > { %1175 = vmatprep.subr.bf16.mxu1 %v1266_v13  ;;  %v1290_v35 = vld [vmem:[%s1411_s23 + $0xc] ss:$20 sps:$4 sm:$0xff]   ;;  %752 = vmatprep.mubr.bf16.mxu0 %v1287_v33  ;;  %v1298_v40 = vld [vmem:[%s1411_s23 + $0x34] ss:$20 sps:$4 sm:$0xff]   ;;  %v1301_v42 = vld [vmem:[%s1411_s23 + $0x30] ss:$20 sps:$4 sm:$0xff]  }
  0x1e   : > { %801 = vmatprep.mubr.bf16.mxu1 %v1290_v35  ;;  %v1293_v38 = vld [vmem:[%s1375_s19 + $0x128] sm:$0xff]   ;;  %v1294_v43 = vld [vmem:[%s1375_s19 + $0x120] sm:$0xff]  }
  0x1f   : > { %1148 = vmatpush3.bf16.msra.mxu0 %v1267_v14  ;;  %v1296_v39 = vld [vmem:[%s1411_s23 + $0x2c] ss:$20 sps:$4 sm:$0xff]   ;;  %v1300_v41 = vld [vmem:[%s1411_s23 + $0x28] ss:$20 sps:$4 sm:$0xff]   ;;  %v1305_v44 = vld [vmem:[%s1411_s23 + $0x10] ss:$20 sps:$4 sm:$0xff]  }
  0x20   : > { %1176 = vmatpush3.bf16.msra.mxu1 %v1268_v15  ;;  %1149 = vmatprep.subr.bf16.mxu0 %v1269_v16  ;;  %v1303_v47 = vld [vmem:[%s1375_s19 + $0x108] sm:$0xff]   ;;  %v1304_v48 = vld [vmem:[%s1375_s19 + $0x100] sm:$0xff]  }
  0x21   : > { %1177 = vmatprep.subr.bf16.mxu1 %v1270_v17  ;;  %v1306_v49 = vld [vmem:[%s1411_s23 + $0x38] ss:$20 sps:$4 sm:$0xff]   ;;  %v1118_v14 = vld [vmem:[%s309_s26] ss:$0 sm:$0xff] }
  0x23   : > { %1150 = vmatpush3.bf16.msra.mxu0 %v1271_v18 }
  0x24   : > { %1178 = vmatpush3.bf16.msra.mxu1 %v1272_v19  ;;  %1151 = vmatprep.subr.bf16.mxu0 %v1273_v20 }
  0x25   : > { %1179 = vmatprep.subr.bf16.mxu1 %v1274_v21 }
  0x27   : > { %1152 = vmatpush3.bf16.msra.mxu0 %v1275_v22 }
  0x28   : > { %1180 = vmatpush3.bf16.msra.mxu1 %v1276_v23  ;;  %1153 = vmatprep.subr.bf16.mxu0 %v1277_v24 }
  0x29   : > { %1181 = vmatprep.subr.bf16.mxu1 %v1278_v25 }
  0x2b   : > { %1154 = vmatpush3.bf16.msra.mxu0 %v1279_v26 }
  0x2c   : > { %1182 = vmatpush3.bf16.msra.mxu1 %v1280_v27  ;;  %1155 = vmatprep.subr.bf16.mxu0 %v1281_v28 }
  0x2d   : > { %1183 = vmatprep.subr.bf16.mxu1 %v1282_v29 }
  0x2f   : > { %1156 = vmatpush3.bf16.msra.mxu0 %v1283_v30 }
  0x30   : > { %1184 = vmatpush3.bf16.msra.mxu1 %v1284_v31  ;;  %1207 = vmatprep.subr.bf16.mxu0 %v1291_v36 }
  0x32   : > { %753 = vmatmul.mubr.bf16.vlgmr.msra.gmra.mxu0 %v1285_v32 }
  0x33   : > { %802 = vmatmul.mubr.bf16.vlgmr.msra.gmra.mxu1 %v1288_v34  ;;  %1208 = vmatpush3.bf16.msra.mxu0 %v1291_v36 }
  0x34   : > { %1209 = vmatprep.subr.bf16.mxu0 %v1292_v37  ;;  %760 = vmatprep.mubr.bf16.mxu0 %v1296_v39 }
  0x35   : > { %809 = vmatprep.mubr.bf16.mxu1 %v1298_v40 }
  0x37   : > { %1210 = vmatpush3.bf16.msra.mxu0 %v1292_v37 }
  0x38   : > { %1211 = vmatprep.subr.bf16.mxu0 %v1293_v38 }
  0x3a   : > { %761 = vmatmul.mubr.bf16.gmra.mxu0 %v1300_v41 }
  0x3b   : > { %810 = vmatmul.mubr.bf16.gmra.mxu1 %v1301_v42  ;;  %1212 = vmatpush3.bf16.msra.mxu0 %v1293_v38 }
  0x3c   : > { %1213 = vmatprep.subr.bf16.mxu0 %v1294_v43  ;;  %1223 = vmatprep.mubr.bf16.mxu0 %v1305_v44 }
  0x3f   : > { %1214 = vmatpush3.bf16.msra.mxu0 %v1294_v43 }
  0x40   : > { %1215 = vmatprep.subr.bf16.mxu0 %v1295_v45 }
  0x43   : > { %1216 = vmatpush3.bf16.msra.mxu0 %v1295_v45 }
  0x44   : > { %1217 = vmatprep.subr.bf16.mxu0 %v1302_v46 }
  0x47   : > { %1218 = vmatpush3.bf16.msra.mxu0 %v1302_v46 }
  0x48   : > { %1219 = vmatprep.subr.bf16.mxu0 %v1303_v47 }
  0x4b   : > { %1220 = vmatpush3.bf16.msra.mxu0 %v1303_v47 }
  0x4c   : > { %1221 = vmatprep.subr.bf16.mxu0 %v1304_v48 }
  0x4f   : > { %1222 = vmatpush3.bf16.msra.mxu0 %v1304_v48 }
  0x52   : > { %1224 = vmatmul.mubr.bf16.vlgmr.msra.gmra.mxu0 %v1306_v49 }
  0xf2   : > { %v1157_v50 = vpop.f32.mrf.mxu0 }
  0xf3   : > { %v1185_v51 = vpop.f32.mrf.mxu1 }
  0xf4   : > { %v1158_v52 = vpop.f32.mrf.mxu0 }
  0xf5   : > { %v1186_v53 = vpop.f32.mrf.mxu1  ;;  %v1159_v4 = vadd.f32 %v1158_v52, %v1157_v50 }
  0xf6   : > { %v1160_v54 = vpop.f32.mrf.mxu0  ;;  %v1187_v5 = vadd.f32 %v1186_v53, %v1185_v51 }
  0xf7   : > { %v1188_v55 = vpop.f32.mrf.mxu1 }
  0xf8   : > { %v1161_v56 = vpop.f32.mrf.mxu0  ;;  %v804_v13 = vadd.f32 %v1187_v5, %v1159_v4 }
  0xf9   : > { %v1189_v57 = vpop.f32.mrf.mxu1  ;;  %v1162_v10 = vadd.f32 %v1161_v56, %v1160_v54 }
  0xfa   : > { %v1163_v58 = vpop.f32.mrf.mxu0  ;;  %v1190_v11 = vadd.f32 %v1189_v57, %v1188_v55 }
  0xfb   : > { %v1191_v59 = vpop.f32.mrf.mxu1 }
  0xfc   : > { %v1164_v60 = vpop.f32.mrf.mxu0  ;;  %v807_v21 = vadd.f32 %v1190_v11, %v1162_v10 }
  0xfd   : > { %v1192_v61 = vpop.f32.mrf.mxu1  ;;  %v1165_v0 = vadd.f32 %v1164_v60, %v1163_v58 }
  0xfe   : > { %v1166_v62 = vpop.f32.mrf.mxu0  ;;  %v1193_v1 = vadd.f32 %v1192_v61, %v1191_v59 }
  0xff   : > { %v1194_v63 = vpop.f32.mrf.mxu1 }
 0x100   : > { %v1167_v2 = vpop.f32.mrf.mxu0  ;;  %v812_v8 = vadd.f32 %v1193_v1, %v1165_v0 }
 0x101   : > { %v1195_v3 = vpop.f32.mrf.mxu1  ;;  %v1168_v6 = vadd.f32 %v1167_v2, %v1166_v62 }
 0x102   : > { %v1196_v7 = vadd.f32 %v1195_v3, %v1194_v63 }
 0x104   : > { %v815_v17 = vadd.f32 %v1196_v7, %v1168_v6 }
 0x112   : > { %v1225_v9 = vpop.f32.mrf.mxu0 }
 0x113   : > { %v861_v12 = vadd.f32 %v1225_v9, %v812_v8 }
 0x114   : > { %v852_v15 = vpop.f32.mrf.mxu0 }
 0x115   : > { %v853_v16 = vadd.f32 %v852_v15, %v804_v13  ;;  %v891_v19 = vadd.f32 %v1118_v14, %v861_v12 }
 0x116   : > { %v1226_v18 = vpop.f32.mrf.mxu0 }
 0x117   : > { %v864_v20 = vadd.f32 %v1226_v18, %v815_v17  ;;  %v889_v23 = vadd.f32 %v1118_v14, %v853_v16  ;;  %v895_v26 = vmax.f32 %v891_v19, 0.0 }
 0x118   : > { %v855_v22 = vpop.f32.mrf.mxu0 }
 0x119   : > { %v892_v24 = vadd.f32 %v1118_v14, %v864_v20  ;;  %v856_v25 = vadd.f32 %v855_v22, %v807_v21  ;;  %v893_v29 = vmax.f32 %v889_v23, 0.0 }
 0x11b   : > { %v896_v27 = vmax.f32 %v892_v24, 0.0  ;;  %v890_v28 = vadd.f32 %v1118_v14, %v856_v25 }
 0x11d   : > { %v1138_v30 = vpack.c.bf16 %v896_v27, %v895_v26  ;;  %v894_v31 = vmax.f32 %v890_v28, 0.0 }
 0x11f   : > { %1140 = vst [vmem:[%s321_s30 + $0x8] sm:$0xff] %v1138_v30   ;;  %v1133_v32 = vpack.c.bf16 %v894_v31, %v893_v29 }
 0x121   : > { %1134 = vst [vmem:[%s321_s30] sm:$0xff] %v1133_v32  }
 0x122 PF: > { %s13_s14 = sadd.s32 1, %s1329_s14   ;;  %s1454_s12 = smov %s1325_s13 }
 0x123   : > { %p10_p5 = scmp.ge.s32.totalorder %s13_s14, 4   ;;  %s1455_s13 = smov %s1457_s15 }
 0x125   :  { %12 = sbr.rel (!%p10_p5) target bundleno = 2 (0x2), region = 76 }

// kernel: _pe_h_network.25
= control target key start
LH: loop header
LB: loop body
LE: loop exit
PB: predicated region body
PF: predicated region fallthrough
CT: control target
= control target key end

     0   :  { %s1475_s15 = smov 0   ;;  %s1477_s16 = smov 0   ;;  %s1581_s0 = inlined_call_operand.vmem [shape: bf16[2,32,640], index: 0, kind: input, shape index: {}]   ;;  %s1582_s1 = inlined_call_operand.vmem [shape: bf16[2,640,128], index: 1, kind: input, shape index: {}]   ;;  %s1583_s2 = inlined_call_operand.vmem [shape: f32[2,1,128], index: 2, kind: input, shape index: {}]   ;;  %s1584_s3 = inlined_call_operand.vmem [shape: bf16[2,32,128], index: 3, kind: input, shape index: {}]   ;;  %s1585_s4 = inlined_call_operand.vmem [shape: bf16[2,32,128], index: 4, kind: output, shape index: {}]  }
   0x1   :  { %s1479_s17 = smov 0  }
   0x2 LB: > { %s40_s18 = sadd.s32 1, %s1444_s16  ;;  %p1170_p0 = scmp.ge.s32.totalorder %s1448_s17, 1  ;;  %s1448_s17 = sphi %s1479_s17, %s14_s17   ;;  %s1444_s16 = sphi %s1477_s16, %s1587_s16   ;;  %s1440_s15 = sphi %s1475_s15, %s1586_s15  }
   0x3   : > { %p42_p1 = scmp.ge.s32.totalorder %s40_s18, 2  ;;  %p264_p2 = scmp.lt.s32.totalorder %s1448_s17, 3 }
   0x5   : > { %s1589_s18 = smov (%p42_p1, %s40_s18), 0  ;;  %p265_p3 = pnand %p1170_p0, %p264_p2 }
   0x6   : > { %p338_p4 = scmp.lt.s32.totalorder (!%p265_p3), %s1440_s15, 1 }
   0x7   : > { %268 = sbr.rel (%p265_p3) target bundleno = 292 (0x124), region = 36 }
   0xc   : > { %s1591_s15 = smov (!%p338_p4, %s1440_s15), 1 }
   0xd   : > { %s1347_s19 = smul.u32 320, %s1591_s15  ;;  %s1234_s27 = sshll.u32 %s1591_s15, 4 }
   0xe   : > { %s1346_s23 = smul.u32 80, %s1591_s15  ;;  %s370_s30 = scalar_lea.vmem %s1583_s2, %s1591_s15 }
   0xf   : > { %s1499_s22 = scalar_lea.vmem %s1582_s1, %s1347_s19  ;;  %s382_s7 = scalar_lea.vmem %s1584_s3, %s1234_s27 }
  0x10   : > { %v1372_v0 = vld [vmem:[%s1499_s22 + $0x78] sm:$0xff]   ;;  %v1376_v4 = vld [vmem:[%s1499_s22 + $0x70] sm:$0xff]   ;;  %v1380_v8 = vld [vmem:[%s1499_s22 + $0x68] sm:$0xff]   ;;  %s1535_s26 = scalar_lea.vmem %s1581_s0, %s1346_s23  ;;  %s395_s10 = scalar_lea.vmem %s1585_s4, %s1234_s27 }
  0x11   : > { %v1373_v1 = vld [vmem:[%s1499_s22 + $0xf8] sm:$0xff]   ;;  %1260 = vmatprep.subr.bf16.mxu0 %v1372_v0  ;;  %v1377_v5 = vld [vmem:[%s1499_s22 + $0xf0] sm:$0xff]   ;;  %v1381_v9 = vld [vmem:[%s1499_s22 + $0xe8] sm:$0xff]  }
  0x12   : > { %v1374_v2 = vld [vmem:[%s1499_s22 + $0x38] sm:$0xff]   ;;  %1288 = vmatprep.subr.bf16.mxu1 %v1373_v1  ;;  %v1378_v6 = vld [vmem:[%s1499_s22 + $0x30] sm:$0xff]   ;;  %v1382_v10 = vld [vmem:[%s1499_s22 + $0x28] sm:$0xff]  }
  0x13   : > { %v1375_v3 = vld [vmem:[%s1499_s22 + $0xb8] sm:$0xff]   ;;  %1261 = vmatpush3.bf16.msra.mxu0 %v1374_v2  ;;  %v1379_v7 = vld [vmem:[%s1499_s22 + $0xb0] sm:$0xff]   ;;  %v1383_v11 = vld [vmem:[%s1499_s22 + $0xa8] sm:$0xff]  }
  0x14   : > { %1289 = vmatpush3.bf16.msra.mxu1 %v1375_v3  ;;  %1262 = vmatprep.subr.bf16.mxu0 %v1376_v4  ;;  %v1384_v12 = vld [vmem:[%s1499_s22 + $0x60] sm:$0xff]   ;;  %v1388_v16 = vld [vmem:[%s1499_s22 + $0x58] sm:$0xff]   ;;  %v1392_v20 = vld [vmem:[%s1499_s22 + $0x50] sm:$0xff]  }
  0x15   : > { %1290 = vmatprep.subr.bf16.mxu1 %v1377_v5  ;;  %v1385_v13 = vld [vmem:[%s1499_s22 + $0xe0] sm:$0xff]   ;;  %v1389_v17 = vld [vmem:[%s1499_s22 + $0xd8] sm:$0xff]   ;;  %v1393_v21 = vld [vmem:[%s1499_s22 + $0xd0] sm:$0xff]  }
  0x16   : > { %v1386_v14 = vld [vmem:[%s1499_s22 + $0x20] sm:$0xff]   ;;  %v1390_v18 = vld [vmem:[%s1499_s22 + $0x18] sm:$0xff]   ;;  %v1394_v22 = vld [vmem:[%s1499_s22 + $0x10] sm:$0xff]  }
  0x17   : > { %1263 = vmatpush3.bf16.msra.mxu0 %v1378_v6  ;;  %v1387_v15 = vld [vmem:[%s1499_s22 + $0xa0] sm:$0xff]   ;;  %v1391_v19 = vld [vmem:[%s1499_s22 + $0x98] sm:$0xff]   ;;  %v1395_v23 = vld [vmem:[%s1499_s22 + $0x90] sm:$0xff]  }
  0x18   : > { %1291 = vmatpush3.bf16.msra.mxu1 %v1379_v7  ;;  %1264 = vmatprep.subr.bf16.mxu0 %v1380_v8  ;;  %v1396_v24 = vld [vmem:[%s1499_s22 + $0x48] sm:$0xff]   ;;  %v1400_v28 = vld [vmem:[%s1499_s22 + $0x40] sm:$0xff]   ;;  %v1410_v36 = vld [vmem:[%s1499_s22 + $0x138] sm:$0xff]  }
  0x19   : > { %1292 = vmatprep.subr.bf16.mxu1 %v1381_v9  ;;  %v1397_v25 = vld [vmem:[%s1499_s22 + $0xc8] sm:$0xff]   ;;  %v1401_v29 = vld [vmem:[%s1499_s22 + $0xc0] sm:$0xff]   ;;  %v1411_v37 = vld [vmem:[%s1499_s22 + $0x130] sm:$0xff]  }
  0x1a   : > { %v1398_v26 = vld [vmem:[%s1499_s22 + $0x8] sm:$0xff]   ;;  %v1402_v30 = vld [vmem:[%s1499_s22] sm:$0xff]   ;;  %v1414_v45 = vld [vmem:[%s1499_s22 + $0x118] sm:$0xff]  }
  0x1b   : > { %1265 = vmatpush3.bf16.msra.mxu0 %v1382_v10  ;;  %v1399_v27 = vld [vmem:[%s1499_s22 + $0x88] sm:$0xff]   ;;  %v1403_v31 = vld [vmem:[%s1499_s22 + $0x80] sm:$0xff]   ;;  %v1421_v46 = vld [vmem:[%s1499_s22 + $0x110] sm:$0xff]  }
  0x1c   : > { %1293 = vmatpush3.bf16.msra.mxu1 %v1383_v11  ;;  %1266 = vmatprep.subr.bf16.mxu0 %v1384_v12  ;;  %v1404_v32 = vld [vmem:[%s1535_s26] ss:$20 sps:$4 sm:$0xff]   ;;  %v1406_v33 = vld [vmem:[%s1535_s26 + $0x4] ss:$20 sps:$4 sm:$0xff]   ;;  %v1407_v34 = vld [vmem:[%s1535_s26 + $0x8] ss:$20 sps:$4 sm:$0xff]  }
  0x1d   : > { %1294 = vmatprep.subr.bf16.mxu1 %v1385_v13  ;;  %v1409_v35 = vld [vmem:[%s1535_s26 + $0xc] ss:$20 sps:$4 sm:$0xff]   ;;  %826 = vmatprep.mubr.bf16.mxu0 %v1406_v33  ;;  %v1417_v40 = vld [vmem:[%s1535_s26 + $0x34] ss:$20 sps:$4 sm:$0xff]   ;;  %v1420_v42 = vld [vmem:[%s1535_s26 + $0x30] ss:$20 sps:$4 sm:$0xff]  }
  0x1e   : > { %875 = vmatprep.mubr.bf16.mxu1 %v1409_v35  ;;  %v1412_v38 = vld [vmem:[%s1499_s22 + $0x128] sm:$0xff]   ;;  %v1413_v43 = vld [vmem:[%s1499_s22 + $0x120] sm:$0xff]  }
  0x1f   : > { %1267 = vmatpush3.bf16.msra.mxu0 %v1386_v14  ;;  %v1415_v39 = vld [vmem:[%s1535_s26 + $0x2c] ss:$20 sps:$4 sm:$0xff]   ;;  %v1419_v41 = vld [vmem:[%s1535_s26 + $0x28] ss:$20 sps:$4 sm:$0xff]   ;;  %v1424_v44 = vld [vmem:[%s1535_s26 + $0x10] ss:$20 sps:$4 sm:$0xff]  }
  0x20   : > { %1295 = vmatpush3.bf16.msra.mxu1 %v1387_v15  ;;  %1268 = vmatprep.subr.bf16.mxu0 %v1388_v16  ;;  %v1422_v47 = vld [vmem:[%s1499_s22 + $0x108] sm:$0xff]   ;;  %v1423_v48 = vld [vmem:[%s1499_s22 + $0x100] sm:$0xff]  }
  0x21   : > { %1296 = vmatprep.subr.bf16.mxu1 %v1389_v17  ;;  %v1425_v49 = vld [vmem:[%s1535_s26 + $0x38] ss:$20 sps:$4 sm:$0xff]   ;;  %v1227_v10 = vld [vmem:[%s370_s30] ss:$0 sm:$0xff] }
  0x22   : > { %v1258_v11 = vld [vmem:[%s382_s7 + $0x8] sm:$0xff]   ;;  %v1241_v16 = vld [vmem:[%s382_s7] sm:$0xff]  }
  0x23   : > { %1269 = vmatpush3.bf16.msra.mxu0 %v1390_v18 }
  0x24   : > { %1297 = vmatpush3.bf16.msra.mxu1 %v1391_v19  ;;  %1270 = vmatprep.subr.bf16.mxu0 %v1392_v20  ;;  %v1246_v19 = vunpack.c.l.bf16 %v1258_v11 }
  0x25   : > { %1298 = vmatprep.subr.bf16.mxu1 %v1393_v21 }
  0x27   : > { %1271 = vmatpush3.bf16.msra.mxu0 %v1394_v22  ;;  %v1242_v22 = vunpack.c.l.bf16 %v1241_v16 }
  0x28   : > { %1299 = vmatpush3.bf16.msra.mxu1 %v1395_v23  ;;  %1272 = vmatprep.subr.bf16.mxu0 %v1396_v24 }
  0x29   : > { %1300 = vmatprep.subr.bf16.mxu1 %v1397_v25 }
  0x2b   : > { %1273 = vmatpush3.bf16.msra.mxu0 %v1398_v26  ;;  %v1247_v26 = vunpack.c.h.bf16 %v1258_v11 }
  0x2c   : > { %1301 = vmatpush3.bf16.msra.mxu1 %v1399_v27  ;;  %1274 = vmatprep.subr.bf16.mxu0 %v1400_v28 }
  0x2d   : > { %1302 = vmatprep.subr.bf16.mxu1 %v1401_v29 }
  0x2f   : > { %1275 = vmatpush3.bf16.msra.mxu0 %v1402_v30 }
  0x30   : > { %1303 = vmatpush3.bf16.msra.mxu1 %v1403_v31  ;;  %1326 = vmatprep.subr.bf16.mxu0 %v1410_v36 }
  0x32   : > { %827 = vmatmul.mubr.bf16.vlgmr.msra.gmra.mxu0 %v1404_v32  ;;  %v1243_v32 = vunpack.c.h.bf16 %v1241_v16 }
  0x33   : > { %876 = vmatmul.mubr.bf16.vlgmr.msra.gmra.mxu1 %v1407_v34  ;;  %1327 = vmatpush3.bf16.msra.mxu0 %v1410_v36 }
  0x34   : > { %1328 = vmatprep.subr.bf16.mxu0 %v1411_v37  ;;  %834 = vmatprep.mubr.bf16.mxu0 %v1415_v39 }
  0x35   : > { %883 = vmatprep.mubr.bf16.mxu1 %v1417_v40 }
  0x37   : > { %1329 = vmatpush3.bf16.msra.mxu0 %v1411_v37 }
  0x38   : > { %1330 = vmatprep.subr.bf16.mxu0 %v1412_v38 }
  0x3a   : > { %835 = vmatmul.mubr.bf16.gmra.mxu0 %v1419_v41 }
  0x3b   : > { %884 = vmatmul.mubr.bf16.gmra.mxu1 %v1420_v42  ;;  %1331 = vmatpush3.bf16.msra.mxu0 %v1412_v38 }
  0x3c   : > { %1332 = vmatprep.subr.bf16.mxu0 %v1413_v43  ;;  %1342 = vmatprep.mubr.bf16.mxu0 %v1424_v44 }
  0x3f   : > { %1333 = vmatpush3.bf16.msra.mxu0 %v1413_v43 }
  0x40   : > { %1334 = vmatprep.subr.bf16.mxu0 %v1414_v45 }
  0x43   : > { %1335 = vmatpush3.bf16.msra.mxu0 %v1414_v45 }
  0x44   : > { %1336 = vmatprep.subr.bf16.mxu0 %v1421_v46 }
  0x47   : > { %1337 = vmatpush3.bf16.msra.mxu0 %v1421_v46 }
  0x48   : > { %1338 = vmatprep.subr.bf16.mxu0 %v1422_v47 }
  0x4b   : > { %1339 = vmatpush3.bf16.msra.mxu0 %v1422_v47 }
  0x4c   : > { %1340 = vmatprep.subr.bf16.mxu0 %v1423_v48 }
  0x4f   : > { %1341 = vmatpush3.bf16.msra.mxu0 %v1423_v48 }
  0x52   : > { %1343 = vmatmul.mubr.bf16.vlgmr.msra.gmra.mxu0 %v1425_v49 }
  0xf2   : > { %v1276_v50 = vpop.f32.mrf.mxu0 }
  0xf3   : > { %v1304_v51 = vpop.f32.mrf.mxu1 }
  0xf4   : > { %v1277_v52 = vpop.f32.mrf.mxu0 }
  0xf5   : > { %v1305_v53 = vpop.f32.mrf.mxu1  ;;  %v1278_v4 = vadd.f32 %v1277_v52, %v1276_v50 }
  0xf6   : > { %v1279_v54 = vpop.f32.mrf.mxu0  ;;  %v1306_v5 = vadd.f32 %v1305_v53, %v1304_v51 }
  0xf7   : > { %v1307_v55 = vpop.f32.mrf.mxu1 }
  0xf8   : > { %v1280_v56 = vpop.f32.mrf.mxu0  ;;  %v878_v15 = vadd.f32 %v1306_v5, %v1278_v4 }
  0xf9   : > { %v1308_v57 = vpop.f32.mrf.mxu1  ;;  %v1281_v12 = vadd.f32 %v1280_v56, %v1279_v54 }
  0xfa   : > { %v1282_v58 = vpop.f32.mrf.mxu0  ;;  %v1309_v13 = vadd.f32 %v1308_v57, %v1307_v55 }
  0xfb   : > { %v1310_v59 = vpop.f32.mrf.mxu1 }
  0xfc   : > { %v1283_v60 = vpop.f32.mrf.mxu0  ;;  %v881_v27 = vadd.f32 %v1309_v13, %v1281_v12 }
  0xfd   : > { %v1311_v61 = vpop.f32.mrf.mxu1  ;;  %v1284_v0 = vadd.f32 %v1283_v60, %v1282_v58 }
  0xfe   : > { %v1285_v62 = vpop.f32.mrf.mxu0  ;;  %v1312_v1 = vadd.f32 %v1311_v61, %v1310_v59 }
  0xff   : > { %v1313_v63 = vpop.f32.mrf.mxu1 }
 0x100   : > { %v1286_v2 = vpop.f32.mrf.mxu0  ;;  %v886_v8 = vadd.f32 %v1312_v1, %v1284_v0 }
 0x101   : > { %v1314_v3 = vpop.f32.mrf.mxu1  ;;  %v1287_v6 = vadd.f32 %v1286_v2, %v1285_v62 }
 0x102   : > { %v1315_v7 = vadd.f32 %v1314_v3, %v1313_v63 }
 0x104   : > { %v889_v21 = vadd.f32 %v1315_v7, %v1287_v6 }
 0x112   : > { %v1344_v9 = vpop.f32.mrf.mxu0 }
 0x113   : > { %v935_v14 = vadd.f32 %v1344_v9, %v886_v8 }
 0x114   : > { %v926_v17 = vpop.f32.mrf.mxu0 }
 0x115   : > { %v965_v18 = vadd.f32 %v1227_v10, %v935_v14  ;;  %v927_v20 = vadd.f32 %v926_v17, %v878_v15 }
 0x116   : > { %v1345_v23 = vpop.f32.mrf.mxu0 }
 0x117   : > { %v963_v24 = vadd.f32 %v1227_v10, %v927_v20  ;;  %v938_v25 = vadd.f32 %v1345_v23, %v889_v21  ;;  %v977_v29 = vadd.f32 %v1246_v19, %v965_v18 }
 0x118   : > { %v929_v28 = vpop.f32.mrf.mxu0 }
 0x119   : > { %v966_v30 = vadd.f32 %v1227_v10, %v938_v25  ;;  %v930_v31 = vadd.f32 %v929_v28, %v881_v27  ;;  %v975_v33 = vadd.f32 %v1242_v22, %v963_v24  ;;  %v981_v36 = vmax.f32 %v977_v29, 0.0 }
 0x11b   : > { %v978_v34 = vadd.f32 %v1247_v26, %v966_v30  ;;  %v964_v35 = vadd.f32 %v1227_v10, %v930_v31  ;;  %v979_v39 = vmax.f32 %v975_v33, 0.0 }
 0x11d   : > { %v982_v37 = vmax.f32 %v978_v34, 0.0  ;;  %v976_v38 = vadd.f32 %v1243_v32, %v964_v35 }
 0x11f   : > { %v1256_v40 = vpack.c.bf16 %v982_v37, %v981_v36  ;;  %v980_v41 = vmax.f32 %v976_v38, 0.0 }
 0x121   : > { %1259 = vst [vmem:[%s395_s10 + $0x8] sm:$0xff] %v1256_v40   ;;  %v1251_v42 = vpack.c.bf16 %v980_v41, %v979_v39 }
 0x123   : > { %1252 = vst [vmem:[%s395_s10] sm:$0xff] %v1251_v42  }
 0x124 PF: > { %s14_s17 = sadd.s32 1, %s1448_s17   ;;  %s1586_s15 = smov %s1444_s16 }
 0x125   : > { %p11_p5 = scmp.ge.s32.totalorder %s14_s17, 4   ;;  %s1587_s16 = smov %s1589_s18 }
 0x127   :  { %13 = sbr.rel (!%p11_p5) target bundleno = 2 (0x2), region = 83 }

// kernel: _pe_h_network.28
= control target key start
LH: loop header
LB: loop body
LE: loop exit
PB: predicated region body
PF: predicated region fallthrough
CT: control target
= control target key end

     0   :  { %s1178_s12 = smov 0   ;;  %s1180_s13 = smov 0   ;;  %s1270_s0 = inlined_call_operand.vmem [shape: bf16[2,8,640], index: 0, kind: input, shape index: {}]   ;;  %s1271_s1 = inlined_call_operand.vmem [shape: bf16[2,640,128], index: 1, kind: input, shape index: {}]   ;;  %s1272_s2 = inlined_call_operand.vmem [shape: f32[2,1,128], index: 2, kind: input, shape index: {}]   ;;  %s1273_s3 = inlined_call_operand.vmem [shape: bf16[2,8,128], index: 3, kind: output, shape index: {}]  }
   0x1   :  { %s1182_s14 = smov 0  }
   0x2 LB: > { %s39_s15 = sadd.s32 1, %s1150_s13  ;;  %p934_p0 = scmp.ge.s32.totalorder %s1154_s14, 1  ;;  %s1154_s14 = sphi %s1182_s14, %s13_s14   ;;  %s1150_s13 = sphi %s1180_s13, %s1275_s13   ;;  %s1146_s12 = sphi %s1178_s12, %s1274_s12  }
   0x3   : > { %p41_p1 = scmp.ge.s32.totalorder %s39_s15, 2  ;;  %p215_p2 = scmp.lt.s32.totalorder %s1154_s14, 3 }
   0x5   : > { %s1277_s15 = smov (%p41_p1, %s39_s15), 0  ;;  %p216_p3 = pnand %p934_p0, %p215_p2 }
   0x6   : > { %p271_p4 = scmp.lt.s32.totalorder (!%p216_p3), %s1146_s12, 1 }
   0x7   : > { %219 = sbr.rel (%p216_p3) target bundleno = 284 (0x11c), region = 32 }
   0xc   : > { %s1279_s12 = smov (!%p271_p4, %s1146_s12), 1  ;;  %v1156_v36 = vmov 0.0   ;;  %vm1157_vm0 = vmmov 0  }
   0xd   : > { %s1060_s16 = smul.u32 320, %s1279_s12  ;;  %s302_s26 = scalar_lea.vmem %s1272_s2, %s1279_s12 }
   0xe   : > { %s1059_s20 = smul.u32 20, %s1279_s12  ;;  %v983_v60 = vld [vmem:[%s302_s26] ss:$0 sm:$0xff]  ;;  %s937_s27 = sshll.u32 %s1279_s12, 2 }
   0xf   : > { %s1202_s19 = scalar_lea.vmem %s1271_s1, %s1060_s16  ;;  %s312_s30 = scalar_lea.vmem %s1273_s3, %s937_s27 }
  0x10   : > { %v1087_v0 = vld [vmem:[%s1202_s19 + $0x78] sm:$0xff]   ;;  %v1091_v4 = vld [vmem:[%s1202_s19 + $0x70] sm:$0xff]   ;;  %v1095_v8 = vld [vmem:[%s1202_s19 + $0x68] sm:$0xff]   ;;  %s1238_s23 = scalar_lea.vmem %s1270_s0, %s1059_s20 }
  0x11   : > { %v1088_v1 = vld [vmem:[%s1202_s19 + $0xf8] sm:$0xff]   ;;  %986 = vmatprep.subr.bf16.mxu0 %v1087_v0  ;;  %v1092_v5 = vld [vmem:[%s1202_s19 + $0xf0] sm:$0xff]   ;;  %v1096_v9 = vld [vmem:[%s1202_s19 + $0xe8] sm:$0xff]  }
  0x12   : > { %v1089_v2 = vld [vmem:[%s1202_s19 + $0x38] sm:$0xff]   ;;  %1008 = vmatprep.subr.bf16.mxu1 %v1088_v1  ;;  %v1093_v6 = vld [vmem:[%s1202_s19 + $0x30] sm:$0xff]   ;;  %v1097_v10 = vld [vmem:[%s1202_s19 + $0x28] sm:$0xff]  }
  0x13   : > { %v1090_v3 = vld [vmem:[%s1202_s19 + $0xb8] sm:$0xff]   ;;  %987 = vmatpush3.bf16.msra.mxu0 %v1089_v2  ;;  %v1094_v7 = vld [vmem:[%s1202_s19 + $0xb0] sm:$0xff]   ;;  %v1098_v11 = vld [vmem:[%s1202_s19 + $0xa8] sm:$0xff]  }
  0x14   : > { %1009 = vmatpush3.bf16.msra.mxu1 %v1090_v3  ;;  %988 = vmatprep.subr.bf16.mxu0 %v1091_v4  ;;  %v1099_v12 = vld [vmem:[%s1202_s19 + $0x60] sm:$0xff]   ;;  %v1103_v16 = vld [vmem:[%s1202_s19 + $0x58] sm:$0xff]   ;;  %v1107_v20 = vld [vmem:[%s1202_s19 + $0x50] sm:$0xff]  }
  0x15   : > { %1010 = vmatprep.subr.bf16.mxu1 %v1092_v5  ;;  %v1100_v13 = vld [vmem:[%s1202_s19 + $0xe0] sm:$0xff]   ;;  %v1104_v17 = vld [vmem:[%s1202_s19 + $0xd8] sm:$0xff]   ;;  %v1108_v21 = vld [vmem:[%s1202_s19 + $0xd0] sm:$0xff]  }
  0x16   : > { %v1101_v14 = vld [vmem:[%s1202_s19 + $0x20] sm:$0xff]   ;;  %v1105_v18 = vld [vmem:[%s1202_s19 + $0x18] sm:$0xff]   ;;  %v1109_v22 = vld [vmem:[%s1202_s19 + $0x10] sm:$0xff]  }
  0x17   : > { %989 = vmatpush3.bf16.msra.mxu0 %v1093_v6  ;;  %v1102_v15 = vld [vmem:[%s1202_s19 + $0xa0] sm:$0xff]   ;;  %v1106_v19 = vld [vmem:[%s1202_s19 + $0x98] sm:$0xff]   ;;  %v1110_v23 = vld [vmem:[%s1202_s19 + $0x90] sm:$0xff]  }
  0x18   : > { %1011 = vmatpush3.bf16.msra.mxu1 %v1094_v7  ;;  %990 = vmatprep.subr.bf16.mxu0 %v1095_v8  ;;  %v1111_v24 = vld [vmem:[%s1202_s19 + $0x48] sm:$0xff]   ;;  %v1115_v28 = vld [vmem:[%s1202_s19 + $0x40] sm:$0xff]   ;;  %v1124_v39 = vld [vmem:[%s1202_s19 + $0x138] sm:$0xff]  }
  0x19   : > { %1012 = vmatprep.subr.bf16.mxu1 %v1096_v9  ;;  %v1112_v25 = vld [vmem:[%s1202_s19 + $0xc8] sm:$0xff]   ;;  %v1116_v29 = vld [vmem:[%s1202_s19 + $0xc0] sm:$0xff]   ;;  %v1125_v40 = vld [vmem:[%s1202_s19 + $0x130] sm:$0xff]  }
  0x1a   : > { %v1113_v26 = vld [vmem:[%s1202_s19 + $0x8] sm:$0xff]   ;;  %v1117_v30 = vld [vmem:[%s1202_s19] sm:$0xff]   ;;  %v1128_v43 = vld [vmem:[%s1202_s19 + $0x118] sm:$0xff]  }
  0x1b   : > { %991 = vmatpush3.bf16.msra.mxu0 %v1097_v10  ;;  %v1114_v27 = vld [vmem:[%s1202_s19 + $0x88] sm:$0xff]   ;;  %v1118_v31 = vld [vmem:[%s1202_s19 + $0x80] sm:$0xff]   ;;  %v1129_v44 = vld [vmem:[%s1202_s19 + $0x110] sm:$0xff]  }
  0x1c   : > { %1013 = vmatpush3.bf16.msra.mxu1 %v1098_v11  ;;  %992 = vmatprep.subr.bf16.mxu0 %v1099_v12  ;;  %v319_v32 = vld [vmem:[%s1238_s23] sm:$0xff]  ;;  %v320_v35 = vld [vmem:[%s1238_s23 + $0x8] sm:$0xff]  ;;  %v1121_v47 = vld [vmem:[%s1238_s23 + $0x10] ss:$0 sps:$4 sm:$0xff]  }
  0x1d   : > { %1014 = vmatprep.subr.bf16.mxu1 %v1100_v13  ;;  %v938_v33 = vcombine.low %v319_v32, %v319_v32  ;;  %v939_v34 = vcombine.high %v319_v32, %v319_v32  ;;  %v940_v37 = vcombine.low %v320_v35, %v320_v35  ;;  %v941_v38 = vcombine.high %v320_v35, %v320_v35  ;;  %v1126_v41 = vld [vmem:[%s1202_s19 + $0x128] sm:$0xff]   ;;  %v1127_v42 = vld [vmem:[%s1202_s19 + $0x120] sm:$0xff]  }
  0x1e   : > { %v1130_v45 = vld [vmem:[%s1202_s19 + $0x108] sm:$0xff]   ;;  %v1131_v46 = vld [vmem:[%s1202_s19 + $0x100] sm:$0xff]  }
  0x1f   : > { %993 = vmatpush3.bf16.msra.mxu0 %v1101_v14  ;;  %693 = vmatprep.mubr.bf16.mxu0 %v939_v34 }
  0x20   : > { %1015 = vmatpush3.bf16.msra.mxu1 %v1102_v15  ;;  %994 = vmatprep.subr.bf16.mxu0 %v1103_v16 }
  0x21   : > { %1016 = vmatprep.subr.bf16.mxu1 %v1104_v17  ;;  %733 = vmatprep.mubr.bf16.mxu1 %v941_v38 }
  0x23   : > { %995 = vmatpush3.bf16.msra.mxu0 %v1105_v18 }
  0x24   : > { %1017 = vmatpush3.bf16.msra.mxu1 %v1106_v19  ;;  %996 = vmatprep.subr.bf16.mxu0 %v1107_v20 }
  0x25   : > { %1018 = vmatprep.subr.bf16.mxu1 %v1108_v21 }
  0x27   : > { %997 = vmatpush3.bf16.msra.mxu0 %v1109_v22 }
  0x28   : > { %1019 = vmatpush3.bf16.msra.mxu1 %v1110_v23  ;;  %998 = vmatprep.subr.bf16.mxu0 %v1111_v24 }
  0x29   : > { %1020 = vmatprep.subr.bf16.mxu1 %v1112_v25 }
  0x2b   : > { %999 = vmatpush3.bf16.msra.mxu0 %v1113_v26 }
  0x2c   : > { %1021 = vmatpush3.bf16.msra.mxu1 %v1114_v27  ;;  %1000 = vmatprep.subr.bf16.mxu0 %v1115_v28 }
  0x2d   : > { %1022 = vmatprep.subr.bf16.mxu1 %v1116_v29 }
  0x2f   : > { %1001 = vmatpush3.bf16.msra.mxu0 %v1117_v30 }
  0x30   : > { %1023 = vmatpush3.bf16.msra.mxu1 %v1118_v31  ;;  %1039 = vmatprep.subr.bf16.mxu0 %v1156_v36 }
  0x32   : > { %694 = vmatmul.mubr.bf16.vlgmr.msra.gmra.mxu0 %v938_v33 }
  0x33   : > { %734 = vmatmul.mubr.bf16.vlgmr.msra.gmra.mxu1 %v940_v37  ;;  %1040 = vmatpush3.bf16.msra.mxu0 %v1124_v39 }
  0x34   : > { %1041 = vmatprep.subr.bf16.mxu0 %v1156_v36  ;;  %1055 = vmatprep.mubr.msk.bf16.mxu0 %vm1157_vm0, %v1156_v36 }
  0x37   : > { %1042 = vmatpush3.bf16.msra.mxu0 %v1125_v40 }
  0x38   : > { %1043 = vmatprep.subr.bf16.mxu0 %v1156_v36 }
  0x3b   : > { %1044 = vmatpush3.bf16.msra.mxu0 %v1126_v41 }
  0x3c   : > { %1045 = vmatprep.subr.bf16.mxu0 %v1156_v36 }
  0x3f   : > { %1046 = vmatpush3.bf16.msra.mxu0 %v1127_v42 }
  0x40   : > { %1047 = vmatprep.subr.bf16.mxu0 %v1156_v36 }
  0x43   : > { %1048 = vmatpush3.bf16.msra.mxu0 %v1128_v43 }
  0x44   : > { %1049 = vmatprep.subr.bf16.mxu0 %v1156_v36 }
  0x47   : > { %1050 = vmatpush3.bf16.msra.mxu0 %v1129_v44 }
  0x48   : > { %1051 = vmatprep.subr.bf16.mxu0 %v1156_v36 }
  0x4b   : > { %1052 = vmatpush3.bf16.msra.mxu0 %v1130_v45 }
  0x4c   : > { %1053 = vmatprep.subr.bf16.mxu0 %v1156_v36 }
  0x4f   : > { %1054 = vmatpush3.bf16.msra.mxu0 %v1131_v46 }
  0x52   : > { %1056 = vmatmul.mubr.bf16.vlgmr.msra.gmra.mxu0 %v1121_v47 }
  0xf2   : > { %v1002_v48 = vpop.f32.mrf.mxu0 }
  0xf3   : > { %v1024_v49 = vpop.f32.mrf.mxu1 }
  0xf4   : > { %v1003_v50 = vpop.f32.mrf.mxu0 }
  0xf5   : > { %v1025_v51 = vpop.f32.mrf.mxu1  ;;  %v1004_v56 = vadd.f32 %v1003_v50, %v1002_v48 }
  0xf6   : > { %v1005_v52 = vpop.f32.mrf.mxu0  ;;  %v1026_v57 = vadd.f32 %v1025_v51, %v1024_v49 }
  0xf7   : > { %v1027_v53 = vpop.f32.mrf.mxu1 }
  0xf8   : > { %v1006_v54 = vpop.f32.mrf.mxu0  ;;  %v736_v58 = vadd.f32 %v1026_v57, %v1004_v56 }
  0xf9   : > { %v1028_v55 = vpop.f32.mrf.mxu1 }
 0x112   : > { %v775_v59 = vpop.f32.mrf.mxu0 }
 0x113   : > { %v776_v61 = vadd.f32 %v775_v59, %v736_v58 }
 0x114   : > { %v1057_v62 = vpop.f32.mrf.mxu0 }
 0x115   : > { %v794_v63 = vadd.f32 %v983_v60, %v776_v61 }
 0x116   : > { %v778_v0 = vpop.f32.mrf.mxu0 }
 0x117   : > { %v795_v1 = vmax.f32 %v794_v63, 0.0 }
 0x118   : > { %v1058_v2 = vpop.f32.mrf.mxu0 }
 0x119   : > { %v796_v3 = vpack.c.bf16 %v795_v1, %v795_v1 }
 0x11b   : > { %797 = vst [vmem:[%s312_s30] sm:$0xf] %v796_v3 }
 0x11c PF: > { %s13_s14 = sadd.s32 1, %s1154_s14   ;;  %s1274_s12 = smov %s1150_s13 }
 0x11d   : > { %p10_p5 = scmp.ge.s32.totalorder %s13_s14, 4   ;;  %s1275_s13 = smov %s1277_s15 }
 0x11f   :  { %12 = sbr.rel (!%p10_p5) target bundleno = 2 (0x2), region = 76 }

// kernel: _pe_h_network.29
= control target key start
LH: loop header
LB: loop body
LE: loop exit
PB: predicated region body
PF: predicated region fallthrough
CT: control target
= control target key end

     0   :  { %s686_s12 = smov 0   ;;  %s688_s13 = smov 0   ;;  %s730_s0 = inlined_call_operand.vmem [shape: bf16[2,8,128], index: 0, kind: input, shape index: {}]   ;;  %s731_s1 = inlined_call_operand.vmem [shape: bf16[2,128,128], index: 1, kind: input, shape index: {}]   ;;  %s732_s2 = inlined_call_operand.vmem [shape: f32[2,1,128], index: 2, kind: input, shape index: {}]   ;;  %s733_s3 = inlined_call_operand.vmem [shape: bf16[2,8,128], index: 3, kind: output, shape index: {}]  }
   0x1   :  { %s690_s14 = smov 0  }
   0x2 LB: > { %s39_s15 = sadd.s32 1, %s658_s13  ;;  %p560_p0 = scmp.ge.s32.totalorder %s662_s14, 1  ;;  %s662_s14 = sphi %s690_s14, %s13_s14   ;;  %s658_s13 = sphi %s688_s13, %s735_s13   ;;  %s654_s12 = sphi %s686_s12, %s734_s12  }
   0x3   : > { %p41_p1 = scmp.ge.s32.totalorder %s39_s15, 2  ;;  %p211_p2 = scmp.lt.s32.totalorder %s662_s14, 3 }
   0x5   : > { %s737_s15 = smov (%p41_p1, %s39_s15), 0  ;;  %p212_p3 = pnand %p560_p0, %p211_p2 }
   0x6   : > { %p263_p4 = scmp.lt.s32.totalorder (!%p212_p3), %s654_s12, 1 }
   0x7   : > { %215 = sbr.rel (%p212_p3) target bundleno = 246 (0xf6), region = 32 }
   0xc   : > { %v664_v0 = vmov 0.0   ;;  %vm665_vm0 = vmmov 0   ;;  %s739_s12 = smov (!%p263_p4, %s654_s12), 1 }
   0xd   : > { %586 = vmatprep.subr.bf16.mxu0 %v664_v0  ;;  %602 = vmatprep.mubr.msk.bf16.mxu0 %vm665_vm0, %v664_v0  ;;  %s576_s16 = sshll.u32 %s739_s12, 6  ;;  %s561_s20 = sshll.u32 %s739_s12, 2 }
   0xe   : > { %s284_s19 = scalar_lea.vmem %s731_s1, %s576_s16  ;;  %s272_s23 = scalar_lea.vmem %s730_s0, %s561_s20 }
   0xf   : > { %v632_v1 = vld [vmem:[%s284_s19 + $0x38] sm:$0xff]   ;;  %v633_v2 = vld [vmem:[%s284_s19 + $0x30] sm:$0xff]   ;;  %v634_v3 = vld [vmem:[%s284_s19 + $0x28] sm:$0xff]   ;;  %s291_s26 = scalar_lea.vmem %s732_s2, %s739_s12  ;;  %s301_s29 = scalar_lea.vmem %s733_s3, %s561_s20 }
  0x10   : > { %587 = vmatpush3.bf16.msra.mxu0 %v632_v1  ;;  %v635_v4 = vld [vmem:[%s284_s19 + $0x20] sm:$0xff]   ;;  %v636_v5 = vld [vmem:[%s284_s19 + $0x18] sm:$0xff]   ;;  %v637_v6 = vld [vmem:[%s284_s19 + $0x10] sm:$0xff]  }
  0x11   : > { %588 = vmatprep.subr.bf16.mxu0 %v664_v0  ;;  %v638_v7 = vld [vmem:[%s284_s19 + $0x8] sm:$0xff]   ;;  %v639_v8 = vld [vmem:[%s284_s19] sm:$0xff]  }
  0x12   : > { %v308_v9 = vld [vmem:[%s272_s23] sm:$0xf] }
  0x13   : > { %v573_v10 = vld [vmem:[%s291_s26] ss:$0 sm:$0xff] }
  0x14   : > { %589 = vmatpush3.bf16.msra.mxu0 %v633_v2 }
  0x15   : > { %590 = vmatprep.subr.bf16.mxu0 %v664_v0 }
  0x18   : > { %591 = vmatpush3.bf16.msra.mxu0 %v634_v3 }
  0x19   : > { %592 = vmatprep.subr.bf16.mxu0 %v664_v0 }
  0x1c   : > { %593 = vmatpush3.bf16.msra.mxu0 %v635_v4 }
  0x1d   : > { %594 = vmatprep.subr.bf16.mxu0 %v664_v0 }
  0x20   : > { %595 = vmatpush3.bf16.msra.mxu0 %v636_v5 }
  0x21   : > { %596 = vmatprep.subr.bf16.mxu0 %v664_v0 }
  0x24   : > { %597 = vmatpush3.bf16.msra.mxu0 %v637_v6 }
  0x25   : > { %598 = vmatprep.subr.bf16.mxu0 %v664_v0 }
  0x28   : > { %599 = vmatpush3.bf16.msra.mxu0 %v638_v7 }
  0x29   : > { %600 = vmatprep.subr.bf16.mxu0 %v664_v0 }
  0x2c   : > { %601 = vmatpush3.bf16.msra.mxu0 %v639_v8 }
  0x2f   : > { %603 = vmatmul.mubr.bf16.vlgmr.msra.gmra.mxu0 %v308_v9 }
  0xef   : > { %v408_v11 = vpop.f32.mrf.mxu0 }
  0xf0   : > { %v427_v12 = vadd.f32 %v573_v10, %v408_v11 }
  0xf1   : > { %v604_v13 = vpop.f32.mrf.mxu0 }
  0xf2   : > { %v428_v14 = vpack.c.bf16 %v427_v12, %v427_v12 }
  0xf3   : > { %v411_v15 = vpop.f32.mrf.mxu0 }
  0xf4   : > { %429 = vst [vmem:[%s301_s29] sm:$0xf] %v428_v14 }
  0xf5   : > { %v605_v16 = vpop.f32.mrf.mxu0 }
  0xf6 PF: > { %s13_s14 = sadd.s32 1, %s662_s14   ;;  %s734_s12 = smov %s658_s13 }
  0xf7   : > { %p10_p5 = scmp.ge.s32.totalorder %s13_s14, 4   ;;  %s735_s13 = smov %s737_s15 }
  0xf9   :  { %12 = sbr.rel (!%p10_p5) target bundleno = 2 (0x2), region = 76 }

// kernel: _pe_h_network.30
= control target key start
LH: loop header
LB: loop body
LE: loop exit
PB: predicated region body
PF: predicated region fallthrough
CT: control target
= control target key end

     0   :  { %s1153_s15 = smov 0   ;;  %s1155_s16 = smov 0   ;;  %s1274_s0 = inlined_call_operand.vmem [shape: bf16[2,8,1536], index: 0, kind: input, shape index: {}]   ;;  %s1275_s1 = inlined_call_operand.vmem [shape: bf16[2,1536,128], index: 1, kind: input, shape index: {}]   ;;  %s1276_s2 = inlined_call_operand.vmem [shape: f32[2,1,128], index: 2, kind: input, shape index: {}]   ;;  %s1277_s3 = inlined_call_operand.vmem [shape: bf16[2,8,128], index: 3, kind: input, shape index: {}]   ;;  %s1278_s4 = inlined_call_operand.vmem [shape: bf16[2,8,128], index: 4, kind: output, shape index: {}]  }
   0x1   :  { %s1157_s17 = smov 0   ;;  %s1159_s18 = smov 0  }
   0x2   :  { %s1161_s19 = smov 0  }
   0x3 LB: > { %s29_s20 = sadd.s32 1, %s1117_s17  ;;  %s40_s21 = sadd.s32 1, %s1121_s18  ;;  %s1125_s19 = sphi %s1161_s19, %s14_s19   ;;  %s1121_s18 = sphi %s1159_s18, %s1282_s18   ;;  %s1117_s17 = sphi %s1157_s17, %s1281_s17   ;;  %s1113_s16 = sphi %s1155_s16, %s1280_s16   ;;  %s1109_s15 = sphi %s1153_s15, %s1279_s15  }
   0x4   : > { %p30_p0 = scmp.ge.s32.totalorder %s29_s20, 3  ;;  %p916_p1 = scmp.ge.s32.totalorder %s1125_s19, 1 }
   0x5   : > { %p259_p2 = scmp.lt.s32.totalorder %s1125_s19, 7 }
   0x6   : > { %s1284_s20 = smov (%p30_p0, %s29_s20), 0  ;;  %s1286_s21 = smov (!%p30_p0, %s40_s21), %s1121_s18 }
   0x7   : > { %p260_p3 = pnand %p916_p1, %p259_p2  ;;  %p42_p4 = scmp.ge.s32.totalorder %s1286_s21, 2 }
   0x8   : > { %s917_s22 = sshll.u32 (!%p260_p3), %s1109_s15, 2  ;;  %p327_p5 = scmp.lt.s32.totalorder (!%p260_p3), %s1113_s16, 1 }
   0x9   : > { %s1288_s21 = smov (%p42_p4, %s1286_s21), 0  ;;  %263 = sbr.rel (%p260_p3) target bundleno = 280 (0x118), region = 36 }
   0xa   : > { %p331_p6 = scmp.lt.s32.totalorder (!%p260_p3), %s917_s22, 11  ;;  %s919_s23 = sshll.u32 (!%p260_p3), %s1109_s15, 6 }
   0xb   : > { %p343_p7 = scmp.lt.s32.totalorder (!%p260_p3), %s919_s23, 191  ;;  %p923_p8 = scmp.ne.s32.totalorder (!%p260_p3), %s1109_s15, 0 }
   0xe   : > { %s1290_s16 = smov (!%p327_p5, %s1113_s16), 1  ;;  %s1292_s22 = smov (!%p331_p6, %s917_s22), 11 }
   0xf   : > { %s1008_s24 = smul.u32 12, %s1290_s16  ;;  %s358_s28 = scalar_lea.vmem %s1276_s2, %s1290_s16 }
  0x10   : > { %s1009_s25 = smul.u32 192, %s1290_s16  ;;  %s921_s30 = sshll.u32 %s1290_s16, 2 }
  0x11   : > { %s336_s29 = sadd.s32 %s1008_s24, %s1292_s22  ;;  %s1199_s8 = scalar_lea.vmem %s1277_s3, %s921_s30 }
  0x12   : > { %s918_s5 = sshll.u32 %s336_s29, 2  ;;  %s1209_s14 = scalar_lea.vmem %s1278_s4, %s921_s30 }
  0x13   : > { %s1204_s11 = scalar_lea.vmem %s1274_s0, %s918_s5  ;;  %s1294_s23 = smov (!%p343_p7, %s919_s23), 191 }
  0x14   : > { %s349_s26 = sadd.s32 %s1009_s25, %s1294_s23  ;;  %383 = sbr.rel (%p923_p8) target bundleno = 27 (0x1b), region = 40 }
  0x15   : > { %s920_s22 = sshll.u32 %s349_s26, 2 }
  0x16   : > { %s1214_s29 = scalar_lea.vmem %s1275_s1, %s920_s22 }
  0x19   : > { %v1127_v0 = vmov 0.0  }
  0x1a   : > { %384 = vst [vmem:[#allocation2] sm:$0xff] %v1127_v0 }
  0x1b PF: > { %v1051_v1 = vld [vmem:[%s1214_s29 + $0x78] sm:$0xff]   ;;  %v1055_v5 = vld [vmem:[%s1214_s29 + $0x70] sm:$0xff]   ;;  %v1059_v9 = vld [vmem:[%s1214_s29 + $0x68] sm:$0xff]   ;;  %p960_p9 = scmp.ne.s32.totalorder %s1109_s15, 2 }
  0x1c   : > { %v1052_v2 = vld [vmem:[%s1214_s29 + $0xf8] sm:$0xff]   ;;  %964 = vmatprep.subr.bf16.mxu0 %v1051_v1  ;;  %v1056_v6 = vld [vmem:[%s1214_s29 + $0xf0] sm:$0xff]   ;;  %v1060_v10 = vld [vmem:[%s1214_s29 + $0xe8] sm:$0xff]  }
  0x1d   : > { %v1053_v3 = vld [vmem:[%s1214_s29 + $0x38] sm:$0xff]   ;;  %986 = vmatprep.subr.bf16.mxu1 %v1052_v2  ;;  %v1057_v7 = vld [vmem:[%s1214_s29 + $0x30] sm:$0xff]   ;;  %v1061_v11 = vld [vmem:[%s1214_s29 + $0x28] sm:$0xff]  }
  0x1e   : > { %v1054_v4 = vld [vmem:[%s1214_s29 + $0xb8] sm:$0xff]   ;;  %965 = vmatpush3.bf16.msra.mxu0 %v1053_v3  ;;  %v1058_v8 = vld [vmem:[%s1214_s29 + $0xb0] sm:$0xff]   ;;  %v1062_v12 = vld [vmem:[%s1214_s29 + $0xa8] sm:$0xff]  }
  0x1f   : > { %987 = vmatpush3.bf16.msra.mxu1 %v1054_v4  ;;  %966 = vmatprep.subr.bf16.mxu0 %v1055_v5  ;;  %v1063_v13 = vld [vmem:[%s1214_s29 + $0x60] sm:$0xff]   ;;  %v1067_v17 = vld [vmem:[%s1214_s29 + $0x58] sm:$0xff]   ;;  %v1071_v21 = vld [vmem:[%s1214_s29 + $0x50] sm:$0xff]  }
  0x20   : > { %988 = vmatprep.subr.bf16.mxu1 %v1056_v6  ;;  %v1064_v14 = vld [vmem:[%s1214_s29 + $0xe0] sm:$0xff]   ;;  %v1068_v18 = vld [vmem:[%s1214_s29 + $0xd8] sm:$0xff]   ;;  %v1072_v22 = vld [vmem:[%s1214_s29 + $0xd0] sm:$0xff]  }
  0x21   : > { %v1065_v15 = vld [vmem:[%s1214_s29 + $0x20] sm:$0xff]   ;;  %v1069_v19 = vld [vmem:[%s1214_s29 + $0x18] sm:$0xff]   ;;  %v1073_v23 = vld [vmem:[%s1214_s29 + $0x10] sm:$0xff]  }
  0x22   : > { %967 = vmatpush3.bf16.msra.mxu0 %v1057_v7  ;;  %v1066_v16 = vld [vmem:[%s1214_s29 + $0xa0] sm:$0xff]   ;;  %v1070_v20 = vld [vmem:[%s1214_s29 + $0x98] sm:$0xff]   ;;  %v1074_v24 = vld [vmem:[%s1214_s29 + $0x90] sm:$0xff]  }
  0x23   : > { %989 = vmatpush3.bf16.msra.mxu1 %v1058_v8  ;;  %968 = vmatprep.subr.bf16.mxu0 %v1059_v9  ;;  %v1075_v25 = vld [vmem:[%s1214_s29 + $0x48] sm:$0xff]   ;;  %v1079_v29 = vld [vmem:[%s1214_s29 + $0x40] sm:$0xff]  }
  0x24   : > { %990 = vmatprep.subr.bf16.mxu1 %v1060_v10  ;;  %v1076_v26 = vld [vmem:[%s1214_s29 + $0xc8] sm:$0xff]   ;;  %v1080_v30 = vld [vmem:[%s1214_s29 + $0xc0] sm:$0xff]  }
  0x25   : > { %v1077_v27 = vld [vmem:[%s1214_s29 + $0x8] sm:$0xff]   ;;  %v1081_v31 = vld [vmem:[%s1214_s29] sm:$0xff]  }
  0x26   : > { %969 = vmatpush3.bf16.msra.mxu0 %v1061_v11  ;;  %v1078_v28 = vld [vmem:[%s1214_s29 + $0x88] sm:$0xff]   ;;  %v1082_v32 = vld [vmem:[%s1214_s29 + $0x80] sm:$0xff]  }
  0x27   : > { %991 = vmatpush3.bf16.msra.mxu1 %v1062_v12  ;;  %970 = vmatprep.subr.bf16.mxu0 %v1063_v13  ;;  %v385_v33 = vld [vmem:[%s1204_s11] sm:$0xff]  ;;  %v386_v34 = vld [vmem:[%s1204_s11 + $0x8] sm:$0xff] }
  0x28   : > { %992 = vmatprep.subr.bf16.mxu1 %v1064_v14  ;;  %v924_v35 = vcombine.low %v385_v33, %v385_v33  ;;  %v925_v36 = vcombine.high %v385_v33, %v385_v33  ;;  %v926_v37 = vcombine.low %v386_v34, %v386_v34  ;;  %v927_v38 = vcombine.high %v386_v34, %v386_v34  ;;  %v387_v45 = vld [vmem:[#allocation2] sm:$0xff] }
  0x2a   : > { %971 = vmatpush3.bf16.msra.mxu0 %v1065_v15  ;;  %690 = vmatprep.mubr.bf16.mxu0 %v925_v36 }
  0x2b   : > { %993 = vmatpush3.bf16.msra.mxu1 %v1066_v16  ;;  %972 = vmatprep.subr.bf16.mxu0 %v1067_v17 }
  0x2c   : > { %994 = vmatprep.subr.bf16.mxu1 %v1068_v18  ;;  %730 = vmatprep.mubr.bf16.mxu1 %v927_v38 }
  0x2e   : > { %973 = vmatpush3.bf16.msra.mxu0 %v1069_v19 }
  0x2f   : > { %995 = vmatpush3.bf16.msra.mxu1 %v1070_v20  ;;  %974 = vmatprep.subr.bf16.mxu0 %v1071_v21 }
  0x30   : > { %996 = vmatprep.subr.bf16.mxu1 %v1072_v22 }
  0x32   : > { %975 = vmatpush3.bf16.msra.mxu0 %v1073_v23 }
  0x33   : > { %997 = vmatpush3.bf16.msra.mxu1 %v1074_v24  ;;  %976 = vmatprep.subr.bf16.mxu0 %v1075_v25 }
  0x34   : > { %998 = vmatprep.subr.bf16.mxu1 %v1076_v26 }
  0x36   : > { %977 = vmatpush3.bf16.msra.mxu0 %v1077_v27 }
  0x37   : > { %999 = vmatpush3.bf16.msra.mxu1 %v1078_v28  ;;  %978 = vmatprep.subr.bf16.mxu0 %v1079_v29 }
  0x38   : > { %1000 = vmatprep.subr.bf16.mxu1 %v1080_v30 }
  0x3a   : > { %979 = vmatpush3.bf16.msra.mxu0 %v1081_v31 }
  0x3b   : > { %1001 = vmatpush3.bf16.msra.mxu1 %v1082_v32 }
  0x3d   : > { %691 = vmatmul.mubr.bf16.vlgmr.msra.gmra.mxu0 %v924_v35 }
  0x3e   : > { %731 = vmatmul.mubr.bf16.vlgmr.msra.gmra.mxu1 %v926_v37 }
  0xfd   : > { %v980_v39 = vpop.f32.mrf.mxu0 }
  0xfe   : > { %v1002_v40 = vpop.f32.mrf.mxu1 }
  0xff   : > { %v981_v41 = vpop.f32.mrf.mxu0 }
 0x100   : > { %v1003_v42 = vpop.f32.mrf.mxu1  ;;  %v982_v43 = vadd.f32 %v981_v41, %v980_v39 }
 0x101   : > { %v1004_v44 = vadd.f32 %v1003_v42, %v1002_v40  ;;  %v983_v46 = vpop.f32.mrf.mxu0 }
 0x102   : > { %v1005_v47 = vpop.f32.mrf.mxu1 }
 0x103   : > { %v733_v48 = vadd.f32 %v1004_v44, %v982_v43  ;;  %v984_v49 = vpop.f32.mrf.mxu0  ;;  %743 = sbr.rel (%p960_p9) target bundleno = 280 (0x118), region = 44 }
 0x104   : > { %v1006_v50 = vpop.f32.mrf.mxu1 }
 0x105   : > { %v738_v51 = vadd.f32 %v733_v48, %v387_v45 }
 0x107   : > { %739 = vst [vmem:[#allocation2] sm:$0xff] %v738_v51 }
 0x108   : > { %v961_v53 = vld [vmem:[%s358_s28] ss:$0 sm:$0xff] }
 0x109   : > { %v753_v54 = vld [vmem:[%s1199_s8] sm:$0xf] }
 0x10a   : > { %v754_v56 = vunpack.c.l.bf16 %v753_v54 }
 0x10e   : > { %v744_v52 = vld [vmem:[#allocation2] sm:$0xff] }
 0x10f   : > { %v752_v55 = vadd.f32 %v961_v53, %v744_v52 }
 0x111   : > { %v755_v57 = vadd.f32 %v754_v56, %v752_v55 }
 0x113   : > { %v756_v58 = vmax.f32 %v755_v57, 0.0 }
 0x115   : > { %v757_v59 = vpack.c.bf16 %v756_v58, %v756_v58 }
 0x117   : > { %758 = vst [vmem:[%s1209_s14] sm:$0xf] %v757_v59 }
 0x118 PF: > { %s14_s19 = sadd.s32 1, %s1125_s19   ;;  %s1279_s15 = smov %s1117_s17 }
 0x119   : > { %p11_p10 = scmp.ge.s32.totalorder %s14_s19, 8   ;;  %s1280_s16 = smov %s1121_s18 }
 0x11a   : > { %s1281_s17 = smov %s1284_s20  ;;  %s1282_s18 = smov %s1288_s21 }
 0x11b   :  { %13 = sbr.rel (!%p11_p10) target bundleno = 3 (0x3), region = 83 }

// kernel: _pe_h_network.31
= control target key start
LH: loop header
LB: loop body
LE: loop exit
PB: predicated region body
PF: predicated region fallthrough
CT: control target
= control target key end

     0   :  { %s1060_s12 = smov 0   ;;  %s1062_s13 = smov 0   ;;  %s1175_s0 = inlined_call_operand.vmem [shape: bf16[2,8,1536], index: 0, kind: input, shape index: {}]   ;;  %s1176_s1 = inlined_call_operand.vmem [shape: bf16[2,1536,128], index: 1, kind: input, shape index: {}]   ;;  %s1177_s2 = inlined_call_operand.vmem [shape: f32[2,1,128], index: 2, kind: input, shape index: {}]   ;;  %s1178_s3 = inlined_call_operand.vmem [shape: bf16[2,8,128], index: 3, kind: output, shape index: {}]  }
   0x1   :  { %s1064_s14 = smov 0   ;;  %s1066_s15 = smov 0  }
   0x2   :  { %s1068_s16 = smov 0  }
   0x3 LB: > { %s28_s17 = sadd.s32 1, %s1029_s14  ;;  %s39_s18 = sadd.s32 1, %s1033_s15  ;;  %s1037_s16 = sphi %s1068_s16, %s13_s16   ;;  %s1033_s15 = sphi %s1066_s15, %s1182_s15   ;;  %s1029_s14 = sphi %s1064_s14, %s1181_s14   ;;  %s1025_s13 = sphi %s1062_s13, %s1180_s13   ;;  %s1021_s12 = sphi %s1060_s12, %s1179_s12  }
   0x4   : > { %p29_p0 = scmp.ge.s32.totalorder %s28_s17, 3  ;;  %p829_p1 = scmp.ge.s32.totalorder %s1037_s16, 1 }
   0x5   : > { %p215_p2 = scmp.lt.s32.totalorder %s1037_s16, 7 }
   0x6   : > { %s1184_s17 = smov (%p29_p0, %s28_s17), 0  ;;  %s1186_s18 = smov (!%p29_p0, %s39_s18), %s1033_s15 }
   0x7   : > { %p216_p3 = pnand %p829_p1, %p215_p2  ;;  %p41_p4 = scmp.ge.s32.totalorder %s1186_s18, 2 }
   0x8   : > { %s830_s19 = sshll.u32 (!%p216_p3), %s1021_s12, 2  ;;  %p271_p5 = scmp.lt.s32.totalorder (!%p216_p3), %s1025_s13, 1 }
   0x9   : > { %s1188_s18 = smov (%p41_p4, %s1186_s18), 0  ;;  %219 = sbr.rel (%p216_p3) target bundleno = 278 (0x116), region = 32 }
   0xa   : > { %p275_p6 = scmp.lt.s32.totalorder (!%p216_p3), %s830_s19, 11  ;;  %s832_s20 = sshll.u32 (!%p216_p3), %s1021_s12, 6 }
   0xb   : > { %p287_p7 = scmp.lt.s32.totalorder (!%p216_p3), %s832_s20, 191  ;;  %p835_p8 = scmp.ne.s32.totalorder (!%p216_p3), %s1021_s12, 0 }
   0xe   : > { %s1190_s13 = smov (!%p271_p5, %s1025_s13), 1  ;;  %s1192_s19 = smov (!%p275_p6, %s830_s19), 11 }
   0xf   : > { %s920_s21 = smul.u32 12, %s1190_s13  ;;  %s302_s25 = scalar_lea.vmem %s1177_s2, %s1190_s13 }
  0x10   : > { %s921_s22 = smul.u32 192, %s1190_s13  ;;  %s834_s27 = sshll.u32 %s1190_s13, 2 }
  0x11   : > { %s280_s26 = sadd.s32 %s920_s21, %s1192_s19  ;;  %s1106_s4 = scalar_lea.vmem %s1178_s3, %s834_s27 }
  0x12   : > { %s831_s28 = sshll.u32 %s280_s26, 2  ;;  %s1194_s20 = smov (!%p287_p7, %s832_s20), 191 }
  0x13   : > { %s1111_s7 = scalar_lea.vmem %s1175_s0, %s831_s28  ;;  %s293_s8 = sadd.s32 %s921_s22, %s1194_s20 }
  0x14   : > { %s833_s9 = sshll.u32 %s293_s8, 2  ;;  %317 = sbr.rel (%p835_p8) target bundleno = 27 (0x1b), region = 36 }
  0x15   : > { %s1116_s23 = scalar_lea.vmem %s1176_s1, %s833_s9 }
  0x19   : > { %v1039_v0 = vmov 0.0  }
  0x1a   : > { %318 = vst [vmem:[#allocation2] sm:$0xff] %v1039_v0 }
  0x1b PF: > { %v963_v1 = vld [vmem:[%s1116_s23 + $0x78] sm:$0xff]   ;;  %v967_v5 = vld [vmem:[%s1116_s23 + $0x70] sm:$0xff]   ;;  %v971_v9 = vld [vmem:[%s1116_s23 + $0x68] sm:$0xff]   ;;  %p872_p9 = scmp.ne.s32.totalorder %s1021_s12, 2 }
  0x1c   : > { %v964_v2 = vld [vmem:[%s1116_s23 + $0xf8] sm:$0xff]   ;;  %876 = vmatprep.subr.bf16.mxu0 %v963_v1  ;;  %v968_v6 = vld [vmem:[%s1116_s23 + $0xf0] sm:$0xff]   ;;  %v972_v10 = vld [vmem:[%s1116_s23 + $0xe8] sm:$0xff]  }
  0x1d   : > { %v965_v3 = vld [vmem:[%s1116_s23 + $0x38] sm:$0xff]   ;;  %898 = vmatprep.subr.bf16.mxu1 %v964_v2  ;;  %v969_v7 = vld [vmem:[%s1116_s23 + $0x30] sm:$0xff]   ;;  %v973_v11 = vld [vmem:[%s1116_s23 + $0x28] sm:$0xff]  }
  0x1e   : > { %v966_v4 = vld [vmem:[%s1116_s23 + $0xb8] sm:$0xff]   ;;  %877 = vmatpush3.bf16.msra.mxu0 %v965_v3  ;;  %v970_v8 = vld [vmem:[%s1116_s23 + $0xb0] sm:$0xff]   ;;  %v974_v12 = vld [vmem:[%s1116_s23 + $0xa8] sm:$0xff]  }
  0x1f   : > { %899 = vmatpush3.bf16.msra.mxu1 %v966_v4  ;;  %878 = vmatprep.subr.bf16.mxu0 %v967_v5  ;;  %v975_v13 = vld [vmem:[%s1116_s23 + $0x60] sm:$0xff]   ;;  %v979_v17 = vld [vmem:[%s1116_s23 + $0x58] sm:$0xff]   ;;  %v983_v21 = vld [vmem:[%s1116_s23 + $0x50] sm:$0xff]  }
  0x20   : > { %900 = vmatprep.subr.bf16.mxu1 %v968_v6  ;;  %v976_v14 = vld [vmem:[%s1116_s23 + $0xe0] sm:$0xff]   ;;  %v980_v18 = vld [vmem:[%s1116_s23 + $0xd8] sm:$0xff]   ;;  %v984_v22 = vld [vmem:[%s1116_s23 + $0xd0] sm:$0xff]  }
  0x21   : > { %v977_v15 = vld [vmem:[%s1116_s23 + $0x20] sm:$0xff]   ;;  %v981_v19 = vld [vmem:[%s1116_s23 + $0x18] sm:$0xff]   ;;  %v985_v23 = vld [vmem:[%s1116_s23 + $0x10] sm:$0xff]  }
  0x22   : > { %879 = vmatpush3.bf16.msra.mxu0 %v969_v7  ;;  %v978_v16 = vld [vmem:[%s1116_s23 + $0xa0] sm:$0xff]   ;;  %v982_v20 = vld [vmem:[%s1116_s23 + $0x98] sm:$0xff]   ;;  %v986_v24 = vld [vmem:[%s1116_s23 + $0x90] sm:$0xff]  }
  0x23   : > { %901 = vmatpush3.bf16.msra.mxu1 %v970_v8  ;;  %880 = vmatprep.subr.bf16.mxu0 %v971_v9  ;;  %v987_v25 = vld [vmem:[%s1116_s23 + $0x48] sm:$0xff]   ;;  %v991_v29 = vld [vmem:[%s1116_s23 + $0x40] sm:$0xff]  }
  0x24   : > { %902 = vmatprep.subr.bf16.mxu1 %v972_v10  ;;  %v988_v26 = vld [vmem:[%s1116_s23 + $0xc8] sm:$0xff]   ;;  %v992_v30 = vld [vmem:[%s1116_s23 + $0xc0] sm:$0xff]  }
  0x25   : > { %v989_v27 = vld [vmem:[%s1116_s23 + $0x8] sm:$0xff]   ;;  %v993_v31 = vld [vmem:[%s1116_s23] sm:$0xff]  }
  0x26   : > { %881 = vmatpush3.bf16.msra.mxu0 %v973_v11  ;;  %v990_v28 = vld [vmem:[%s1116_s23 + $0x88] sm:$0xff]   ;;  %v994_v32 = vld [vmem:[%s1116_s23 + $0x80] sm:$0xff]  }
  0x27   : > { %903 = vmatpush3.bf16.msra.mxu1 %v974_v12  ;;  %882 = vmatprep.subr.bf16.mxu0 %v975_v13  ;;  %v319_v33 = vld [vmem:[%s1111_s7] sm:$0xff]  ;;  %v320_v34 = vld [vmem:[%s1111_s7 + $0x8] sm:$0xff] }
  0x28   : > { %904 = vmatprep.subr.bf16.mxu1 %v976_v14  ;;  %v836_v35 = vcombine.low %v319_v33, %v319_v33  ;;  %v837_v36 = vcombine.high %v319_v33, %v319_v33  ;;  %v838_v37 = vcombine.low %v320_v34, %v320_v34  ;;  %v839_v38 = vcombine.high %v320_v34, %v320_v34  ;;  %v321_v45 = vld [vmem:[#allocation2] sm:$0xff] }
  0x2a   : > { %883 = vmatpush3.bf16.msra.mxu0 %v977_v15  ;;  %624 = vmatprep.mubr.bf16.mxu0 %v837_v36 }
  0x2b   : > { %905 = vmatpush3.bf16.msra.mxu1 %v978_v16  ;;  %884 = vmatprep.subr.bf16.mxu0 %v979_v17 }
  0x2c   : > { %906 = vmatprep.subr.bf16.mxu1 %v980_v18  ;;  %664 = vmatprep.mubr.bf16.mxu1 %v839_v38 }
  0x2e   : > { %885 = vmatpush3.bf16.msra.mxu0 %v981_v19 }
  0x2f   : > { %907 = vmatpush3.bf16.msra.mxu1 %v982_v20  ;;  %886 = vmatprep.subr.bf16.mxu0 %v983_v21 }
  0x30   : > { %908 = vmatprep.subr.bf16.mxu1 %v984_v22 }
  0x32   : > { %887 = vmatpush3.bf16.msra.mxu0 %v985_v23 }
  0x33   : > { %909 = vmatpush3.bf16.msra.mxu1 %v986_v24  ;;  %888 = vmatprep.subr.bf16.mxu0 %v987_v25 }
  0x34   : > { %910 = vmatprep.subr.bf16.mxu1 %v988_v26 }
  0x36   : > { %889 = vmatpush3.bf16.msra.mxu0 %v989_v27 }
  0x37   : > { %911 = vmatpush3.bf16.msra.mxu1 %v990_v28  ;;  %890 = vmatprep.subr.bf16.mxu0 %v991_v29 }
  0x38   : > { %912 = vmatprep.subr.bf16.mxu1 %v992_v30 }
  0x3a   : > { %891 = vmatpush3.bf16.msra.mxu0 %v993_v31 }
  0x3b   : > { %913 = vmatpush3.bf16.msra.mxu1 %v994_v32 }
  0x3d   : > { %625 = vmatmul.mubr.bf16.vlgmr.msra.gmra.mxu0 %v836_v35 }
  0x3e   : > { %665 = vmatmul.mubr.bf16.vlgmr.msra.gmra.mxu1 %v838_v37 }
  0xfd   : > { %v892_v39 = vpop.f32.mrf.mxu0 }
  0xfe   : > { %v914_v40 = vpop.f32.mrf.mxu1 }
  0xff   : > { %v893_v41 = vpop.f32.mrf.mxu0 }
 0x100   : > { %v915_v42 = vpop.f32.mrf.mxu1  ;;  %v894_v43 = vadd.f32 %v893_v41, %v892_v39 }
 0x101   : > { %v916_v44 = vadd.f32 %v915_v42, %v914_v40  ;;  %v895_v46 = vpop.f32.mrf.mxu0 }
 0x102   : > { %v917_v47 = vpop.f32.mrf.mxu1 }
 0x103   : > { %v667_v48 = vadd.f32 %v916_v44, %v894_v43  ;;  %v896_v49 = vpop.f32.mrf.mxu0  ;;  %677 = sbr.rel (%p872_p9) target bundleno = 278 (0x116), region = 40 }
 0x104   : > { %v918_v50 = vpop.f32.mrf.mxu1 }
 0x105   : > { %v672_v51 = vadd.f32 %v667_v48, %v321_v45 }
 0x107   : > { %673 = vst [vmem:[#allocation2] sm:$0xff] %v672_v51 }
 0x108   : > { %v873_v53 = vld [vmem:[%s302_s25] ss:$0 sm:$0xff] }
 0x10e   : > { %v678_v52 = vld [vmem:[#allocation2] sm:$0xff] }
 0x10f   : > { %v686_v54 = vadd.f32 %v873_v53, %v678_v52 }
 0x111   : > { %v687_v55 = vmax.f32 %v686_v54, 0.0 }
 0x113   : > { %v688_v56 = vpack.c.bf16 %v687_v55, %v687_v55 }
 0x115   : > { %689 = vst [vmem:[%s1106_s4] sm:$0xf] %v688_v56 }
 0x116 PF: > { %s13_s16 = sadd.s32 1, %s1037_s16   ;;  %s1179_s12 = smov %s1029_s14 }
 0x117   : > { %p10_p10 = scmp.ge.s32.totalorder %s13_s16, 8   ;;  %s1180_s13 = smov %s1033_s15 }
 0x118   : > { %s1181_s14 = smov %s1184_s17  ;;  %s1182_s15 = smov %s1188_s18 }
 0x119   :  { %12 = sbr.rel (!%p10_p10) target bundleno = 3 (0x3), region = 76 }

// kernel: _pe_h_network.33
= control target key start
LH: loop header
LB: loop body
LE: loop exit
PB: predicated region body
PF: predicated region fallthrough
CT: control target
= control target key end

     0   :  { %s1310_s12 = smov 0   ;;  %s1312_s13 = smov 0   ;;  %s1449_s0 = inlined_call_operand.vmem [shape: bf16[2,8,1536], index: 0, kind: input, shape index: {}]   ;;  %s1450_s1 = inlined_call_operand.vmem [shape: bf16[2,1536,256], index: 1, kind: input, shape index: {}]   ;;  %s1451_s2 = inlined_call_operand.vmem [shape: f32[2,1,256], index: 2, kind: input, shape index: {}]   ;;  %s1452_s3 = inlined_call_operand.vmem [shape: bf16[2,8,256], index: 3, kind: output, shape index: {}]  }
   0x1   :  { %s1314_s14 = smov 0   ;;  %s1316_s15 = smov 0  }
   0x2   :  { %s1318_s16 = smov 0  }
   0x3 LB: > { %s28_s17 = sadd.s32 1, %s1279_s14  ;;  %s39_s18 = sadd.s32 1, %s1283_s15  ;;  %s1287_s16 = sphi %s1318_s16, %s13_s16   ;;  %s1283_s15 = sphi %s1316_s15, %s1456_s15   ;;  %s1279_s14 = sphi %s1314_s14, %s1455_s14   ;;  %s1275_s13 = sphi %s1312_s13, %s1454_s13   ;;  %s1271_s12 = sphi %s1310_s12, %s1453_s12  }
   0x4   : > { %p29_p0 = scmp.ge.s32.totalorder %s28_s17, 3  ;;  %p1022_p1 = scmp.ge.s32.totalorder %s1287_s16, 1 }
   0x5   : > { %p221_p2 = scmp.lt.s32.totalorder %s1287_s16, 7 }
   0x6   : > { %s1458_s17 = smov (%p29_p0, %s28_s17), 0  ;;  %s1460_s18 = smov (!%p29_p0, %s39_s18), %s1283_s15 }
   0x7   : > { %p222_p3 = pnand %p1022_p1, %p221_p2  ;;  %p41_p4 = scmp.ge.s32.totalorder %s1460_s18, 2 }
   0x8   : > { %s1023_s19 = sshll.u32 (!%p222_p3), %s1271_s12, 2  ;;  %p284_p5 = scmp.lt.s32.totalorder (!%p222_p3), %s1275_s13, 1 }
   0x9   : > { %s1462_s18 = smov (%p41_p4, %s1460_s18), 0  ;;  %225 = sbr.rel (%p222_p3) target bundleno = 308 (0x134), region = 32 }
   0xa   : > { %p288_p6 = scmp.lt.s32.totalorder (!%p222_p3), %s1023_s19, 11  ;;  %s1025_s20 = sshll.u32 (!%p222_p3), %s1271_s12, 6 }
   0xb   : > { %p301_p7 = scmp.lt.s32.totalorder (!%p222_p3), %s1025_s20, 191  ;;  %p1031_p8 = scmp.ne.s32.totalorder (!%p222_p3), %s1271_s12, 0 }
   0xe   : > { %s1464_s13 = smov (!%p284_p5, %s1275_s13), 1  ;;  %s1466_s19 = smov (!%p288_p6, %s1023_s19), 11 }
   0xf   : > { %s1106_s21 = smul.u32 12, %s1464_s13  ;;  %s1028_s23 = sshll.u32 %s1464_s13, 1 }
  0x10   : > { %s1107_s22 = smul.u32 384, %s1464_s13  ;;  %s1347_s27 = scalar_lea.vmem %s1451_s2, %s1028_s23 }
  0x11   : > { %s293_s24 = sadd.s32 %s1106_s21, %s1466_s19  ;;  %s1104_s29 = sshll.u32 %s1464_s13, 3 }
  0x12   : > { %s1024_s28 = sshll.u32 %s293_s24, 2  ;;  %s1357_s8 = scalar_lea.vmem %s1452_s3, %s1104_s29 }
  0x13   : > { %s1352_s5 = scalar_lea.vmem %s1449_s0, %s1024_s28  ;;  %s1468_s20 = smov (!%p301_p7, %s1025_s20), 191 }
  0x14   : > { %s1026_s9 = sshll.u32 %s1468_s20, 1  ;;  %339 = sbr.rel (%p1031_p8) target bundleno = 27 (0x1b), region = 36 }
  0x15   : > { %s308_s10 = sadd.s32 %s1107_s22, %s1026_s9 }
  0x16   : > { %s1027_s11 = sshll.u32 %s308_s10, 2 }
  0x17   : > { %s1362_s23 = scalar_lea.vmem %s1450_s1, %s1027_s11 }
  0x19   : > { %v1289_v0 = vmov 0.0  }
  0x1a   : > { %340 = vst [vmem:[#allocation2] sm:$0xff] %v1289_v0  ;;  %341 = vst [vmem:[#allocation2 + $0x8] sm:$0xff] %v1289_v0 }
  0x1b PF: > { %v1149_v1 = vld [vmem:[%s1362_s23 + $0x74] ss:$8 sps:$4 sm:$0xff]   ;;  %v1153_v3 = vld [vmem:[%s1362_s23 + $0x70] ss:$8 sps:$4 sm:$0xff]   ;;  %v1155_v5 = vld [vmem:[%s1362_s23 + $0x64] ss:$8 sps:$4 sm:$0xff]  }
  0x1c   : > { %v1151_v2 = vld [vmem:[%s1362_s23 + $0x174] ss:$8 sps:$4 sm:$0xff]   ;;  %744 = vmatprep.subr.bf16.mxu0 %v1149_v1  ;;  %v1154_v4 = vld [vmem:[%s1362_s23 + $0x170] ss:$8 sps:$4 sm:$0xff]   ;;  %v1157_v6 = vld [vmem:[%s1362_s23 + $0x164] ss:$8 sps:$4 sm:$0xff]  }
  0x1d   : > { %785 = vmatprep.subr.bf16.mxu1 %v1151_v2  ;;  %745 = vmatpush1.bf16.msra.mxu0 %v1153_v3  ;;  %v1159_v7 = vld [vmem:[%s1362_s23 + $0x60] ss:$8 sps:$4 sm:$0xff]   ;;  %v1161_v9 = vld [vmem:[%s1362_s23 + $0x54] ss:$8 sps:$4 sm:$0xff]   ;;  %v1165_v11 = vld [vmem:[%s1362_s23 + $0x50] ss:$8 sps:$4 sm:$0xff]  }
  0x1e   : > { %786 = vmatpush1.bf16.msra.mxu1 %v1154_v4  ;;  %746 = vmatprep.subr.bf16.mxu0 %v1155_v5  ;;  %v1160_v8 = vld [vmem:[%s1362_s23 + $0x160] ss:$8 sps:$4 sm:$0xff]   ;;  %v1163_v10 = vld [vmem:[%s1362_s23 + $0x154] ss:$8 sps:$4 sm:$0xff]   ;;  %v1166_v12 = vld [vmem:[%s1362_s23 + $0x150] ss:$8 sps:$4 sm:$0xff]  }
  0x1f   : > { %787 = vmatprep.subr.bf16.mxu1 %v1157_v6  ;;  %v1167_v13 = vld [vmem:[%s1362_s23 + $0x44] ss:$8 sps:$4 sm:$0xff]   ;;  %v1171_v15 = vld [vmem:[%s1362_s23 + $0x40] ss:$8 sps:$4 sm:$0xff]   ;;  %v1173_v17 = vld [vmem:[%s1362_s23 + $0x34] ss:$8 sps:$4 sm:$0xff]  }
  0x20   : > { %v1169_v14 = vld [vmem:[%s1362_s23 + $0x144] ss:$8 sps:$4 sm:$0xff]   ;;  %v1172_v16 = vld [vmem:[%s1362_s23 + $0x140] ss:$8 sps:$4 sm:$0xff]   ;;  %v1175_v18 = vld [vmem:[%s1362_s23 + $0x134] ss:$8 sps:$4 sm:$0xff]  }
  0x21   : > { %747 = vmatpush1.bf16.msra.mxu0 %v1159_v7  ;;  %v1177_v19 = vld [vmem:[%s1362_s23 + $0x30] ss:$8 sps:$4 sm:$0xff]   ;;  %v1179_v21 = vld [vmem:[%s1362_s23 + $0x24] ss:$8 sps:$4 sm:$0xff]   ;;  %v1183_v23 = vld [vmem:[%s1362_s23 + $0x20] ss:$8 sps:$4 sm:$0xff]  }
  0x22   : > { %788 = vmatpush1.bf16.msra.mxu1 %v1160_v8  ;;  %748 = vmatprep.subr.bf16.mxu0 %v1161_v9  ;;  %v1178_v20 = vld [vmem:[%s1362_s23 + $0x130] ss:$8 sps:$4 sm:$0xff]   ;;  %v1181_v22 = vld [vmem:[%s1362_s23 + $0x124] ss:$8 sps:$4 sm:$0xff]   ;;  %v1184_v24 = vld [vmem:[%s1362_s23 + $0x120] ss:$8 sps:$4 sm:$0xff]  }
  0x23   : > { %789 = vmatprep.subr.bf16.mxu1 %v1163_v10  ;;  %v1185_v25 = vld [vmem:[%s1362_s23 + $0x14] ss:$8 sps:$4 sm:$0xff]   ;;  %v1189_v27 = vld [vmem:[%s1362_s23 + $0x10] ss:$8 sps:$4 sm:$0xff]   ;;  %v1191_v29 = vld [vmem:[%s1362_s23 + $0x4] ss:$8 sps:$4 sm:$0xff]  }
  0x24   : > { %v1187_v26 = vld [vmem:[%s1362_s23 + $0x114] ss:$8 sps:$4 sm:$0xff]   ;;  %v1190_v28 = vld [vmem:[%s1362_s23 + $0x110] ss:$8 sps:$4 sm:$0xff]   ;;  %v1193_v30 = vld [vmem:[%s1362_s23 + $0x104] ss:$8 sps:$4 sm:$0xff]  }
  0x25   : > { %749 = vmatpush1.bf16.msra.mxu0 %v1165_v11  ;;  %v1195_v31 = vld [vmem:[%s1362_s23] ss:$8 sps:$4 sm:$0xff]   ;;  %v1197_v33 = vld [vmem:[%s1362_s23 + $0xf4] ss:$8 sps:$4 sm:$0xff]   ;;  %v1201_v35 = vld [vmem:[%s1362_s23 + $0xf0] ss:$8 sps:$4 sm:$0xff]  }
  0x26   : > { %790 = vmatpush1.bf16.msra.mxu1 %v1166_v12  ;;  %750 = vmatprep.subr.bf16.mxu0 %v1167_v13  ;;  %v1196_v32 = vld [vmem:[%s1362_s23 + $0x100] ss:$8 sps:$4 sm:$0xff]   ;;  %v1199_v34 = vld [vmem:[%s1362_s23 + $0x1f4] ss:$8 sps:$4 sm:$0xff]   ;;  %v1202_v36 = vld [vmem:[%s1362_s23 + $0x1f0] ss:$8 sps:$4 sm:$0xff]  }
  0x27   : > { %791 = vmatprep.subr.bf16.mxu1 %v1169_v14  ;;  %v1203_v37 = vld [vmem:[%s1362_s23 + $0xe4] ss:$8 sps:$4 sm:$0xff]   ;;  %v1207_v39 = vld [vmem:[%s1362_s23 + $0xe0] ss:$8 sps:$4 sm:$0xff]   ;;  %v1209_v41 = vld [vmem:[%s1362_s23 + $0xd4] ss:$8 sps:$4 sm:$0xff]  }
  0x28   : > { %v1205_v38 = vld [vmem:[%s1362_s23 + $0x1e4] ss:$8 sps:$4 sm:$0xff]   ;;  %v1208_v40 = vld [vmem:[%s1362_s23 + $0x1e0] ss:$8 sps:$4 sm:$0xff]   ;;  %v1211_v42 = vld [vmem:[%s1362_s23 + $0x1d4] ss:$8 sps:$4 sm:$0xff]  }
  0x29   : > { %751 = vmatpush1.bf16.msra.mxu0 %v1171_v15  ;;  %v1213_v43 = vld [vmem:[%s1362_s23 + $0xd0] ss:$8 sps:$4 sm:$0xff]   ;;  %v1215_v45 = vld [vmem:[%s1362_s23 + $0xc4] ss:$8 sps:$4 sm:$0xff]   ;;  %v1219_v50 = vld [vmem:[%s1362_s23 + $0xc0] ss:$8 sps:$4 sm:$0xff]  }
  0x2a   : > { %792 = vmatpush1.bf16.msra.mxu1 %v1172_v16  ;;  %752 = vmatprep.subr.bf16.mxu0 %v1173_v17  ;;  %v1214_v44 = vld [vmem:[%s1362_s23 + $0x1d0] ss:$8 sps:$4 sm:$0xff]   ;;  %v1217_v46 = vld [vmem:[%s1362_s23 + $0x1c4] ss:$8 sps:$4 sm:$0xff]   ;;  %v1220_v51 = vld [vmem:[%s1362_s23 + $0x1c0] ss:$8 sps:$4 sm:$0xff]  }
  0x2b   : > { %793 = vmatprep.subr.bf16.mxu1 %v1175_v18  ;;  %v342_v47 = vld [vmem:[%s1352_s5] sm:$0xff]  ;;  %v343_v49 = vld [vmem:[%s1352_s5 + $0x8] sm:$0xff]  ;;  %v1221_v53 = vld [vmem:[%s1362_s23 + $0xb4] ss:$8 sps:$4 sm:$0xff]   ;;  %p1100_p9 = scmp.ne.s32.totalorder %s1271_s12, 2 }
  0x2c   : > { %v1033_v48 = vcombine.high %v342_v47, %v342_v47  ;;  %v1035_v52 = vcombine.high %v343_v49, %v343_v49  ;;  %v1223_v54 = vld [vmem:[%s1362_s23 + $0x1b4] ss:$8 sps:$4 sm:$0xff]   ;;  %v1225_v55 = vld [vmem:[%s1362_s23 + $0xb0] ss:$8 sps:$4 sm:$0xff]   ;;  %v1227_v57 = vld [vmem:[%s1362_s23 + $0xa4] ss:$8 sps:$4 sm:$0xff]   ;;  %v1032_v5 = vcombine.low %v342_v47, %v342_v47  ;;  %v1034_v6 = vcombine.low %v343_v49, %v343_v49 }
  0x2d   : > { %753 = vmatpush1.bf16.msra.mxu0 %v1177_v19  ;;  %v1226_v56 = vld [vmem:[%s1362_s23 + $0x1b0] ss:$8 sps:$4 sm:$0xff]   ;;  %v1229_v58 = vld [vmem:[%s1362_s23 + $0x1a4] ss:$8 sps:$4 sm:$0xff]   ;;  %v1231_v59 = vld [vmem:[%s1362_s23 + $0xa0] ss:$8 sps:$4 sm:$0xff]  }
  0x2e   : > { %794 = vmatpush1.bf16.msra.mxu1 %v1178_v20  ;;  %754 = vmatprep.subr.bf16.mxu0 %v1179_v21  ;;  %v1232_v60 = vld [vmem:[%s1362_s23 + $0x1a0] ss:$8 sps:$4 sm:$0xff]   ;;  %v1233_v61 = vld [vmem:[%s1362_s23 + $0x94] ss:$8 sps:$4 sm:$0xff]   ;;  %v1237_v63 = vld [vmem:[%s1362_s23 + $0x90] ss:$8 sps:$4 sm:$0xff]  }
  0x2f   : > { %795 = vmatprep.subr.bf16.mxu1 %v1181_v22  ;;  %776 = vmatprep.mubr.bf16.mxu0 %v1033_v48  ;;  %v1235_v62 = vld [vmem:[%s1362_s23 + $0x194] ss:$8 sps:$4 sm:$0xff]   ;;  %v1238_v0 = vld [vmem:[%s1362_s23 + $0x190] ss:$8 sps:$4 sm:$0xff]   ;;  %v1239_v1 = vld [vmem:[%s1362_s23 + $0x84] ss:$8 sps:$4 sm:$0xff]  }
  0x30   : > { %817 = vmatprep.mubr.bf16.mxu1 %v1035_v52  ;;  %v1241_v2 = vld [vmem:[%s1362_s23 + $0x184] ss:$8 sps:$4 sm:$0xff]   ;;  %v1243_v3 = vld [vmem:[%s1362_s23 + $0x80] ss:$8 sps:$4 sm:$0xff]  }
  0x31   : > { %755 = vmatpush1.bf16.msra.mxu0 %v1183_v23  ;;  %v1244_v4 = vld [vmem:[%s1362_s23 + $0x180] ss:$8 sps:$4 sm:$0xff]  }
  0x32   : > { %796 = vmatpush1.bf16.msra.mxu1 %v1184_v24  ;;  %756 = vmatprep.subr.bf16.mxu0 %v1185_v25  ;;  %v344_v8 = vld [vmem:[#allocation2] sm:$0xff]  ;;  %v345_v12 = vld [vmem:[#allocation2 + $0x8] sm:$0xff] }
  0x33   : > { %797 = vmatprep.subr.bf16.mxu1 %v1187_v26 }
  0x35   : > { %757 = vmatpush1.bf16.msra.mxu0 %v1189_v27 }
  0x36   : > { %798 = vmatpush1.bf16.msra.mxu1 %v1190_v28  ;;  %758 = vmatprep.subr.bf16.mxu0 %v1191_v29 }
  0x37   : > { %799 = vmatprep.subr.bf16.mxu1 %v1193_v30 }
  0x39   : > { %759 = vmatpush1.bf16.msra.mxu0 %v1195_v31 }
  0x3a   : > { %800 = vmatpush1.bf16.msra.mxu1 %v1196_v32  ;;  %760 = vmatprep.subr.bf16.mxu0 %v1197_v33 }
  0x3b   : > { %801 = vmatprep.subr.bf16.mxu1 %v1199_v34 }
  0x3d   : > { %761 = vmatpush2.bf16.msra.mxu0 %v1201_v35 }
  0x3e   : > { %802 = vmatpush2.bf16.msra.mxu1 %v1202_v36  ;;  %762 = vmatprep.subr.bf16.mxu0 %v1203_v37 }
  0x3f   : > { %803 = vmatprep.subr.bf16.mxu1 %v1205_v38 }
  0x41   : > { %763 = vmatpush2.bf16.msra.mxu0 %v1207_v39 }
  0x42   : > { %804 = vmatpush2.bf16.msra.mxu1 %v1208_v40  ;;  %764 = vmatprep.subr.bf16.mxu0 %v1209_v41 }
  0x43   : > { %805 = vmatprep.subr.bf16.mxu1 %v1211_v42 }
  0x45   : > { %765 = vmatpush2.bf16.msra.mxu0 %v1213_v43 }
  0x46   : > { %806 = vmatpush2.bf16.msra.mxu1 %v1214_v44  ;;  %766 = vmatprep.subr.bf16.mxu0 %v1215_v45 }
  0x47   : > { %807 = vmatprep.subr.bf16.mxu1 %v1217_v46 }
  0x49   : > { %767 = vmatpush2.bf16.msra.mxu0 %v1219_v50 }
  0x4a   : > { %808 = vmatpush2.bf16.msra.mxu1 %v1220_v51  ;;  %768 = vmatprep.subr.bf16.mxu0 %v1221_v53 }
  0x4b   : > { %809 = vmatprep.subr.bf16.mxu1 %v1223_v54 }
  0x4d   : > { %769 = vmatpush2.bf16.msra.mxu0 %v1225_v55 }
  0x4e   : > { %810 = vmatpush2.bf16.msra.mxu1 %v1226_v56  ;;  %770 = vmatprep.subr.bf16.mxu0 %v1227_v57 }
  0x4f   : > { %811 = vmatprep.subr.bf16.mxu1 %v1229_v58 }
  0x51   : > { %771 = vmatpush2.bf16.msra.mxu0 %v1231_v59 }
  0x52   : > { %812 = vmatpush2.bf16.msra.mxu1 %v1232_v60  ;;  %772 = vmatprep.subr.bf16.mxu0 %v1233_v61 }
  0x53   : > { %813 = vmatprep.subr.bf16.mxu1 %v1235_v62 }
  0x55   : > { %773 = vmatpush2.bf16.msra.mxu0 %v1237_v63 }
  0x56   : > { %814 = vmatpush2.bf16.msra.mxu1 %v1238_v0  ;;  %774 = vmatprep.subr.bf16.mxu0 %v1239_v1 }
  0x57   : > { %815 = vmatprep.subr.bf16.mxu1 %v1241_v2 }
  0x59   : > { %775 = vmatpush2.bf16.msra.mxu0 %v1243_v3 }
  0x5a   : > { %816 = vmatpush2.bf16.msra.mxu1 %v1244_v4 }
  0x5c   : > { %777 = vmatmul.mubr.bf16.vlgmr.msra.gmra.mxu0 %v1032_v5 }
  0x5d   : > { %818 = vmatmul.mubr.bf16.vlgmr.msra.gmra.mxu1 %v1034_v6 }
 0x11c   : > { %v778_v7 = vpop.f32.mrf.mxu0 }
 0x11d   : > { %v819_v9 = vpop.f32.mrf.mxu1 }
 0x11e   : > { %v820_v10 = vadd.f32 %v819_v9, %v778_v7  ;;  %v780_v11 = vpop.f32.mrf.mxu0 }
 0x11f   : > { %v821_v13 = vpop.f32.mrf.mxu1 }
 0x120   : > { %v826_v14 = vadd.f32 %v820_v10, %v344_v8  ;;  %v822_v15 = vadd.f32 %v821_v13, %v780_v11  ;;  %v782_v16 = vpop.f32.mrf.mxu0  ;;  %833 = sbr.rel (%p1100_p9) target bundleno = 308 (0x134), region = 40 }
 0x121   : > { %v823_v17 = vpop.f32.mrf.mxu1 }
 0x122   : > { %828 = vst [vmem:[#allocation2] sm:$0xff] %v826_v14  ;;  %v827_v18 = vadd.f32 %v822_v15, %v345_v12  ;;  %v783_v19 = vpop.f32.mrf.mxu0 }
 0x123   : > { %v824_v20 = vpop.f32.mrf.mxu1 }
 0x124   : > { %829 = vst [vmem:[#allocation2 + $0x8] sm:$0xff] %v827_v18 }
 0x125   : > { %v838_v21 = vlaneseq  ;;  %v836_v23 = vld [vmem:[%s1347_s27] sm:$0x3] }
 0x127   : > { %v839_v22 = vshrl.u32 %v838_v21, 7 }
 0x129   : > { %v840_v24 = vsub.s32 0, %v839_v22  ;;  %v844_v25 = vsub.s32 1, %v839_v22  ;;  %v834_v26 = vld [vmem:[#allocation2] sm:$0xff] }
 0x12b   : > { %v835_v27 = vld [vmem:[#allocation2 + $0x8] sm:$0xff]  ;;  %v841_v28 = vrot.slane %v836_v23, %v840_v24  ;;  %v845_v29 = vrot.slane %v836_v23, %v844_v25 }
 0x12d   : > { %v848_v30 = vadd.f32 %v841_v28, %v834_v26  ;;  %v849_v31 = vadd.f32 %v845_v29, %v835_v27 }
 0x12f   : > { %v850_v32 = vmax.f32 %v848_v30, 0.0  ;;  %v851_v33 = vmax.f32 %v849_v31, 0.0 }
 0x131   : > { %v1105_v34 = vpack.c.bf16 %v851_v33, %v850_v32 }
 0x133   : > { %860 = vst [vmem:[%s1357_s8] sm:$0xff] %v1105_v34 }
 0x134 PF: > { %s13_s16 = sadd.s32 1, %s1287_s16   ;;  %s1453_s12 = smov %s1279_s14 }
 0x135   : > { %p10_p10 = scmp.ge.s32.totalorder %s13_s16, 8   ;;  %s1454_s13 = smov %s1283_s15 }
 0x136   : > { %s1455_s14 = smov %s1458_s17  ;;  %s1456_s15 = smov %s1462_s18 }
 0x137   :  { %12 = sbr.rel (!%p10_p10) target bundleno = 3 (0x3), region = 76 }

// kernel: _pe_h_network.35
= control target key start
LH: loop header
LB: loop body
LE: loop exit
PB: predicated region body
PF: predicated region fallthrough
CT: control target
= control target key end

     0   :  { %s1424_s15 = smov 0   ;;  %s1426_s16 = smov 0   ;;  %s1569_s0 = inlined_call_operand.vmem [shape: bf16[2,8,2560], index: 0, kind: input, shape index: {}]   ;;  %s1570_s1 = inlined_call_operand.vmem [shape: bf16[2,2560,256], index: 1, kind: input, shape index: {}]   ;;  %s1571_s2 = inlined_call_operand.vmem [shape: f32[2,1,256], index: 2, kind: input, shape index: {}]   ;;  %s1572_s3 = inlined_call_operand.vmem [shape: bf16[2,8,256], index: 3, kind: input, shape index: {}]   ;;  %s1573_s4 = inlined_call_operand.vmem [shape: bf16[2,8,256], index: 4, kind: output, shape index: {}]  }
   0x1   :  { %s1428_s17 = smov 0   ;;  %s1430_s18 = smov 0  }
   0x2   :  { %s1432_s19 = smov 0  }
   0x3 LB: > { %s29_s20 = sadd.s32 1, %s1388_s17  ;;  %s40_s21 = sadd.s32 1, %s1392_s18  ;;  %s1396_s19 = sphi %s1432_s19, %s14_s19   ;;  %s1392_s18 = sphi %s1430_s18, %s1577_s18   ;;  %s1388_s17 = sphi %s1428_s17, %s1576_s17   ;;  %s1384_s16 = sphi %s1426_s16, %s1575_s16   ;;  %s1380_s15 = sphi %s1424_s15, %s1574_s15  }
   0x4   : > { %p30_p0 = scmp.ge.s32.totalorder %s29_s20, 5  ;;  %p1128_p1 = scmp.ge.s32.totalorder %s1396_s19, 1 }
   0x5   : > { %p269_p2 = scmp.lt.s32.totalorder %s1396_s19, 11 }
   0x6   : > { %s1579_s20 = smov (%p30_p0, %s29_s20), 0  ;;  %s1581_s21 = smov (!%p30_p0, %s40_s21), %s1392_s18 }
   0x7   : > { %p270_p3 = pnand %p1128_p1, %p269_p2  ;;  %p42_p4 = scmp.ge.s32.totalorder %s1581_s21, 2 }
   0x8   : > { %s1129_s22 = sshll.u32 (!%p270_p3), %s1380_s15, 2  ;;  %p347_p5 = scmp.lt.s32.totalorder (!%p270_p3), %s1384_s16, 1 }
   0x9   : > { %s1583_s21 = smov (%p42_p4, %s1581_s21), 0  ;;  %273 = sbr.rel (%p270_p3) target bundleno = 311 (0x137), region = 36 }
   0xa   : > { %p351_p6 = scmp.lt.s32.totalorder (!%p270_p3), %s1129_s22, 19  ;;  %s1131_s23 = sshll.u32 (!%p270_p3), %s1380_s15, 6 }
   0xb   : > { %p364_p7 = scmp.lt.s32.totalorder (!%p270_p3), %s1131_s23, 319  ;;  %p1139_p8 = scmp.ne.s32.totalorder (!%p270_p3), %s1380_s15, 0 }
   0xe   : > { %s1585_s16 = smov (!%p347_p5, %s1384_s16), 1  ;;  %s1587_s22 = smov (!%p351_p6, %s1129_s22), 19 }
   0xf   : > { %s1215_s24 = smul.u32 20, %s1585_s16  ;;  %s1134_s26 = sshll.u32 %s1585_s16, 1 }
  0x10   : > { %s1216_s25 = smul.u32 640, %s1585_s16  ;;  %s1461_s30 = scalar_lea.vmem %s1571_s2, %s1134_s26 }
  0x11   : > { %s356_s27 = sadd.s32 %s1215_s24, %s1587_s22  ;;  %s1212_s6 = sshll.u32 %s1585_s16, 3 }
  0x12   : > { %s1130_s5 = sshll.u32 %s356_s27, 2  ;;  %s1471_s12 = scalar_lea.vmem %s1572_s3, %s1212_s6 }
  0x13   : > { %s1466_s9 = scalar_lea.vmem %s1569_s0, %s1130_s5  ;;  %s1589_s23 = smov (!%p364_p7, %s1131_s23), 319 }
  0x14   : > { %s1476_s22 = scalar_lea.vmem %s1573_s4, %s1212_s6  ;;  %s1132_s24 = sshll.u32 %s1589_s23, 1 }
  0x15   : > { %s371_s26 = sadd.s32 %s1216_s25, %s1132_s24  ;;  %416 = sbr.rel (%p1139_p8) target bundleno = 28 (0x1c), region = 40 }
  0x16   : > { %s1133_s27 = sshll.u32 %s371_s26, 2 }
  0x17   : > { %s1481_s29 = scalar_lea.vmem %s1570_s1, %s1133_s27 }
  0x1a   : > { %v1398_v0 = vmov 0.0  }
  0x1b   : > { %417 = vst [vmem:[#allocation2] sm:$0xff] %v1398_v0  ;;  %418 = vst [vmem:[#allocation2 + $0x8] sm:$0xff] %v1398_v0 }
  0x1c PF: > { %v1258_v1 = vld [vmem:[%s1481_s29 + $0x74] ss:$8 sps:$4 sm:$0xff]   ;;  %v1262_v3 = vld [vmem:[%s1481_s29 + $0x70] ss:$8 sps:$4 sm:$0xff]   ;;  %v1264_v5 = vld [vmem:[%s1481_s29 + $0x64] ss:$8 sps:$4 sm:$0xff]  }
  0x1d   : > { %v1260_v2 = vld [vmem:[%s1481_s29 + $0x174] ss:$8 sps:$4 sm:$0xff]   ;;  %821 = vmatprep.subr.bf16.mxu0 %v1258_v1  ;;  %v1263_v4 = vld [vmem:[%s1481_s29 + $0x170] ss:$8 sps:$4 sm:$0xff]   ;;  %v1266_v6 = vld [vmem:[%s1481_s29 + $0x164] ss:$8 sps:$4 sm:$0xff]  }
  0x1e   : > { %862 = vmatprep.subr.bf16.mxu1 %v1260_v2  ;;  %822 = vmatpush1.bf16.msra.mxu0 %v1262_v3  ;;  %v1268_v7 = vld [vmem:[%s1481_s29 + $0x60] ss:$8 sps:$4 sm:$0xff]   ;;  %v1270_v9 = vld [vmem:[%s1481_s29 + $0x54] ss:$8 sps:$4 sm:$0xff]   ;;  %v1274_v11 = vld [vmem:[%s1481_s29 + $0x50] ss:$8 sps:$4 sm:$0xff]  }
  0x1f   : > { %863 = vmatpush1.bf16.msra.mxu1 %v1263_v4  ;;  %823 = vmatprep.subr.bf16.mxu0 %v1264_v5  ;;  %v1269_v8 = vld [vmem:[%s1481_s29 + $0x160] ss:$8 sps:$4 sm:$0xff]   ;;  %v1272_v10 = vld [vmem:[%s1481_s29 + $0x154] ss:$8 sps:$4 sm:$0xff]   ;;  %v1275_v12 = vld [vmem:[%s1481_s29 + $0x150] ss:$8 sps:$4 sm:$0xff]  }
  0x20   : > { %864 = vmatprep.subr.bf16.mxu1 %v1266_v6  ;;  %v1276_v13 = vld [vmem:[%s1481_s29 + $0x44] ss:$8 sps:$4 sm:$0xff]   ;;  %v1280_v15 = vld [vmem:[%s1481_s29 + $0x40] ss:$8 sps:$4 sm:$0xff]   ;;  %v1282_v17 = vld [vmem:[%s1481_s29 + $0x34] ss:$8 sps:$4 sm:$0xff]  }
  0x21   : > { %v1278_v14 = vld [vmem:[%s1481_s29 + $0x144] ss:$8 sps:$4 sm:$0xff]   ;;  %v1281_v16 = vld [vmem:[%s1481_s29 + $0x140] ss:$8 sps:$4 sm:$0xff]   ;;  %v1284_v18 = vld [vmem:[%s1481_s29 + $0x134] ss:$8 sps:$4 sm:$0xff]  }
  0x22   : > { %824 = vmatpush1.bf16.msra.mxu0 %v1268_v7  ;;  %v1286_v19 = vld [vmem:[%s1481_s29 + $0x30] ss:$8 sps:$4 sm:$0xff]   ;;  %v1288_v21 = vld [vmem:[%s1481_s29 + $0x24] ss:$8 sps:$4 sm:$0xff]   ;;  %v1292_v23 = vld [vmem:[%s1481_s29 + $0x20] ss:$8 sps:$4 sm:$0xff]  }
  0x23   : > { %865 = vmatpush1.bf16.msra.mxu1 %v1269_v8  ;;  %825 = vmatprep.subr.bf16.mxu0 %v1270_v9  ;;  %v1287_v20 = vld [vmem:[%s1481_s29 + $0x130] ss:$8 sps:$4 sm:$0xff]   ;;  %v1290_v22 = vld [vmem:[%s1481_s29 + $0x124] ss:$8 sps:$4 sm:$0xff]   ;;  %v1293_v24 = vld [vmem:[%s1481_s29 + $0x120] ss:$8 sps:$4 sm:$0xff]  }
  0x24   : > { %866 = vmatprep.subr.bf16.mxu1 %v1272_v10  ;;  %v1294_v25 = vld [vmem:[%s1481_s29 + $0x14] ss:$8 sps:$4 sm:$0xff]   ;;  %v1298_v27 = vld [vmem:[%s1481_s29 + $0x10] ss:$8 sps:$4 sm:$0xff]   ;;  %v1300_v29 = vld [vmem:[%s1481_s29 + $0x4] ss:$8 sps:$4 sm:$0xff]  }
  0x25   : > { %v1296_v26 = vld [vmem:[%s1481_s29 + $0x114] ss:$8 sps:$4 sm:$0xff]   ;;  %v1299_v28 = vld [vmem:[%s1481_s29 + $0x110] ss:$8 sps:$4 sm:$0xff]   ;;  %v1302_v30 = vld [vmem:[%s1481_s29 + $0x104] ss:$8 sps:$4 sm:$0xff]  }
  0x26   : > { %826 = vmatpush1.bf16.msra.mxu0 %v1274_v11  ;;  %v1304_v31 = vld [vmem:[%s1481_s29] ss:$8 sps:$4 sm:$0xff]   ;;  %v1306_v33 = vld [vmem:[%s1481_s29 + $0xf4] ss:$8 sps:$4 sm:$0xff]   ;;  %v1310_v35 = vld [vmem:[%s1481_s29 + $0xf0] ss:$8 sps:$4 sm:$0xff]  }
  0x27   : > { %867 = vmatpush1.bf16.msra.mxu1 %v1275_v12  ;;  %827 = vmatprep.subr.bf16.mxu0 %v1276_v13  ;;  %v1305_v32 = vld [vmem:[%s1481_s29 + $0x100] ss:$8 sps:$4 sm:$0xff]   ;;  %v1308_v34 = vld [vmem:[%s1481_s29 + $0x1f4] ss:$8 sps:$4 sm:$0xff]   ;;  %v1311_v36 = vld [vmem:[%s1481_s29 + $0x1f0] ss:$8 sps:$4 sm:$0xff]  }
  0x28   : > { %868 = vmatprep.subr.bf16.mxu1 %v1278_v14  ;;  %v1312_v37 = vld [vmem:[%s1481_s29 + $0xe4] ss:$8 sps:$4 sm:$0xff]   ;;  %v1316_v39 = vld [vmem:[%s1481_s29 + $0xe0] ss:$8 sps:$4 sm:$0xff]   ;;  %v1318_v41 = vld [vmem:[%s1481_s29 + $0xd4] ss:$8 sps:$4 sm:$0xff]  }
  0x29   : > { %v1314_v38 = vld [vmem:[%s1481_s29 + $0x1e4] ss:$8 sps:$4 sm:$0xff]   ;;  %v1317_v40 = vld [vmem:[%s1481_s29 + $0x1e0] ss:$8 sps:$4 sm:$0xff]   ;;  %v1320_v42 = vld [vmem:[%s1481_s29 + $0x1d4] ss:$8 sps:$4 sm:$0xff]  }
  0x2a   : > { %828 = vmatpush1.bf16.msra.mxu0 %v1280_v15  ;;  %v1322_v43 = vld [vmem:[%s1481_s29 + $0xd0] ss:$8 sps:$4 sm:$0xff]   ;;  %v1324_v45 = vld [vmem:[%s1481_s29 + $0xc4] ss:$8 sps:$4 sm:$0xff]   ;;  %v1328_v50 = vld [vmem:[%s1481_s29 + $0xc0] ss:$8 sps:$4 sm:$0xff]  }
  0x2b   : > { %869 = vmatpush1.bf16.msra.mxu1 %v1281_v16  ;;  %829 = vmatprep.subr.bf16.mxu0 %v1282_v17  ;;  %v1323_v44 = vld [vmem:[%s1481_s29 + $0x1d0] ss:$8 sps:$4 sm:$0xff]   ;;  %v1326_v46 = vld [vmem:[%s1481_s29 + $0x1c4] ss:$8 sps:$4 sm:$0xff]   ;;  %v1329_v51 = vld [vmem:[%s1481_s29 + $0x1c0] ss:$8 sps:$4 sm:$0xff]  }
  0x2c   : > { %870 = vmatprep.subr.bf16.mxu1 %v1284_v18  ;;  %v419_v47 = vld [vmem:[%s1466_s9] sm:$0xff]  ;;  %v420_v49 = vld [vmem:[%s1466_s9 + $0x8] sm:$0xff]  ;;  %v1330_v53 = vld [vmem:[%s1481_s29 + $0xb4] ss:$8 sps:$4 sm:$0xff]   ;;  %p1208_p9 = scmp.ne.s32.totalorder %s1380_s15, 4 }
  0x2d   : > { %v1141_v48 = vcombine.high %v419_v47, %v419_v47  ;;  %v1143_v52 = vcombine.high %v420_v49, %v420_v49  ;;  %v1332_v54 = vld [vmem:[%s1481_s29 + $0x1b4] ss:$8 sps:$4 sm:$0xff]   ;;  %v1334_v55 = vld [vmem:[%s1481_s29 + $0xb0] ss:$8 sps:$4 sm:$0xff]   ;;  %v1336_v57 = vld [vmem:[%s1481_s29 + $0xa4] ss:$8 sps:$4 sm:$0xff]   ;;  %v1140_v5 = vcombine.low %v419_v47, %v419_v47  ;;  %v1142_v6 = vcombine.low %v420_v49, %v420_v49 }
  0x2e   : > { %830 = vmatpush1.bf16.msra.mxu0 %v1286_v19  ;;  %v1335_v56 = vld [vmem:[%s1481_s29 + $0x1b0] ss:$8 sps:$4 sm:$0xff]   ;;  %v1338_v58 = vld [vmem:[%s1481_s29 + $0x1a4] ss:$8 sps:$4 sm:$0xff]   ;;  %v1340_v59 = vld [vmem:[%s1481_s29 + $0xa0] ss:$8 sps:$4 sm:$0xff]  }
  0x2f   : > { %871 = vmatpush1.bf16.msra.mxu1 %v1287_v20  ;;  %831 = vmatprep.subr.bf16.mxu0 %v1288_v21  ;;  %v1341_v60 = vld [vmem:[%s1481_s29 + $0x1a0] ss:$8 sps:$4 sm:$0xff]   ;;  %v1342_v61 = vld [vmem:[%s1481_s29 + $0x94] ss:$8 sps:$4 sm:$0xff]   ;;  %v1346_v63 = vld [vmem:[%s1481_s29 + $0x90] ss:$8 sps:$4 sm:$0xff]  }
  0x30   : > { %872 = vmatprep.subr.bf16.mxu1 %v1290_v22  ;;  %853 = vmatprep.mubr.bf16.mxu0 %v1141_v48  ;;  %v1344_v62 = vld [vmem:[%s1481_s29 + $0x194] ss:$8 sps:$4 sm:$0xff]   ;;  %v1347_v0 = vld [vmem:[%s1481_s29 + $0x190] ss:$8 sps:$4 sm:$0xff]   ;;  %v1348_v1 = vld [vmem:[%s1481_s29 + $0x84] ss:$8 sps:$4 sm:$0xff]  }
  0x31   : > { %894 = vmatprep.mubr.bf16.mxu1 %v1143_v52  ;;  %v1350_v2 = vld [vmem:[%s1481_s29 + $0x184] ss:$8 sps:$4 sm:$0xff]   ;;  %v1352_v3 = vld [vmem:[%s1481_s29 + $0x80] ss:$8 sps:$4 sm:$0xff]  }
  0x32   : > { %832 = vmatpush1.bf16.msra.mxu0 %v1292_v23  ;;  %v1353_v4 = vld [vmem:[%s1481_s29 + $0x180] ss:$8 sps:$4 sm:$0xff]  }
  0x33   : > { %873 = vmatpush1.bf16.msra.mxu1 %v1293_v24  ;;  %833 = vmatprep.subr.bf16.mxu0 %v1294_v25  ;;  %v421_v8 = vld [vmem:[#allocation2] sm:$0xff]  ;;  %v422_v12 = vld [vmem:[#allocation2 + $0x8] sm:$0xff] }
  0x34   : > { %874 = vmatprep.subr.bf16.mxu1 %v1296_v26 }
  0x36   : > { %834 = vmatpush1.bf16.msra.mxu0 %v1298_v27 }
  0x37   : > { %875 = vmatpush1.bf16.msra.mxu1 %v1299_v28  ;;  %835 = vmatprep.subr.bf16.mxu0 %v1300_v29 }
  0x38   : > { %876 = vmatprep.subr.bf16.mxu1 %v1302_v30 }
  0x3a   : > { %836 = vmatpush1.bf16.msra.mxu0 %v1304_v31 }
  0x3b   : > { %877 = vmatpush1.bf16.msra.mxu1 %v1305_v32  ;;  %837 = vmatprep.subr.bf16.mxu0 %v1306_v33 }
  0x3c   : > { %878 = vmatprep.subr.bf16.mxu1 %v1308_v34 }
  0x3e   : > { %838 = vmatpush2.bf16.msra.mxu0 %v1310_v35 }
  0x3f   : > { %879 = vmatpush2.bf16.msra.mxu1 %v1311_v36  ;;  %839 = vmatprep.subr.bf16.mxu0 %v1312_v37 }
  0x40   : > { %880 = vmatprep.subr.bf16.mxu1 %v1314_v38 }
  0x42   : > { %840 = vmatpush2.bf16.msra.mxu0 %v1316_v39 }
  0x43   : > { %881 = vmatpush2.bf16.msra.mxu1 %v1317_v40  ;;  %841 = vmatprep.subr.bf16.mxu0 %v1318_v41 }
  0x44   : > { %882 = vmatprep.subr.bf16.mxu1 %v1320_v42 }
  0x46   : > { %842 = vmatpush2.bf16.msra.mxu0 %v1322_v43 }
  0x47   : > { %883 = vmatpush2.bf16.msra.mxu1 %v1323_v44  ;;  %843 = vmatprep.subr.bf16.mxu0 %v1324_v45 }
  0x48   : > { %884 = vmatprep.subr.bf16.mxu1 %v1326_v46 }
  0x4a   : > { %844 = vmatpush2.bf16.msra.mxu0 %v1328_v50 }
  0x4b   : > { %885 = vmatpush2.bf16.msra.mxu1 %v1329_v51  ;;  %845 = vmatprep.subr.bf16.mxu0 %v1330_v53 }
  0x4c   : > { %886 = vmatprep.subr.bf16.mxu1 %v1332_v54 }
  0x4e   : > { %846 = vmatpush2.bf16.msra.mxu0 %v1334_v55 }
  0x4f   : > { %887 = vmatpush2.bf16.msra.mxu1 %v1335_v56  ;;  %847 = vmatprep.subr.bf16.mxu0 %v1336_v57 }
  0x50   : > { %888 = vmatprep.subr.bf16.mxu1 %v1338_v58 }
  0x52   : > { %848 = vmatpush2.bf16.msra.mxu0 %v1340_v59 }
  0x53   : > { %889 = vmatpush2.bf16.msra.mxu1 %v1341_v60  ;;  %849 = vmatprep.subr.bf16.mxu0 %v1342_v61 }
  0x54   : > { %890 = vmatprep.subr.bf16.mxu1 %v1344_v62 }
  0x56   : > { %850 = vmatpush2.bf16.msra.mxu0 %v1346_v63 }
  0x57   : > { %891 = vmatpush2.bf16.msra.mxu1 %v1347_v0  ;;  %851 = vmatprep.subr.bf16.mxu0 %v1348_v1 }
  0x58   : > { %892 = vmatprep.subr.bf16.mxu1 %v1350_v2 }
  0x5a   : > { %852 = vmatpush2.bf16.msra.mxu0 %v1352_v3 }
  0x5b   : > { %893 = vmatpush2.bf16.msra.mxu1 %v1353_v4 }
  0x5d   : > { %854 = vmatmul.mubr.bf16.vlgmr.msra.gmra.mxu0 %v1140_v5 }
  0x5e   : > { %895 = vmatmul.mubr.bf16.vlgmr.msra.gmra.mxu1 %v1142_v6 }
 0x11d   : > { %v855_v7 = vpop.f32.mrf.mxu0 }
 0x11e   : > { %v896_v9 = vpop.f32.mrf.mxu1 }
 0x11f   : > { %v897_v10 = vadd.f32 %v896_v9, %v855_v7  ;;  %v857_v11 = vpop.f32.mrf.mxu0 }
 0x120   : > { %v898_v13 = vpop.f32.mrf.mxu1 }
 0x121   : > { %v903_v14 = vadd.f32 %v897_v10, %v421_v8  ;;  %v899_v15 = vadd.f32 %v898_v13, %v857_v11  ;;  %v859_v16 = vpop.f32.mrf.mxu0  ;;  %910 = sbr.rel (%p1208_p9) target bundleno = 311 (0x137), region = 44 }
 0x122   : > { %v900_v17 = vpop.f32.mrf.mxu1 }
 0x123   : > { %905 = vst [vmem:[#allocation2] sm:$0xff] %v903_v14  ;;  %v904_v18 = vadd.f32 %v899_v15, %v422_v12  ;;  %v860_v19 = vpop.f32.mrf.mxu0 }
 0x124   : > { %v901_v20 = vpop.f32.mrf.mxu1 }
 0x125   : > { %906 = vst [vmem:[#allocation2 + $0x8] sm:$0xff] %v904_v18 }
 0x126   : > { %v915_v21 = vlaneseq  ;;  %v913_v23 = vld [vmem:[%s1461_s30] sm:$0x3] }
 0x127   : > { %v927_v24 = vld [vmem:[%s1471_s12] sm:$0xff] }
 0x128   : > { %v916_v22 = vshrl.u32 %v915_v21, 7  ;;  %v928_v31 = vunpack.c.l.bf16 %v927_v24  ;;  %v929_v32 = vunpack.c.h.bf16 %v927_v24 }
 0x12a   : > { %v917_v25 = vsub.s32 0, %v916_v22  ;;  %v921_v26 = vsub.s32 1, %v916_v22  ;;  %v911_v27 = vld [vmem:[#allocation2] sm:$0xff] }
 0x12c   : > { %v912_v28 = vld [vmem:[#allocation2 + $0x8] sm:$0xff]  ;;  %v918_v29 = vrot.slane %v913_v23, %v917_v25  ;;  %v922_v30 = vrot.slane %v913_v23, %v921_v26 }
 0x12e   : > { %v925_v33 = vadd.f32 %v918_v29, %v911_v27  ;;  %v926_v34 = vadd.f32 %v922_v30, %v912_v28 }
 0x130   : > { %v930_v35 = vadd.f32 %v928_v31, %v925_v33  ;;  %v931_v36 = vadd.f32 %v929_v32, %v926_v34 }
 0x132   : > { %v932_v37 = vmax.f32 %v930_v35, 0.0  ;;  %v933_v38 = vmax.f32 %v931_v36, 0.0 }
 0x134   : > { %v1214_v39 = vpack.c.bf16 %v933_v38, %v932_v37 }
 0x136   : > { %942 = vst [vmem:[%s1476_s22] sm:$0xff] %v1214_v39 }
 0x137 PF: > { %s14_s19 = sadd.s32 1, %s1396_s19   ;;  %s1574_s15 = smov %s1388_s17 }
 0x138   : > { %p11_p10 = scmp.ge.s32.totalorder %s14_s19, 12   ;;  %s1575_s16 = smov %s1392_s18 }
 0x139   : > { %s1576_s17 = smov %s1579_s20  ;;  %s1577_s18 = smov %s1583_s21 }
 0x13a   :  { %13 = sbr.rel (!%p11_p10) target bundleno = 3 (0x3), region = 83 }

// kernel: _pe_h_network.34
= control target key start
LH: loop header
LB: loop body
LE: loop exit
PB: predicated region body
PF: predicated region fallthrough
CT: control target
= control target key end

     0   :  { %s779_s12 = smov 0   ;;  %s781_s13 = smov 0   ;;  %s842_s0 = inlined_call_operand.vmem [shape: bf16[2,8,128], index: 0, kind: input, shape index: {}]   ;;  %s843_s1 = inlined_call_operand.vmem [shape: bf16[2,128,256], index: 1, kind: input, shape index: {}]   ;;  %s844_s2 = inlined_call_operand.vmem [shape: f32[2,1,256], index: 2, kind: input, shape index: {}]   ;;  %s845_s3 = inlined_call_operand.vmem [shape: bf16[2,8,256], index: 3, kind: output, shape index: {}]  }
   0x1   :  { %s783_s14 = smov 0  }
   0x2 LB: > { %s39_s15 = sadd.s32 1, %s752_s13  ;;  %p656_p0 = scmp.ge.s32.totalorder %s756_s14, 1  ;;  %s756_s14 = sphi %s783_s14, %s13_s14   ;;  %s752_s13 = sphi %s781_s13, %s847_s13   ;;  %s748_s12 = sphi %s779_s12, %s846_s12  }
   0x3   : > { %p41_p1 = scmp.ge.s32.totalorder %s39_s15, 2  ;;  %p217_p2 = scmp.lt.s32.totalorder %s756_s14, 3 }
   0x5   : > { %s849_s15 = smov (%p41_p1, %s39_s15), 0  ;;  %p218_p3 = pnand %p656_p0, %p217_p2 }
   0x6   : > { %p276_p4 = scmp.lt.s32.totalorder (!%p218_p3), %s748_s12, 1 }
   0x7   : > { %221 = sbr.rel (%p218_p3) target bundleno = 248 (0xf8), region = 32 }
   0xc   : > { %v758_v0 = vmov 0   ;;  %s851_s12 = smov (!%p276_p4, %s748_s12), 1  ;;  %v483_v18 = vlaneseq }
   0xd   : > { %463 = vmatprep.mubr.bf16.mxu0 %v758_v0  ;;  %s682_s16 = sshll.u32 %s851_s12, 7  ;;  %s657_s20 = sshll.u32 %s851_s12, 2 }
   0xe   : > { %s803_s19 = scalar_lea.vmem %s843_s1, %s682_s16  ;;  %s285_s23 = scalar_lea.vmem %s842_s0, %s657_s20  ;;  %v484_v19 = vshrl.u32 %v483_v18, 7 }
   0xf   : > { %v710_v1 = vld [vmem:[%s803_s19 + $0x74] ss:$8 sps:$4 sm:$0xff]   ;;  %v712_v2 = vld [vmem:[%s803_s19 + $0x70] ss:$8 sps:$4 sm:$0xff]   ;;  %v713_v3 = vld [vmem:[%s803_s19 + $0x64] ss:$8 sps:$4 sm:$0xff]  }
  0x10   : > { %431 = vmatprep.subr.bf16.mxu0 %v710_v1  ;;  %v715_v4 = vld [vmem:[%s803_s19 + $0x60] ss:$8 sps:$4 sm:$0xff]   ;;  %v716_v5 = vld [vmem:[%s803_s19 + $0x54] ss:$8 sps:$4 sm:$0xff]   ;;  %v718_v6 = vld [vmem:[%s803_s19 + $0x50] ss:$8 sps:$4 sm:$0xff]  }
  0x11   : > { %432 = vmatpush1.bf16.msra.mxu0 %v712_v2  ;;  %v719_v7 = vld [vmem:[%s803_s19 + $0x44] ss:$8 sps:$4 sm:$0xff]   ;;  %v721_v8 = vld [vmem:[%s803_s19 + $0x40] ss:$8 sps:$4 sm:$0xff]   ;;  %v722_v9 = vld [vmem:[%s803_s19 + $0x34] ss:$8 sps:$4 sm:$0xff]  }
  0x12   : > { %433 = vmatprep.subr.bf16.mxu0 %v713_v3  ;;  %v724_v10 = vld [vmem:[%s803_s19 + $0x30] ss:$8 sps:$4 sm:$0xff]   ;;  %v725_v11 = vld [vmem:[%s803_s19 + $0x24] ss:$8 sps:$4 sm:$0xff]   ;;  %v727_v12 = vld [vmem:[%s803_s19 + $0x20] ss:$8 sps:$4 sm:$0xff]  }
  0x13   : > { %v728_v13 = vld [vmem:[%s803_s19 + $0x14] ss:$8 sps:$4 sm:$0xff]   ;;  %v730_v14 = vld [vmem:[%s803_s19 + $0x10] ss:$8 sps:$4 sm:$0xff]   ;;  %v731_v15 = vld [vmem:[%s803_s19 + $0x4] ss:$8 sps:$4 sm:$0xff]  }
  0x14   : > { %v733_v16 = vld [vmem:[%s803_s19] ss:$8 sps:$4 sm:$0xff]   ;;  %s660_s24 = sshll.u32 %s851_s12, 1  ;;  %v485_v20 = vsub.s32 0, %v484_v19  ;;  %v489_v21 = vsub.s32 1, %v484_v19  ;;  %s683_s28 = sshll.u32 %s851_s12, 3 }
  0x15   : > { %434 = vmatpush1.bf16.msra.mxu0 %v715_v4  ;;  %v332_v17 = vld [vmem:[%s285_s23] sm:$0xf]  ;;  %s309_s27 = scalar_lea.vmem %s844_s2, %s660_s24  ;;  %s323_s4 = scalar_lea.vmem %s845_s3, %s683_s28 }
  0x16   : > { %435 = vmatprep.subr.bf16.mxu0 %v716_v5  ;;  %v481_v22 = vld [vmem:[%s309_s27] sm:$0x3] }
  0x17   : > { %v486_v23 = vrot.slane %v481_v22, %v485_v20  ;;  %v490_v24 = vrot.slane %v481_v22, %v489_v21 }
  0x19   : > { %436 = vmatpush1.bf16.msra.mxu0 %v718_v6 }
  0x1a   : > { %437 = vmatprep.subr.bf16.mxu0 %v719_v7 }
  0x1d   : > { %438 = vmatpush1.bf16.msra.mxu0 %v721_v8 }
  0x1e   : > { %439 = vmatprep.subr.bf16.mxu0 %v722_v9 }
  0x21   : > { %440 = vmatpush1.bf16.msra.mxu0 %v724_v10 }
  0x22   : > { %441 = vmatprep.subr.bf16.mxu0 %v725_v11 }
  0x25   : > { %442 = vmatpush1.bf16.msra.mxu0 %v727_v12 }
  0x26   : > { %443 = vmatprep.subr.bf16.mxu0 %v728_v13 }
  0x29   : > { %444 = vmatpush1.bf16.msra.mxu0 %v730_v14 }
  0x2a   : > { %445 = vmatprep.subr.bf16.mxu0 %v731_v15 }
  0x2d   : > { %446 = vmatpush1.bf16.msra.mxu0 %v733_v16 }
  0x30   : > { %464 = vmatmul.mubr.bf16.vlgmr.msra.gmra.mxu0 %v332_v17 }
  0xf0   : > { %v465_v25 = vpop.f32.mrf.mxu0 }
  0xf1   : > { %v493_v27 = vadd.f32 %v486_v23, %v465_v25 }
  0xf2   : > { %v467_v26 = vpop.f32.mrf.mxu0 }
  0xf3   : > { %v494_v28 = vadd.f32 %v490_v24, %v467_v26 }
  0xf4   : > { %v469_v29 = vpop.f32.mrf.mxu0 }
  0xf5   : > { %v684_v30 = vpack.c.bf16 %v494_v28, %v493_v27 }
  0xf6   : > { %v470_v31 = vpop.f32.mrf.mxu0 }
  0xf7   : > { %503 = vst [vmem:[%s323_s4] sm:$0xff] %v684_v30 }
  0xf8 PF: > { %s13_s14 = sadd.s32 1, %s756_s14   ;;  %s846_s12 = smov %s752_s13 }
  0xf9   : > { %p10_p5 = scmp.ge.s32.totalorder %s13_s14, 4   ;;  %s847_s13 = smov %s849_s15 }
  0xfb   :  { %12 = sbr.rel (!%p10_p5) target bundleno = 2 (0x2), region = 76 }

// kernel: _pe_h_network.38
= control target key start
LH: loop header
LB: loop body
LE: loop exit
PB: predicated region body
PF: predicated region fallthrough
CT: control target
= control target key end

     0   :  { %s1987_s0 = inlined_call_operand.vmem [shape: bf16[2,8,2560], index: 0, kind: input, shape index: {}]   ;;  %s1988_s1 = inlined_call_operand.vmem [shape: bf16[2,2560,512], index: 1, kind: input, shape index: {}]   ;;  %s1989_s2 = inlined_call_operand.vmem [shape: f32[2,1,512], index: 2, kind: input, shape index: {}]   ;;  %s1990_s3 = inlined_call_operand.vmem [shape: bf16[2,8,512], index: 3, kind: output, shape index: {}]  }
   0x1   :  { %1991 = sst [smem:[#allocation4_spill]] %s1988_s1 }
   0x2   :  { %s1645_s12 = smov 0   ;;  %s1647_s13 = smov 0  }
   0x3   :  { %s1649_s14 = smov 0   ;;  %s1651_s15 = smov 0  }
   0x4   :  { %s1653_s16 = smov 0   ;;  %s1655_s17 = smov 0  }
   0x5   :  { %s1657_s18 = smov 0   ;;  %s1659_s19 = smov 0  }
   0x6   :  { %s1661_s20 = smov 0  }
   0x7 LB: > { %s28_s21 = sadd.s32 1, %s1610_s17  ;;  %s31_s22 = sadd.s32 1, %s1614_s18  ;;  %s1622_s20 = sphi %s1661_s20, %s13_s20   ;;  %s1618_s19 = sphi %s1659_s19, %s2001_s19   ;;  %s1614_s18 = sphi %s1657_s18, %s2000_s18   ;;  %s1610_s17 = sphi %s1655_s17, %s1999_s17   ;;  %s1606_s16 = sphi %s1653_s16, %s1998_s16   ;;  %s1602_s15 = sphi %s1651_s15, %s1997_s15   ;;  %s1598_s14 = sphi %s1649_s14, %s1996_s14   ;;  %s1594_s13 = sphi %s1647_s13, %s1995_s13   ;;  %s1590_s12 = sphi %s1645_s12, %s1994_s12  }
   0x8   : > { %p29_p0 = scmp.ge.s32.totalorder %s28_s21, 5  ;;  %p87_p1 = scmp.ne.s32.totalorder %s1594_s13, %s1590_s12 }
   0x9   : > { %p88_p2 = scmp.eq.s32.totalorder %s1622_s20, 0  ;;  %s39_s23 = sadd.s32 1, %s1618_s19 }
   0xa   : > { %s2003_s22 = smov (!%p29_p0, %s31_s22), %s1614_s18  ;;  %s2005_s21 = smov (%p29_p0, %s28_s21), 0 }
   0xb   : > { %p33_p3 = scmp.ge.s32.totalorder %s2003_s22, 2  ;;  %p1697_p4 = por %p88_p2, %p87_p1 }
   0xc   : > { %s74_s25 = ssub.s32 %s1610_s17, %s2005_s21  ;;  %s80_s30 = sadd.s32 1, %s1594_s13 }
   0xd   : > { %s2007_s23 = smov (!%p33_p3, %s39_s23), %s1618_s19  ;;  %s2009_s22 = smov (%p33_p3, %s2003_s22), 0 }
   0xe   : > { %p41_p5 = scmp.ge.s32.totalorder %s2007_s23, 2  ;;  %s76_s26 = ssub.s32 %s1614_s18, %s2009_s22 }
   0xf   : > { %p1287_p7 = scmp.ge.s32.totalorder %s1622_s20, 20 }
  0x10   : > { %s2011_s23 = smov (%p41_p5, %s2007_s23), 0 }
  0x11   : > { %s73_s27 = ssub.s32 %s1618_s19, %s2011_s23 }
  0x12   : > { %s75_s28 = sor.u32 %s74_s25, %s73_s27  ;;  %171 = sbr.rel (%p1287_p7) target bundleno = 66 (0x42), region = 16 }
  0x13   : > { %s77_s29 = sor.u32 %s76_s26, %s75_s28 }
  0x14   : > { %p78_p6 = scmp.eq.s32.totalorder %s77_s29, 0 }
  0x16   : > { %s1716_s4 = scalar_select %p78_p6, %s1594_s13, %s80_s30  }
  0x17   : > { %191 = sbr.rel (!%p1697_p4) target bundleno = 66 (0x42), region = 24  ;;  %s193_s5 = sand.u32 (%p1697_p4), 1, %s1594_s13  }
  0x18   : > { %s1290_s6 = sshll.u32 (%p1697_p4), %s1614_s18, 1  ;;  %s1375_s7 = sshll.u32 (%p1697_p4), %s1610_s17, 8 }
  0x19   : > { %s199_s8 = sadd.s32 (%p1697_p4), %s1375_s7, %s1290_s6  ;;  %s1288_s9 = sshll.u32 (%p1697_p4), %s193_s5, 9 }
  0x1a   : > { %s1377_s10 = smul.u32 (%p1697_p4), 1280, %s1618_s19  ;;  %s1993_s1 = sld [smem:[#allocation4_spill]] (%p1697_p4) }
  0x1b   : > { %s1733_s24 = scalar_lea.vmem (%p1697_p4), [#allocation3], %s1288_s9 }
  0x1c   : > { %s201_s11 = sadd.s32 %s1377_s10, %s199_s8 }
  0x1d   : > { %s1292_s25 = sshll.u32 %s201_s11, 2 }
  0x20   : > { %s1728_s28 = scalar_lea.vmem %s1993_s1, %s1292_s25 }
  0x21   : > { %v358_v0 = vld [vmem:[%s1728_s28] sm:$0xff]  ;;  %v360_v1 = vld [vmem:[%s1728_s28 + $0x10] sm:$0xff] }
  0x22   : > { %v362_v2 = vld [vmem:[%s1728_s28 + $0x20] sm:$0xff]  ;;  %359 = vst [vmem:[%s1733_s24] sm:$0xff] %v358_v0  ;;  %361 = vst [vmem:[%s1733_s24 + $0x8] sm:$0xff] %v360_v1  ;;  %v364_v3 = vld [vmem:[%s1728_s28 + $0x30] sm:$0xff] }
  0x23   : > { %363 = vst [vmem:[%s1733_s24 + $0x10] sm:$0xff] %v362_v2  ;;  %v366_v4 = vld [vmem:[%s1728_s28 + $0x40] sm:$0xff]  ;;  %v368_v5 = vld [vmem:[%s1728_s28 + $0x50] sm:$0xff]  ;;  %365 = vst [vmem:[%s1733_s24 + $0x18] sm:$0xff] %v364_v3 }
  0x24   : > { %367 = vst [vmem:[%s1733_s24 + $0x20] sm:$0xff] %v366_v4  ;;  %369 = vst [vmem:[%s1733_s24 + $0x28] sm:$0xff] %v368_v5  ;;  %v370_v6 = vld [vmem:[%s1728_s28 + $0x60] sm:$0xff]  ;;  %v372_v7 = vld [vmem:[%s1728_s28 + $0x70] sm:$0xff] }
  0x25   : > { %v374_v8 = vld [vmem:[%s1728_s28 + $0x80] sm:$0xff]  ;;  %371 = vst [vmem:[%s1733_s24 + $0x30] sm:$0xff] %v370_v6  ;;  %373 = vst [vmem:[%s1733_s24 + $0x38] sm:$0xff] %v372_v7  ;;  %v376_v9 = vld [vmem:[%s1728_s28 + $0x90] sm:$0xff] }
  0x26   : > { %375 = vst [vmem:[%s1733_s24 + $0x40] sm:$0xff] %v374_v8  ;;  %v378_v10 = vld [vmem:[%s1728_s28 + $0xa0] sm:$0xff]  ;;  %v380_v11 = vld [vmem:[%s1728_s28 + $0xb0] sm:$0xff]  ;;  %377 = vst [vmem:[%s1733_s24 + $0x48] sm:$0xff] %v376_v9 }
  0x27   : > { %379 = vst [vmem:[%s1733_s24 + $0x50] sm:$0xff] %v378_v10  ;;  %381 = vst [vmem:[%s1733_s24 + $0x58] sm:$0xff] %v380_v11  ;;  %v382_v12 = vld [vmem:[%s1728_s28 + $0xc0] sm:$0xff]  ;;  %v384_v13 = vld [vmem:[%s1728_s28 + $0xd0] sm:$0xff] }
  0x28   : > { %v386_v14 = vld [vmem:[%s1728_s28 + $0xe0] sm:$0xff]  ;;  %383 = vst [vmem:[%s1733_s24 + $0x60] sm:$0xff] %v382_v12  ;;  %385 = vst [vmem:[%s1733_s24 + $0x68] sm:$0xff] %v384_v13  ;;  %v388_v15 = vld [vmem:[%s1728_s28 + $0xf0] sm:$0xff] }
  0x29   : > { %387 = vst [vmem:[%s1733_s24 + $0x70] sm:$0xff] %v386_v14  ;;  %v390_v16 = vld [vmem:[%s1728_s28 + $0x100] sm:$0xff]  ;;  %v392_v17 = vld [vmem:[%s1728_s28 + $0x110] sm:$0xff]  ;;  %389 = vst [vmem:[%s1733_s24 + $0x78] sm:$0xff] %v388_v15 }
  0x2a   : > { %391 = vst [vmem:[%s1733_s24 + $0x80] sm:$0xff] %v390_v16  ;;  %393 = vst [vmem:[%s1733_s24 + $0x88] sm:$0xff] %v392_v17  ;;  %v394_v18 = vld [vmem:[%s1728_s28 + $0x120] sm:$0xff]  ;;  %v396_v19 = vld [vmem:[%s1728_s28 + $0x130] sm:$0xff] }
  0x2b   : > { %v398_v20 = vld [vmem:[%s1728_s28 + $0x140] sm:$0xff]  ;;  %395 = vst [vmem:[%s1733_s24 + $0x90] sm:$0xff] %v394_v18  ;;  %397 = vst [vmem:[%s1733_s24 + $0x98] sm:$0xff] %v396_v19  ;;  %v400_v21 = vld [vmem:[%s1728_s28 + $0x150] sm:$0xff] }
  0x2c   : > { %399 = vst [vmem:[%s1733_s24 + $0xa0] sm:$0xff] %v398_v20  ;;  %v402_v22 = vld [vmem:[%s1728_s28 + $0x160] sm:$0xff]  ;;  %v404_v23 = vld [vmem:[%s1728_s28 + $0x170] sm:$0xff]  ;;  %401 = vst [vmem:[%s1733_s24 + $0xa8] sm:$0xff] %v400_v21 }
  0x2d   : > { %403 = vst [vmem:[%s1733_s24 + $0xb0] sm:$0xff] %v402_v22  ;;  %405 = vst [vmem:[%s1733_s24 + $0xb8] sm:$0xff] %v404_v23  ;;  %v406_v24 = vld [vmem:[%s1728_s28 + $0x180] sm:$0xff]  ;;  %v408_v25 = vld [vmem:[%s1728_s28 + $0x190] sm:$0xff] }
  0x2e   : > { %v410_v26 = vld [vmem:[%s1728_s28 + $0x1a0] sm:$0xff]  ;;  %407 = vst [vmem:[%s1733_s24 + $0xc0] sm:$0xff] %v406_v24  ;;  %409 = vst [vmem:[%s1733_s24 + $0xc8] sm:$0xff] %v408_v25  ;;  %v412_v27 = vld [vmem:[%s1728_s28 + $0x1b0] sm:$0xff] }
  0x2f   : > { %411 = vst [vmem:[%s1733_s24 + $0xd0] sm:$0xff] %v410_v26  ;;  %v414_v28 = vld [vmem:[%s1728_s28 + $0x1c0] sm:$0xff]  ;;  %v416_v29 = vld [vmem:[%s1728_s28 + $0x1d0] sm:$0xff]  ;;  %413 = vst [vmem:[%s1733_s24 + $0xd8] sm:$0xff] %v412_v27 }
  0x30   : > { %415 = vst [vmem:[%s1733_s24 + $0xe0] sm:$0xff] %v414_v28  ;;  %417 = vst [vmem:[%s1733_s24 + $0xe8] sm:$0xff] %v416_v29  ;;  %v418_v30 = vld [vmem:[%s1728_s28 + $0x1e0] sm:$0xff]  ;;  %v420_v31 = vld [vmem:[%s1728_s28 + $0x1f0] sm:$0xff] }
  0x31   : > { %v422_v32 = vld [vmem:[%s1728_s28 + $0x200] sm:$0xff]  ;;  %419 = vst [vmem:[%s1733_s24 + $0xf0] sm:$0xff] %v418_v30  ;;  %421 = vst [vmem:[%s1733_s24 + $0xf8] sm:$0xff] %v420_v31  ;;  %v424_v33 = vld [vmem:[%s1728_s28 + $0x210] sm:$0xff] }
  0x32   : > { %423 = vst [vmem:[%s1733_s24 + $0x100] sm:$0xff] %v422_v32  ;;  %v426_v34 = vld [vmem:[%s1728_s28 + $0x220] sm:$0xff]  ;;  %v428_v35 = vld [vmem:[%s1728_s28 + $0x230] sm:$0xff]  ;;  %425 = vst [vmem:[%s1733_s24 + $0x108] sm:$0xff] %v424_v33 }
  0x33   : > { %427 = vst [vmem:[%s1733_s24 + $0x110] sm:$0xff] %v426_v34  ;;  %429 = vst [vmem:[%s1733_s24 + $0x118] sm:$0xff] %v428_v35  ;;  %v430_v36 = vld [vmem:[%s1728_s28 + $0x240] sm:$0xff]  ;;  %v432_v37 = vld [vmem:[%s1728_s28 + $0x250] sm:$0xff] }
  0x34   : > { %v434_v38 = vld [vmem:[%s1728_s28 + $0x260] sm:$0xff]  ;;  %431 = vst [vmem:[%s1733_s24 + $0x120] sm:$0xff] %v430_v36  ;;  %433 = vst [vmem:[%s1733_s24 + $0x128] sm:$0xff] %v432_v37  ;;  %v436_v39 = vld [vmem:[%s1728_s28 + $0x270] sm:$0xff] }
  0x35   : > { %435 = vst [vmem:[%s1733_s24 + $0x130] sm:$0xff] %v434_v38  ;;  %v438_v40 = vld [vmem:[%s1728_s28 + $0x280] sm:$0xff]  ;;  %v440_v41 = vld [vmem:[%s1728_s28 + $0x290] sm:$0xff]  ;;  %437 = vst [vmem:[%s1733_s24 + $0x138] sm:$0xff] %v436_v39 }
  0x36   : > { %439 = vst [vmem:[%s1733_s24 + $0x140] sm:$0xff] %v438_v40  ;;  %441 = vst [vmem:[%s1733_s24 + $0x148] sm:$0xff] %v440_v41  ;;  %v442_v42 = vld [vmem:[%s1728_s28 + $0x2a0] sm:$0xff]  ;;  %v444_v43 = vld [vmem:[%s1728_s28 + $0x2b0] sm:$0xff] }
  0x37   : > { %v446_v44 = vld [vmem:[%s1728_s28 + $0x2c0] sm:$0xff]  ;;  %443 = vst [vmem:[%s1733_s24 + $0x150] sm:$0xff] %v442_v42  ;;  %445 = vst [vmem:[%s1733_s24 + $0x158] sm:$0xff] %v444_v43  ;;  %v448_v45 = vld [vmem:[%s1728_s28 + $0x2d0] sm:$0xff] }
  0x38   : > { %447 = vst [vmem:[%s1733_s24 + $0x160] sm:$0xff] %v446_v44  ;;  %v450_v46 = vld [vmem:[%s1728_s28 + $0x2e0] sm:$0xff]  ;;  %v452_v47 = vld [vmem:[%s1728_s28 + $0x2f0] sm:$0xff]  ;;  %449 = vst [vmem:[%s1733_s24 + $0x168] sm:$0xff] %v448_v45 }
  0x39   : > { %451 = vst [vmem:[%s1733_s24 + $0x170] sm:$0xff] %v450_v46  ;;  %453 = vst [vmem:[%s1733_s24 + $0x178] sm:$0xff] %v452_v47  ;;  %v454_v48 = vld [vmem:[%s1728_s28 + $0x300] sm:$0xff]  ;;  %v456_v49 = vld [vmem:[%s1728_s28 + $0x310] sm:$0xff] }
  0x3a   : > { %v458_v50 = vld [vmem:[%s1728_s28 + $0x320] sm:$0xff]  ;;  %455 = vst [vmem:[%s1733_s24 + $0x180] sm:$0xff] %v454_v48  ;;  %457 = vst [vmem:[%s1733_s24 + $0x188] sm:$0xff] %v456_v49  ;;  %v460_v51 = vld [vmem:[%s1728_s28 + $0x330] sm:$0xff] }
  0x3b   : > { %459 = vst [vmem:[%s1733_s24 + $0x190] sm:$0xff] %v458_v50  ;;  %v462_v52 = vld [vmem:[%s1728_s28 + $0x340] sm:$0xff]  ;;  %v464_v53 = vld [vmem:[%s1728_s28 + $0x350] sm:$0xff]  ;;  %461 = vst [vmem:[%s1733_s24 + $0x198] sm:$0xff] %v460_v51 }
  0x3c   : > { %463 = vst [vmem:[%s1733_s24 + $0x1a0] sm:$0xff] %v462_v52  ;;  %465 = vst [vmem:[%s1733_s24 + $0x1a8] sm:$0xff] %v464_v53  ;;  %v466_v54 = vld [vmem:[%s1728_s28 + $0x360] sm:$0xff]  ;;  %v468_v55 = vld [vmem:[%s1728_s28 + $0x370] sm:$0xff] }
  0x3d   : > { %v470_v56 = vld [vmem:[%s1728_s28 + $0x380] sm:$0xff]  ;;  %467 = vst [vmem:[%s1733_s24 + $0x1b0] sm:$0xff] %v466_v54  ;;  %469 = vst [vmem:[%s1733_s24 + $0x1b8] sm:$0xff] %v468_v55  ;;  %v472_v57 = vld [vmem:[%s1728_s28 + $0x390] sm:$0xff] }
  0x3e   : > { %471 = vst [vmem:[%s1733_s24 + $0x1c0] sm:$0xff] %v470_v56  ;;  %v474_v58 = vld [vmem:[%s1728_s28 + $0x3a0] sm:$0xff]  ;;  %v476_v59 = vld [vmem:[%s1728_s28 + $0x3b0] sm:$0xff]  ;;  %473 = vst [vmem:[%s1733_s24 + $0x1c8] sm:$0xff] %v472_v57 }
  0x3f   : > { %475 = vst [vmem:[%s1733_s24 + $0x1d0] sm:$0xff] %v474_v58  ;;  %477 = vst [vmem:[%s1733_s24 + $0x1d8] sm:$0xff] %v476_v59  ;;  %v478_v60 = vld [vmem:[%s1728_s28 + $0x3c0] sm:$0xff]  ;;  %v480_v61 = vld [vmem:[%s1728_s28 + $0x3d0] sm:$0xff] }
  0x40   : > { %v482_v62 = vld [vmem:[%s1728_s28 + $0x3e0] sm:$0xff]  ;;  %479 = vst [vmem:[%s1733_s24 + $0x1e0] sm:$0xff] %v478_v60  ;;  %481 = vst [vmem:[%s1733_s24 + $0x1e8] sm:$0xff] %v480_v61  ;;  %v484_v63 = vld [vmem:[%s1728_s28 + $0x3f0] sm:$0xff] }
  0x41   : > { %483 = vst [vmem:[%s1733_s24 + $0x1f0] sm:$0xff] %v482_v62  ;;  %485 = vst [vmem:[%s1733_s24 + $0x1f8] sm:$0xff] %v484_v63 }
  0x42 PF: > { %p1293_p8 = scmp.ge.s32.totalorder %s1622_s20, 1  ;;  %p502_p9 = scmp.lt.s32.totalorder %s1622_s20, 21 }
  0x44   : > { %p503_p10 = pnand %p1293_p8, %p502_p9 }
  0x45   : > { %s509_s29 = sand.u32 (!%p503_p10), 1, %s1590_s12   ;;  %s1295_s30 = sshll.u32 (!%p503_p10), %s1598_s14, 2 }
  0x46   : > { %506 = sbr.rel (%p503_p10) target bundleno = 365 (0x16d), region = 66  ;;  %s1294_s5 = sshll.u32 (!%p503_p10), %s509_s29, 9 }
  0x47   : > { %p562_p11 = scmp.lt.s32.totalorder (!%p503_p10), %s1606_s16, 1  ;;  %p566_p12 = scmp.lt.s32.totalorder (!%p503_p10), %s1295_s30, 19 }
  0x48   : > { %s1297_s7 = sshll.u32 (!%p503_p10), %s1602_s15, 1  ;;  %p1302_p0 = scmp.ne.s32.totalorder (!%p503_p10), %s1598_s14, 0 }
  0x49   : > { %p580_p13 = scmp.lt.s32.totalorder (!%p503_p10), %s1297_s7, 3 }
  0x4b   : > { %s2013_s16 = smov (!%p562_p11, %s1606_s16), 1  ;;  %s2015_s30 = smov (!%p566_p12, %s1295_s30), 19 }
  0x4c   : > { %s1378_s6 = smul.u32 20, %s2013_s16  ;;  %s1298_s26 = sshll.u32 %s2013_s16, 2 }
  0x4d   : > { %s2017_s7 = smov (!%p580_p13, %s1297_s7), 3  ;;  %603 = sbr.rel (%p1302_p0) target bundleno = 84 (0x54), region = 74 }
  0x4e   : > { %s571_s8 = sadd.s32 %s1378_s6, %s2015_s30  ;;  %s1872_s27 = sadd.s32 %s1298_s26, %s2017_s7 }
  0x4f   : > { %s1296_s9 = sshll.u32 %s571_s8, 2  ;;  %s584_s24 = scalar_lea.vmem %s1989_s2, %s1872_s27 }
  0x50   : > { %s1870_s25 = scalar_lea.vmem %s1987_s0, %s1296_s9  ;;  %s1301_s29 = sshll.u32 %s1872_s27, 2 }
  0x51   : > { %s1882_s30 = scalar_lea.vmem %s1990_s3, %s1301_s29  ;;  %s1884_s6 = scalar_lea.vmem [#allocation3], %s1294_s5 }
  0x52   : > { %v1624_v0 = vmov 0.0  }
  0x53   : > { %604 = vst [vmem:[#allocation2] sm:$0xff] %v1624_v0  ;;  %605 = vst [vmem:[#allocation2 + $0x8] sm:$0xff] %v1624_v0 }
  0x54 PF: > { %v1452_v1 = vld [vmem:[%s1884_s6 + $0x74] ss:$8 sps:$4 sm:$0xff]   ;;  %v1456_v3 = vld [vmem:[%s1884_s6 + $0x70] ss:$8 sps:$4 sm:$0xff]   ;;  %v1458_v5 = vld [vmem:[%s1884_s6 + $0x64] ss:$8 sps:$4 sm:$0xff]  }
  0x55   : > { %v1454_v2 = vld [vmem:[%s1884_s6 + $0x174] ss:$8 sps:$4 sm:$0xff]   ;;  %1008 = vmatprep.subr.bf16.mxu0 %v1452_v1  ;;  %v1457_v4 = vld [vmem:[%s1884_s6 + $0x170] ss:$8 sps:$4 sm:$0xff]   ;;  %v1460_v6 = vld [vmem:[%s1884_s6 + $0x164] ss:$8 sps:$4 sm:$0xff]  }
  0x56   : > { %1049 = vmatprep.subr.bf16.mxu1 %v1454_v2  ;;  %1009 = vmatpush1.bf16.msra.mxu0 %v1456_v3  ;;  %v1462_v7 = vld [vmem:[%s1884_s6 + $0x60] ss:$8 sps:$4 sm:$0xff]   ;;  %v1464_v9 = vld [vmem:[%s1884_s6 + $0x54] ss:$8 sps:$4 sm:$0xff]   ;;  %v1468_v11 = vld [vmem:[%s1884_s6 + $0x50] ss:$8 sps:$4 sm:$0xff]  }
  0x57   : > { %1050 = vmatpush1.bf16.msra.mxu1 %v1457_v4  ;;  %1010 = vmatprep.subr.bf16.mxu0 %v1458_v5  ;;  %v1463_v8 = vld [vmem:[%s1884_s6 + $0x160] ss:$8 sps:$4 sm:$0xff]   ;;  %v1466_v10 = vld [vmem:[%s1884_s6 + $0x154] ss:$8 sps:$4 sm:$0xff]   ;;  %v1469_v12 = vld [vmem:[%s1884_s6 + $0x150] ss:$8 sps:$4 sm:$0xff]  }
  0x58   : > { %1051 = vmatprep.subr.bf16.mxu1 %v1460_v6  ;;  %v1470_v13 = vld [vmem:[%s1884_s6 + $0x44] ss:$8 sps:$4 sm:$0xff]   ;;  %v1474_v15 = vld [vmem:[%s1884_s6 + $0x40] ss:$8 sps:$4 sm:$0xff]   ;;  %v1476_v17 = vld [vmem:[%s1884_s6 + $0x34] ss:$8 sps:$4 sm:$0xff]  }
  0x59   : > { %v1472_v14 = vld [vmem:[%s1884_s6 + $0x144] ss:$8 sps:$4 sm:$0xff]   ;;  %v1475_v16 = vld [vmem:[%s1884_s6 + $0x140] ss:$8 sps:$4 sm:$0xff]   ;;  %v1478_v18 = vld [vmem:[%s1884_s6 + $0x134] ss:$8 sps:$4 sm:$0xff]  }
  0x5a   : > { %1011 = vmatpush1.bf16.msra.mxu0 %v1462_v7  ;;  %v1480_v19 = vld [vmem:[%s1884_s6 + $0x30] ss:$8 sps:$4 sm:$0xff]   ;;  %v1482_v21 = vld [vmem:[%s1884_s6 + $0x24] ss:$8 sps:$4 sm:$0xff]   ;;  %v1486_v23 = vld [vmem:[%s1884_s6 + $0x20] ss:$8 sps:$4 sm:$0xff]  }
  0x5b   : > { %1052 = vmatpush1.bf16.msra.mxu1 %v1463_v8  ;;  %1012 = vmatprep.subr.bf16.mxu0 %v1464_v9  ;;  %v1481_v20 = vld [vmem:[%s1884_s6 + $0x130] ss:$8 sps:$4 sm:$0xff]   ;;  %v1484_v22 = vld [vmem:[%s1884_s6 + $0x124] ss:$8 sps:$4 sm:$0xff]   ;;  %v1487_v24 = vld [vmem:[%s1884_s6 + $0x120] ss:$8 sps:$4 sm:$0xff]  }
  0x5c   : > { %1053 = vmatprep.subr.bf16.mxu1 %v1466_v10  ;;  %v1488_v25 = vld [vmem:[%s1884_s6 + $0x14] ss:$8 sps:$4 sm:$0xff]   ;;  %v1492_v27 = vld [vmem:[%s1884_s6 + $0x10] ss:$8 sps:$4 sm:$0xff]   ;;  %v1494_v29 = vld [vmem:[%s1884_s6 + $0x4] ss:$8 sps:$4 sm:$0xff]  }
  0x5d   : > { %v1490_v26 = vld [vmem:[%s1884_s6 + $0x114] ss:$8 sps:$4 sm:$0xff]   ;;  %v1493_v28 = vld [vmem:[%s1884_s6 + $0x110] ss:$8 sps:$4 sm:$0xff]   ;;  %v1496_v30 = vld [vmem:[%s1884_s6 + $0x104] ss:$8 sps:$4 sm:$0xff]  }
  0x5e   : > { %1013 = vmatpush1.bf16.msra.mxu0 %v1468_v11  ;;  %v1498_v31 = vld [vmem:[%s1884_s6] ss:$8 sps:$4 sm:$0xff]   ;;  %v1500_v33 = vld [vmem:[%s1884_s6 + $0xf4] ss:$8 sps:$4 sm:$0xff]   ;;  %v1504_v35 = vld [vmem:[%s1884_s6 + $0xf0] ss:$8 sps:$4 sm:$0xff]  }
  0x5f   : > { %1054 = vmatpush1.bf16.msra.mxu1 %v1469_v12  ;;  %1014 = vmatprep.subr.bf16.mxu0 %v1470_v13  ;;  %v1499_v32 = vld [vmem:[%s1884_s6 + $0x100] ss:$8 sps:$4 sm:$0xff]   ;;  %v1502_v34 = vld [vmem:[%s1884_s6 + $0x1f4] ss:$8 sps:$4 sm:$0xff]   ;;  %v1505_v36 = vld [vmem:[%s1884_s6 + $0x1f0] ss:$8 sps:$4 sm:$0xff]  }
  0x60   : > { %1055 = vmatprep.subr.bf16.mxu1 %v1472_v14  ;;  %v1506_v37 = vld [vmem:[%s1884_s6 + $0xe4] ss:$8 sps:$4 sm:$0xff]   ;;  %v1510_v39 = vld [vmem:[%s1884_s6 + $0xe0] ss:$8 sps:$4 sm:$0xff]   ;;  %v1512_v41 = vld [vmem:[%s1884_s6 + $0xd4] ss:$8 sps:$4 sm:$0xff]  }
  0x61   : > { %v1508_v38 = vld [vmem:[%s1884_s6 + $0x1e4] ss:$8 sps:$4 sm:$0xff]   ;;  %v1511_v40 = vld [vmem:[%s1884_s6 + $0x1e0] ss:$8 sps:$4 sm:$0xff]   ;;  %v1514_v42 = vld [vmem:[%s1884_s6 + $0x1d4] ss:$8 sps:$4 sm:$0xff]  }
  0x62   : > { %1015 = vmatpush1.bf16.msra.mxu0 %v1474_v15  ;;  %v1516_v43 = vld [vmem:[%s1884_s6 + $0xd0] ss:$8 sps:$4 sm:$0xff]   ;;  %v1518_v45 = vld [vmem:[%s1884_s6 + $0xc4] ss:$8 sps:$4 sm:$0xff]   ;;  %v1522_v50 = vld [vmem:[%s1884_s6 + $0xc0] ss:$8 sps:$4 sm:$0xff]  }
  0x63   : > { %1056 = vmatpush1.bf16.msra.mxu1 %v1475_v16  ;;  %1016 = vmatprep.subr.bf16.mxu0 %v1476_v17  ;;  %v1517_v44 = vld [vmem:[%s1884_s6 + $0x1d0] ss:$8 sps:$4 sm:$0xff]   ;;  %v1520_v46 = vld [vmem:[%s1884_s6 + $0x1c4] ss:$8 sps:$4 sm:$0xff]   ;;  %v1523_v51 = vld [vmem:[%s1884_s6 + $0x1c0] ss:$8 sps:$4 sm:$0xff]  }
  0x64   : > { %1057 = vmatprep.subr.bf16.mxu1 %v1478_v18  ;;  %v606_v47 = vld [vmem:[%s1870_s25] sm:$0xff]  ;;  %v607_v49 = vld [vmem:[%s1870_s25 + $0x8] sm:$0xff]  ;;  %v1530_v57 = vld [vmem:[%s1884_s6 + $0xa4] ss:$8 sps:$4 sm:$0xff]   ;;  %p1371_p1 = scmp.ne.s32.totalorder %s1598_s14, 4 }
  0x65   : > { %v1304_v48 = vcombine.high %v606_v47, %v606_v47  ;;  %v1306_v52 = vcombine.high %v607_v49, %v607_v49  ;;  %v1524_v53 = vld [vmem:[%s1884_s6 + $0xb4] ss:$8 sps:$4 sm:$0xff]   ;;  %v1528_v55 = vld [vmem:[%s1884_s6 + $0xb0] ss:$8 sps:$4 sm:$0xff]   ;;  %v1532_v58 = vld [vmem:[%s1884_s6 + $0x1a4] ss:$8 sps:$4 sm:$0xff]   ;;  %v1303_v5 = vcombine.low %v606_v47, %v606_v47  ;;  %v1305_v6 = vcombine.low %v607_v49, %v607_v49 }
  0x66   : > { %1017 = vmatpush1.bf16.msra.mxu0 %v1480_v19  ;;  %v1526_v54 = vld [vmem:[%s1884_s6 + $0x1b4] ss:$8 sps:$4 sm:$0xff]   ;;  %v1529_v56 = vld [vmem:[%s1884_s6 + $0x1b0] ss:$8 sps:$4 sm:$0xff]   ;;  %v1534_v59 = vld [vmem:[%s1884_s6 + $0xa0] ss:$8 sps:$4 sm:$0xff]  }
  0x67   : > { %1058 = vmatpush1.bf16.msra.mxu1 %v1481_v20  ;;  %1018 = vmatprep.subr.bf16.mxu0 %v1482_v21  ;;  %v1535_v60 = vld [vmem:[%s1884_s6 + $0x1a0] ss:$8 sps:$4 sm:$0xff]   ;;  %v1536_v61 = vld [vmem:[%s1884_s6 + $0x94] ss:$8 sps:$4 sm:$0xff]   ;;  %v1540_v63 = vld [vmem:[%s1884_s6 + $0x90] ss:$8 sps:$4 sm:$0xff]  }
  0x68   : > { %1059 = vmatprep.subr.bf16.mxu1 %v1484_v22  ;;  %1040 = vmatprep.mubr.bf16.mxu0 %v1304_v48  ;;  %v1538_v62 = vld [vmem:[%s1884_s6 + $0x194] ss:$8 sps:$4 sm:$0xff]   ;;  %v1541_v0 = vld [vmem:[%s1884_s6 + $0x190] ss:$8 sps:$4 sm:$0xff]   ;;  %v1542_v1 = vld [vmem:[%s1884_s6 + $0x84] ss:$8 sps:$4 sm:$0xff]  }
  0x69   : > { %1081 = vmatprep.mubr.bf16.mxu1 %v1306_v52  ;;  %v1544_v2 = vld [vmem:[%s1884_s6 + $0x184] ss:$8 sps:$4 sm:$0xff]   ;;  %v1546_v3 = vld [vmem:[%s1884_s6 + $0x80] ss:$8 sps:$4 sm:$0xff]   ;;  %v608_v8 = vld [vmem:[#allocation2] sm:$0xff] }
  0x6a   : > { %1019 = vmatpush1.bf16.msra.mxu0 %v1486_v23  ;;  %v1547_v4 = vld [vmem:[%s1884_s6 + $0x180] ss:$8 sps:$4 sm:$0xff]   ;;  %v609_v12 = vld [vmem:[#allocation2 + $0x8] sm:$0xff] }
  0x6b   : > { %1060 = vmatpush1.bf16.msra.mxu1 %v1487_v24  ;;  %1020 = vmatprep.subr.bf16.mxu0 %v1488_v25 }
  0x6c   : > { %1061 = vmatprep.subr.bf16.mxu1 %v1490_v26 }
  0x6e   : > { %1021 = vmatpush1.bf16.msra.mxu0 %v1492_v27 }
  0x6f   : > { %1062 = vmatpush1.bf16.msra.mxu1 %v1493_v28  ;;  %1022 = vmatprep.subr.bf16.mxu0 %v1494_v29 }
  0x70   : > { %1063 = vmatprep.subr.bf16.mxu1 %v1496_v30 }
  0x72   : > { %1023 = vmatpush1.bf16.msra.mxu0 %v1498_v31 }
  0x73   : > { %1064 = vmatpush1.bf16.msra.mxu1 %v1499_v32  ;;  %1024 = vmatprep.subr.bf16.mxu0 %v1500_v33 }
  0x74   : > { %1065 = vmatprep.subr.bf16.mxu1 %v1502_v34 }
  0x76   : > { %1025 = vmatpush2.bf16.msra.mxu0 %v1504_v35 }
  0x77   : > { %1066 = vmatpush2.bf16.msra.mxu1 %v1505_v36  ;;  %1026 = vmatprep.subr.bf16.mxu0 %v1506_v37 }
  0x78   : > { %1067 = vmatprep.subr.bf16.mxu1 %v1508_v38 }
  0x7a   : > { %1027 = vmatpush2.bf16.msra.mxu0 %v1510_v39 }
  0x7b   : > { %1068 = vmatpush2.bf16.msra.mxu1 %v1511_v40  ;;  %1028 = vmatprep.subr.bf16.mxu0 %v1512_v41 }
  0x7c   : > { %1069 = vmatprep.subr.bf16.mxu1 %v1514_v42 }
  0x7e   : > { %1029 = vmatpush2.bf16.msra.mxu0 %v1516_v43 }
  0x7f   : > { %1070 = vmatpush2.bf16.msra.mxu1 %v1517_v44  ;;  %1030 = vmatprep.subr.bf16.mxu0 %v1518_v45 }
  0x80   : > { %1071 = vmatprep.subr.bf16.mxu1 %v1520_v46 }
  0x82   : > { %1031 = vmatpush2.bf16.msra.mxu0 %v1522_v50 }
  0x83   : > { %1072 = vmatpush2.bf16.msra.mxu1 %v1523_v51  ;;  %1032 = vmatprep.subr.bf16.mxu0 %v1524_v53 }
  0x84   : > { %1073 = vmatprep.subr.bf16.mxu1 %v1526_v54 }
  0x86   : > { %1033 = vmatpush2.bf16.msra.mxu0 %v1528_v55 }
  0x87   : > { %1074 = vmatpush2.bf16.msra.mxu1 %v1529_v56  ;;  %1034 = vmatprep.subr.bf16.mxu0 %v1530_v57 }
  0x88   : > { %1075 = vmatprep.subr.bf16.mxu1 %v1532_v58 }
  0x8a   : > { %1035 = vmatpush2.bf16.msra.mxu0 %v1534_v59 }
  0x8b   : > { %1076 = vmatpush2.bf16.msra.mxu1 %v1535_v60  ;;  %1036 = vmatprep.subr.bf16.mxu0 %v1536_v61 }
  0x8c   : > { %1077 = vmatprep.subr.bf16.mxu1 %v1538_v62 }
  0x8e   : > { %1037 = vmatpush2.bf16.msra.mxu0 %v1540_v63 }
  0x8f   : > { %1078 = vmatpush2.bf16.msra.mxu1 %v1541_v0  ;;  %1038 = vmatprep.subr.bf16.mxu0 %v1542_v1 }
  0x90   : > { %1079 = vmatprep.subr.bf16.mxu1 %v1544_v2 }
  0x92   : > { %1039 = vmatpush2.bf16.msra.mxu0 %v1546_v3 }
  0x93   : > { %1080 = vmatpush2.bf16.msra.mxu1 %v1547_v4 }
  0x95   : > { %1041 = vmatmul.mubr.bf16.vlgmr.msra.gmra.mxu0 %v1303_v5 }
  0x96   : > { %1082 = vmatmul.mubr.bf16.vlgmr.msra.gmra.mxu1 %v1305_v6 }
 0x155   : > { %v1042_v7 = vpop.f32.mrf.mxu0 }
 0x156   : > { %v1083_v9 = vpop.f32.mrf.mxu1 }
 0x157   : > { %v1084_v10 = vadd.f32 %v1083_v9, %v1042_v7  ;;  %v1044_v11 = vpop.f32.mrf.mxu0 }
 0x158   : > { %v1085_v13 = vpop.f32.mrf.mxu1 }
 0x159   : > { %v1090_v14 = vadd.f32 %v1084_v10, %v608_v8  ;;  %v1086_v15 = vadd.f32 %v1085_v13, %v1044_v11  ;;  %v1046_v16 = vpop.f32.mrf.mxu0  ;;  %1097 = sbr.rel (%p1371_p1) target bundleno = 365 (0x16d), region = 78 }
 0x15a   : > { %v1087_v17 = vpop.f32.mrf.mxu1 }
 0x15b   : > { %1092 = vst [vmem:[#allocation2] sm:$0xff] %v1090_v14  ;;  %v1091_v18 = vadd.f32 %v1086_v15, %v609_v12  ;;  %v1047_v19 = vpop.f32.mrf.mxu0 }
 0x15c   : > { %v1088_v20 = vpop.f32.mrf.mxu1 }
 0x15d   : > { %1093 = vst [vmem:[#allocation2 + $0x8] sm:$0xff] %v1091_v18 }
 0x15e   : > { %v1102_v21 = vlaneseq  ;;  %v1100_v23 = vld [vmem:[%s584_s24] sm:$0x3] }
 0x160   : > { %v1103_v22 = vshrl.u32 %v1102_v21, 7 }
 0x162   : > { %v1104_v24 = vsub.s32 0, %v1103_v22  ;;  %v1108_v25 = vsub.s32 1, %v1103_v22  ;;  %v1098_v26 = vld [vmem:[#allocation2] sm:$0xff] }
 0x164   : > { %v1099_v27 = vld [vmem:[#allocation2 + $0x8] sm:$0xff]  ;;  %v1105_v28 = vrot.slane %v1100_v23, %v1104_v24  ;;  %v1109_v29 = vrot.slane %v1100_v23, %v1108_v25 }
 0x166   : > { %v1112_v30 = vadd.f32 %v1105_v28, %v1098_v26  ;;  %v1113_v31 = vadd.f32 %v1109_v29, %v1099_v27 }
 0x168   : > { %v1114_v32 = vmax.f32 %v1112_v30, 0.0  ;;  %v1115_v33 = vmax.f32 %v1113_v31, 0.0 }
 0x16a   : > { %v1376_v34 = vpack.c.bf16 %v1115_v33, %v1114_v32 }
 0x16c   : > { %1124 = vst [vmem:[%s1882_s30] sm:$0xff] %v1376_v34 }
 0x16d PF: > { %s13_s20 = sadd.s32 1, %s1622_s20   ;;  %s1994_s12 = smov %s1594_s13 }
 0x16e   : > { %p10_p2 = scmp.ge.s32.totalorder %s13_s20, 22   ;;  %s1995_s13 = smov %s1716_s4 }
 0x16f   : > { %s1996_s14 = smov %s1610_s17  ;;  %s1997_s15 = smov %s1614_s18 }
 0x170   : > { %s1998_s16 = smov %s1618_s19  ;;  %s1999_s17 = smov %s2005_s21 }
 0x171   : > { %s2000_s18 = smov %s2009_s22  ;;  %s2001_s19 = smov %s2011_s23 }
 0x172   :  { %12 = sbr.rel (!%p10_p2) target bundleno = 7 (0x7), region = 119 }

// kernel: _pe_h_network.36
= control target key start
LH: loop header
LB: loop body
LE: loop exit
PB: predicated region body
PF: predicated region fallthrough
CT: control target
= control target key end

     0   :  { %s1310_s12 = smov 0   ;;  %s1312_s13 = smov 0   ;;  %s1449_s0 = inlined_call_operand.vmem [shape: bf16[2,8,2560], index: 0, kind: input, shape index: {}]   ;;  %s1450_s1 = inlined_call_operand.vmem [shape: bf16[2,2560,256], index: 1, kind: input, shape index: {}]   ;;  %s1451_s2 = inlined_call_operand.vmem [shape: f32[2,1,256], index: 2, kind: input, shape index: {}]   ;;  %s1452_s3 = inlined_call_operand.vmem [shape: bf16[2,8,256], index: 3, kind: output, shape index: {}]  }
   0x1   :  { %s1314_s14 = smov 0   ;;  %s1316_s15 = smov 0  }
   0x2   :  { %s1318_s16 = smov 0  }
   0x3 LB: > { %s28_s17 = sadd.s32 1, %s1279_s14  ;;  %s39_s18 = sadd.s32 1, %s1283_s15  ;;  %s1287_s16 = sphi %s1318_s16, %s13_s16   ;;  %s1283_s15 = sphi %s1316_s15, %s1456_s15   ;;  %s1279_s14 = sphi %s1314_s14, %s1455_s14   ;;  %s1275_s13 = sphi %s1312_s13, %s1454_s13   ;;  %s1271_s12 = sphi %s1310_s12, %s1453_s12  }
   0x4   : > { %p29_p0 = scmp.ge.s32.totalorder %s28_s17, 5  ;;  %p1022_p1 = scmp.ge.s32.totalorder %s1287_s16, 1 }
   0x5   : > { %p221_p2 = scmp.lt.s32.totalorder %s1287_s16, 11 }
   0x6   : > { %s1458_s17 = smov (%p29_p0, %s28_s17), 0  ;;  %s1460_s18 = smov (!%p29_p0, %s39_s18), %s1283_s15 }
   0x7   : > { %p222_p3 = pnand %p1022_p1, %p221_p2  ;;  %p41_p4 = scmp.ge.s32.totalorder %s1460_s18, 2 }
   0x8   : > { %s1023_s19 = sshll.u32 (!%p222_p3), %s1271_s12, 2  ;;  %p284_p5 = scmp.lt.s32.totalorder (!%p222_p3), %s1275_s13, 1 }
   0x9   : > { %s1462_s18 = smov (%p41_p4, %s1460_s18), 0  ;;  %225 = sbr.rel (%p222_p3) target bundleno = 308 (0x134), region = 32 }
   0xa   : > { %p288_p6 = scmp.lt.s32.totalorder (!%p222_p3), %s1023_s19, 19  ;;  %s1025_s20 = sshll.u32 (!%p222_p3), %s1271_s12, 6 }
   0xb   : > { %p301_p7 = scmp.lt.s32.totalorder (!%p222_p3), %s1025_s20, 319  ;;  %p1031_p8 = scmp.ne.s32.totalorder (!%p222_p3), %s1271_s12, 0 }
   0xe   : > { %s1464_s13 = smov (!%p284_p5, %s1275_s13), 1  ;;  %s1466_s19 = smov (!%p288_p6, %s1023_s19), 19 }
   0xf   : > { %s1106_s21 = smul.u32 20, %s1464_s13  ;;  %s1028_s23 = sshll.u32 %s1464_s13, 1 }
  0x10   : > { %s1107_s22 = smul.u32 640, %s1464_s13  ;;  %s1347_s27 = scalar_lea.vmem %s1451_s2, %s1028_s23 }
  0x11   : > { %s293_s24 = sadd.s32 %s1106_s21, %s1466_s19  ;;  %s1104_s29 = sshll.u32 %s1464_s13, 3 }
  0x12   : > { %s1024_s28 = sshll.u32 %s293_s24, 2  ;;  %s1357_s8 = scalar_lea.vmem %s1452_s3, %s1104_s29 }
  0x13   : > { %s1352_s5 = scalar_lea.vmem %s1449_s0, %s1024_s28  ;;  %s1468_s20 = smov (!%p301_p7, %s1025_s20), 319 }
  0x14   : > { %s1026_s9 = sshll.u32 %s1468_s20, 1  ;;  %339 = sbr.rel (%p1031_p8) target bundleno = 27 (0x1b), region = 36 }
  0x15   : > { %s308_s10 = sadd.s32 %s1107_s22, %s1026_s9 }
  0x16   : > { %s1027_s11 = sshll.u32 %s308_s10, 2 }
  0x17   : > { %s1362_s23 = scalar_lea.vmem %s1450_s1, %s1027_s11 }
  0x19   : > { %v1289_v0 = vmov 0.0  }
  0x1a   : > { %340 = vst [vmem:[#allocation2] sm:$0xff] %v1289_v0  ;;  %341 = vst [vmem:[#allocation2 + $0x8] sm:$0xff] %v1289_v0 }
  0x1b PF: > { %v1149_v1 = vld [vmem:[%s1362_s23 + $0x74] ss:$8 sps:$4 sm:$0xff]   ;;  %v1153_v3 = vld [vmem:[%s1362_s23 + $0x70] ss:$8 sps:$4 sm:$0xff]   ;;  %v1155_v5 = vld [vmem:[%s1362_s23 + $0x64] ss:$8 sps:$4 sm:$0xff]  }
  0x1c   : > { %v1151_v2 = vld [vmem:[%s1362_s23 + $0x174] ss:$8 sps:$4 sm:$0xff]   ;;  %744 = vmatprep.subr.bf16.mxu0 %v1149_v1  ;;  %v1154_v4 = vld [vmem:[%s1362_s23 + $0x170] ss:$8 sps:$4 sm:$0xff]   ;;  %v1157_v6 = vld [vmem:[%s1362_s23 + $0x164] ss:$8 sps:$4 sm:$0xff]  }
  0x1d   : > { %785 = vmatprep.subr.bf16.mxu1 %v1151_v2  ;;  %745 = vmatpush1.bf16.msra.mxu0 %v1153_v3  ;;  %v1159_v7 = vld [vmem:[%s1362_s23 + $0x60] ss:$8 sps:$4 sm:$0xff]   ;;  %v1161_v9 = vld [vmem:[%s1362_s23 + $0x54] ss:$8 sps:$4 sm:$0xff]   ;;  %v1165_v11 = vld [vmem:[%s1362_s23 + $0x50] ss:$8 sps:$4 sm:$0xff]  }
  0x1e   : > { %786 = vmatpush1.bf16.msra.mxu1 %v1154_v4  ;;  %746 = vmatprep.subr.bf16.mxu0 %v1155_v5  ;;  %v1160_v8 = vld [vmem:[%s1362_s23 + $0x160] ss:$8 sps:$4 sm:$0xff]   ;;  %v1163_v10 = vld [vmem:[%s1362_s23 + $0x154] ss:$8 sps:$4 sm:$0xff]   ;;  %v1166_v12 = vld [vmem:[%s1362_s23 + $0x150] ss:$8 sps:$4 sm:$0xff]  }
  0x1f   : > { %787 = vmatprep.subr.bf16.mxu1 %v1157_v6  ;;  %v1167_v13 = vld [vmem:[%s1362_s23 + $0x44] ss:$8 sps:$4 sm:$0xff]   ;;  %v1171_v15 = vld [vmem:[%s1362_s23 + $0x40] ss:$8 sps:$4 sm:$0xff]   ;;  %v1173_v17 = vld [vmem:[%s1362_s23 + $0x34] ss:$8 sps:$4 sm:$0xff]  }
  0x20   : > { %v1169_v14 = vld [vmem:[%s1362_s23 + $0x144] ss:$8 sps:$4 sm:$0xff]   ;;  %v1172_v16 = vld [vmem:[%s1362_s23 + $0x140] ss:$8 sps:$4 sm:$0xff]   ;;  %v1175_v18 = vld [vmem:[%s1362_s23 + $0x134] ss:$8 sps:$4 sm:$0xff]  }
  0x21   : > { %747 = vmatpush1.bf16.msra.mxu0 %v1159_v7  ;;  %v1177_v19 = vld [vmem:[%s1362_s23 + $0x30] ss:$8 sps:$4 sm:$0xff]   ;;  %v1179_v21 = vld [vmem:[%s1362_s23 + $0x24] ss:$8 sps:$4 sm:$0xff]   ;;  %v1183_v23 = vld [vmem:[%s1362_s23 + $0x20] ss:$8 sps:$4 sm:$0xff]  }
  0x22   : > { %788 = vmatpush1.bf16.msra.mxu1 %v1160_v8  ;;  %748 = vmatprep.subr.bf16.mxu0 %v1161_v9  ;;  %v1178_v20 = vld [vmem:[%s1362_s23 + $0x130] ss:$8 sps:$4 sm:$0xff]   ;;  %v1181_v22 = vld [vmem:[%s1362_s23 + $0x124] ss:$8 sps:$4 sm:$0xff]   ;;  %v1184_v24 = vld [vmem:[%s1362_s23 + $0x120] ss:$8 sps:$4 sm:$0xff]  }
  0x23   : > { %789 = vmatprep.subr.bf16.mxu1 %v1163_v10  ;;  %v1185_v25 = vld [vmem:[%s1362_s23 + $0x14] ss:$8 sps:$4 sm:$0xff]   ;;  %v1189_v27 = vld [vmem:[%s1362_s23 + $0x10] ss:$8 sps:$4 sm:$0xff]   ;;  %v1191_v29 = vld [vmem:[%s1362_s23 + $0x4] ss:$8 sps:$4 sm:$0xff]  }
  0x24   : > { %v1187_v26 = vld [vmem:[%s1362_s23 + $0x114] ss:$8 sps:$4 sm:$0xff]   ;;  %v1190_v28 = vld [vmem:[%s1362_s23 + $0x110] ss:$8 sps:$4 sm:$0xff]   ;;  %v1193_v30 = vld [vmem:[%s1362_s23 + $0x104] ss:$8 sps:$4 sm:$0xff]  }
  0x25   : > { %749 = vmatpush1.bf16.msra.mxu0 %v1165_v11  ;;  %v1195_v31 = vld [vmem:[%s1362_s23] ss:$8 sps:$4 sm:$0xff]   ;;  %v1197_v33 = vld [vmem:[%s1362_s23 + $0xf4] ss:$8 sps:$4 sm:$0xff]   ;;  %v1201_v35 = vld [vmem:[%s1362_s23 + $0xf0] ss:$8 sps:$4 sm:$0xff]  }
  0x26   : > { %790 = vmatpush1.bf16.msra.mxu1 %v1166_v12  ;;  %750 = vmatprep.subr.bf16.mxu0 %v1167_v13  ;;  %v1196_v32 = vld [vmem:[%s1362_s23 + $0x100] ss:$8 sps:$4 sm:$0xff]   ;;  %v1199_v34 = vld [vmem:[%s1362_s23 + $0x1f4] ss:$8 sps:$4 sm:$0xff]   ;;  %v1202_v36 = vld [vmem:[%s1362_s23 + $0x1f0] ss:$8 sps:$4 sm:$0xff]  }
  0x27   : > { %791 = vmatprep.subr.bf16.mxu1 %v1169_v14  ;;  %v1203_v37 = vld [vmem:[%s1362_s23 + $0xe4] ss:$8 sps:$4 sm:$0xff]   ;;  %v1207_v39 = vld [vmem:[%s1362_s23 + $0xe0] ss:$8 sps:$4 sm:$0xff]   ;;  %v1209_v41 = vld [vmem:[%s1362_s23 + $0xd4] ss:$8 sps:$4 sm:$0xff]  }
  0x28   : > { %v1205_v38 = vld [vmem:[%s1362_s23 + $0x1e4] ss:$8 sps:$4 sm:$0xff]   ;;  %v1208_v40 = vld [vmem:[%s1362_s23 + $0x1e0] ss:$8 sps:$4 sm:$0xff]   ;;  %v1211_v42 = vld [vmem:[%s1362_s23 + $0x1d4] ss:$8 sps:$4 sm:$0xff]  }
  0x29   : > { %751 = vmatpush1.bf16.msra.mxu0 %v1171_v15  ;;  %v1213_v43 = vld [vmem:[%s1362_s23 + $0xd0] ss:$8 sps:$4 sm:$0xff]   ;;  %v1215_v45 = vld [vmem:[%s1362_s23 + $0xc4] ss:$8 sps:$4 sm:$0xff]   ;;  %v1219_v50 = vld [vmem:[%s1362_s23 + $0xc0] ss:$8 sps:$4 sm:$0xff]  }
  0x2a   : > { %792 = vmatpush1.bf16.msra.mxu1 %v1172_v16  ;;  %752 = vmatprep.subr.bf16.mxu0 %v1173_v17  ;;  %v1214_v44 = vld [vmem:[%s1362_s23 + $0x1d0] ss:$8 sps:$4 sm:$0xff]   ;;  %v1217_v46 = vld [vmem:[%s1362_s23 + $0x1c4] ss:$8 sps:$4 sm:$0xff]   ;;  %v1220_v51 = vld [vmem:[%s1362_s23 + $0x1c0] ss:$8 sps:$4 sm:$0xff]  }
  0x2b   : > { %793 = vmatprep.subr.bf16.mxu1 %v1175_v18  ;;  %v342_v47 = vld [vmem:[%s1352_s5] sm:$0xff]  ;;  %v343_v49 = vld [vmem:[%s1352_s5 + $0x8] sm:$0xff]  ;;  %v1221_v53 = vld [vmem:[%s1362_s23 + $0xb4] ss:$8 sps:$4 sm:$0xff]   ;;  %p1100_p9 = scmp.ne.s32.totalorder %s1271_s12, 4 }
  0x2c   : > { %v1033_v48 = vcombine.high %v342_v47, %v342_v47  ;;  %v1035_v52 = vcombine.high %v343_v49, %v343_v49  ;;  %v1223_v54 = vld [vmem:[%s1362_s23 + $0x1b4] ss:$8 sps:$4 sm:$0xff]   ;;  %v1225_v55 = vld [vmem:[%s1362_s23 + $0xb0] ss:$8 sps:$4 sm:$0xff]   ;;  %v1227_v57 = vld [vmem:[%s1362_s23 + $0xa4] ss:$8 sps:$4 sm:$0xff]   ;;  %v1032_v5 = vcombine.low %v342_v47, %v342_v47  ;;  %v1034_v6 = vcombine.low %v343_v49, %v343_v49 }
  0x2d   : > { %753 = vmatpush1.bf16.msra.mxu0 %v1177_v19  ;;  %v1226_v56 = vld [vmem:[%s1362_s23 + $0x1b0] ss:$8 sps:$4 sm:$0xff]   ;;  %v1229_v58 = vld [vmem:[%s1362_s23 + $0x1a4] ss:$8 sps:$4 sm:$0xff]   ;;  %v1231_v59 = vld [vmem:[%s1362_s23 + $0xa0] ss:$8 sps:$4 sm:$0xff]  }
  0x2e   : > { %794 = vmatpush1.bf16.msra.mxu1 %v1178_v20  ;;  %754 = vmatprep.subr.bf16.mxu0 %v1179_v21  ;;  %v1232_v60 = vld [vmem:[%s1362_s23 + $0x1a0] ss:$8 sps:$4 sm:$0xff]   ;;  %v1233_v61 = vld [vmem:[%s1362_s23 + $0x94] ss:$8 sps:$4 sm:$0xff]   ;;  %v1237_v63 = vld [vmem:[%s1362_s23 + $0x90] ss:$8 sps:$4 sm:$0xff]  }
  0x2f   : > { %795 = vmatprep.subr.bf16.mxu1 %v1181_v22  ;;  %776 = vmatprep.mubr.bf16.mxu0 %v1033_v48  ;;  %v1235_v62 = vld [vmem:[%s1362_s23 + $0x194] ss:$8 sps:$4 sm:$0xff]   ;;  %v1238_v0 = vld [vmem:[%s1362_s23 + $0x190] ss:$8 sps:$4 sm:$0xff]   ;;  %v1239_v1 = vld [vmem:[%s1362_s23 + $0x84] ss:$8 sps:$4 sm:$0xff]  }
  0x30   : > { %817 = vmatprep.mubr.bf16.mxu1 %v1035_v52  ;;  %v1241_v2 = vld [vmem:[%s1362_s23 + $0x184] ss:$8 sps:$4 sm:$0xff]   ;;  %v1243_v3 = vld [vmem:[%s1362_s23 + $0x80] ss:$8 sps:$4 sm:$0xff]  }
  0x31   : > { %755 = vmatpush1.bf16.msra.mxu0 %v1183_v23  ;;  %v1244_v4 = vld [vmem:[%s1362_s23 + $0x180] ss:$8 sps:$4 sm:$0xff]  }
  0x32   : > { %796 = vmatpush1.bf16.msra.mxu1 %v1184_v24  ;;  %756 = vmatprep.subr.bf16.mxu0 %v1185_v25  ;;  %v344_v8 = vld [vmem:[#allocation2] sm:$0xff]  ;;  %v345_v12 = vld [vmem:[#allocation2 + $0x8] sm:$0xff] }
  0x33   : > { %797 = vmatprep.subr.bf16.mxu1 %v1187_v26 }
  0x35   : > { %757 = vmatpush1.bf16.msra.mxu0 %v1189_v27 }
  0x36   : > { %798 = vmatpush1.bf16.msra.mxu1 %v1190_v28  ;;  %758 = vmatprep.subr.bf16.mxu0 %v1191_v29 }
  0x37   : > { %799 = vmatprep.subr.bf16.mxu1 %v1193_v30 }
  0x39   : > { %759 = vmatpush1.bf16.msra.mxu0 %v1195_v31 }
  0x3a   : > { %800 = vmatpush1.bf16.msra.mxu1 %v1196_v32  ;;  %760 = vmatprep.subr.bf16.mxu0 %v1197_v33 }
  0x3b   : > { %801 = vmatprep.subr.bf16.mxu1 %v1199_v34 }
  0x3d   : > { %761 = vmatpush2.bf16.msra.mxu0 %v1201_v35 }
  0x3e   : > { %802 = vmatpush2.bf16.msra.mxu1 %v1202_v36  ;;  %762 = vmatprep.subr.bf16.mxu0 %v1203_v37 }
  0x3f   : > { %803 = vmatprep.subr.bf16.mxu1 %v1205_v38 }
  0x41   : > { %763 = vmatpush2.bf16.msra.mxu0 %v1207_v39 }
  0x42   : > { %804 = vmatpush2.bf16.msra.mxu1 %v1208_v40  ;;  %764 = vmatprep.subr.bf16.mxu0 %v1209_v41 }
  0x43   : > { %805 = vmatprep.subr.bf16.mxu1 %v1211_v42 }
  0x45   : > { %765 = vmatpush2.bf16.msra.mxu0 %v1213_v43 }
  0x46   : > { %806 = vmatpush2.bf16.msra.mxu1 %v1214_v44  ;;  %766 = vmatprep.subr.bf16.mxu0 %v1215_v45 }
  0x47   : > { %807 = vmatprep.subr.bf16.mxu1 %v1217_v46 }
  0x49   : > { %767 = vmatpush2.bf16.msra.mxu0 %v1219_v50 }
  0x4a   : > { %808 = vmatpush2.bf16.msra.mxu1 %v1220_v51  ;;  %768 = vmatprep.subr.bf16.mxu0 %v1221_v53 }
  0x4b   : > { %809 = vmatprep.subr.bf16.mxu1 %v1223_v54 }
  0x4d   : > { %769 = vmatpush2.bf16.msra.mxu0 %v1225_v55 }
  0x4e   : > { %810 = vmatpush2.bf16.msra.mxu1 %v1226_v56  ;;  %770 = vmatprep.subr.bf16.mxu0 %v1227_v57 }
  0x4f   : > { %811 = vmatprep.subr.bf16.mxu1 %v1229_v58 }
  0x51   : > { %771 = vmatpush2.bf16.msra.mxu0 %v1231_v59 }
  0x52   : > { %812 = vmatpush2.bf16.msra.mxu1 %v1232_v60  ;;  %772 = vmatprep.subr.bf16.mxu0 %v1233_v61 }
  0x53   : > { %813 = vmatprep.subr.bf16.mxu1 %v1235_v62 }
  0x55   : > { %773 = vmatpush2.bf16.msra.mxu0 %v1237_v63 }
  0x56   : > { %814 = vmatpush2.bf16.msra.mxu1 %v1238_v0  ;;  %774 = vmatprep.subr.bf16.mxu0 %v1239_v1 }
  0x57   : > { %815 = vmatprep.subr.bf16.mxu1 %v1241_v2 }
  0x59   : > { %775 = vmatpush2.bf16.msra.mxu0 %v1243_v3 }
  0x5a   : > { %816 = vmatpush2.bf16.msra.mxu1 %v1244_v4 }
  0x5c   : > { %777 = vmatmul.mubr.bf16.vlgmr.msra.gmra.mxu0 %v1032_v5 }
  0x5d   : > { %818 = vmatmul.mubr.bf16.vlgmr.msra.gmra.mxu1 %v1034_v6 }
 0x11c   : > { %v778_v7 = vpop.f32.mrf.mxu0 }
 0x11d   : > { %v819_v9 = vpop.f32.mrf.mxu1 }
 0x11e   : > { %v820_v10 = vadd.f32 %v819_v9, %v778_v7  ;;  %v780_v11 = vpop.f32.mrf.mxu0 }
 0x11f   : > { %v821_v13 = vpop.f32.mrf.mxu1 }
 0x120   : > { %v826_v14 = vadd.f32 %v820_v10, %v344_v8  ;;  %v822_v15 = vadd.f32 %v821_v13, %v780_v11  ;;  %v782_v16 = vpop.f32.mrf.mxu0  ;;  %833 = sbr.rel (%p1100_p9) target bundleno = 308 (0x134), region = 40 }
 0x121   : > { %v823_v17 = vpop.f32.mrf.mxu1 }
 0x122   : > { %828 = vst [vmem:[#allocation2] sm:$0xff] %v826_v14  ;;  %v827_v18 = vadd.f32 %v822_v15, %v345_v12  ;;  %v783_v19 = vpop.f32.mrf.mxu0 }
 0x123   : > { %v824_v20 = vpop.f32.mrf.mxu1 }
 0x124   : > { %829 = vst [vmem:[#allocation2 + $0x8] sm:$0xff] %v827_v18 }
 0x125   : > { %v838_v21 = vlaneseq  ;;  %v836_v23 = vld [vmem:[%s1347_s27] sm:$0x3] }
 0x127   : > { %v839_v22 = vshrl.u32 %v838_v21, 7 }
 0x129   : > { %v840_v24 = vsub.s32 0, %v839_v22  ;;  %v844_v25 = vsub.s32 1, %v839_v22  ;;  %v834_v26 = vld [vmem:[#allocation2] sm:$0xff] }
 0x12b   : > { %v835_v27 = vld [vmem:[#allocation2 + $0x8] sm:$0xff]  ;;  %v841_v28 = vrot.slane %v836_v23, %v840_v24  ;;  %v845_v29 = vrot.slane %v836_v23, %v844_v25 }
 0x12d   : > { %v848_v30 = vadd.f32 %v841_v28, %v834_v26  ;;  %v849_v31 = vadd.f32 %v845_v29, %v835_v27 }
 0x12f   : > { %v850_v32 = vmax.f32 %v848_v30, 0.0  ;;  %v851_v33 = vmax.f32 %v849_v31, 0.0 }
 0x131   : > { %v1105_v34 = vpack.c.bf16 %v851_v33, %v850_v32 }
 0x133   : > { %860 = vst [vmem:[%s1357_s8] sm:$0xff] %v1105_v34 }
 0x134 PF: > { %s13_s16 = sadd.s32 1, %s1287_s16   ;;  %s1453_s12 = smov %s1279_s14 }
 0x135   : > { %p10_p10 = scmp.ge.s32.totalorder %s13_s16, 12   ;;  %s1454_s13 = smov %s1283_s15 }
 0x136   : > { %s1455_s14 = smov %s1458_s17  ;;  %s1456_s15 = smov %s1462_s18 }
 0x137   :  { %12 = sbr.rel (!%p10_p10) target bundleno = 3 (0x3), region = 76 }

// kernel: _pe_h_network.39
= control target key start
LH: loop header
LB: loop body
LE: loop exit
PB: predicated region body
PF: predicated region fallthrough
CT: control target
= control target key end

     0   :  { %s1147_s12 = smov 0   ;;  %s1149_s13 = smov 0   ;;  %s1349_s0 = inlined_call_operand.vmem [shape: bf16[2,8,256], index: 0, kind: input, shape index: {}]   ;;  %s1350_s1 = inlined_call_operand.vmem [shape: bf16[2,256,512], index: 1, kind: input, shape index: {}]   ;;  %s1351_s2 = inlined_call_operand.vmem [shape: f32[2,1,512], index: 2, kind: input, shape index: {}]   ;;  %s1352_s3 = inlined_call_operand.vmem [shape: bf16[2,8,512], index: 3, kind: output, shape index: {}]  }
   0x1   :  { %s1151_s14 = smov 0   ;;  %s1153_s15 = smov 0  }
   0x2   :  { %s1155_s16 = smov 0   ;;  %s1157_s17 = smov 0  }
   0x3   :  { %s1159_s18 = smov 0  }
   0x4 LB: > { %s31_s19 = sadd.s32 1, %s1117_s16  ;;  %s39_s20 = sadd.s32 1, %s1121_s17  ;;  %s1125_s18 = sphi %s1159_s18, %s13_s18   ;;  %s1121_s17 = sphi %s1157_s17, %s1358_s17   ;;  %s1117_s16 = sphi %s1155_s16, %s1357_s16   ;;  %s1113_s15 = sphi %s1153_s15, %s1356_s15   ;;  %s1109_s14 = sphi %s1151_s14, %s1355_s14   ;;  %s1105_s13 = sphi %s1149_s13, %s1354_s13   ;;  %s1101_s12 = sphi %s1147_s12, %s1353_s12  }
   0x5   : > { %p33_p0 = scmp.ge.s32.totalorder %s31_s19, 2  ;;  %p87_p1 = scmp.ne.s32.totalorder %s1105_s13, %s1101_s12 }
   0x6   : > { %p88_p2 = scmp.eq.s32.totalorder %s1125_s18, 0  ;;  %s80_s24 = sadd.s32 1, %s1105_s13 }
   0x7   : > { %s1360_s19 = smov (%p33_p0, %s31_s19), 0  ;;  %s1362_s20 = smov (!%p33_p0, %s39_s20), %s1121_s17 }
   0x8   : > { %p89_p3 = por %p88_p2, %p87_p1  ;;  %p41_p4 = scmp.ge.s32.totalorder %s1362_s20, 2 }
   0x9   : > { %s76_s21 = ssub.s32 %s1117_s16, %s1360_s19  ;;  %p912_p6 = scmp.ge.s32.totalorder %s1125_s18, 4 }
   0xa   : > { %s1364_s20 = smov (%p41_p4, %s1362_s20), 0 }
   0xb   : > { %s73_s22 = ssub.s32 %s1121_s17, %s1364_s20  ;;  %171 = sbr.rel (%p912_p6) target bundleno = 39 (0x27), region = 16 }
   0xc   : > { %s77_s23 = sor.u32 %s76_s21, %s73_s22 }
   0xd   : > { %p78_p5 = scmp.eq.s32.totalorder %s77_s23, 0 }
   0xf   : > { %s1198_s25 = scalar_select %p78_p5, %s1105_s13, %s80_s24  }
  0x10   : > { %191 = sbr.rel (!%p89_p3) target bundleno = 39 (0x27), region = 24  ;;  %s193_s26 = sand.u32 (%p89_p3), 1, %s1105_s13  }
  0x11   : > { %s914_s27 = sshll.u32 (%p89_p3), %s1117_s16, 1  ;;  %s913_s28 = sshll.u32 (%p89_p3), %s193_s26, 8 }
  0x12   : > { %s915_s29 = sshll.u32 (%p89_p3), %s1121_s17, 7  ;;  %s1212_s8 = scalar_lea.vmem (%p89_p3), [#allocation3], %s913_s28 }
  0x13   : > { %s201_s30 = sadd.s32 (%p89_p3), %s915_s29, %s914_s27 }
  0x14   : > { %s916_s4 = sshll.u32 (%p89_p3), %s201_s30, 2 }
  0x15   : > { %s1207_s7 = scalar_lea.vmem %s1350_s1, %s916_s4 }
  0x16   : > { %v294_v0 = vld [vmem:[%s1207_s7] sm:$0xff]  ;;  %v296_v1 = vld [vmem:[%s1207_s7 + $0x10] sm:$0xff] }
  0x17   : > { %v298_v2 = vld [vmem:[%s1207_s7 + $0x20] sm:$0xff]  ;;  %295 = vst [vmem:[%s1212_s8] sm:$0xff] %v294_v0  ;;  %297 = vst [vmem:[%s1212_s8 + $0x8] sm:$0xff] %v296_v1  ;;  %v300_v3 = vld [vmem:[%s1207_s7 + $0x30] sm:$0xff] }
  0x18   : > { %299 = vst [vmem:[%s1212_s8 + $0x10] sm:$0xff] %v298_v2  ;;  %v302_v4 = vld [vmem:[%s1207_s7 + $0x40] sm:$0xff]  ;;  %v304_v5 = vld [vmem:[%s1207_s7 + $0x50] sm:$0xff]  ;;  %301 = vst [vmem:[%s1212_s8 + $0x18] sm:$0xff] %v300_v3 }
  0x19   : > { %303 = vst [vmem:[%s1212_s8 + $0x20] sm:$0xff] %v302_v4  ;;  %305 = vst [vmem:[%s1212_s8 + $0x28] sm:$0xff] %v304_v5  ;;  %v306_v6 = vld [vmem:[%s1207_s7 + $0x60] sm:$0xff]  ;;  %v308_v7 = vld [vmem:[%s1207_s7 + $0x70] sm:$0xff] }
  0x1a   : > { %v310_v8 = vld [vmem:[%s1207_s7 + $0x80] sm:$0xff]  ;;  %307 = vst [vmem:[%s1212_s8 + $0x30] sm:$0xff] %v306_v6  ;;  %309 = vst [vmem:[%s1212_s8 + $0x38] sm:$0xff] %v308_v7  ;;  %v312_v9 = vld [vmem:[%s1207_s7 + $0x90] sm:$0xff] }
  0x1b   : > { %311 = vst [vmem:[%s1212_s8 + $0x40] sm:$0xff] %v310_v8  ;;  %v314_v10 = vld [vmem:[%s1207_s7 + $0xa0] sm:$0xff]  ;;  %v316_v11 = vld [vmem:[%s1207_s7 + $0xb0] sm:$0xff]  ;;  %313 = vst [vmem:[%s1212_s8 + $0x48] sm:$0xff] %v312_v9 }
  0x1c   : > { %315 = vst [vmem:[%s1212_s8 + $0x50] sm:$0xff] %v314_v10  ;;  %317 = vst [vmem:[%s1212_s8 + $0x58] sm:$0xff] %v316_v11  ;;  %v318_v12 = vld [vmem:[%s1207_s7 + $0xc0] sm:$0xff]  ;;  %v320_v13 = vld [vmem:[%s1207_s7 + $0xd0] sm:$0xff] }
  0x1d   : > { %v322_v14 = vld [vmem:[%s1207_s7 + $0xe0] sm:$0xff]  ;;  %319 = vst [vmem:[%s1212_s8 + $0x60] sm:$0xff] %v318_v12  ;;  %321 = vst [vmem:[%s1212_s8 + $0x68] sm:$0xff] %v320_v13  ;;  %v324_v15 = vld [vmem:[%s1207_s7 + $0xf0] sm:$0xff] }
  0x1e   : > { %323 = vst [vmem:[%s1212_s8 + $0x70] sm:$0xff] %v322_v14  ;;  %v326_v16 = vld [vmem:[%s1207_s7 + $0x100] sm:$0xff]  ;;  %v328_v17 = vld [vmem:[%s1207_s7 + $0x110] sm:$0xff]  ;;  %325 = vst [vmem:[%s1212_s8 + $0x78] sm:$0xff] %v324_v15 }
  0x1f   : > { %327 = vst [vmem:[%s1212_s8 + $0x80] sm:$0xff] %v326_v16  ;;  %329 = vst [vmem:[%s1212_s8 + $0x88] sm:$0xff] %v328_v17  ;;  %v330_v18 = vld [vmem:[%s1207_s7 + $0x120] sm:$0xff]  ;;  %v332_v19 = vld [vmem:[%s1207_s7 + $0x130] sm:$0xff] }
  0x20   : > { %v334_v20 = vld [vmem:[%s1207_s7 + $0x140] sm:$0xff]  ;;  %331 = vst [vmem:[%s1212_s8 + $0x90] sm:$0xff] %v330_v18  ;;  %333 = vst [vmem:[%s1212_s8 + $0x98] sm:$0xff] %v332_v19  ;;  %v336_v21 = vld [vmem:[%s1207_s7 + $0x150] sm:$0xff] }
  0x21   : > { %335 = vst [vmem:[%s1212_s8 + $0xa0] sm:$0xff] %v334_v20  ;;  %v338_v22 = vld [vmem:[%s1207_s7 + $0x160] sm:$0xff]  ;;  %v340_v23 = vld [vmem:[%s1207_s7 + $0x170] sm:$0xff]  ;;  %337 = vst [vmem:[%s1212_s8 + $0xa8] sm:$0xff] %v336_v21 }
  0x22   : > { %339 = vst [vmem:[%s1212_s8 + $0xb0] sm:$0xff] %v338_v22  ;;  %341 = vst [vmem:[%s1212_s8 + $0xb8] sm:$0xff] %v340_v23  ;;  %v342_v24 = vld [vmem:[%s1207_s7 + $0x180] sm:$0xff]  ;;  %v344_v25 = vld [vmem:[%s1207_s7 + $0x190] sm:$0xff] }
  0x23   : > { %v346_v26 = vld [vmem:[%s1207_s7 + $0x1a0] sm:$0xff]  ;;  %343 = vst [vmem:[%s1212_s8 + $0xc0] sm:$0xff] %v342_v24  ;;  %345 = vst [vmem:[%s1212_s8 + $0xc8] sm:$0xff] %v344_v25  ;;  %v348_v27 = vld [vmem:[%s1207_s7 + $0x1b0] sm:$0xff] }
  0x24   : > { %347 = vst [vmem:[%s1212_s8 + $0xd0] sm:$0xff] %v346_v26  ;;  %v350_v28 = vld [vmem:[%s1207_s7 + $0x1c0] sm:$0xff]  ;;  %v352_v29 = vld [vmem:[%s1207_s7 + $0x1d0] sm:$0xff]  ;;  %349 = vst [vmem:[%s1212_s8 + $0xd8] sm:$0xff] %v348_v27 }
  0x25   : > { %351 = vst [vmem:[%s1212_s8 + $0xe0] sm:$0xff] %v350_v28  ;;  %353 = vst [vmem:[%s1212_s8 + $0xe8] sm:$0xff] %v352_v29  ;;  %v354_v30 = vld [vmem:[%s1207_s7 + $0x1e0] sm:$0xff]  ;;  %v356_v31 = vld [vmem:[%s1207_s7 + $0x1f0] sm:$0xff] }
  0x26   : > { %355 = vst [vmem:[%s1212_s8 + $0xf0] sm:$0xff] %v354_v30  ;;  %357 = vst [vmem:[%s1212_s8 + $0xf8] sm:$0xff] %v356_v31 }
  0x27 PF: > { %p917_p7 = scmp.ge.s32.totalorder %s1125_s18, 1  ;;  %p374_p8 = scmp.lt.s32.totalorder %s1125_s18, 5 }
  0x29   : > { %p375_p9 = pnand %p917_p7, %p374_p8 }
  0x2a   : > { %s381_s9 = sand.u32 (!%p375_p9), 1, %s1101_s12   ;;  %p434_p10 = scmp.lt.s32.totalorder (!%p375_p9), %s1113_s15, 1 }
  0x2b   : > { %378 = sbr.rel (%p375_p9) target bundleno = 313 (0x139), region = 66  ;;  %s918_s10 = sshll.u32 (!%p375_p9), %s381_s9, 8 }
  0x2c   : > { %s1278_s11 = scalar_lea.vmem (!%p375_p9), [#allocation3], %s918_s10  ;;  %s921_s24 = sshll.u32 (!%p375_p9), %s1109_s14, 1 }
  0x2d   : > { %p452_p11 = scmp.lt.s32.totalorder (!%p375_p9), %s921_s24, 3 }
  0x30   : > { %v1021_v32 = vld [vmem:[%s1278_s11 + $0x74] ss:$8 sps:$4 sm:$0xff]   ;;  %v1023_v33 = vld [vmem:[%s1278_s11 + $0x70] ss:$8 sps:$4 sm:$0xff]   ;;  %v1024_v34 = vld [vmem:[%s1278_s11 + $0x64] ss:$8 sps:$4 sm:$0xff]   ;;  %v732_v3 = vlaneseq }
  0x31   : > { %680 = vmatprep.subr.bf16.mxu0 %v1021_v32  ;;  %v1026_v35 = vld [vmem:[%s1278_s11 + $0x60] ss:$8 sps:$4 sm:$0xff]   ;;  %v1027_v36 = vld [vmem:[%s1278_s11 + $0x54] ss:$8 sps:$4 sm:$0xff]   ;;  %v1029_v37 = vld [vmem:[%s1278_s11 + $0x50] ss:$8 sps:$4 sm:$0xff]  }
  0x32   : > { %681 = vmatpush1.bf16.msra.mxu0 %v1023_v33  ;;  %v1030_v38 = vld [vmem:[%s1278_s11 + $0x44] ss:$8 sps:$4 sm:$0xff]   ;;  %v1032_v39 = vld [vmem:[%s1278_s11 + $0x40] ss:$8 sps:$4 sm:$0xff]   ;;  %s1366_s15 = smov (!%p434_p10, %s1113_s15), 1  ;;  %s1368_s24 = smov (!%p452_p11, %s921_s24), 3 }
  0x33   : > { %682 = vmatprep.subr.bf16.mxu0 %v1024_v34  ;;  %v1033_v40 = vld [vmem:[%s1278_s11 + $0x34] ss:$8 sps:$4 sm:$0xff]   ;;  %v1035_v41 = vld [vmem:[%s1278_s11 + $0x30] ss:$8 sps:$4 sm:$0xff]   ;;  %s963_s12 = sshll.u32 %s1366_s15, 3  ;;  %s922_s26 = sshll.u32 %s1366_s15, 2 }
  0x34   : > { %v1036_v42 = vld [vmem:[%s1278_s11 + $0x24] ss:$8 sps:$4 sm:$0xff]   ;;  %s445_s23 = scalar_lea.vmem %s1349_s0, %s963_s12  ;;  %v1038_v43 = vld [vmem:[%s1278_s11 + $0x20] ss:$8 sps:$4 sm:$0xff]   ;;  %v1039_v44 = vld [vmem:[%s1278_s11 + $0x14] ss:$8 sps:$4 sm:$0xff]   ;;  %s455_s27 = sadd.s32 %s922_s26, %s1368_s24 }
  0x35   : > { %v478_v45 = vld [vmem:[%s445_s23] sm:$0xff]  ;;  %v1041_v47 = vld [vmem:[%s1278_s11 + $0x10] ss:$8 sps:$4 sm:$0xff]   ;;  %v1045_v50 = vld [vmem:[%s1278_s11 + $0xf4] ss:$8 sps:$4 sm:$0xff]   ;;  %v733_v4 = vshrl.u32 %v732_v3, 7  ;;  %s456_s30 = scalar_lea.vmem %s1351_s2, %s455_s27 }
  0x36   : > { %683 = vmatpush1.bf16.msra.mxu0 %v1026_v35  ;;  %v927_v46 = vcombine.high %v478_v45, %v478_v45  ;;  %v1042_v48 = vld [vmem:[%s1278_s11 + $0x4] ss:$8 sps:$4 sm:$0xff]   ;;  %v1044_v49 = vld [vmem:[%s1278_s11] ss:$8 sps:$4 sm:$0xff]   ;;  %v1047_v51 = vld [vmem:[%s1278_s11 + $0xf0] ss:$8 sps:$4 sm:$0xff]   ;;  %v926_v2 = vcombine.low %v478_v45, %v478_v45 }
  0x37   : > { %684 = vmatprep.subr.bf16.mxu0 %v1027_v36  ;;  %v1048_v52 = vld [vmem:[%s1278_s11 + $0xe4] ss:$8 sps:$4 sm:$0xff]   ;;  %v1050_v53 = vld [vmem:[%s1278_s11 + $0xe0] ss:$8 sps:$4 sm:$0xff]   ;;  %v1051_v54 = vld [vmem:[%s1278_s11 + $0xd4] ss:$8 sps:$4 sm:$0xff]  }
  0x38   : > { %712 = vmatprep.mubr.bf16.mxu0 %v927_v46  ;;  %v1053_v55 = vld [vmem:[%s1278_s11 + $0xd0] ss:$8 sps:$4 sm:$0xff]   ;;  %v1054_v56 = vld [vmem:[%s1278_s11 + $0xc4] ss:$8 sps:$4 sm:$0xff]   ;;  %v1056_v57 = vld [vmem:[%s1278_s11 + $0xc0] ss:$8 sps:$4 sm:$0xff]  }
  0x39   : > { %v1057_v58 = vld [vmem:[%s1278_s11 + $0xb4] ss:$8 sps:$4 sm:$0xff]   ;;  %v1059_v59 = vld [vmem:[%s1278_s11 + $0xb0] ss:$8 sps:$4 sm:$0xff]   ;;  %v1060_v60 = vld [vmem:[%s1278_s11 + $0xa4] ss:$8 sps:$4 sm:$0xff]  }
  0x3a   : > { %685 = vmatpush1.bf16.msra.mxu0 %v1029_v37  ;;  %v1062_v61 = vld [vmem:[%s1278_s11 + $0xa0] ss:$8 sps:$4 sm:$0xff]   ;;  %v1063_v62 = vld [vmem:[%s1278_s11 + $0x94] ss:$8 sps:$4 sm:$0xff]   ;;  %v1065_v63 = vld [vmem:[%s1278_s11 + $0x90] ss:$8 sps:$4 sm:$0xff]  }
  0x3b   : > { %686 = vmatprep.subr.bf16.mxu0 %v1030_v38  ;;  %v1066_v0 = vld [vmem:[%s1278_s11 + $0x84] ss:$8 sps:$4 sm:$0xff]   ;;  %v1068_v1 = vld [vmem:[%s1278_s11 + $0x80] ss:$8 sps:$4 sm:$0xff]   ;;  %v734_v5 = vsub.s32 0, %v733_v4  ;;  %v738_v6 = vsub.s32 1, %v733_v4 }
  0x3c   : > { %v730_v7 = vld [vmem:[%s456_s30] sm:$0x3]  ;;  %s925_s4 = sshll.u32 %s455_s27, 2 }
  0x3d   : > { %v735_v8 = vrot.slane %v730_v7, %v734_v5  ;;  %v739_v9 = vrot.slane %v730_v7, %v738_v6  ;;  %s470_s15 = scalar_lea.vmem %s1352_s3, %s925_s4 }
  0x3e   : > { %687 = vmatpush1.bf16.msra.mxu0 %v1032_v39 }
  0x3f   : > { %688 = vmatprep.subr.bf16.mxu0 %v1033_v40 }
  0x42   : > { %689 = vmatpush1.bf16.msra.mxu0 %v1035_v41 }
  0x43   : > { %690 = vmatprep.subr.bf16.mxu0 %v1036_v42 }
  0x46   : > { %691 = vmatpush1.bf16.msra.mxu0 %v1038_v43 }
  0x47   : > { %692 = vmatprep.subr.bf16.mxu0 %v1039_v44 }
  0x4a   : > { %693 = vmatpush1.bf16.msra.mxu0 %v1041_v47 }
  0x4b   : > { %694 = vmatprep.subr.bf16.mxu0 %v1042_v48 }
  0x4e   : > { %695 = vmatpush1.bf16.msra.mxu0 %v1044_v49 }
  0x4f   : > { %696 = vmatprep.subr.bf16.mxu0 %v1045_v50 }
  0x52   : > { %697 = vmatpush2.bf16.msra.mxu0 %v1047_v51 }
  0x53   : > { %698 = vmatprep.subr.bf16.mxu0 %v1048_v52 }
  0x56   : > { %699 = vmatpush2.bf16.msra.mxu0 %v1050_v53 }
  0x57   : > { %700 = vmatprep.subr.bf16.mxu0 %v1051_v54 }
  0x5a   : > { %701 = vmatpush2.bf16.msra.mxu0 %v1053_v55 }
  0x5b   : > { %702 = vmatprep.subr.bf16.mxu0 %v1054_v56 }
  0x5e   : > { %703 = vmatpush2.bf16.msra.mxu0 %v1056_v57 }
  0x5f   : > { %704 = vmatprep.subr.bf16.mxu0 %v1057_v58 }
  0x62   : > { %705 = vmatpush2.bf16.msra.mxu0 %v1059_v59 }
  0x63   : > { %706 = vmatprep.subr.bf16.mxu0 %v1060_v60 }
  0x66   : > { %707 = vmatpush2.bf16.msra.mxu0 %v1062_v61 }
  0x67   : > { %708 = vmatprep.subr.bf16.mxu0 %v1063_v62 }
  0x6a   : > { %709 = vmatpush2.bf16.msra.mxu0 %v1065_v63 }
  0x6b   : > { %710 = vmatprep.subr.bf16.mxu0 %v1066_v0 }
  0x6e   : > { %711 = vmatpush2.bf16.msra.mxu0 %v1068_v1 }
  0x71   : > { %713 = vmatmul.mubr.bf16.vlgmr.msra.gmra.mxu0 %v926_v2 }
 0x131   : > { %v714_v10 = vpop.f32.mrf.mxu0 }
 0x132   : > { %v742_v12 = vadd.f32 %v735_v8, %v714_v10 }
 0x133   : > { %v716_v11 = vpop.f32.mrf.mxu0 }
 0x134   : > { %v743_v13 = vadd.f32 %v739_v9, %v716_v11 }
 0x135   : > { %v718_v14 = vpop.f32.mrf.mxu0 }
 0x136   : > { %v964_v15 = vpack.c.bf16 %v743_v13, %v742_v12 }
 0x137   : > { %v719_v16 = vpop.f32.mrf.mxu0 }
 0x138   : > { %752 = vst [vmem:[%s470_s15] sm:$0xff] %v964_v15 }
 0x139 PF: > { %s13_s18 = sadd.s32 1, %s1125_s18   ;;  %s1353_s12 = smov %s1105_s13 }
 0x13a   : > { %p10_p12 = scmp.ge.s32.totalorder %s13_s18, 6   ;;  %s1354_s13 = smov %s1198_s25 }
 0x13b   : > { %s1355_s14 = smov %s1117_s16  ;;  %s1356_s15 = smov %s1121_s17 }
 0x13c   : > { %s1357_s16 = smov %s1360_s19  ;;  %s1358_s17 = smov %s1364_s20 }
 0x13d   :  { %12 = sbr.rel (!%p10_p12) target bundleno = 4 (0x4), region = 119 }

// kernel: _pe_h_network.40
= control target key start
LH: loop header
LB: loop body
LE: loop exit
PB: predicated region body
PF: predicated region fallthrough
CT: control target
= control target key end

     0   :  { %s2107_s0 = inlined_call_operand.vmem [shape: bf16[2,8,4608], index: 0, kind: input, shape index: {}]   ;;  %s2108_s1 = inlined_call_operand.vmem [shape: bf16[2,4608,512], index: 1, kind: input, shape index: {}]   ;;  %s2109_s2 = inlined_call_operand.vmem [shape: f32[2,1,512], index: 2, kind: input, shape index: {}]   ;;  %s2110_s3 = inlined_call_operand.vmem [shape: bf16[2,8,512], index: 3, kind: input, shape index: {}]   ;;  %s2111_s4 = inlined_call_operand.vmem [shape: bf16[2,8,512], index: 4, kind: output, shape index: {}]  }
   0x1   :  { %2113 = sst [smem:[#allocation5_spill]] %s2108_s1 }
   0x2   :  { %s1759_s15 = smov 0   ;;  %s1761_s16 = smov 0  }
   0x3   :  { %s1763_s17 = smov 0   ;;  %s1765_s18 = smov 0  }
   0x4   :  { %s1767_s19 = smov 0   ;;  %s1769_s20 = smov 0  }
   0x5   :  { %s1771_s21 = smov 0   ;;  %s1773_s22 = smov 0  }
   0x6   :  { %s1775_s23 = smov 0  }
   0x7 LB: > { %s29_s24 = sadd.s32 1, %s1719_s20  ;;  %s32_s25 = sadd.s32 1, %s1723_s21  ;;  %s1731_s23 = sphi %s1775_s23, %s14_s23   ;;  %s1727_s22 = sphi %s1773_s22, %s2125_s22   ;;  %s1723_s21 = sphi %s1771_s21, %s2124_s21   ;;  %s1719_s20 = sphi %s1769_s20, %s2123_s20   ;;  %s1715_s19 = sphi %s1767_s19, %s2122_s19   ;;  %s1711_s18 = sphi %s1765_s18, %s2121_s18   ;;  %s1707_s17 = sphi %s1763_s17, %s2120_s17   ;;  %s1703_s16 = sphi %s1761_s16, %s2119_s16   ;;  %s1699_s15 = sphi %s1759_s15, %s2118_s15  }
   0x8   : > { %p30_p0 = scmp.ge.s32.totalorder %s29_s24, 9  ;;  %p88_p1 = scmp.ne.s32.totalorder %s1703_s16, %s1699_s15 }
   0x9   : > { %p89_p2 = scmp.eq.s32.totalorder %s1731_s23, 0  ;;  %s40_s26 = sadd.s32 1, %s1727_s22 }
   0xa   : > { %s2127_s25 = smov (!%p30_p0, %s32_s25), %s1723_s21  ;;  %s2129_s24 = smov (%p30_p0, %s29_s24), 0 }
   0xb   : > { %p34_p3 = scmp.ge.s32.totalorder %s2127_s25, 2  ;;  %p1811_p4 = por %p89_p2, %p88_p1 }
   0xc   : > { %s75_s28 = ssub.s32 %s1719_s20, %s2129_s24  ;;  %s81_s7 = sadd.s32 1, %s1703_s16 }
   0xd   : > { %s2131_s26 = smov (!%p34_p3, %s40_s26), %s1727_s22  ;;  %s2133_s25 = smov (%p34_p3, %s2127_s25), 0 }
   0xe   : > { %p42_p5 = scmp.ge.s32.totalorder %s2131_s26, 2  ;;  %s77_s29 = ssub.s32 %s1723_s21, %s2133_s25 }
   0xf   : > { %p1393_p7 = scmp.ge.s32.totalorder %s1731_s23, 36 }
  0x10   : > { %s2135_s26 = smov (%p42_p5, %s2131_s26), 0 }
  0x11   : > { %2115 = sst [smem:[#allocation4_spill]] %s2135_s26  ;;  %s74_s30 = ssub.s32 %s1727_s22, %s2135_s26 }
  0x12   : > { %s76_s5 = sor.u32 %s75_s28, %s74_s30  ;;  %202 = sbr.rel (%p1393_p7) target bundleno = 66 (0x42), region = 16 }
  0x13   : > { %s78_s6 = sor.u32 %s77_s29, %s76_s5 }
  0x14   : > { %p79_p6 = scmp.eq.s32.totalorder %s78_s6, 0 }
  0x16   : > { %s1830_s8 = scalar_select %p79_p6, %s1703_s16, %s81_s7  }
  0x17   : > { %222 = sbr.rel (!%p1811_p4) target bundleno = 66 (0x42), region = 24  ;;  %s224_s9 = sand.u32 (%p1811_p4), 1, %s1703_s16  }
  0x18   : > { %s1396_s10 = sshll.u32 (%p1811_p4), %s1723_s21, 1  ;;  %s1484_s11 = sshll.u32 (%p1811_p4), %s1719_s20, 8 }
  0x19   : > { %s230_s12 = sadd.s32 (%p1811_p4), %s1484_s11, %s1396_s10  ;;  %s1394_s13 = sshll.u32 (%p1811_p4), %s224_s9, 9 }
  0x1a   : > { %s1486_s14 = smul.u32 (%p1811_p4), 2304, %s1727_s22  ;;  %s2116_s1 = sld [smem:[#allocation5_spill]] (%p1811_p4) }
  0x1b   : > { %s1847_s27 = scalar_lea.vmem (%p1811_p4), [#allocation3], %s1394_s13 }
  0x1c   : > { %s232_s28 = sadd.s32 %s1486_s14, %s230_s12 }
  0x1d   : > { %s1398_s29 = sshll.u32 %s232_s28, 2 }
  0x20   : > { %s1842_s6 = scalar_lea.vmem %s2116_s1, %s1398_s29 }
  0x21   : > { %v389_v0 = vld [vmem:[%s1842_s6] sm:$0xff]  ;;  %v391_v1 = vld [vmem:[%s1842_s6 + $0x10] sm:$0xff] }
  0x22   : > { %v393_v2 = vld [vmem:[%s1842_s6 + $0x20] sm:$0xff]  ;;  %390 = vst [vmem:[%s1847_s27] sm:$0xff] %v389_v0  ;;  %392 = vst [vmem:[%s1847_s27 + $0x8] sm:$0xff] %v391_v1  ;;  %v395_v3 = vld [vmem:[%s1842_s6 + $0x30] sm:$0xff] }
  0x23   : > { %394 = vst [vmem:[%s1847_s27 + $0x10] sm:$0xff] %v393_v2  ;;  %v397_v4 = vld [vmem:[%s1842_s6 + $0x40] sm:$0xff]  ;;  %v399_v5 = vld [vmem:[%s1842_s6 + $0x50] sm:$0xff]  ;;  %396 = vst [vmem:[%s1847_s27 + $0x18] sm:$0xff] %v395_v3 }
  0x24   : > { %398 = vst [vmem:[%s1847_s27 + $0x20] sm:$0xff] %v397_v4  ;;  %400 = vst [vmem:[%s1847_s27 + $0x28] sm:$0xff] %v399_v5  ;;  %v401_v6 = vld [vmem:[%s1842_s6 + $0x60] sm:$0xff]  ;;  %v403_v7 = vld [vmem:[%s1842_s6 + $0x70] sm:$0xff] }
  0x25   : > { %v405_v8 = vld [vmem:[%s1842_s6 + $0x80] sm:$0xff]  ;;  %402 = vst [vmem:[%s1847_s27 + $0x30] sm:$0xff] %v401_v6  ;;  %404 = vst [vmem:[%s1847_s27 + $0x38] sm:$0xff] %v403_v7  ;;  %v407_v9 = vld [vmem:[%s1842_s6 + $0x90] sm:$0xff] }
  0x26   : > { %406 = vst [vmem:[%s1847_s27 + $0x40] sm:$0xff] %v405_v8  ;;  %v409_v10 = vld [vmem:[%s1842_s6 + $0xa0] sm:$0xff]  ;;  %v411_v11 = vld [vmem:[%s1842_s6 + $0xb0] sm:$0xff]  ;;  %408 = vst [vmem:[%s1847_s27 + $0x48] sm:$0xff] %v407_v9 }
  0x27   : > { %410 = vst [vmem:[%s1847_s27 + $0x50] sm:$0xff] %v409_v10  ;;  %412 = vst [vmem:[%s1847_s27 + $0x58] sm:$0xff] %v411_v11  ;;  %v413_v12 = vld [vmem:[%s1842_s6 + $0xc0] sm:$0xff]  ;;  %v415_v13 = vld [vmem:[%s1842_s6 + $0xd0] sm:$0xff] }
  0x28   : > { %v417_v14 = vld [vmem:[%s1842_s6 + $0xe0] sm:$0xff]  ;;  %414 = vst [vmem:[%s1847_s27 + $0x60] sm:$0xff] %v413_v12  ;;  %416 = vst [vmem:[%s1847_s27 + $0x68] sm:$0xff] %v415_v13  ;;  %v419_v15 = vld [vmem:[%s1842_s6 + $0xf0] sm:$0xff] }
  0x29   : > { %418 = vst [vmem:[%s1847_s27 + $0x70] sm:$0xff] %v417_v14  ;;  %v421_v16 = vld [vmem:[%s1842_s6 + $0x100] sm:$0xff]  ;;  %v423_v17 = vld [vmem:[%s1842_s6 + $0x110] sm:$0xff]  ;;  %420 = vst [vmem:[%s1847_s27 + $0x78] sm:$0xff] %v419_v15 }
  0x2a   : > { %422 = vst [vmem:[%s1847_s27 + $0x80] sm:$0xff] %v421_v16  ;;  %424 = vst [vmem:[%s1847_s27 + $0x88] sm:$0xff] %v423_v17  ;;  %v425_v18 = vld [vmem:[%s1842_s6 + $0x120] sm:$0xff]  ;;  %v427_v19 = vld [vmem:[%s1842_s6 + $0x130] sm:$0xff] }
  0x2b   : > { %v429_v20 = vld [vmem:[%s1842_s6 + $0x140] sm:$0xff]  ;;  %426 = vst [vmem:[%s1847_s27 + $0x90] sm:$0xff] %v425_v18  ;;  %428 = vst [vmem:[%s1847_s27 + $0x98] sm:$0xff] %v427_v19  ;;  %v431_v21 = vld [vmem:[%s1842_s6 + $0x150] sm:$0xff] }
  0x2c   : > { %430 = vst [vmem:[%s1847_s27 + $0xa0] sm:$0xff] %v429_v20  ;;  %v433_v22 = vld [vmem:[%s1842_s6 + $0x160] sm:$0xff]  ;;  %v435_v23 = vld [vmem:[%s1842_s6 + $0x170] sm:$0xff]  ;;  %432 = vst [vmem:[%s1847_s27 + $0xa8] sm:$0xff] %v431_v21 }
  0x2d   : > { %434 = vst [vmem:[%s1847_s27 + $0xb0] sm:$0xff] %v433_v22  ;;  %436 = vst [vmem:[%s1847_s27 + $0xb8] sm:$0xff] %v435_v23  ;;  %v437_v24 = vld [vmem:[%s1842_s6 + $0x180] sm:$0xff]  ;;  %v439_v25 = vld [vmem:[%s1842_s6 + $0x190] sm:$0xff] }
  0x2e   : > { %v441_v26 = vld [vmem:[%s1842_s6 + $0x1a0] sm:$0xff]  ;;  %438 = vst [vmem:[%s1847_s27 + $0xc0] sm:$0xff] %v437_v24  ;;  %440 = vst [vmem:[%s1847_s27 + $0xc8] sm:$0xff] %v439_v25  ;;  %v443_v27 = vld [vmem:[%s1842_s6 + $0x1b0] sm:$0xff] }
  0x2f   : > { %442 = vst [vmem:[%s1847_s27 + $0xd0] sm:$0xff] %v441_v26  ;;  %v445_v28 = vld [vmem:[%s1842_s6 + $0x1c0] sm:$0xff]  ;;  %v447_v29 = vld [vmem:[%s1842_s6 + $0x1d0] sm:$0xff]  ;;  %444 = vst [vmem:[%s1847_s27 + $0xd8] sm:$0xff] %v443_v27 }
  0x30   : > { %446 = vst [vmem:[%s1847_s27 + $0xe0] sm:$0xff] %v445_v28  ;;  %448 = vst [vmem:[%s1847_s27 + $0xe8] sm:$0xff] %v447_v29  ;;  %v449_v30 = vld [vmem:[%s1842_s6 + $0x1e0] sm:$0xff]  ;;  %v451_v31 = vld [vmem:[%s1842_s6 + $0x1f0] sm:$0xff] }
  0x31   : > { %v453_v32 = vld [vmem:[%s1842_s6 + $0x200] sm:$0xff]  ;;  %450 = vst [vmem:[%s1847_s27 + $0xf0] sm:$0xff] %v449_v30  ;;  %452 = vst [vmem:[%s1847_s27 + $0xf8] sm:$0xff] %v451_v31  ;;  %v455_v33 = vld [vmem:[%s1842_s6 + $0x210] sm:$0xff] }
  0x32   : > { %454 = vst [vmem:[%s1847_s27 + $0x100] sm:$0xff] %v453_v32  ;;  %v457_v34 = vld [vmem:[%s1842_s6 + $0x220] sm:$0xff]  ;;  %v459_v35 = vld [vmem:[%s1842_s6 + $0x230] sm:$0xff]  ;;  %456 = vst [vmem:[%s1847_s27 + $0x108] sm:$0xff] %v455_v33 }
  0x33   : > { %458 = vst [vmem:[%s1847_s27 + $0x110] sm:$0xff] %v457_v34  ;;  %460 = vst [vmem:[%s1847_s27 + $0x118] sm:$0xff] %v459_v35  ;;  %v461_v36 = vld [vmem:[%s1842_s6 + $0x240] sm:$0xff]  ;;  %v463_v37 = vld [vmem:[%s1842_s6 + $0x250] sm:$0xff] }
  0x34   : > { %v465_v38 = vld [vmem:[%s1842_s6 + $0x260] sm:$0xff]  ;;  %462 = vst [vmem:[%s1847_s27 + $0x120] sm:$0xff] %v461_v36  ;;  %464 = vst [vmem:[%s1847_s27 + $0x128] sm:$0xff] %v463_v37  ;;  %v467_v39 = vld [vmem:[%s1842_s6 + $0x270] sm:$0xff] }
  0x35   : > { %466 = vst [vmem:[%s1847_s27 + $0x130] sm:$0xff] %v465_v38  ;;  %v469_v40 = vld [vmem:[%s1842_s6 + $0x280] sm:$0xff]  ;;  %v471_v41 = vld [vmem:[%s1842_s6 + $0x290] sm:$0xff]  ;;  %468 = vst [vmem:[%s1847_s27 + $0x138] sm:$0xff] %v467_v39 }
  0x36   : > { %470 = vst [vmem:[%s1847_s27 + $0x140] sm:$0xff] %v469_v40  ;;  %472 = vst [vmem:[%s1847_s27 + $0x148] sm:$0xff] %v471_v41  ;;  %v473_v42 = vld [vmem:[%s1842_s6 + $0x2a0] sm:$0xff]  ;;  %v475_v43 = vld [vmem:[%s1842_s6 + $0x2b0] sm:$0xff] }
  0x37   : > { %v477_v44 = vld [vmem:[%s1842_s6 + $0x2c0] sm:$0xff]  ;;  %474 = vst [vmem:[%s1847_s27 + $0x150] sm:$0xff] %v473_v42  ;;  %476 = vst [vmem:[%s1847_s27 + $0x158] sm:$0xff] %v475_v43  ;;  %v479_v45 = vld [vmem:[%s1842_s6 + $0x2d0] sm:$0xff] }
  0x38   : > { %478 = vst [vmem:[%s1847_s27 + $0x160] sm:$0xff] %v477_v44  ;;  %v481_v46 = vld [vmem:[%s1842_s6 + $0x2e0] sm:$0xff]  ;;  %v483_v47 = vld [vmem:[%s1842_s6 + $0x2f0] sm:$0xff]  ;;  %480 = vst [vmem:[%s1847_s27 + $0x168] sm:$0xff] %v479_v45 }
  0x39   : > { %482 = vst [vmem:[%s1847_s27 + $0x170] sm:$0xff] %v481_v46  ;;  %484 = vst [vmem:[%s1847_s27 + $0x178] sm:$0xff] %v483_v47  ;;  %v485_v48 = vld [vmem:[%s1842_s6 + $0x300] sm:$0xff]  ;;  %v487_v49 = vld [vmem:[%s1842_s6 + $0x310] sm:$0xff] }
  0x3a   : > { %v489_v50 = vld [vmem:[%s1842_s6 + $0x320] sm:$0xff]  ;;  %486 = vst [vmem:[%s1847_s27 + $0x180] sm:$0xff] %v485_v48  ;;  %488 = vst [vmem:[%s1847_s27 + $0x188] sm:$0xff] %v487_v49  ;;  %v491_v51 = vld [vmem:[%s1842_s6 + $0x330] sm:$0xff] }
  0x3b   : > { %490 = vst [vmem:[%s1847_s27 + $0x190] sm:$0xff] %v489_v50  ;;  %v493_v52 = vld [vmem:[%s1842_s6 + $0x340] sm:$0xff]  ;;  %v495_v53 = vld [vmem:[%s1842_s6 + $0x350] sm:$0xff]  ;;  %492 = vst [vmem:[%s1847_s27 + $0x198] sm:$0xff] %v491_v51 }
  0x3c   : > { %494 = vst [vmem:[%s1847_s27 + $0x1a0] sm:$0xff] %v493_v52  ;;  %496 = vst [vmem:[%s1847_s27 + $0x1a8] sm:$0xff] %v495_v53  ;;  %v497_v54 = vld [vmem:[%s1842_s6 + $0x360] sm:$0xff]  ;;  %v499_v55 = vld [vmem:[%s1842_s6 + $0x370] sm:$0xff] }
  0x3d   : > { %v501_v56 = vld [vmem:[%s1842_s6 + $0x380] sm:$0xff]  ;;  %498 = vst [vmem:[%s1847_s27 + $0x1b0] sm:$0xff] %v497_v54  ;;  %500 = vst [vmem:[%s1847_s27 + $0x1b8] sm:$0xff] %v499_v55  ;;  %v503_v57 = vld [vmem:[%s1842_s6 + $0x390] sm:$0xff] }
  0x3e   : > { %502 = vst [vmem:[%s1847_s27 + $0x1c0] sm:$0xff] %v501_v56  ;;  %v505_v58 = vld [vmem:[%s1842_s6 + $0x3a0] sm:$0xff]  ;;  %v507_v59 = vld [vmem:[%s1842_s6 + $0x3b0] sm:$0xff]  ;;  %504 = vst [vmem:[%s1847_s27 + $0x1c8] sm:$0xff] %v503_v57 }
  0x3f   : > { %506 = vst [vmem:[%s1847_s27 + $0x1d0] sm:$0xff] %v505_v58  ;;  %508 = vst [vmem:[%s1847_s27 + $0x1d8] sm:$0xff] %v507_v59  ;;  %v509_v60 = vld [vmem:[%s1842_s6 + $0x3c0] sm:$0xff]  ;;  %v511_v61 = vld [vmem:[%s1842_s6 + $0x3d0] sm:$0xff] }
  0x40   : > { %v513_v62 = vld [vmem:[%s1842_s6 + $0x3e0] sm:$0xff]  ;;  %510 = vst [vmem:[%s1847_s27 + $0x1e0] sm:$0xff] %v509_v60  ;;  %512 = vst [vmem:[%s1847_s27 + $0x1e8] sm:$0xff] %v511_v61  ;;  %v515_v63 = vld [vmem:[%s1842_s6 + $0x3f0] sm:$0xff] }
  0x41   : > { %514 = vst [vmem:[%s1847_s27 + $0x1f0] sm:$0xff] %v513_v62  ;;  %516 = vst [vmem:[%s1847_s27 + $0x1f8] sm:$0xff] %v515_v63 }
  0x42 PF: > { %p1399_p8 = scmp.ge.s32.totalorder %s1731_s23, 1  ;;  %p550_p9 = scmp.lt.s32.totalorder %s1731_s23, 37 }
  0x44   : > { %p551_p10 = pnand %p1399_p8, %p550_p9 }
  0x45   : > { %s557_s7 = sand.u32 (!%p551_p10), 1, %s1699_s15   ;;  %s1401_s9 = sshll.u32 (!%p551_p10), %s1707_s17, 2 }
  0x46   : > { %554 = sbr.rel (%p551_p10) target bundleno = 372 (0x174), region = 70  ;;  %s1400_s10 = sshll.u32 (!%p551_p10), %s557_s7, 9 }
  0x47   : > { %p625_p11 = scmp.lt.s32.totalorder (!%p551_p10), %s1715_s19, 1  ;;  %p629_p12 = scmp.lt.s32.totalorder (!%p551_p10), %s1401_s9, 35 }
  0x48   : > { %s1403_s12 = sshll.u32 (!%p551_p10), %s1711_s18, 1  ;;  %p1411_p0 = scmp.ne.s32.totalorder (!%p551_p10), %s1707_s17, 0 }
  0x49   : > { %p643_p13 = scmp.lt.s32.totalorder (!%p551_p10), %s1403_s12, 3 }
  0x4b   : > { %s2137_s19 = smov (!%p625_p11, %s1715_s19), 1  ;;  %s2139_s9 = smov (!%p629_p12, %s1401_s9), 35 }
  0x4c   : > { %s1487_s11 = smul.u32 36, %s2137_s19  ;;  %s1404_s5 = sshll.u32 %s2137_s19, 2 }
  0x4d   : > { %s2141_s12 = smov (!%p643_p13, %s1403_s12), 3  ;;  %s2003_s19 = scalar_lea.vmem [#allocation3], %s1400_s10 }
  0x4e   : > { %s634_s13 = sadd.s32 %s1487_s11, %s2139_s9  ;;  %s1986_s6 = sadd.s32 %s1404_s5, %s2141_s12 }
  0x4f   : > { %s1402_s14 = sshll.u32 %s634_s13, 2  ;;  %s647_s7 = scalar_lea.vmem %s2109_s2, %s1986_s6 }
  0x50   : > { %s1984_s30 = scalar_lea.vmem %s2107_s0, %s1402_s14  ;;  %s1407_s1 = sshll.u32 %s1986_s6, 2 }
  0x51   : > { %s1996_s9 = scalar_lea.vmem %s2110_s3, %s1407_s1  ;;  %s2001_s14 = scalar_lea.vmem %s2111_s4, %s1407_s1 }
  0x52   : > { %680 = sbr.rel (%p1411_p0) target bundleno = 89 (0x59), region = 78 }
  0x57   : > { %v1733_v0 = vmov 0.0  }
  0x58   : > { %681 = vst [vmem:[#allocation2] sm:$0xff] %v1733_v0  ;;  %682 = vst [vmem:[#allocation2 + $0x8] sm:$0xff] %v1733_v0 }
  0x59 PF: > { %v1561_v1 = vld [vmem:[%s2003_s19 + $0x74] ss:$8 sps:$4 sm:$0xff]   ;;  %v1565_v3 = vld [vmem:[%s2003_s19 + $0x70] ss:$8 sps:$4 sm:$0xff]   ;;  %v1567_v5 = vld [vmem:[%s2003_s19 + $0x64] ss:$8 sps:$4 sm:$0xff]  }
  0x5a   : > { %v1563_v2 = vld [vmem:[%s2003_s19 + $0x174] ss:$8 sps:$4 sm:$0xff]   ;;  %1085 = vmatprep.subr.bf16.mxu0 %v1561_v1  ;;  %v1566_v4 = vld [vmem:[%s2003_s19 + $0x170] ss:$8 sps:$4 sm:$0xff]   ;;  %v1569_v6 = vld [vmem:[%s2003_s19 + $0x164] ss:$8 sps:$4 sm:$0xff]  }
  0x5b   : > { %1126 = vmatprep.subr.bf16.mxu1 %v1563_v2  ;;  %1086 = vmatpush1.bf16.msra.mxu0 %v1565_v3  ;;  %v1571_v7 = vld [vmem:[%s2003_s19 + $0x60] ss:$8 sps:$4 sm:$0xff]   ;;  %v1573_v9 = vld [vmem:[%s2003_s19 + $0x54] ss:$8 sps:$4 sm:$0xff]   ;;  %v1577_v11 = vld [vmem:[%s2003_s19 + $0x50] ss:$8 sps:$4 sm:$0xff]  }
  0x5c   : > { %1127 = vmatpush1.bf16.msra.mxu1 %v1566_v4  ;;  %1087 = vmatprep.subr.bf16.mxu0 %v1567_v5  ;;  %v1572_v8 = vld [vmem:[%s2003_s19 + $0x160] ss:$8 sps:$4 sm:$0xff]   ;;  %v1575_v10 = vld [vmem:[%s2003_s19 + $0x154] ss:$8 sps:$4 sm:$0xff]   ;;  %v1578_v12 = vld [vmem:[%s2003_s19 + $0x150] ss:$8 sps:$4 sm:$0xff]  }
  0x5d   : > { %1128 = vmatprep.subr.bf16.mxu1 %v1569_v6  ;;  %v1579_v13 = vld [vmem:[%s2003_s19 + $0x44] ss:$8 sps:$4 sm:$0xff]   ;;  %v1583_v15 = vld [vmem:[%s2003_s19 + $0x40] ss:$8 sps:$4 sm:$0xff]   ;;  %v1585_v17 = vld [vmem:[%s2003_s19 + $0x34] ss:$8 sps:$4 sm:$0xff]  }
  0x5e   : > { %v1581_v14 = vld [vmem:[%s2003_s19 + $0x144] ss:$8 sps:$4 sm:$0xff]   ;;  %v1584_v16 = vld [vmem:[%s2003_s19 + $0x140] ss:$8 sps:$4 sm:$0xff]   ;;  %v1587_v18 = vld [vmem:[%s2003_s19 + $0x134] ss:$8 sps:$4 sm:$0xff]  }
  0x5f   : > { %1088 = vmatpush1.bf16.msra.mxu0 %v1571_v7  ;;  %v1589_v19 = vld [vmem:[%s2003_s19 + $0x30] ss:$8 sps:$4 sm:$0xff]   ;;  %v1591_v21 = vld [vmem:[%s2003_s19 + $0x24] ss:$8 sps:$4 sm:$0xff]   ;;  %v1595_v23 = vld [vmem:[%s2003_s19 + $0x20] ss:$8 sps:$4 sm:$0xff]  }
  0x60   : > { %1129 = vmatpush1.bf16.msra.mxu1 %v1572_v8  ;;  %1089 = vmatprep.subr.bf16.mxu0 %v1573_v9  ;;  %v1590_v20 = vld [vmem:[%s2003_s19 + $0x130] ss:$8 sps:$4 sm:$0xff]   ;;  %v1593_v22 = vld [vmem:[%s2003_s19 + $0x124] ss:$8 sps:$4 sm:$0xff]   ;;  %v1596_v24 = vld [vmem:[%s2003_s19 + $0x120] ss:$8 sps:$4 sm:$0xff]  }
  0x61   : > { %1130 = vmatprep.subr.bf16.mxu1 %v1575_v10  ;;  %v1597_v25 = vld [vmem:[%s2003_s19 + $0x14] ss:$8 sps:$4 sm:$0xff]   ;;  %v1601_v27 = vld [vmem:[%s2003_s19 + $0x10] ss:$8 sps:$4 sm:$0xff]   ;;  %v1603_v29 = vld [vmem:[%s2003_s19 + $0x4] ss:$8 sps:$4 sm:$0xff]  }
  0x62   : > { %v1599_v26 = vld [vmem:[%s2003_s19 + $0x114] ss:$8 sps:$4 sm:$0xff]   ;;  %v1602_v28 = vld [vmem:[%s2003_s19 + $0x110] ss:$8 sps:$4 sm:$0xff]   ;;  %v1605_v30 = vld [vmem:[%s2003_s19 + $0x104] ss:$8 sps:$4 sm:$0xff]  }
  0x63   : > { %1090 = vmatpush1.bf16.msra.mxu0 %v1577_v11  ;;  %v1607_v31 = vld [vmem:[%s2003_s19] ss:$8 sps:$4 sm:$0xff]   ;;  %v1609_v33 = vld [vmem:[%s2003_s19 + $0xf4] ss:$8 sps:$4 sm:$0xff]   ;;  %v1613_v35 = vld [vmem:[%s2003_s19 + $0xf0] ss:$8 sps:$4 sm:$0xff]  }
  0x64   : > { %1131 = vmatpush1.bf16.msra.mxu1 %v1578_v12  ;;  %1091 = vmatprep.subr.bf16.mxu0 %v1579_v13  ;;  %v1608_v32 = vld [vmem:[%s2003_s19 + $0x100] ss:$8 sps:$4 sm:$0xff]   ;;  %v1611_v34 = vld [vmem:[%s2003_s19 + $0x1f4] ss:$8 sps:$4 sm:$0xff]   ;;  %v1614_v36 = vld [vmem:[%s2003_s19 + $0x1f0] ss:$8 sps:$4 sm:$0xff]  }
  0x65   : > { %1132 = vmatprep.subr.bf16.mxu1 %v1581_v14  ;;  %v1615_v37 = vld [vmem:[%s2003_s19 + $0xe4] ss:$8 sps:$4 sm:$0xff]   ;;  %v1619_v39 = vld [vmem:[%s2003_s19 + $0xe0] ss:$8 sps:$4 sm:$0xff]   ;;  %v1621_v41 = vld [vmem:[%s2003_s19 + $0xd4] ss:$8 sps:$4 sm:$0xff]  }
  0x66   : > { %v1617_v38 = vld [vmem:[%s2003_s19 + $0x1e4] ss:$8 sps:$4 sm:$0xff]   ;;  %v1620_v40 = vld [vmem:[%s2003_s19 + $0x1e0] ss:$8 sps:$4 sm:$0xff]   ;;  %v1623_v42 = vld [vmem:[%s2003_s19 + $0x1d4] ss:$8 sps:$4 sm:$0xff]  }
  0x67   : > { %1092 = vmatpush1.bf16.msra.mxu0 %v1583_v15  ;;  %v1625_v43 = vld [vmem:[%s2003_s19 + $0xd0] ss:$8 sps:$4 sm:$0xff]   ;;  %v1627_v45 = vld [vmem:[%s2003_s19 + $0xc4] ss:$8 sps:$4 sm:$0xff]   ;;  %v1631_v50 = vld [vmem:[%s2003_s19 + $0xc0] ss:$8 sps:$4 sm:$0xff]  }
  0x68   : > { %1133 = vmatpush1.bf16.msra.mxu1 %v1584_v16  ;;  %1093 = vmatprep.subr.bf16.mxu0 %v1585_v17  ;;  %v1626_v44 = vld [vmem:[%s2003_s19 + $0x1d0] ss:$8 sps:$4 sm:$0xff]   ;;  %v1629_v46 = vld [vmem:[%s2003_s19 + $0x1c4] ss:$8 sps:$4 sm:$0xff]   ;;  %v1632_v51 = vld [vmem:[%s2003_s19 + $0x1c0] ss:$8 sps:$4 sm:$0xff]  }
  0x69   : > { %1134 = vmatprep.subr.bf16.mxu1 %v1587_v18  ;;  %v683_v47 = vld [vmem:[%s1984_s30] sm:$0xff]  ;;  %v684_v49 = vld [vmem:[%s1984_s30 + $0x8] sm:$0xff]  ;;  %v1639_v57 = vld [vmem:[%s2003_s19 + $0xa4] ss:$8 sps:$4 sm:$0xff]   ;;  %p1480_p1 = scmp.ne.s32.totalorder %s1707_s17, 8 }
  0x6a   : > { %v1413_v48 = vcombine.high %v683_v47, %v683_v47  ;;  %v1415_v52 = vcombine.high %v684_v49, %v684_v49  ;;  %v1633_v53 = vld [vmem:[%s2003_s19 + $0xb4] ss:$8 sps:$4 sm:$0xff]   ;;  %v1637_v55 = vld [vmem:[%s2003_s19 + $0xb0] ss:$8 sps:$4 sm:$0xff]   ;;  %v1641_v58 = vld [vmem:[%s2003_s19 + $0x1a4] ss:$8 sps:$4 sm:$0xff]   ;;  %v1412_v5 = vcombine.low %v683_v47, %v683_v47  ;;  %v1414_v6 = vcombine.low %v684_v49, %v684_v49 }
  0x6b   : > { %1094 = vmatpush1.bf16.msra.mxu0 %v1589_v19  ;;  %v1635_v54 = vld [vmem:[%s2003_s19 + $0x1b4] ss:$8 sps:$4 sm:$0xff]   ;;  %v1638_v56 = vld [vmem:[%s2003_s19 + $0x1b0] ss:$8 sps:$4 sm:$0xff]   ;;  %v1643_v59 = vld [vmem:[%s2003_s19 + $0xa0] ss:$8 sps:$4 sm:$0xff]  }
  0x6c   : > { %1135 = vmatpush1.bf16.msra.mxu1 %v1590_v20  ;;  %1095 = vmatprep.subr.bf16.mxu0 %v1591_v21  ;;  %v1644_v60 = vld [vmem:[%s2003_s19 + $0x1a0] ss:$8 sps:$4 sm:$0xff]   ;;  %v1645_v61 = vld [vmem:[%s2003_s19 + $0x94] ss:$8 sps:$4 sm:$0xff]   ;;  %v1649_v63 = vld [vmem:[%s2003_s19 + $0x90] ss:$8 sps:$4 sm:$0xff]  }
  0x6d   : > { %1136 = vmatprep.subr.bf16.mxu1 %v1593_v22  ;;  %1117 = vmatprep.mubr.bf16.mxu0 %v1413_v48  ;;  %v1647_v62 = vld [vmem:[%s2003_s19 + $0x194] ss:$8 sps:$4 sm:$0xff]   ;;  %v1650_v0 = vld [vmem:[%s2003_s19 + $0x190] ss:$8 sps:$4 sm:$0xff]   ;;  %v1651_v1 = vld [vmem:[%s2003_s19 + $0x84] ss:$8 sps:$4 sm:$0xff]  }
  0x6e   : > { %1158 = vmatprep.mubr.bf16.mxu1 %v1415_v52  ;;  %v1653_v2 = vld [vmem:[%s2003_s19 + $0x184] ss:$8 sps:$4 sm:$0xff]   ;;  %v1655_v3 = vld [vmem:[%s2003_s19 + $0x80] ss:$8 sps:$4 sm:$0xff]   ;;  %v685_v8 = vld [vmem:[#allocation2] sm:$0xff] }
  0x6f   : > { %1096 = vmatpush1.bf16.msra.mxu0 %v1595_v23  ;;  %v1656_v4 = vld [vmem:[%s2003_s19 + $0x180] ss:$8 sps:$4 sm:$0xff]   ;;  %v686_v12 = vld [vmem:[#allocation2 + $0x8] sm:$0xff] }
  0x70   : > { %1137 = vmatpush1.bf16.msra.mxu1 %v1596_v24  ;;  %1097 = vmatprep.subr.bf16.mxu0 %v1597_v25 }
  0x71   : > { %1138 = vmatprep.subr.bf16.mxu1 %v1599_v26 }
  0x73   : > { %1098 = vmatpush1.bf16.msra.mxu0 %v1601_v27 }
  0x74   : > { %1139 = vmatpush1.bf16.msra.mxu1 %v1602_v28  ;;  %1099 = vmatprep.subr.bf16.mxu0 %v1603_v29 }
  0x75   : > { %1140 = vmatprep.subr.bf16.mxu1 %v1605_v30 }
  0x77   : > { %1100 = vmatpush1.bf16.msra.mxu0 %v1607_v31 }
  0x78   : > { %1141 = vmatpush1.bf16.msra.mxu1 %v1608_v32  ;;  %1101 = vmatprep.subr.bf16.mxu0 %v1609_v33 }
  0x79   : > { %1142 = vmatprep.subr.bf16.mxu1 %v1611_v34 }
  0x7b   : > { %1102 = vmatpush2.bf16.msra.mxu0 %v1613_v35 }
  0x7c   : > { %1143 = vmatpush2.bf16.msra.mxu1 %v1614_v36  ;;  %1103 = vmatprep.subr.bf16.mxu0 %v1615_v37 }
  0x7d   : > { %1144 = vmatprep.subr.bf16.mxu1 %v1617_v38 }
  0x7f   : > { %1104 = vmatpush2.bf16.msra.mxu0 %v1619_v39 }
  0x80   : > { %1145 = vmatpush2.bf16.msra.mxu1 %v1620_v40  ;;  %1105 = vmatprep.subr.bf16.mxu0 %v1621_v41 }
  0x81   : > { %1146 = vmatprep.subr.bf16.mxu1 %v1623_v42 }
  0x83   : > { %1106 = vmatpush2.bf16.msra.mxu0 %v1625_v43 }
  0x84   : > { %1147 = vmatpush2.bf16.msra.mxu1 %v1626_v44  ;;  %1107 = vmatprep.subr.bf16.mxu0 %v1627_v45 }
  0x85   : > { %1148 = vmatprep.subr.bf16.mxu1 %v1629_v46 }
  0x87   : > { %1108 = vmatpush2.bf16.msra.mxu0 %v1631_v50 }
  0x88   : > { %1149 = vmatpush2.bf16.msra.mxu1 %v1632_v51  ;;  %1109 = vmatprep.subr.bf16.mxu0 %v1633_v53 }
  0x89   : > { %1150 = vmatprep.subr.bf16.mxu1 %v1635_v54 }
  0x8b   : > { %1110 = vmatpush2.bf16.msra.mxu0 %v1637_v55 }
  0x8c   : > { %1151 = vmatpush2.bf16.msra.mxu1 %v1638_v56  ;;  %1111 = vmatprep.subr.bf16.mxu0 %v1639_v57 }
  0x8d   : > { %1152 = vmatprep.subr.bf16.mxu1 %v1641_v58 }
  0x8f   : > { %1112 = vmatpush2.bf16.msra.mxu0 %v1643_v59 }
  0x90   : > { %1153 = vmatpush2.bf16.msra.mxu1 %v1644_v60  ;;  %1113 = vmatprep.subr.bf16.mxu0 %v1645_v61 }
  0x91   : > { %1154 = vmatprep.subr.bf16.mxu1 %v1647_v62 }
  0x93   : > { %1114 = vmatpush2.bf16.msra.mxu0 %v1649_v63 }
  0x94   : > { %1155 = vmatpush2.bf16.msra.mxu1 %v1650_v0  ;;  %1115 = vmatprep.subr.bf16.mxu0 %v1651_v1 }
  0x95   : > { %1156 = vmatprep.subr.bf16.mxu1 %v1653_v2 }
  0x97   : > { %1116 = vmatpush2.bf16.msra.mxu0 %v1655_v3 }
  0x98   : > { %1157 = vmatpush2.bf16.msra.mxu1 %v1656_v4 }
  0x9a   : > { %1118 = vmatmul.mubr.bf16.vlgmr.msra.gmra.mxu0 %v1412_v5 }
  0x9b   : > { %1159 = vmatmul.mubr.bf16.vlgmr.msra.gmra.mxu1 %v1414_v6 }
 0x15a   : > { %v1119_v7 = vpop.f32.mrf.mxu0 }
 0x15b   : > { %v1160_v9 = vpop.f32.mrf.mxu1 }
 0x15c   : > { %v1161_v10 = vadd.f32 %v1160_v9, %v1119_v7  ;;  %v1121_v11 = vpop.f32.mrf.mxu0 }
 0x15d   : > { %v1162_v13 = vpop.f32.mrf.mxu1 }
 0x15e   : > { %v1167_v14 = vadd.f32 %v1161_v10, %v685_v8  ;;  %v1163_v15 = vadd.f32 %v1162_v13, %v1121_v11  ;;  %v1123_v16 = vpop.f32.mrf.mxu0  ;;  %1174 = sbr.rel (%p1480_p1) target bundleno = 372 (0x174), region = 82 }
 0x15f   : > { %v1164_v17 = vpop.f32.mrf.mxu1 }
 0x160   : > { %1169 = vst [vmem:[#allocation2] sm:$0xff] %v1167_v14  ;;  %v1168_v18 = vadd.f32 %v1163_v15, %v686_v12  ;;  %v1124_v19 = vpop.f32.mrf.mxu0 }
 0x161   : > { %v1165_v20 = vpop.f32.mrf.mxu1 }
 0x162   : > { %1170 = vst [vmem:[#allocation2 + $0x8] sm:$0xff] %v1168_v18 }
 0x163   : > { %v1179_v21 = vlaneseq  ;;  %v1177_v23 = vld [vmem:[%s647_s7] sm:$0x3] }
 0x164   : > { %v1191_v24 = vld [vmem:[%s1996_s9] sm:$0xff] }
 0x165   : > { %v1180_v22 = vshrl.u32 %v1179_v21, 7  ;;  %v1192_v31 = vunpack.c.l.bf16 %v1191_v24  ;;  %v1193_v32 = vunpack.c.h.bf16 %v1191_v24 }
 0x167   : > { %v1181_v25 = vsub.s32 0, %v1180_v22  ;;  %v1185_v26 = vsub.s32 1, %v1180_v22  ;;  %v1175_v27 = vld [vmem:[#allocation2] sm:$0xff] }
 0x169   : > { %v1176_v28 = vld [vmem:[#allocation2 + $0x8] sm:$0xff]  ;;  %v1182_v29 = vrot.slane %v1177_v23, %v1181_v25  ;;  %v1186_v30 = vrot.slane %v1177_v23, %v1185_v26 }
 0x16b   : > { %v1189_v33 = vadd.f32 %v1182_v29, %v1175_v27  ;;  %v1190_v34 = vadd.f32 %v1186_v30, %v1176_v28 }
 0x16d   : > { %v1194_v35 = vadd.f32 %v1192_v31, %v1189_v33  ;;  %v1195_v36 = vadd.f32 %v1193_v32, %v1190_v34 }
 0x16f   : > { %v1196_v37 = vmax.f32 %v1194_v35, 0.0  ;;  %v1197_v38 = vmax.f32 %v1195_v36, 0.0 }
 0x171   : > { %v1485_v39 = vpack.c.bf16 %v1197_v38, %v1196_v37 }
 0x173   : > { %1206 = vst [vmem:[%s2001_s14] sm:$0xff] %v1485_v39 }
 0x174 PF: > { %s14_s23 = sadd.s32 1, %s1731_s23   ;;  %s2117_s10 = sld [smem:[#allocation4_spill]] }
 0x175   : > { %p11_p2 = scmp.ge.s32.totalorder %s14_s23, 38   ;;  %s2118_s15 = smov %s1703_s16 }
 0x176   : > { %s2119_s16 = smov %s1830_s8  ;;  %s2120_s17 = smov %s1719_s20 }
 0x177   : > { %s2121_s18 = smov %s1723_s21  ;;  %s2122_s19 = smov %s1727_s22 }
 0x178   : > { %s2123_s20 = smov %s2129_s24  ;;  %s2124_s21 = smov %s2133_s25 }
 0x179   :  { %13 = sbr.rel (!%p11_p2) target bundleno = 7 (0x7), region = 126 }
 0x17a   : > { %s2125_s22 = smov %s2117_s10 }

// kernel: _pe_h_network.41
= control target key start
LH: loop header
LB: loop body
LE: loop exit
PB: predicated region body
PF: predicated region fallthrough
CT: control target
= control target key end

     0   :  { %s1987_s0 = inlined_call_operand.vmem [shape: bf16[2,8,4608], index: 0, kind: input, shape index: {}]   ;;  %s1988_s1 = inlined_call_operand.vmem [shape: bf16[2,4608,512], index: 1, kind: input, shape index: {}]   ;;  %s1989_s2 = inlined_call_operand.vmem [shape: f32[2,1,512], index: 2, kind: input, shape index: {}]   ;;  %s1990_s3 = inlined_call_operand.vmem [shape: bf16[2,8,512], index: 3, kind: output, shape index: {}]  }
   0x1   :  { %1991 = sst [smem:[#allocation4_spill]] %s1988_s1 }
   0x2   :  { %s1645_s12 = smov 0   ;;  %s1647_s13 = smov 0  }
   0x3   :  { %s1649_s14 = smov 0   ;;  %s1651_s15 = smov 0  }
   0x4   :  { %s1653_s16 = smov 0   ;;  %s1655_s17 = smov 0  }
   0x5   :  { %s1657_s18 = smov 0   ;;  %s1659_s19 = smov 0  }
   0x6   :  { %s1661_s20 = smov 0  }
   0x7 LB: > { %s28_s21 = sadd.s32 1, %s1610_s17  ;;  %s31_s22 = sadd.s32 1, %s1614_s18  ;;  %s1622_s20 = sphi %s1661_s20, %s13_s20   ;;  %s1618_s19 = sphi %s1659_s19, %s2001_s19   ;;  %s1614_s18 = sphi %s1657_s18, %s2000_s18   ;;  %s1610_s17 = sphi %s1655_s17, %s1999_s17   ;;  %s1606_s16 = sphi %s1653_s16, %s1998_s16   ;;  %s1602_s15 = sphi %s1651_s15, %s1997_s15   ;;  %s1598_s14 = sphi %s1649_s14, %s1996_s14   ;;  %s1594_s13 = sphi %s1647_s13, %s1995_s13   ;;  %s1590_s12 = sphi %s1645_s12, %s1994_s12  }
   0x8   : > { %p29_p0 = scmp.ge.s32.totalorder %s28_s21, 9  ;;  %p87_p1 = scmp.ne.s32.totalorder %s1594_s13, %s1590_s12 }
   0x9   : > { %p88_p2 = scmp.eq.s32.totalorder %s1622_s20, 0  ;;  %s39_s23 = sadd.s32 1, %s1618_s19 }
   0xa   : > { %s2003_s22 = smov (!%p29_p0, %s31_s22), %s1614_s18  ;;  %s2005_s21 = smov (%p29_p0, %s28_s21), 0 }
   0xb   : > { %p33_p3 = scmp.ge.s32.totalorder %s2003_s22, 2  ;;  %p1697_p4 = por %p88_p2, %p87_p1 }
   0xc   : > { %s74_s25 = ssub.s32 %s1610_s17, %s2005_s21  ;;  %s80_s30 = sadd.s32 1, %s1594_s13 }
   0xd   : > { %s2007_s23 = smov (!%p33_p3, %s39_s23), %s1618_s19  ;;  %s2009_s22 = smov (%p33_p3, %s2003_s22), 0 }
   0xe   : > { %p41_p5 = scmp.ge.s32.totalorder %s2007_s23, 2  ;;  %s76_s26 = ssub.s32 %s1614_s18, %s2009_s22 }
   0xf   : > { %p1287_p7 = scmp.ge.s32.totalorder %s1622_s20, 36 }
  0x10   : > { %s2011_s23 = smov (%p41_p5, %s2007_s23), 0 }
  0x11   : > { %s73_s27 = ssub.s32 %s1618_s19, %s2011_s23 }
  0x12   : > { %s75_s28 = sor.u32 %s74_s25, %s73_s27  ;;  %171 = sbr.rel (%p1287_p7) target bundleno = 66 (0x42), region = 16 }
  0x13   : > { %s77_s29 = sor.u32 %s76_s26, %s75_s28 }
  0x14   : > { %p78_p6 = scmp.eq.s32.totalorder %s77_s29, 0 }
  0x16   : > { %s1716_s4 = scalar_select %p78_p6, %s1594_s13, %s80_s30  }
  0x17   : > { %191 = sbr.rel (!%p1697_p4) target bundleno = 66 (0x42), region = 24  ;;  %s193_s5 = sand.u32 (%p1697_p4), 1, %s1594_s13  }
  0x18   : > { %s1290_s6 = sshll.u32 (%p1697_p4), %s1614_s18, 1  ;;  %s1375_s7 = sshll.u32 (%p1697_p4), %s1610_s17, 8 }
  0x19   : > { %s199_s8 = sadd.s32 (%p1697_p4), %s1375_s7, %s1290_s6  ;;  %s1288_s9 = sshll.u32 (%p1697_p4), %s193_s5, 9 }
  0x1a   : > { %s1377_s10 = smul.u32 (%p1697_p4), 2304, %s1618_s19  ;;  %s1993_s1 = sld [smem:[#allocation4_spill]] (%p1697_p4) }
  0x1b   : > { %s1733_s24 = scalar_lea.vmem (%p1697_p4), [#allocation3], %s1288_s9 }
  0x1c   : > { %s201_s11 = sadd.s32 %s1377_s10, %s199_s8 }
  0x1d   : > { %s1292_s25 = sshll.u32 %s201_s11, 2 }
  0x20   : > { %s1728_s28 = scalar_lea.vmem %s1993_s1, %s1292_s25 }
  0x21   : > { %v358_v0 = vld [vmem:[%s1728_s28] sm:$0xff]  ;;  %v360_v1 = vld [vmem:[%s1728_s28 + $0x10] sm:$0xff] }
  0x22   : > { %v362_v2 = vld [vmem:[%s1728_s28 + $0x20] sm:$0xff]  ;;  %359 = vst [vmem:[%s1733_s24] sm:$0xff] %v358_v0  ;;  %361 = vst [vmem:[%s1733_s24 + $0x8] sm:$0xff] %v360_v1  ;;  %v364_v3 = vld [vmem:[%s1728_s28 + $0x30] sm:$0xff] }
  0x23   : > { %363 = vst [vmem:[%s1733_s24 + $0x10] sm:$0xff] %v362_v2  ;;  %v366_v4 = vld [vmem:[%s1728_s28 + $0x40] sm:$0xff]  ;;  %v368_v5 = vld [vmem:[%s1728_s28 + $0x50] sm:$0xff]  ;;  %365 = vst [vmem:[%s1733_s24 + $0x18] sm:$0xff] %v364_v3 }
  0x24   : > { %367 = vst [vmem:[%s1733_s24 + $0x20] sm:$0xff] %v366_v4  ;;  %369 = vst [vmem:[%s1733_s24 + $0x28] sm:$0xff] %v368_v5  ;;  %v370_v6 = vld [vmem:[%s1728_s28 + $0x60] sm:$0xff]  ;;  %v372_v7 = vld [vmem:[%s1728_s28 + $0x70] sm:$0xff] }
  0x25   : > { %v374_v8 = vld [vmem:[%s1728_s28 + $0x80] sm:$0xff]  ;;  %371 = vst [vmem:[%s1733_s24 + $0x30] sm:$0xff] %v370_v6  ;;  %373 = vst [vmem:[%s1733_s24 + $0x38] sm:$0xff] %v372_v7  ;;  %v376_v9 = vld [vmem:[%s1728_s28 + $0x90] sm:$0xff] }
  0x26   : > { %375 = vst [vmem:[%s1733_s24 + $0x40] sm:$0xff] %v374_v8  ;;  %v378_v10 = vld [vmem:[%s1728_s28 + $0xa0] sm:$0xff]  ;;  %v380_v11 = vld [vmem:[%s1728_s28 + $0xb0] sm:$0xff]  ;;  %377 = vst [vmem:[%s1733_s24 + $0x48] sm:$0xff] %v376_v9 }
  0x27   : > { %379 = vst [vmem:[%s1733_s24 + $0x50] sm:$0xff] %v378_v10  ;;  %381 = vst [vmem:[%s1733_s24 + $0x58] sm:$0xff] %v380_v11  ;;  %v382_v12 = vld [vmem:[%s1728_s28 + $0xc0] sm:$0xff]  ;;  %v384_v13 = vld [vmem:[%s1728_s28 + $0xd0] sm:$0xff] }
  0x28   : > { %v386_v14 = vld [vmem:[%s1728_s28 + $0xe0] sm:$0xff]  ;;  %383 = vst [vmem:[%s1733_s24 + $0x60] sm:$0xff] %v382_v12  ;;  %385 = vst [vmem:[%s1733_s24 + $0x68] sm:$0xff] %v384_v13  ;;  %v388_v15 = vld [vmem:[%s1728_s28 + $0xf0] sm:$0xff] }
  0x29   : > { %387 = vst [vmem:[%s1733_s24 + $0x70] sm:$0xff] %v386_v14  ;;  %v390_v16 = vld [vmem:[%s1728_s28 + $0x100] sm:$0xff]  ;;  %v392_v17 = vld [vmem:[%s1728_s28 + $0x110] sm:$0xff]  ;;  %389 = vst [vmem:[%s1733_s24 + $0x78] sm:$0xff] %v388_v15 }
  0x2a   : > { %391 = vst [vmem:[%s1733_s24 + $0x80] sm:$0xff] %v390_v16  ;;  %393 = vst [vmem:[%s1733_s24 + $0x88] sm:$0xff] %v392_v17  ;;  %v394_v18 = vld [vmem:[%s1728_s28 + $0x120] sm:$0xff]  ;;  %v396_v19 = vld [vmem:[%s1728_s28 + $0x130] sm:$0xff] }
  0x2b   : > { %v398_v20 = vld [vmem:[%s1728_s28 + $0x140] sm:$0xff]  ;;  %395 = vst [vmem:[%s1733_s24 + $0x90] sm:$0xff] %v394_v18  ;;  %397 = vst [vmem:[%s1733_s24 + $0x98] sm:$0xff] %v396_v19  ;;  %v400_v21 = vld [vmem:[%s1728_s28 + $0x150] sm:$0xff] }
  0x2c   : > { %399 = vst [vmem:[%s1733_s24 + $0xa0] sm:$0xff] %v398_v20  ;;  %v402_v22 = vld [vmem:[%s1728_s28 + $0x160] sm:$0xff]  ;;  %v404_v23 = vld [vmem:[%s1728_s28 + $0x170] sm:$0xff]  ;;  %401 = vst [vmem:[%s1733_s24 + $0xa8] sm:$0xff] %v400_v21 }
  0x2d   : > { %403 = vst [vmem:[%s1733_s24 + $0xb0] sm:$0xff] %v402_v22  ;;  %405 = vst [vmem:[%s1733_s24 + $0xb8] sm:$0xff] %v404_v23  ;;  %v406_v24 = vld [vmem:[%s1728_s28 + $0x180] sm:$0xff]  ;;  %v408_v25 = vld [vmem:[%s1728_s28 + $0x190] sm:$0xff] }
  0x2e   : > { %v410_v26 = vld [vmem:[%s1728_s28 + $0x1a0] sm:$0xff]  ;;  %407 = vst [vmem:[%s1733_s24 + $0xc0] sm:$0xff] %v406_v24  ;;  %409 = vst [vmem:[%s1733_s24 + $0xc8] sm:$0xff] %v408_v25  ;;  %v412_v27 = vld [vmem:[%s1728_s28 + $0x1b0] sm:$0xff] }
  0x2f   : > { %411 = vst [vmem:[%s1733_s24 + $0xd0] sm:$0xff] %v410_v26  ;;  %v414_v28 = vld [vmem:[%s1728_s28 + $0x1c0] sm:$0xff]  ;;  %v416_v29 = vld [vmem:[%s1728_s28 + $0x1d0] sm:$0xff]  ;;  %413 = vst [vmem:[%s1733_s24 + $0xd8] sm:$0xff] %v412_v27 }
  0x30   : > { %415 = vst [vmem:[%s1733_s24 + $0xe0] sm:$0xff] %v414_v28  ;;  %417 = vst [vmem:[%s1733_s24 + $0xe8] sm:$0xff] %v416_v29  ;;  %v418_v30 = vld [vmem:[%s1728_s28 + $0x1e0] sm:$0xff]  ;;  %v420_v31 = vld [vmem:[%s1728_s28 + $0x1f0] sm:$0xff] }
  0x31   : > { %v422_v32 = vld [vmem:[%s1728_s28 + $0x200] sm:$0xff]  ;;  %419 = vst [vmem:[%s1733_s24 + $0xf0] sm:$0xff] %v418_v30  ;;  %421 = vst [vmem:[%s1733_s24 + $0xf8] sm:$0xff] %v420_v31  ;;  %v424_v33 = vld [vmem:[%s1728_s28 + $0x210] sm:$0xff] }
  0x32   : > { %423 = vst [vmem:[%s1733_s24 + $0x100] sm:$0xff] %v422_v32  ;;  %v426_v34 = vld [vmem:[%s1728_s28 + $0x220] sm:$0xff]  ;;  %v428_v35 = vld [vmem:[%s1728_s28 + $0x230] sm:$0xff]  ;;  %425 = vst [vmem:[%s1733_s24 + $0x108] sm:$0xff] %v424_v33 }
  0x33   : > { %427 = vst [vmem:[%s1733_s24 + $0x110] sm:$0xff] %v426_v34  ;;  %429 = vst [vmem:[%s1733_s24 + $0x118] sm:$0xff] %v428_v35  ;;  %v430_v36 = vld [vmem:[%s1728_s28 + $0x240] sm:$0xff]  ;;  %v432_v37 = vld [vmem:[%s1728_s28 + $0x250] sm:$0xff] }
  0x34   : > { %v434_v38 = vld [vmem:[%s1728_s28 + $0x260] sm:$0xff]  ;;  %431 = vst [vmem:[%s1733_s24 + $0x120] sm:$0xff] %v430_v36  ;;  %433 = vst [vmem:[%s1733_s24 + $0x128] sm:$0xff] %v432_v37  ;;  %v436_v39 = vld [vmem:[%s1728_s28 + $0x270] sm:$0xff] }
  0x35   : > { %435 = vst [vmem:[%s1733_s24 + $0x130] sm:$0xff] %v434_v38  ;;  %v438_v40 = vld [vmem:[%s1728_s28 + $0x280] sm:$0xff]  ;;  %v440_v41 = vld [vmem:[%s1728_s28 + $0x290] sm:$0xff]  ;;  %437 = vst [vmem:[%s1733_s24 + $0x138] sm:$0xff] %v436_v39 }
  0x36   : > { %439 = vst [vmem:[%s1733_s24 + $0x140] sm:$0xff] %v438_v40  ;;  %441 = vst [vmem:[%s1733_s24 + $0x148] sm:$0xff] %v440_v41  ;;  %v442_v42 = vld [vmem:[%s1728_s28 + $0x2a0] sm:$0xff]  ;;  %v444_v43 = vld [vmem:[%s1728_s28 + $0x2b0] sm:$0xff] }
  0x37   : > { %v446_v44 = vld [vmem:[%s1728_s28 + $0x2c0] sm:$0xff]  ;;  %443 = vst [vmem:[%s1733_s24 + $0x150] sm:$0xff] %v442_v42  ;;  %445 = vst [vmem:[%s1733_s24 + $0x158] sm:$0xff] %v444_v43  ;;  %v448_v45 = vld [vmem:[%s1728_s28 + $0x2d0] sm:$0xff] }
  0x38   : > { %447 = vst [vmem:[%s1733_s24 + $0x160] sm:$0xff] %v446_v44  ;;  %v450_v46 = vld [vmem:[%s1728_s28 + $0x2e0] sm:$0xff]  ;;  %v452_v47 = vld [vmem:[%s1728_s28 + $0x2f0] sm:$0xff]  ;;  %449 = vst [vmem:[%s1733_s24 + $0x168] sm:$0xff] %v448_v45 }
  0x39   : > { %451 = vst [vmem:[%s1733_s24 + $0x170] sm:$0xff] %v450_v46  ;;  %453 = vst [vmem:[%s1733_s24 + $0x178] sm:$0xff] %v452_v47  ;;  %v454_v48 = vld [vmem:[%s1728_s28 + $0x300] sm:$0xff]  ;;  %v456_v49 = vld [vmem:[%s1728_s28 + $0x310] sm:$0xff] }
  0x3a   : > { %v458_v50 = vld [vmem:[%s1728_s28 + $0x320] sm:$0xff]  ;;  %455 = vst [vmem:[%s1733_s24 + $0x180] sm:$0xff] %v454_v48  ;;  %457 = vst [vmem:[%s1733_s24 + $0x188] sm:$0xff] %v456_v49  ;;  %v460_v51 = vld [vmem:[%s1728_s28 + $0x330] sm:$0xff] }
  0x3b   : > { %459 = vst [vmem:[%s1733_s24 + $0x190] sm:$0xff] %v458_v50  ;;  %v462_v52 = vld [vmem:[%s1728_s28 + $0x340] sm:$0xff]  ;;  %v464_v53 = vld [vmem:[%s1728_s28 + $0x350] sm:$0xff]  ;;  %461 = vst [vmem:[%s1733_s24 + $0x198] sm:$0xff] %v460_v51 }
  0x3c   : > { %463 = vst [vmem:[%s1733_s24 + $0x1a0] sm:$0xff] %v462_v52  ;;  %465 = vst [vmem:[%s1733_s24 + $0x1a8] sm:$0xff] %v464_v53  ;;  %v466_v54 = vld [vmem:[%s1728_s28 + $0x360] sm:$0xff]  ;;  %v468_v55 = vld [vmem:[%s1728_s28 + $0x370] sm:$0xff] }
  0x3d   : > { %v470_v56 = vld [vmem:[%s1728_s28 + $0x380] sm:$0xff]  ;;  %467 = vst [vmem:[%s1733_s24 + $0x1b0] sm:$0xff] %v466_v54  ;;  %469 = vst [vmem:[%s1733_s24 + $0x1b8] sm:$0xff] %v468_v55  ;;  %v472_v57 = vld [vmem:[%s1728_s28 + $0x390] sm:$0xff] }
  0x3e   : > { %471 = vst [vmem:[%s1733_s24 + $0x1c0] sm:$0xff] %v470_v56  ;;  %v474_v58 = vld [vmem:[%s1728_s28 + $0x3a0] sm:$0xff]  ;;  %v476_v59 = vld [vmem:[%s1728_s28 + $0x3b0] sm:$0xff]  ;;  %473 = vst [vmem:[%s1733_s24 + $0x1c8] sm:$0xff] %v472_v57 }
  0x3f   : > { %475 = vst [vmem:[%s1733_s24 + $0x1d0] sm:$0xff] %v474_v58  ;;  %477 = vst [vmem:[%s1733_s24 + $0x1d8] sm:$0xff] %v476_v59  ;;  %v478_v60 = vld [vmem:[%s1728_s28 + $0x3c0] sm:$0xff]  ;;  %v480_v61 = vld [vmem:[%s1728_s28 + $0x3d0] sm:$0xff] }
  0x40   : > { %v482_v62 = vld [vmem:[%s1728_s28 + $0x3e0] sm:$0xff]  ;;  %479 = vst [vmem:[%s1733_s24 + $0x1e0] sm:$0xff] %v478_v60  ;;  %481 = vst [vmem:[%s1733_s24 + $0x1e8] sm:$0xff] %v480_v61  ;;  %v484_v63 = vld [vmem:[%s1728_s28 + $0x3f0] sm:$0xff] }
  0x41   : > { %483 = vst [vmem:[%s1733_s24 + $0x1f0] sm:$0xff] %v482_v62  ;;  %485 = vst [vmem:[%s1733_s24 + $0x1f8] sm:$0xff] %v484_v63 }
  0x42 PF: > { %p1293_p8 = scmp.ge.s32.totalorder %s1622_s20, 1  ;;  %p502_p9 = scmp.lt.s32.totalorder %s1622_s20, 37 }
  0x44   : > { %p503_p10 = pnand %p1293_p8, %p502_p9 }
  0x45   : > { %s509_s29 = sand.u32 (!%p503_p10), 1, %s1590_s12   ;;  %s1295_s30 = sshll.u32 (!%p503_p10), %s1598_s14, 2 }
  0x46   : > { %506 = sbr.rel (%p503_p10) target bundleno = 365 (0x16d), region = 66  ;;  %s1294_s5 = sshll.u32 (!%p503_p10), %s509_s29, 9 }
  0x47   : > { %p562_p11 = scmp.lt.s32.totalorder (!%p503_p10), %s1606_s16, 1  ;;  %p566_p12 = scmp.lt.s32.totalorder (!%p503_p10), %s1295_s30, 35 }
  0x48   : > { %s1297_s7 = sshll.u32 (!%p503_p10), %s1602_s15, 1  ;;  %p1302_p0 = scmp.ne.s32.totalorder (!%p503_p10), %s1598_s14, 0 }
  0x49   : > { %p580_p13 = scmp.lt.s32.totalorder (!%p503_p10), %s1297_s7, 3 }
  0x4b   : > { %s2013_s16 = smov (!%p562_p11, %s1606_s16), 1  ;;  %s2015_s30 = smov (!%p566_p12, %s1295_s30), 35 }
  0x4c   : > { %s1378_s6 = smul.u32 36, %s2013_s16  ;;  %s1298_s26 = sshll.u32 %s2013_s16, 2 }
  0x4d   : > { %s2017_s7 = smov (!%p580_p13, %s1297_s7), 3  ;;  %603 = sbr.rel (%p1302_p0) target bundleno = 84 (0x54), region = 74 }
  0x4e   : > { %s571_s8 = sadd.s32 %s1378_s6, %s2015_s30  ;;  %s1872_s27 = sadd.s32 %s1298_s26, %s2017_s7 }
  0x4f   : > { %s1296_s9 = sshll.u32 %s571_s8, 2  ;;  %s584_s24 = scalar_lea.vmem %s1989_s2, %s1872_s27 }
  0x50   : > { %s1870_s25 = scalar_lea.vmem %s1987_s0, %s1296_s9  ;;  %s1301_s29 = sshll.u32 %s1872_s27, 2 }
  0x51   : > { %s1882_s30 = scalar_lea.vmem %s1990_s3, %s1301_s29  ;;  %s1884_s6 = scalar_lea.vmem [#allocation3], %s1294_s5 }
  0x52   : > { %v1624_v0 = vmov 0.0  }
  0x53   : > { %604 = vst [vmem:[#allocation2] sm:$0xff] %v1624_v0  ;;  %605 = vst [vmem:[#allocation2 + $0x8] sm:$0xff] %v1624_v0 }
  0x54 PF: > { %v1452_v1 = vld [vmem:[%s1884_s6 + $0x74] ss:$8 sps:$4 sm:$0xff]   ;;  %v1456_v3 = vld [vmem:[%s1884_s6 + $0x70] ss:$8 sps:$4 sm:$0xff]   ;;  %v1458_v5 = vld [vmem:[%s1884_s6 + $0x64] ss:$8 sps:$4 sm:$0xff]  }
  0x55   : > { %v1454_v2 = vld [vmem:[%s1884_s6 + $0x174] ss:$8 sps:$4 sm:$0xff]   ;;  %1008 = vmatprep.subr.bf16.mxu0 %v1452_v1  ;;  %v1457_v4 = vld [vmem:[%s1884_s6 + $0x170] ss:$8 sps:$4 sm:$0xff]   ;;  %v1460_v6 = vld [vmem:[%s1884_s6 + $0x164] ss:$8 sps:$4 sm:$0xff]  }
  0x56   : > { %1049 = vmatprep.subr.bf16.mxu1 %v1454_v2  ;;  %1009 = vmatpush1.bf16.msra.mxu0 %v1456_v3  ;;  %v1462_v7 = vld [vmem:[%s1884_s6 + $0x60] ss:$8 sps:$4 sm:$0xff]   ;;  %v1464_v9 = vld [vmem:[%s1884_s6 + $0x54] ss:$8 sps:$4 sm:$0xff]   ;;  %v1468_v11 = vld [vmem:[%s1884_s6 + $0x50] ss:$8 sps:$4 sm:$0xff]  }
  0x57   : > { %1050 = vmatpush1.bf16.msra.mxu1 %v1457_v4  ;;  %1010 = vmatprep.subr.bf16.mxu0 %v1458_v5  ;;  %v1463_v8 = vld [vmem:[%s1884_s6 + $0x160] ss:$8 sps:$4 sm:$0xff]   ;;  %v1466_v10 = vld [vmem:[%s1884_s6 + $0x154] ss:$8 sps:$4 sm:$0xff]   ;;  %v1469_v12 = vld [vmem:[%s1884_s6 + $0x150] ss:$8 sps:$4 sm:$0xff]  }
  0x58   : > { %1051 = vmatprep.subr.bf16.mxu1 %v1460_v6  ;;  %v1470_v13 = vld [vmem:[%s1884_s6 + $0x44] ss:$8 sps:$4 sm:$0xff]   ;;  %v1474_v15 = vld [vmem:[%s1884_s6 + $0x40] ss:$8 sps:$4 sm:$0xff]   ;;  %v1476_v17 = vld [vmem:[%s1884_s6 + $0x34] ss:$8 sps:$4 sm:$0xff]  }
  0x59   : > { %v1472_v14 = vld [vmem:[%s1884_s6 + $0x144] ss:$8 sps:$4 sm:$0xff]   ;;  %v1475_v16 = vld [vmem:[%s1884_s6 + $0x140] ss:$8 sps:$4 sm:$0xff]   ;;  %v1478_v18 = vld [vmem:[%s1884_s6 + $0x134] ss:$8 sps:$4 sm:$0xff]  }
  0x5a   : > { %1011 = vmatpush1.bf16.msra.mxu0 %v1462_v7  ;;  %v1480_v19 = vld [vmem:[%s1884_s6 + $0x30] ss:$8 sps:$4 sm:$0xff]   ;;  %v1482_v21 = vld [vmem:[%s1884_s6 + $0x24] ss:$8 sps:$4 sm:$0xff]   ;;  %v1486_v23 = vld [vmem:[%s1884_s6 + $0x20] ss:$8 sps:$4 sm:$0xff]  }
  0x5b   : > { %1052 = vmatpush1.bf16.msra.mxu1 %v1463_v8  ;;  %1012 = vmatprep.subr.bf16.mxu0 %v1464_v9  ;;  %v1481_v20 = vld [vmem:[%s1884_s6 + $0x130] ss:$8 sps:$4 sm:$0xff]   ;;  %v1484_v22 = vld [vmem:[%s1884_s6 + $0x124] ss:$8 sps:$4 sm:$0xff]   ;;  %v1487_v24 = vld [vmem:[%s1884_s6 + $0x120] ss:$8 sps:$4 sm:$0xff]  }
  0x5c   : > { %1053 = vmatprep.subr.bf16.mxu1 %v1466_v10  ;;  %v1488_v25 = vld [vmem:[%s1884_s6 + $0x14] ss:$8 sps:$4 sm:$0xff]   ;;  %v1492_v27 = vld [vmem:[%s1884_s6 + $0x10] ss:$8 sps:$4 sm:$0xff]   ;;  %v1494_v29 = vld [vmem:[%s1884_s6 + $0x4] ss:$8 sps:$4 sm:$0xff]  }
  0x5d   : > { %v1490_v26 = vld [vmem:[%s1884_s6 + $0x114] ss:$8 sps:$4 sm:$0xff]   ;;  %v1493_v28 = vld [vmem:[%s1884_s6 + $0x110] ss:$8 sps:$4 sm:$0xff]   ;;  %v1496_v30 = vld [vmem:[%s1884_s6 + $0x104] ss:$8 sps:$4 sm:$0xff]  }
  0x5e   : > { %1013 = vmatpush1.bf16.msra.mxu0 %v1468_v11  ;;  %v1498_v31 = vld [vmem:[%s1884_s6] ss:$8 sps:$4 sm:$0xff]   ;;  %v1500_v33 = vld [vmem:[%s1884_s6 + $0xf4] ss:$8 sps:$4 sm:$0xff]   ;;  %v1504_v35 = vld [vmem:[%s1884_s6 + $0xf0] ss:$8 sps:$4 sm:$0xff]  }
  0x5f   : > { %1054 = vmatpush1.bf16.msra.mxu1 %v1469_v12  ;;  %1014 = vmatprep.subr.bf16.mxu0 %v1470_v13  ;;  %v1499_v32 = vld [vmem:[%s1884_s6 + $0x100] ss:$8 sps:$4 sm:$0xff]   ;;  %v1502_v34 = vld [vmem:[%s1884_s6 + $0x1f4] ss:$8 sps:$4 sm:$0xff]   ;;  %v1505_v36 = vld [vmem:[%s1884_s6 + $0x1f0] ss:$8 sps:$4 sm:$0xff]  }
  0x60   : > { %1055 = vmatprep.subr.bf16.mxu1 %v1472_v14  ;;  %v1506_v37 = vld [vmem:[%s1884_s6 + $0xe4] ss:$8 sps:$4 sm:$0xff]   ;;  %v1510_v39 = vld [vmem:[%s1884_s6 + $0xe0] ss:$8 sps:$4 sm:$0xff]   ;;  %v1512_v41 = vld [vmem:[%s1884_s6 + $0xd4] ss:$8 sps:$4 sm:$0xff]  }
  0x61   : > { %v1508_v38 = vld [vmem:[%s1884_s6 + $0x1e4] ss:$8 sps:$4 sm:$0xff]   ;;  %v1511_v40 = vld [vmem:[%s1884_s6 + $0x1e0] ss:$8 sps:$4 sm:$0xff]   ;;  %v1514_v42 = vld [vmem:[%s1884_s6 + $0x1d4] ss:$8 sps:$4 sm:$0xff]  }
  0x62   : > { %1015 = vmatpush1.bf16.msra.mxu0 %v1474_v15  ;;  %v1516_v43 = vld [vmem:[%s1884_s6 + $0xd0] ss:$8 sps:$4 sm:$0xff]   ;;  %v1518_v45 = vld [vmem:[%s1884_s6 + $0xc4] ss:$8 sps:$4 sm:$0xff]   ;;  %v1522_v50 = vld [vmem:[%s1884_s6 + $0xc0] ss:$8 sps:$4 sm:$0xff]  }
  0x63   : > { %1056 = vmatpush1.bf16.msra.mxu1 %v1475_v16  ;;  %1016 = vmatprep.subr.bf16.mxu0 %v1476_v17  ;;  %v1517_v44 = vld [vmem:[%s1884_s6 + $0x1d0] ss:$8 sps:$4 sm:$0xff]   ;;  %v1520_v46 = vld [vmem:[%s1884_s6 + $0x1c4] ss:$8 sps:$4 sm:$0xff]   ;;  %v1523_v51 = vld [vmem:[%s1884_s6 + $0x1c0] ss:$8 sps:$4 sm:$0xff]  }
  0x64   : > { %1057 = vmatprep.subr.bf16.mxu1 %v1478_v18  ;;  %v606_v47 = vld [vmem:[%s1870_s25] sm:$0xff]  ;;  %v607_v49 = vld [vmem:[%s1870_s25 + $0x8] sm:$0xff]  ;;  %v1530_v57 = vld [vmem:[%s1884_s6 + $0xa4] ss:$8 sps:$4 sm:$0xff]   ;;  %p1371_p1 = scmp.ne.s32.totalorder %s1598_s14, 8 }
  0x65   : > { %v1304_v48 = vcombine.high %v606_v47, %v606_v47  ;;  %v1306_v52 = vcombine.high %v607_v49, %v607_v49  ;;  %v1524_v53 = vld [vmem:[%s1884_s6 + $0xb4] ss:$8 sps:$4 sm:$0xff]   ;;  %v1528_v55 = vld [vmem:[%s1884_s6 + $0xb0] ss:$8 sps:$4 sm:$0xff]   ;;  %v1532_v58 = vld [vmem:[%s1884_s6 + $0x1a4] ss:$8 sps:$4 sm:$0xff]   ;;  %v1303_v5 = vcombine.low %v606_v47, %v606_v47  ;;  %v1305_v6 = vcombine.low %v607_v49, %v607_v49 }
  0x66   : > { %1017 = vmatpush1.bf16.msra.mxu0 %v1480_v19  ;;  %v1526_v54 = vld [vmem:[%s1884_s6 + $0x1b4] ss:$8 sps:$4 sm:$0xff]   ;;  %v1529_v56 = vld [vmem:[%s1884_s6 + $0x1b0] ss:$8 sps:$4 sm:$0xff]   ;;  %v1534_v59 = vld [vmem:[%s1884_s6 + $0xa0] ss:$8 sps:$4 sm:$0xff]  }
  0x67   : > { %1058 = vmatpush1.bf16.msra.mxu1 %v1481_v20  ;;  %1018 = vmatprep.subr.bf16.mxu0 %v1482_v21  ;;  %v1535_v60 = vld [vmem:[%s1884_s6 + $0x1a0] ss:$8 sps:$4 sm:$0xff]   ;;  %v1536_v61 = vld [vmem:[%s1884_s6 + $0x94] ss:$8 sps:$4 sm:$0xff]   ;;  %v1540_v63 = vld [vmem:[%s1884_s6 + $0x90] ss:$8 sps:$4 sm:$0xff]  }
  0x68   : > { %1059 = vmatprep.subr.bf16.mxu1 %v1484_v22  ;;  %1040 = vmatprep.mubr.bf16.mxu0 %v1304_v48  ;;  %v1538_v62 = vld [vmem:[%s1884_s6 + $0x194] ss:$8 sps:$4 sm:$0xff]   ;;  %v1541_v0 = vld [vmem:[%s1884_s6 + $0x190] ss:$8 sps:$4 sm:$0xff]   ;;  %v1542_v1 = vld [vmem:[%s1884_s6 + $0x84] ss:$8 sps:$4 sm:$0xff]  }
  0x69   : > { %1081 = vmatprep.mubr.bf16.mxu1 %v1306_v52  ;;  %v1544_v2 = vld [vmem:[%s1884_s6 + $0x184] ss:$8 sps:$4 sm:$0xff]   ;;  %v1546_v3 = vld [vmem:[%s1884_s6 + $0x80] ss:$8 sps:$4 sm:$0xff]   ;;  %v608_v8 = vld [vmem:[#allocation2] sm:$0xff] }
  0x6a   : > { %1019 = vmatpush1.bf16.msra.mxu0 %v1486_v23  ;;  %v1547_v4 = vld [vmem:[%s1884_s6 + $0x180] ss:$8 sps:$4 sm:$0xff]   ;;  %v609_v12 = vld [vmem:[#allocation2 + $0x8] sm:$0xff] }
  0x6b   : > { %1060 = vmatpush1.bf16.msra.mxu1 %v1487_v24  ;;  %1020 = vmatprep.subr.bf16.mxu0 %v1488_v25 }
  0x6c   : > { %1061 = vmatprep.subr.bf16.mxu1 %v1490_v26 }
  0x6e   : > { %1021 = vmatpush1.bf16.msra.mxu0 %v1492_v27 }
  0x6f   : > { %1062 = vmatpush1.bf16.msra.mxu1 %v1493_v28  ;;  %1022 = vmatprep.subr.bf16.mxu0 %v1494_v29 }
  0x70   : > { %1063 = vmatprep.subr.bf16.mxu1 %v1496_v30 }
  0x72   : > { %1023 = vmatpush1.bf16.msra.mxu0 %v1498_v31 }
  0x73   : > { %1064 = vmatpush1.bf16.msra.mxu1 %v1499_v32  ;;  %1024 = vmatprep.subr.bf16.mxu0 %v1500_v33 }
  0x74   : > { %1065 = vmatprep.subr.bf16.mxu1 %v1502_v34 }
  0x76   : > { %1025 = vmatpush2.bf16.msra.mxu0 %v1504_v35 }
  0x77   : > { %1066 = vmatpush2.bf16.msra.mxu1 %v1505_v36  ;;  %1026 = vmatprep.subr.bf16.mxu0 %v1506_v37 }
  0x78   : > { %1067 = vmatprep.subr.bf16.mxu1 %v1508_v38 }
  0x7a   : > { %1027 = vmatpush2.bf16.msra.mxu0 %v1510_v39 }
  0x7b   : > { %1068 = vmatpush2.bf16.msra.mxu1 %v1511_v40  ;;  %1028 = vmatprep.subr.bf16.mxu0 %v1512_v41 }
  0x7c   : > { %1069 = vmatprep.subr.bf16.mxu1 %v1514_v42 }
  0x7e   : > { %1029 = vmatpush2.bf16.msra.mxu0 %v1516_v43 }
  0x7f   : > { %1070 = vmatpush2.bf16.msra.mxu1 %v1517_v44  ;;  %1030 = vmatprep.subr.bf16.mxu0 %v1518_v45 }
  0x80   : > { %1071 = vmatprep.subr.bf16.mxu1 %v1520_v46 }
  0x82   : > { %1031 = vmatpush2.bf16.msra.mxu0 %v1522_v50 }
  0x83   : > { %1072 = vmatpush2.bf16.msra.mxu1 %v1523_v51  ;;  %1032 = vmatprep.subr.bf16.mxu0 %v1524_v53 }
  0x84   : > { %1073 = vmatprep.subr.bf16.mxu1 %v1526_v54 }
  0x86   : > { %1033 = vmatpush2.bf16.msra.mxu0 %v1528_v55 }
  0x87   : > { %1074 = vmatpush2.bf16.msra.mxu1 %v1529_v56  ;;  %1034 = vmatprep.subr.bf16.mxu0 %v1530_v57 }
  0x88   : > { %1075 = vmatprep.subr.bf16.mxu1 %v1532_v58 }
  0x8a   : > { %1035 = vmatpush2.bf16.msra.mxu0 %v1534_v59 }
  0x8b   : > { %1076 = vmatpush2.bf16.msra.mxu1 %v1535_v60  ;;  %1036 = vmatprep.subr.bf16.mxu0 %v1536_v61 }
  0x8c   : > { %1077 = vmatprep.subr.bf16.mxu1 %v1538_v62 }
  0x8e   : > { %1037 = vmatpush2.bf16.msra.mxu0 %v1540_v63 }
  0x8f   : > { %1078 = vmatpush2.bf16.msra.mxu1 %v1541_v0  ;;  %1038 = vmatprep.subr.bf16.mxu0 %v1542_v1 }
  0x90   : > { %1079 = vmatprep.subr.bf16.mxu1 %v1544_v2 }
  0x92   : > { %1039 = vmatpush2.bf16.msra.mxu0 %v1546_v3 }
  0x93   : > { %1080 = vmatpush2.bf16.msra.mxu1 %v1547_v4 }
  0x95   : > { %1041 = vmatmul.mubr.bf16.vlgmr.msra.gmra.mxu0 %v1303_v5 }
  0x96   : > { %1082 = vmatmul.mubr.bf16.vlgmr.msra.gmra.mxu1 %v1305_v6 }
 0x155   : > { %v1042_v7 = vpop.f32.mrf.mxu0 }
 0x156   : > { %v1083_v9 = vpop.f32.mrf.mxu1 }
 0x157   : > { %v1084_v10 = vadd.f32 %v1083_v9, %v1042_v7  ;;  %v1044_v11 = vpop.f32.mrf.mxu0 }
 0x158   : > { %v1085_v13 = vpop.f32.mrf.mxu1 }
 0x159   : > { %v1090_v14 = vadd.f32 %v1084_v10, %v608_v8  ;;  %v1086_v15 = vadd.f32 %v1085_v13, %v1044_v11  ;;  %v1046_v16 = vpop.f32.mrf.mxu0  ;;  %1097 = sbr.rel (%p1371_p1) target bundleno = 365 (0x16d), region = 78 }
 0x15a   : > { %v1087_v17 = vpop.f32.mrf.mxu1 }
 0x15b   : > { %1092 = vst [vmem:[#allocation2] sm:$0xff] %v1090_v14  ;;  %v1091_v18 = vadd.f32 %v1086_v15, %v609_v12  ;;  %v1047_v19 = vpop.f32.mrf.mxu0 }
 0x15c   : > { %v1088_v20 = vpop.f32.mrf.mxu1 }
 0x15d   : > { %1093 = vst [vmem:[#allocation2 + $0x8] sm:$0xff] %v1091_v18 }
 0x15e   : > { %v1102_v21 = vlaneseq  ;;  %v1100_v23 = vld [vmem:[%s584_s24] sm:$0x3] }
 0x160   : > { %v1103_v22 = vshrl.u32 %v1102_v21, 7 }
 0x162   : > { %v1104_v24 = vsub.s32 0, %v1103_v22  ;;  %v1108_v25 = vsub.s32 1, %v1103_v22  ;;  %v1098_v26 = vld [vmem:[#allocation2] sm:$0xff] }
 0x164   : > { %v1099_v27 = vld [vmem:[#allocation2 + $0x8] sm:$0xff]  ;;  %v1105_v28 = vrot.slane %v1100_v23, %v1104_v24  ;;  %v1109_v29 = vrot.slane %v1100_v23, %v1108_v25 }
 0x166   : > { %v1112_v30 = vadd.f32 %v1105_v28, %v1098_v26  ;;  %v1113_v31 = vadd.f32 %v1109_v29, %v1099_v27 }
 0x168   : > { %v1114_v32 = vmax.f32 %v1112_v30, 0.0  ;;  %v1115_v33 = vmax.f32 %v1113_v31, 0.0 }
 0x16a   : > { %v1376_v34 = vpack.c.bf16 %v1115_v33, %v1114_v32 }
 0x16c   : > { %1124 = vst [vmem:[%s1882_s30] sm:$0xff] %v1376_v34 }
 0x16d PF: > { %s13_s20 = sadd.s32 1, %s1622_s20   ;;  %s1994_s12 = smov %s1594_s13 }
 0x16e   : > { %p10_p2 = scmp.ge.s32.totalorder %s13_s20, 38   ;;  %s1995_s13 = smov %s1716_s4 }
 0x16f   : > { %s1996_s14 = smov %s1610_s17  ;;  %s1997_s15 = smov %s1614_s18 }
 0x170   : > { %s1998_s16 = smov %s1618_s19  ;;  %s1999_s17 = smov %s2005_s21 }
 0x171   : > { %s2000_s18 = smov %s2009_s22  ;;  %s2001_s19 = smov %s2011_s23 }
 0x172   :  { %12 = sbr.rel (!%p10_p2) target bundleno = 7 (0x7), region = 119 }

// kernel: _pe_h_network.43
= control target key start
LH: loop header
LB: loop body
LE: loop exit
PB: predicated region body
PF: predicated region fallthrough
CT: control target
= control target key end

     0   :  { %v42_v38 = vlaneseq  ;;  %vm285_vm0 = vcmask 1041409   ;;  %s2487_s0 = inlined_call_operand.vmem [shape: bf16[2,2,1,512], index: 0, kind: input, shape index: {}]   ;;  %s2488_s1 = inlined_call_operand.vmem [shape: bf16[1024,256], index: 1, kind: input, shape index: {}]   ;;  %s2489_s2 = inlined_call_operand.vmem [shape: f32[1,256], index: 2, kind: input, shape index: {}]   ;;  %s2490_s3 = inlined_call_operand.vmem [shape: bf16[256,128], index: 3, kind: input, shape index: {}]   ;;  %s2491_s4 = inlined_call_operand.vmem [shape: f32[1,128], index: 4, kind: input, shape index: {}]   ;;  %s2492_s5 = inlined_call_operand.vmem [shape: bf16[128,2], index: 5, kind: input, shape index: {}]   ;;  %s2493_s6 = inlined_call_operand.vmem [shape: f32[1,2], index: 6, kind: input, shape index: {}]   ;;  %s2494_s7 = inlined_call_operand.hbm [shape: f32[2,2], index: 7, kind: output, shape index: {}]  }
   0x1   :  { %v1676_v0 = vld [vmem:[%s2488_s1 + $0x274] ss:$8 sps:$4 sm:$0xff]   ;;  %v1680_v2 = vld [vmem:[%s2488_s1 + $0x270] ss:$8 sps:$4 sm:$0xff]   ;;  %v1682_v4 = vld [vmem:[%s2488_s1 + $0x264] ss:$8 sps:$4 sm:$0xff]  }
   0x2   :  { %v1678_v1 = vld [vmem:[%s2488_s1 + $0x374] ss:$8 sps:$4 sm:$0xff]   ;;  %621 = vmatprep.subr.bf16.mxu0 %v1676_v0  ;;  %v1681_v3 = vld [vmem:[%s2488_s1 + $0x370] ss:$8 sps:$4 sm:$0xff]   ;;  %v1684_v5 = vld [vmem:[%s2488_s1 + $0x364] ss:$8 sps:$4 sm:$0xff]  }
   0x3   :  { %662 = vmatprep.subr.bf16.mxu1 %v1678_v1  ;;  %622 = vmatpush1.bf16.msra.mxu0 %v1680_v2  ;;  %v1686_v6 = vld [vmem:[%s2488_s1 + $0x260] ss:$8 sps:$4 sm:$0xff]   ;;  %v1688_v8 = vld [vmem:[%s2488_s1 + $0x254] ss:$8 sps:$4 sm:$0xff]   ;;  %v1692_v10 = vld [vmem:[%s2488_s1 + $0x250] ss:$8 sps:$4 sm:$0xff]  }
   0x4   :  { %663 = vmatpush1.bf16.msra.mxu1 %v1681_v3  ;;  %623 = vmatprep.subr.bf16.mxu0 %v1682_v4  ;;  %v1687_v7 = vld [vmem:[%s2488_s1 + $0x360] ss:$8 sps:$4 sm:$0xff]   ;;  %v1690_v9 = vld [vmem:[%s2488_s1 + $0x354] ss:$8 sps:$4 sm:$0xff]   ;;  %v1693_v11 = vld [vmem:[%s2488_s1 + $0x350] ss:$8 sps:$4 sm:$0xff]  }
   0x5   :  { %664 = vmatprep.subr.bf16.mxu1 %v1684_v5  ;;  %v1694_v12 = vld [vmem:[%s2488_s1 + $0x244] ss:$8 sps:$4 sm:$0xff]   ;;  %v1698_v14 = vld [vmem:[%s2488_s1 + $0x240] ss:$8 sps:$4 sm:$0xff]   ;;  %v1700_v16 = vld [vmem:[%s2488_s1 + $0x234] ss:$8 sps:$4 sm:$0xff]  }
   0x6   :  { %v1696_v13 = vld [vmem:[%s2488_s1 + $0x344] ss:$8 sps:$4 sm:$0xff]   ;;  %v1699_v15 = vld [vmem:[%s2488_s1 + $0x340] ss:$8 sps:$4 sm:$0xff]   ;;  %v1702_v17 = vld [vmem:[%s2488_s1 + $0x334] ss:$8 sps:$4 sm:$0xff]  }
   0x7   :  { %624 = vmatpush1.bf16.msra.mxu0 %v1686_v6  ;;  %v1704_v18 = vld [vmem:[%s2488_s1 + $0x230] ss:$8 sps:$4 sm:$0xff]   ;;  %v1706_v20 = vld [vmem:[%s2488_s1 + $0x224] ss:$8 sps:$4 sm:$0xff]   ;;  %v1710_v22 = vld [vmem:[%s2488_s1 + $0x220] ss:$8 sps:$4 sm:$0xff]  }
   0x8   :  { %665 = vmatpush1.bf16.msra.mxu1 %v1687_v7  ;;  %625 = vmatprep.subr.bf16.mxu0 %v1688_v8  ;;  %v1705_v19 = vld [vmem:[%s2488_s1 + $0x330] ss:$8 sps:$4 sm:$0xff]   ;;  %v1708_v21 = vld [vmem:[%s2488_s1 + $0x324] ss:$8 sps:$4 sm:$0xff]   ;;  %v1711_v23 = vld [vmem:[%s2488_s1 + $0x320] ss:$8 sps:$4 sm:$0xff]  }
   0x9   :  { %666 = vmatprep.subr.bf16.mxu1 %v1690_v9  ;;  %v1712_v24 = vld [vmem:[%s2488_s1 + $0x214] ss:$8 sps:$4 sm:$0xff]   ;;  %v1716_v26 = vld [vmem:[%s2488_s1 + $0x210] ss:$8 sps:$4 sm:$0xff]   ;;  %v1718_v28 = vld [vmem:[%s2488_s1 + $0x204] ss:$8 sps:$4 sm:$0xff]  }
   0xa   :  { %v1714_v25 = vld [vmem:[%s2488_s1 + $0x314] ss:$8 sps:$4 sm:$0xff]   ;;  %v1717_v27 = vld [vmem:[%s2488_s1 + $0x310] ss:$8 sps:$4 sm:$0xff]   ;;  %v1720_v29 = vld [vmem:[%s2488_s1 + $0x304] ss:$8 sps:$4 sm:$0xff]  }
   0xb   :  { %626 = vmatpush1.bf16.msra.mxu0 %v1692_v10  ;;  %v1722_v30 = vld [vmem:[%s2488_s1 + $0x200] ss:$8 sps:$4 sm:$0xff]   ;;  %v1724_v32 = vld [vmem:[%s2488_s1 + $0x2f4] ss:$8 sps:$4 sm:$0xff]   ;;  %v1728_v34 = vld [vmem:[%s2488_s1 + $0x2f0] ss:$8 sps:$4 sm:$0xff]  }
   0xc   :  { %667 = vmatpush1.bf16.msra.mxu1 %v1693_v11  ;;  %627 = vmatprep.subr.bf16.mxu0 %v1694_v12  ;;  %v1723_v31 = vld [vmem:[%s2488_s1 + $0x300] ss:$8 sps:$4 sm:$0xff]   ;;  %v1726_v33 = vld [vmem:[%s2488_s1 + $0x3f4] ss:$8 sps:$4 sm:$0xff]   ;;  %v1729_v35 = vld [vmem:[%s2488_s1 + $0x3f0] ss:$8 sps:$4 sm:$0xff]  }
   0xd   :  { %668 = vmatprep.subr.bf16.mxu1 %v1696_v13  ;;  %v1730_v36 = vld [vmem:[%s2488_s1 + $0x2e4] ss:$8 sps:$4 sm:$0xff]   ;;  %v1734_v39 = vld [vmem:[%s2488_s1 + $0x2e0] ss:$8 sps:$4 sm:$0xff]   ;;  %v1736_v41 = vld [vmem:[%s2488_s1 + $0x2d4] ss:$8 sps:$4 sm:$0xff]  }
   0xe   :  { %v1732_v37 = vld [vmem:[%s2488_s1 + $0x3e4] ss:$8 sps:$4 sm:$0xff]   ;;  %v1735_v40 = vld [vmem:[%s2488_s1 + $0x3e0] ss:$8 sps:$4 sm:$0xff]   ;;  %v1738_v42 = vld [vmem:[%s2488_s1 + $0x3d4] ss:$8 sps:$4 sm:$0xff]  }
   0xf   :  { %628 = vmatpush1.bf16.msra.mxu0 %v1698_v14  ;;  %v2083_v43 = vshrl.u32 %v42_v38, 7  ;;  %v1740_v44 = vld [vmem:[%s2488_s1 + $0x2d0] ss:$8 sps:$4 sm:$0xff]   ;;  %v1742_v46 = vld [vmem:[%s2488_s1 + $0x2c4] ss:$8 sps:$4 sm:$0xff]  }
  0x10   :  { %669 = vmatpush1.bf16.msra.mxu1 %v1699_v15  ;;  %629 = vmatprep.subr.bf16.mxu0 %v1700_v16  ;;  %v1741_v45 = vld [vmem:[%s2488_s1 + $0x3d0] ss:$8 sps:$4 sm:$0xff]   ;;  %v1744_v47 = vld [vmem:[%s2488_s1 + $0x3c4] ss:$8 sps:$4 sm:$0xff]   ;;  %v1746_v52 = vld [vmem:[%s2488_s1 + $0x2c0] ss:$8 sps:$4 sm:$0xff]  }
  0x11   :  { %670 = vmatprep.subr.bf16.mxu1 %v1702_v17  ;;  %v2098_v48 = vsub.s32 2, %v2083_v43  ;;  %v1621_v49 = vld [vmem:[%s2487_s0 + $0x8] sm:$0xff]   ;;  %v2104_v50 = vsub.s32 6, %v2083_v43  ;;  %v2107_v51 = vsub.s32 0, %v2083_v43  ;;  %v2113_v55 = vsub.s32 4, %v2083_v43 }
  0x12   :  { %v1619_v53 = vunpack.c.l.bf16 %v1621_v49  ;;  %v1620_v54 = vunpack.c.h.bf16 %v1621_v49  ;;  %v1747_v56 = vld [vmem:[%s2488_s1 + $0x3c0] ss:$8 sps:$4 sm:$0xff]   ;;  %v1748_v57 = vld [vmem:[%s2488_s1 + $0x2b4] ss:$8 sps:$4 sm:$0xff]   ;;  %v1752_v1 = vld [vmem:[%s2488_s1 + $0x2b0] ss:$8 sps:$4 sm:$0xff]  }
  0x13   :  { %630 = vmatpush1.bf16.msra.mxu0 %v1704_v18  ;;  %v1750_v58 = vld [vmem:[%s2488_s1 + $0x3b4] ss:$8 sps:$4 sm:$0xff]   ;;  %v1753_v6 = vld [vmem:[%s2488_s1 + $0x3b0] ss:$8 sps:$4 sm:$0xff]   ;;  %v1754_v10 = vld [vmem:[%s2488_s1 + $0x2a4] ss:$8 sps:$4 sm:$0xff]  }
  0x14   :  { %671 = vmatpush1.bf16.msra.mxu1 %v1705_v19  ;;  %631 = vmatprep.subr.bf16.mxu0 %v1706_v20  ;;  %v99_v59 = vrot.slane %v1619_v53, %v2098_v48  ;;  %v115_v60 = vrot.slane %v1620_v54, %v2098_v48  ;;  %v107_v61 = vrot.slane %v1619_v53, %v2104_v50  ;;  %v1756_v11 = vld [vmem:[%s2488_s1 + $0x3a4] ss:$8 sps:$4 sm:$0xff]   ;;  %v1758_v17 = vld [vmem:[%s2488_s1 + $0x2a0] ss:$8 sps:$4 sm:$0xff]   ;;  %v1772_v49 = vld [vmem:[%s2488_s1 + $0x70] ss:$8 sps:$4 sm:$0xff]  }
  0x15   :  { %672 = vmatprep.subr.bf16.mxu1 %v1708_v21  ;;  %v123_v62 = vrot.slane %v1620_v54, %v2104_v50  ;;  %v95_v63 = vrot.slane %v1619_v53, %v2107_v51  ;;  %v111_v0 = vrot.slane %v1620_v54, %v2107_v51  ;;  %v119_v5 = vrot.slane %v1620_v54, %v2113_v55  ;;  %v1759_v20 = vld [vmem:[%s2488_s1 + $0x3a0] ss:$8 sps:$4 sm:$0xff]   ;;  %v1768_v38 = vld [vmem:[%s2488_s1 + $0x384] ss:$8 sps:$4 sm:$0xff]  }
  0x16   :  { %v133_v2 = vpack.c.bf16 %v99_v59, %v99_v59  ;;  %v137_v3 = vpack.c.bf16 %v115_v60, %v115_v60  ;;  %v135_v4 = vpack.c.bf16 %v107_v61, %v107_v61  ;;  %v103_v9 = vrot.slane %v1619_v53, %v2113_v55  ;;  %v1780_v53 = vld [vmem:[%s2488_s1 + $0x64] ss:$8 sps:$4 sm:$0xff]   ;;  %v1789_v59 = vld [vmem:[%s2488_s1 + $0x154] ss:$8 sps:$4 sm:$0xff]   ;;  %v1784_v60 = vld [vmem:[%s2488_s1 + $0x50] ss:$8 sps:$4 sm:$0xff]  }
  0x17   :  { %632 = vmatpush1.bf16.msra.mxu0 %v1710_v22  ;;  %v139_v7 = vpack.c.bf16 %v123_v62, %v123_v62  ;;  %v136_v8 = vpack.c.bf16 %v111_v0, %v111_v0  ;;  %v138_v16 = vpack.c.bf16 %v119_v5, %v119_v5  ;;  %v132_v19 = vpack.c.bf16 %v95_v63, %v95_v63  ;;  %v1783_v54 = vld [vmem:[%s2488_s1 + $0x164] ss:$8 sps:$4 sm:$0xff]   ;;  %v1787_v61 = vld [vmem:[%s2488_s1 + $0x150] ss:$8 sps:$4 sm:$0xff]   ;;  %v1790_v0 = vld [vmem:[%s2488_s1 + $0x40] ss:$8 sps:$4 sm:$0xff]  }
  0x18   :  { %673 = vmatpush1.bf16.msra.mxu1 %v1711_v23  ;;  %633 = vmatprep.subr.bf16.mxu0 %v1712_v24  ;;  %v277_v12 = vunpack.c.l.b16 %v133_v2  ;;  %v281_v13 = vunpack.c.l.b16 %v137_v3  ;;  %v279_v14 = vunpack.c.l.b16 %v135_v4  ;;  %v134_v23 = vpack.c.bf16 %v103_v9, %v103_v9  ;;  %v1792_v62 = vld [vmem:[%s2488_s1 + $0x44] ss:$8 sps:$4 sm:$0xff]   ;;  %v1798_v2 = vld [vmem:[%s2488_s1 + $0x34] ss:$8 sps:$4 sm:$0xff]   ;;  %v1796_v4 = vld [vmem:[%s2488_s1 + $0x30] ss:$8 sps:$4 sm:$0xff]  }
  0x19   :  { %674 = vmatprep.subr.bf16.mxu1 %v1714_v25  ;;  %v283_v15 = vunpack.c.l.b16 %v139_v7  ;;  %v280_v22 = vunpack.c.l.b16 %v136_v8  ;;  %v282_v24 = vunpack.c.l.b16 %v138_v16  ;;  %v1760_v25 = vld [vmem:[%s2488_s1 + $0x294] ss:$8 sps:$4 sm:$0xff]   ;;  %v1795_v63 = vld [vmem:[%s2488_s1 + $0x144] ss:$8 sps:$4 sm:$0xff]   ;;  %v1799_v5 = vld [vmem:[%s2488_s1 + $0x130] ss:$8 sps:$4 sm:$0xff]  }
  0x1a   :  { %v287_v18 = vrot.slane %v281_v13, 7  ;;  %v1801_v3 = vld [vmem:[%s2488_s1 + $0x134] ss:$8 sps:$4 sm:$0xff]   ;;  %v1807_v7 = vld [vmem:[%s2488_s1 + $0x124] ss:$8 sps:$4 sm:$0xff]  }
  0x1b   :  { %634 = vmatpush1.bf16.msra.mxu0 %v1716_v26  ;;  %v291_v21 = vrot.slane %v283_v15, 7  ;;  %v1762_v26 = vld [vmem:[%s2488_s1 + $0x394] ss:$8 sps:$4 sm:$0xff]   ;;  %v1802_v8 = vld [vmem:[%s2488_s1 + $0x20] ss:$8 sps:$4 sm:$0xff]  }
  0x1c   :  { %675 = vmatpush1.bf16.msra.mxu1 %v1717_v27  ;;  %635 = vmatprep.subr.bf16.mxu0 %v1718_v28  ;;  %v288_v27 = vsel %vm285_vm0, %v287_v18, %v277_v12  ;;  %v1805_v9 = vld [vmem:[%s2488_s1 + $0x120] ss:$8 sps:$4 sm:$0xff]   ;;  %v1808_v13 = vld [vmem:[%s2488_s1 + $0x10] ss:$8 sps:$4 sm:$0xff]   ;;  %v1819_v18 = vld [vmem:[%s2488_s1 + $0x104] ss:$8 sps:$4 sm:$0xff]  }
  0x1d   :  { %676 = vmatprep.subr.bf16.mxu1 %v1720_v29  ;;  %v294_v28 = vpack.c.b16 %v288_v27, %v288_v27  ;;  %v292_v29 = vsel %vm285_vm0, %v291_v21, %v279_v14  ;;  %v1614_v12 = vld [vmem:[%s2487_s0] sm:$0xff]   ;;  %v1811_v14 = vld [vmem:[%s2488_s1 + $0x110] ss:$8 sps:$4 sm:$0xff]  }
  0x1e   :  { %v2265_v15 = vunpack.c.l.bf16 %v1614_v12  ;;  %v2267_v16 = vunpack.c.h.bf16 %v1614_v12 }
  0x1f   :  { %636 = vmatpush1.bf16.msra.mxu0 %v1722_v30  ;;  %v1764_v30 = vld [vmem:[%s2488_s1 + $0x290] ss:$8 sps:$4 sm:$0xff]   ;;  %653 = vmatprep.mubr.bf16.mxu0 %v294_v28  ;;  %v1822_v28 = vld [vmem:[%s2488_s1 + $0xf4] ss:$8 sps:$4 sm:$0xff]  }
  0x20   :  { %677 = vmatpush1.bf16.msra.mxu1 %v1723_v31  ;;  %637 = vmatprep.subr.bf16.mxu0 %v1724_v32  ;;  %v296_v31 = vpack.c.b16 %v292_v29, %v292_v29  ;;  %v1765_v32 = vld [vmem:[%s2488_s1 + $0x390] ss:$8 sps:$4 sm:$0xff]   ;;  %v57_v21 = vrot.slane %v2265_v15, %v2104_v50 }
  0x21   :  { %678 = vmatprep.subr.bf16.mxu1 %v1726_v33  ;;  %v276_v33 = vunpack.c.l.b16 %v132_v19  ;;  %v49_v19 = vrot.slane %v2265_v15, %v2098_v48 }
  0x22   :  { %694 = vmatprep.mubr.bf16.mxu1 %v296_v31  ;;  %v85_v27 = vpack.c.bf16 %v57_v21, %v57_v21 }
  0x23   :  { %638 = vmatpush2.bf16.msra.mxu0 %v1728_v34  ;;  %v284_v34 = vrot.slane %v280_v22, 7  ;;  %v73_v22 = vrot.slane %v2267_v16, %v2104_v50  ;;  %v1825_v50 = vld [vmem:[%s2488_s1 + $0x1f4] ss:$8 sps:$4 sm:$0xff]  }
  0x24   :  { %679 = vmatpush2.bf16.msra.mxu1 %v1729_v35  ;;  %639 = vmatprep.subr.bf16.mxu0 %v1730_v36  ;;  %v278_v35 = vunpack.c.l.b16 %v134_v23  ;;  %v289_v36 = vrot.slane %v282_v24, 7  ;;  %v1814_v23 = vld [vmem:[%s2488_s1] ss:$8 sps:$4 sm:$0xff]  }
  0x25   :  { %680 = vmatprep.subr.bf16.mxu1 %v1732_v37  ;;  %v1766_v37 = vld [vmem:[%s2488_s1 + $0x284] ss:$8 sps:$4 sm:$0xff]   ;;  %v1817_v24 = vld [vmem:[%s2488_s1 + $0x100] ss:$8 sps:$4 sm:$0xff]   ;;  %v89_v29 = vpack.c.bf16 %v73_v22, %v73_v22 }
  0x27   :  { %640 = vmatpush2.bf16.msra.mxu0 %v1734_v39  ;;  %v1770_v39 = vld [vmem:[%s2488_s1 + $0x280] ss:$8 sps:$4 sm:$0xff]  }
  0x28   :  { %681 = vmatpush2.bf16.msra.mxu1 %v1735_v40  ;;  %641 = vmatprep.subr.bf16.mxu0 %v1736_v41  ;;  %v1771_v40 = vld [vmem:[%s2488_s1 + $0x380] ss:$8 sps:$4 sm:$0xff]   ;;  %v286_v41 = vsel %vm285_vm0, %v284_v34, %v276_v33  ;;  %v714_v34 = vunpack.c.l.b16 %v85_v27 }
  0x29   :  { %682 = vmatprep.subr.bf16.mxu1 %v1738_v42  ;;  %v290_v42 = vsel %vm285_vm0, %v289_v36, %v278_v35  ;;  %v718_v35 = vunpack.c.l.b16 %v89_v29 }
  0x2b   :  { %642 = vmatpush2.bf16.msra.mxu0 %v1740_v44  ;;  %v1774_v44 = vld [vmem:[%s2488_s1 + $0x74] ss:$8 sps:$4 sm:$0xff]  }
  0x2c   :  { %683 = vmatpush2.bf16.msra.mxu1 %v1741_v45  ;;  %643 = vmatprep.subr.bf16.mxu0 %v1742_v46  ;;  %v1777_v45 = vld [vmem:[%s2488_s1 + $0x174] ss:$8 sps:$4 sm:$0xff]   ;;  %v293_v46 = vpack.c.b16 %v286_v41, %v286_v41  ;;  %v725_v41 = vrot.slane %v718_v35, 7 }
  0x2d   :  { %684 = vmatprep.subr.bf16.mxu1 %v1744_v47  ;;  %v295_v47 = vpack.c.b16 %v290_v42, %v290_v42 }
  0x2f   :  { %644 = vmatpush2.bf16.msra.mxu0 %v1746_v52  ;;  %v1775_v52 = vld [vmem:[%s2488_s1 + $0x170] ss:$8 sps:$4 sm:$0xff]  }
  0x30   :  { %685 = vmatpush2.bf16.msra.mxu1 %v1747_v56  ;;  %645 = vmatprep.subr.bf16.mxu0 %v1748_v57  ;;  %v1778_v56 = vld [vmem:[%s2488_s1 + $0x60] ss:$8 sps:$4 sm:$0xff]  }
  0x31   :  { %686 = vmatprep.subr.bf16.mxu1 %v1750_v58  ;;  %v1781_v57 = vld [vmem:[%s2488_s1 + $0x160] ss:$8 sps:$4 sm:$0xff]   ;;  %v1786_v58 = vld [vmem:[%s2488_s1 + $0x54] ss:$8 sps:$4 sm:$0xff]  }
  0x33   :  { %646 = vmatpush2.bf16.msra.mxu0 %v1752_v1  ;;  %v1793_v1 = vld [vmem:[%s2488_s1 + $0x140] ss:$8 sps:$4 sm:$0xff]  }
  0x34   :  { %687 = vmatpush2.bf16.msra.mxu1 %v1753_v6  ;;  %647 = vmatprep.subr.bf16.mxu0 %v1754_v10  ;;  %v1804_v6 = vld [vmem:[%s2488_s1 + $0x24] ss:$8 sps:$4 sm:$0xff]   ;;  %v1810_v10 = vld [vmem:[%s2488_s1 + $0x14] ss:$8 sps:$4 sm:$0xff]  }
  0x35   :  { %688 = vmatprep.subr.bf16.mxu1 %v1756_v11  ;;  %v1813_v11 = vld [vmem:[%s2488_s1 + $0x114] ss:$8 sps:$4 sm:$0xff]  }
  0x37   :  { %648 = vmatpush2.bf16.msra.mxu0 %v1758_v17  ;;  %v1816_v17 = vld [vmem:[%s2488_s1 + $0x4] ss:$8 sps:$4 sm:$0xff]  }
  0x38   :  { %689 = vmatpush2.bf16.msra.mxu1 %v1759_v20  ;;  %649 = vmatprep.subr.bf16.mxu0 %v1760_v25  ;;  %v65_v20 = vrot.slane %v2267_v16, %v2098_v48  ;;  %v83_v25 = vpack.c.bf16 %v49_v19, %v49_v19  ;;  %v53_v48 = vrot.slane %v2265_v15, %v2113_v55 }
  0x39   :  { %690 = vmatprep.subr.bf16.mxu1 %v1762_v26 }
  0x3a   :  { %v87_v26 = vpack.c.bf16 %v65_v20, %v65_v20  ;;  %v712_v31 = vunpack.c.l.b16 %v83_v25  ;;  %v84_v33 = vpack.c.bf16 %v53_v48, %v53_v48 }
  0x3b   :  { %650 = vmatpush2.bf16.msra.mxu0 %v1764_v30  ;;  %v69_v30 = vrot.slane %v2267_v16, %v2113_v55  ;;  %v1828_v55 = vld [vmem:[%s2488_s1 + $0xe4] ss:$8 sps:$4 sm:$0xff]  }
  0x3c   :  { %691 = vmatpush2.bf16.msra.mxu1 %v1765_v32  ;;  %651 = vmatprep.subr.bf16.mxu0 %v1766_v37  ;;  %v716_v32 = vunpack.c.l.b16 %v87_v26  ;;  %v1820_v37 = vld [vmem:[%s2488_s1 + $0xf0] ss:$8 sps:$4 sm:$0xff]   ;;  %v713_v42 = vunpack.c.l.b16 %v84_v33 }
  0x3d   :  { %692 = vmatprep.subr.bf16.mxu1 %v1768_v38  ;;  %v88_v36 = vpack.c.bf16 %v69_v30, %v69_v30  ;;  %v1823_v38 = vld [vmem:[%s2488_s1 + $0x1f0] ss:$8 sps:$4 sm:$0xff]  }
  0x3f   :  { %652 = vmatpush2.bf16.msra.mxu0 %v1770_v39  ;;  %v721_v39 = vrot.slane %v716_v32, 7 }
  0x40   :  { %693 = vmatpush2.bf16.msra.mxu1 %v1771_v40  ;;  %1055 = vmatprep.subr.bf16.mxu0 %v1774_v44  ;;  %v1831_v40 = vld [vmem:[%s2488_s1 + $0x1e4] ss:$8 sps:$4 sm:$0xff]   ;;  %v717_v44 = vunpack.c.l.b16 %v88_v36 }
  0x41   :  { %1096 = vmatprep.subr.bf16.mxu1 %v1777_v45  ;;  %v722_v45 = vsel %vm285_vm0, %v721_v39, %v712_v31 }
  0x42   :  { %654 = vmatmul.mubr.bf16.vlgmr.msra.gmra.mxu0 %v293_v46  ;;  %v728_v46 = vpack.c.b16 %v722_v45, %v722_v45 }
  0x43   :  { %695 = vmatmul.mubr.bf16.vlgmr.msra.gmra.mxu1 %v295_v47  ;;  %1056 = vmatpush1.bf16.msra.mxu0 %v1772_v49  ;;  %v726_v47 = vsel %vm285_vm0, %v725_v41, %v714_v34  ;;  %v723_v49 = vrot.slane %v717_v44, 7 }
  0x44   :  { %1097 = vmatpush1.bf16.msra.mxu1 %v1775_v52  ;;  %1057 = vmatprep.subr.bf16.mxu0 %v1780_v53  ;;  %v1826_v52 = vld [vmem:[%s2488_s1 + $0xe0] ss:$8 sps:$4 sm:$0xff]  }
  0x45   :  { %1098 = vmatprep.subr.bf16.mxu1 %v1783_v54  ;;  %v1829_v53 = vld [vmem:[%s2488_s1 + $0x1e0] ss:$8 sps:$4 sm:$0xff]   ;;  %v730_v54 = vpack.c.b16 %v726_v47, %v726_v47  ;;  %1087 = vmatprep.mubr.bf16.mxu0 %v728_v46 }
  0x47   :  { %1058 = vmatpush1.bf16.msra.mxu0 %v1778_v56  ;;  %v1834_v56 = vld [vmem:[%s2488_s1 + $0xd4] ss:$8 sps:$4 sm:$0xff]   ;;  %1128 = vmatprep.mubr.bf16.mxu1 %v730_v54 }
  0x48   :  { %1099 = vmatpush1.bf16.msra.mxu1 %v1781_v57  ;;  %1059 = vmatprep.subr.bf16.mxu0 %v1786_v58  ;;  %v1837_v57 = vld [vmem:[%s2488_s1 + $0x1d4] ss:$8 sps:$4 sm:$0xff]   ;;  %v2326_v58 = vsel %vm285_vm0, %v723_v49, %v713_v42 }
  0x49   :  { %1100 = vmatprep.subr.bf16.mxu1 %v1789_v59 }
  0x4b   :  { %1060 = vmatpush1.bf16.msra.mxu0 %v1784_v60 }
  0x4c   :  { %1101 = vmatpush1.bf16.msra.mxu1 %v1787_v61  ;;  %1061 = vmatprep.subr.bf16.mxu0 %v1792_v62 }
  0x4d   :  { %1102 = vmatprep.subr.bf16.mxu1 %v1795_v63 }
  0x4f   :  { %1062 = vmatpush1.bf16.msra.mxu0 %v1790_v0 }
  0x50   :  { %1103 = vmatpush1.bf16.msra.mxu1 %v1793_v1  ;;  %1063 = vmatprep.subr.bf16.mxu0 %v1798_v2 }
  0x51   :  { %1104 = vmatprep.subr.bf16.mxu1 %v1801_v3 }
  0x53   :  { %1064 = vmatpush1.bf16.msra.mxu0 %v1796_v4 }
  0x54   :  { %1105 = vmatpush1.bf16.msra.mxu1 %v1799_v5  ;;  %1065 = vmatprep.subr.bf16.mxu0 %v1804_v6 }
  0x55   :  { %1106 = vmatprep.subr.bf16.mxu1 %v1807_v7 }
  0x57   :  { %1066 = vmatpush1.bf16.msra.mxu0 %v1802_v8 }
  0x58   :  { %1107 = vmatpush1.bf16.msra.mxu1 %v1805_v9  ;;  %1067 = vmatprep.subr.bf16.mxu0 %v1810_v10 }
  0x59   :  { %1108 = vmatprep.subr.bf16.mxu1 %v1813_v11 }
  0x5b   :  { %1068 = vmatpush1.bf16.msra.mxu0 %v1808_v13 }
  0x5c   :  { %1109 = vmatpush1.bf16.msra.mxu1 %v1811_v14  ;;  %1069 = vmatprep.subr.bf16.mxu0 %v1816_v17 }
  0x5d   :  { %1110 = vmatprep.subr.bf16.mxu1 %v1819_v18 }
  0x5f   :  { %1070 = vmatpush1.bf16.msra.mxu0 %v1814_v23 }
  0x60   :  { %1111 = vmatpush1.bf16.msra.mxu1 %v1817_v24  ;;  %1071 = vmatprep.subr.bf16.mxu0 %v1822_v28 }
  0x61   :  { %1112 = vmatprep.subr.bf16.mxu1 %v1825_v50 }
  0x63   :  { %1072 = vmatpush2.bf16.msra.mxu0 %v1820_v37 }
  0x64   :  { %1113 = vmatpush2.bf16.msra.mxu1 %v1823_v38  ;;  %1073 = vmatprep.subr.bf16.mxu0 %v1828_v55 }
  0x65   :  { %1114 = vmatprep.subr.bf16.mxu1 %v1831_v40 }
  0x66   :  { %12 = vsyncpa [#allocation3], 0  ;;  %v1832_v59 = vld [vmem:[%s2488_s1 + $0xd0] ss:$8 sps:$4 sm:$0xff]   ;;  %v1840_v61 = vld [vmem:[%s2488_s1 + $0xc4] ss:$8 sps:$4 sm:$0xff]   ;;  %v61_v1 = vrot.slane %v2267_v16, %v2107_v51  ;;  %v45_v6 = vrot.slane %v2265_v15, %v2107_v51  ;;  %v729_v26 = vpack.c.b16 %v2326_v58, %v2326_v58 }
  0x67   :  { %1074 = vmatpush2.bf16.msra.mxu0 %v1826_v52  ;;  %v1835_v60 = vld [vmem:[%s2488_s1 + $0x1d0] ss:$8 sps:$4 sm:$0xff]   ;;  %v1843_v62 = vld [vmem:[%s2488_s1 + $0x1c4] ss:$8 sps:$4 sm:$0xff]   ;;  %v1838_v63 = vld [vmem:[%s2488_s1 + $0xc0] ss:$8 sps:$4 sm:$0xff]  }
  0x68   :  { %1115 = vmatpush2.bf16.msra.mxu1 %v1829_v53  ;;  %1075 = vmatprep.subr.bf16.mxu0 %v1834_v56  ;;  %v1841_v0 = vld [vmem:[%s2488_s1 + $0x1c0] ss:$8 sps:$4 sm:$0xff]   ;;  %v1846_v2 = vld [vmem:[%s2488_s1 + $0xb4] ss:$8 sps:$4 sm:$0xff]   ;;  %v1844_v4 = vld [vmem:[%s2488_s1 + $0xb0] ss:$8 sps:$4 sm:$0xff]   ;;  %v86_v7 = vpack.c.bf16 %v61_v1, %v61_v1  ;;  %v82_v12 = vpack.c.bf16 %v45_v6, %v45_v6 }
  0x69   :  { %1116 = vmatprep.subr.bf16.mxu1 %v1837_v57  ;;  %v1849_v3 = vld [vmem:[%s2488_s1 + $0x1b4] ss:$8 sps:$4 sm:$0xff]   ;;  %v1847_v5 = vld [vmem:[%s2488_s1 + $0x1b0] ss:$8 sps:$4 sm:$0xff]   ;;  %v1852_v8 = vld [vmem:[%s2488_s1 + $0xa4] ss:$8 sps:$4 sm:$0xff]  }
  0x6a   :  { %v1855_v9 = vld [vmem:[%s2488_s1 + $0x1a4] ss:$8 sps:$4 sm:$0xff]   ;;  %v1850_v10 = vld [vmem:[%s2488_s1 + $0xa0] ss:$8 sps:$4 sm:$0xff]   ;;  %v715_v13 = vunpack.c.l.b16 %v86_v7  ;;  %v1858_v14 = vld [vmem:[%s2488_s1 + $0x94] ss:$8 sps:$4 sm:$0xff]   ;;  %v711_v18 = vunpack.c.l.b16 %v82_v12 }
  0x6b   :  { %1076 = vmatpush2.bf16.msra.mxu0 %v1832_v59  ;;  %v1853_v11 = vld [vmem:[%s2488_s1 + $0x1a0] ss:$8 sps:$4 sm:$0xff]   ;;  %v1861_v15 = vld [vmem:[%s2488_s1 + $0x194] ss:$8 sps:$4 sm:$0xff]   ;;  %v1856_v16 = vld [vmem:[%s2488_s1 + $0x90] ss:$8 sps:$4 sm:$0xff]  }
  0x6c   :  { %1117 = vmatpush2.bf16.msra.mxu1 %v1835_v60  ;;  %1077 = vmatprep.subr.bf16.mxu0 %v1840_v61  ;;  %v1859_v17 = vld [vmem:[%s2488_s1 + $0x190] ss:$8 sps:$4 sm:$0xff]   ;;  %v719_v19 = vrot.slane %v715_v13, 7  ;;  %v1864_v20 = vld [vmem:[%s2488_s1 + $0x84] ss:$8 sps:$4 sm:$0xff]   ;;  %v1914_v41 = vmov 0.0  }
  0x6d   :  { %1118 = vmatprep.subr.bf16.mxu1 %v1843_v62  ;;  %v1867_v21 = vld [vmem:[%s2488_s1 + $0x184] ss:$8 sps:$4 sm:$0xff]   ;;  %v1862_v22 = vld [vmem:[%s2488_s1 + $0x80] ss:$8 sps:$4 sm:$0xff]   ;;  %v1868_v27 = vld [vmem:[%s2490_s3 + $0x78] sm:$0xff]   ;;  %v1145_v61 = vsub.s32 1, %v2083_v43 }
  0x6e   :  { %v1865_v23 = vld [vmem:[%s2488_s1 + $0x180] ss:$8 sps:$4 sm:$0xff]   ;;  %v720_v24 = vsel %vm285_vm0, %v719_v19, %v711_v18  ;;  %v1869_v48 = vld [vmem:[%s2490_s3 + $0x38] sm:$0xff]   ;;  %v1870_v28 = vld [vmem:[%s2490_s3 + $0x70] sm:$0xff]   ;;  %vm1915_vm1 = vmmov 0   ;;  %vm1443_vm2 = vcmask 9216  }
  0x6f   :  { %1078 = vmatpush2.bf16.msra.mxu0 %v1838_v63  ;;  %v727_v25 = vpack.c.b16 %v720_v24, %v720_v24  ;;  %v1871_v50 = vld [vmem:[%s2490_s3 + $0x30] sm:$0xff]   ;;  %v1872_v29 = vld [vmem:[%s2490_s3 + $0x68] sm:$0xff]   ;;  %v1874_v31 = vld [vmem:[%s2490_s3 + $0x60] sm:$0xff]  }
  0x70   :  { %1119 = vmatpush2.bf16.msra.mxu1 %v1841_v0  ;;  %1079 = vmatprep.subr.bf16.mxu0 %v1846_v2  ;;  %v1873_v30 = vld [vmem:[%s2490_s3 + $0x28] sm:$0xff]   ;;  %v1875_v32 = vld [vmem:[%s2490_s3 + $0x20] sm:$0xff]   ;;  %v1876_v33 = vld [vmem:[%s2490_s3 + $0x58] sm:$0xff]  }
  0x71   :  { %1120 = vmatprep.subr.bf16.mxu1 %v1849_v3  ;;  %v1877_v34 = vld [vmem:[%s2490_s3 + $0x18] sm:$0xff]   ;;  %v1878_v35 = vld [vmem:[%s2490_s3 + $0x50] sm:$0xff]   ;;  %v1880_v37 = vld [vmem:[%s2490_s3 + $0x48] sm:$0xff]  }
  0x72   :  { %v1879_v36 = vld [vmem:[%s2490_s3 + $0x10] sm:$0xff]   ;;  %v1881_v38 = vld [vmem:[%s2490_s3 + $0x8] sm:$0xff]   ;;  %v1882_v39 = vld [vmem:[%s2490_s3 + $0x40] sm:$0xff]  }
  0x73   :  { %1080 = vmatpush2.bf16.msra.mxu0 %v1844_v4  ;;  %v1883_v55 = vld [vmem:[%s2490_s3] sm:$0xff]   ;;  %v1884_v40 = vld [vmem:[%s2492_s5 + $0x38] sm:$0xff]   ;;  %v1885_v42 = vld [vmem:[%s2492_s5 + $0x30] sm:$0xff]  }
  0x74   :  { %1121 = vmatpush2.bf16.msra.mxu1 %v1847_v5  ;;  %1081 = vmatprep.subr.bf16.mxu0 %v1852_v8  ;;  %v1886_v44 = vld [vmem:[%s2492_s5 + $0x28] sm:$0xff]   ;;  %v1887_v45 = vld [vmem:[%s2492_s5 + $0x20] sm:$0xff]   ;;  %v1888_v46 = vld [vmem:[%s2492_s5 + $0x18] sm:$0xff]  }
  0x75   :  { %1122 = vmatprep.subr.bf16.mxu1 %v1855_v9  ;;  %v1137_v60 = vld [vmem:[%s2489_s2] sm:$0x3]  ;;  %v1890_v18 = vld [vmem:[%s2492_s5 + $0x8] sm:$0xff]  }
  0x76   :  { %v1142_v2 = vrot.slane %v1137_v60, %v2107_v51  ;;  %v1146_v7 = vrot.slane %v1137_v60, %v1145_v61  ;;  %v1889_v51 = vld [vmem:[%s2492_s5 + $0x10] sm:$0xff]   ;;  %v1891_v19 = vld [vmem:[%s2492_s5] sm:$0xff]   ;;  %s1916_s5 = smov [#allocation2]  }
  0x77   :  { %1082 = vmatpush2.bf16.msra.mxu0 %v1850_v10  ;;  %s1451_s30 = sshll.u32 %s1916_s5, 4  ;;  %s1452_s30 = int_to_ptr.vmem [resolvable:$true] %s1451_s30 }
  0x78   :  { %1123 = vmatpush2.bf16.msra.mxu1 %v1853_v11  ;;  %1083 = vmatprep.subr.bf16.mxu0 %v1858_v14  ;;  %p1897_p1 = scmp.lt.s32.totalorder %s1452_s30, %s1452_s30 }
  0x79   :  { %1124 = vmatprep.subr.bf16.mxu1 %v1861_v15 }
  0x7b   :  { %1084 = vmatpush2.bf16.msra.mxu0 %v1856_v16 }
  0x7c   :  { %1125 = vmatpush2.bf16.msra.mxu1 %v1859_v17  ;;  %1085 = vmatprep.subr.bf16.mxu0 %v1864_v20 }
  0x7d   :  { %1126 = vmatprep.subr.bf16.mxu1 %v1867_v21  ;;  %v1587_v21 = vld [vmem:[%s2491_s4] ss:$0 sm:$0xff]  ;;  %s1892_s4 = scalar_lea.vmem %s1452_s30, 32 }
  0x7e   :  { %p1893_p0 = scmp.ne.s32.totalorder %s1452_s30, %s1892_s4  ;;  %p1898_p2 = scmp.lt.s32.totalorder %s1892_s4, %s1892_s4 }
  0x7f   :  { %1086 = vmatpush2.bf16.msra.mxu0 %v1862_v22 }
  0x80   :  { %1127 = vmatpush2.bf16.msra.mxu1 %v1865_v23  ;;  %1622 = vmatprep.subr.bf16.mxu0 %v1868_v27  ;;  %p1899_p3 = por %p1898_p2, %p1897_p1 }
  0x81   :  { %1653 = vmatprep.subr.bf16.mxu1 %v1914_v41 }
  0x82   :  { %1088 = vmatmul.mubr.bf16.vlgmr.msra.gmra.mxu0 %v727_v25  ;;  %p1900_p4 = pnand %p1899_p3, %p1893_p0 }
  0x83   :  { %1129 = vmatmul.mubr.bf16.vlgmr.msra.gmra.mxu1 %v729_v26  ;;  %1623 = vmatpush3.bf16.msra.mxu0 %v1869_v48 }
  0x84   :  { %1624 = vmatprep.subr.bf16.mxu0 %v1870_v28  ;;  %1654 = vmatpush3.bf16.msra.mxu1 %v1884_v40  ;;  %v1604_v28 = vld [vmem:[%s2493_s6] ss:$0 sm:$0xff] }
  0x85   :  { %1655 = vmatprep.subr.bf16.mxu1 %v1914_v41  ;;  %1669 = vmatprep.mubr.msk.bf16.mxu1 %vm1915_vm1, %v1914_v41 }
  0x87   :  { %1625 = vmatpush3.bf16.msra.mxu0 %v1871_v50 }
  0x88   :  { %1626 = vmatprep.subr.bf16.mxu0 %v1872_v29  ;;  %1656 = vmatpush3.bf16.msra.mxu1 %v1885_v42 }
  0x89   :  { %1657 = vmatprep.subr.bf16.mxu1 %v1914_v41 }
  0x8b   :  { %1627 = vmatpush3.bf16.msra.mxu0 %v1873_v30 }
  0x8c   :  { %1628 = vmatprep.subr.bf16.mxu0 %v1874_v31  ;;  %1658 = vmatpush3.bf16.msra.mxu1 %v1886_v44 }
  0x8d   :  { %1659 = vmatprep.subr.bf16.mxu1 %v1914_v41 }
  0x8f   :  { %1629 = vmatpush3.bf16.msra.mxu0 %v1875_v32 }
  0x90   :  { %1630 = vmatprep.subr.bf16.mxu0 %v1876_v33  ;;  %1660 = vmatpush3.bf16.msra.mxu1 %v1887_v45 }
  0x91   :  { %1661 = vmatprep.subr.bf16.mxu1 %v1914_v41 }
  0x93   :  { %1631 = vmatpush3.bf16.msra.mxu0 %v1877_v34 }
  0x94   :  { %1632 = vmatprep.subr.bf16.mxu0 %v1878_v35  ;;  %1662 = vmatpush3.bf16.msra.mxu1 %v1888_v46 }
  0x95   :  { %1663 = vmatprep.subr.bf16.mxu1 %v1914_v41 }
  0x97   :  { %1633 = vmatpush3.bf16.msra.mxu0 %v1879_v36 }
  0x98   :  { %1634 = vmatprep.subr.bf16.mxu0 %v1880_v37  ;;  %1664 = vmatpush3.bf16.msra.mxu1 %v1889_v51 }
  0x99   :  { %1665 = vmatprep.subr.bf16.mxu1 %v1914_v41 }
  0x9b   :  { %1635 = vmatpush3.bf16.msra.mxu0 %v1881_v38 }
  0x9c   :  { %1636 = vmatprep.subr.bf16.mxu0 %v1882_v39  ;;  %1666 = vmatpush3.bf16.msra.mxu1 %v1890_v18 }
  0x9d   :  { %1667 = vmatprep.subr.bf16.mxu1 %v1914_v41 }
  0x9f   :  { %1637 = vmatpush3.bf16.msra.mxu0 %v1883_v55 }
  0xa0   :  { %1668 = vmatpush3.bf16.msra.mxu1 %v1891_v19 }
 0x102   :  { %v655_v47 = vpop.f32.mrf.mxu0 }
 0x103   :  { %v696_v49 = vpop.f32.mrf.mxu1 }
 0x104   :  { %v697_v52 = vadd.f32 %v696_v49, %v655_v47  ;;  %v657_v53 = vpop.f32.mrf.mxu0 }
 0x105   :  { %v698_v54 = vpop.f32.mrf.mxu1 }
 0x106   :  { %v659_v56 = vpop.f32.mrf.mxu0  ;;  %v699_v0 = vadd.f32 %v698_v54, %v657_v53 }
 0x107   :  { %v700_v57 = vpop.f32.mrf.mxu1 }
 0x108   :  { %v660_v58 = vpop.f32.mrf.mxu0 }
 0x109   :  { %v701_v59 = vpop.f32.mrf.mxu1 }
 0x142   :  { %v1089_v62 = vpop.f32.mrf.mxu0 }
 0x143   :  { %v1130_v63 = vpop.f32.mrf.mxu1  ;;  %v1090_v1 = vadd.f32 %v1089_v62, %v697_v52 }
 0x144   :  { %v1091_v3 = vpop.f32.mrf.mxu0 }
 0x145   :  { %v1132_v4 = vpop.f32.mrf.mxu1  ;;  %v1131_v5 = vadd.f32 %v1130_v63, %v1090_v1  ;;  %v1092_v6 = vadd.f32 %v1091_v3, %v699_v0 }
 0x146   :  { %v1093_v8 = vpop.f32.mrf.mxu0 }
 0x147   :  { %v1134_v9 = vpop.f32.mrf.mxu1  ;;  %v1149_v10 = vadd.f32 %v1142_v2, %v1131_v5  ;;  %v1133_v11 = vadd.f32 %v1132_v4, %v1092_v6 }
 0x148   :  { %v1094_v12 = vpop.f32.mrf.mxu0 }
 0x149   :  { %v1135_v13 = vpop.f32.mrf.mxu1  ;;  %v1150_v14 = vadd.f32 %v1146_v7, %v1133_v11  ;;  %v1151_v15 = vmax.f32 %v1149_v10, 0.0 }
 0x14b   :  { %v1152_v43 = vmax.f32 %v1150_v14, 0.0  ;;  %v1153_v17 = vpack.c.bf16 %v1151_v15, %v1151_v15 }
 0x14d   :  { %v1154_v16 = vpack.c.bf16 %v1152_v43, %v1152_v43 }
 0x14f   :  { %1322 = vmatprep.mubr.bf16.mxu0 %v1154_v16 }
 0x150   :  { %1323 = vmatmul.mubr.bf16.vlgmr.msra.gmra.mxu0 %v1153_v17 }
 0x210   :  { %v1638_v20 = vpop.f32.mrf.mxu0 }
 0x212   :  { %v1639_v22 = vpop.f32.mrf.mxu0 }
 0x213   :  { %v1640_v23 = vadd.f32 %v1639_v22, %v1638_v20 }
 0x214   :  { %v1641_v24 = vpop.f32.mrf.mxu0 }
 0x215   :  { %v1325_v25 = vadd.f32 %v1640_v23, %v1587_v21 }
 0x216   :  { %v1642_v26 = vpop.f32.mrf.mxu0 }
 0x217   :  { %v1330_v27 = vmax.f32 %v1325_v25, 0.0 }
 0x219   :  { %v1331_v48 = vpack.c.bf16 %v1330_v27, %v1330_v27 }
 0x21b   :  { %1670 = vmatmul.mubr.bf16.vlgmr.msra.gmra.mxu1 %v1331_v48 }
 0x2db   :  { %v1437_v50 = vpop.f32.mrf.mxu1 }
 0x2dc   :  { %v1438_v29 = vadd.f32 %v1604_v28, %v1437_v50 }
 0x2dd   :  { %v1671_v30 = vpop.f32.mrf.mxu1 }
 0x2de   :  { %1444 = vst.msk [vmem:[#allocation2] sm:$0x3] %vm1443_vm2, %v1438_v29 }
 0x2df   :  { %v1440_v31 = vpop.f32.mrf.mxu1 }
 0x2e0   :  { %1903 = shalt.err (!%p1900_p4)
}
 0x2e1   :  { %1454 = dma.vmem_to_hbm [thread:$0]  %s1452_s30, 32, %s2494_s7, [#allocation3]   ;;  %v1672_v32 = vpop.f32.mrf.mxu1 }
 0x2e2   :  { %1912 = dma.done.wait [#allocation3], 32  }
 0x2e3   :  { %1913 = vsyncadd [#allocation3], 4294967264 }
 0x2e4   :  { %1458 = vsyncpa [#allocation3], 1 }

</bundles_post_ra>
